<compile_context>
chip_gen: v7x
topology: tpu7x:2x2x1
jax: 0.10.0
libtpu: 0.0.40
codegen_flags: <defaults>
</compile_context>

<pallas_src>
import functools

import jax
import jax.numpy as jnp
import numpy as np
from jax.experimental import pallas as pl
from jax.experimental.pallas import tpu as pltpu


# ---------------------------------------------------------------------------
# small helpers
# ---------------------------------------------------------------------------
def _round_up(x, m):
    return ((x + m - 1) // m) * m


def _pick_row_tile(m):
    """Row tile: 512 for large M; otherwise ~M/2 so the grid has >=2 steps (v7x)."""
    if m > 512:
        return 512
    if m > 256:
        return 256
    if m > 16:
        return _round_up(pl.cdiv(m, 2), 8)
    return m


def im2col_nhwc(x, k):
    """NHWC -> (N*Ho*Wo, C*k*k) patches; column order (channel, kh, kw)."""
    n, h, w, c = x.shape
    ho, wo = h - k + 1, w - k + 1
    slabs = [x[:, i:i + ho, j:j + wo, :] for i in range(k) for j in range(k)]
    p = jnp.stack(slabs, axis=-1)                       # (n, ho, wo, c, k*k)
    return p.reshape(n * ho * wo, c * k * k), (n, ho, wo)


def combine_weights(wr_mat, wi_mat):
    """(K, N) real/imag weights -> (2K, 2N) block matrix [[Wr, Wi], [-Wi, Wr]]."""
    top = jnp.concatenate([wr_mat, wi_mat], axis=1)
    bot = jnp.concatenate([-wi_mat, wr_mat], axis=1)
    return jnp.concatenate([top, bot], axis=0)


def combine_bias(br, bi):
    """apply_complex bias folding: real part gets br - bi, imag part gets br + bi."""
    return jnp.concatenate([br - bi, br + bi])


# ---------------------------------------------------------------------------
# one-time parameter preparation (outside the jitted forward)
# ---------------------------------------------------------------------------
def prepare_params(p):
    """Combined bf16 block weights, folded f32 biases, fc1 rows pre-permuted so the
    NHWC-packed pool2 output flattens with a zero-copy reshape."""
    cd = jnp.bfloat16
    q = {}
    for name in ("c1", "c2"):
        wr, wi = p[f"{name}_wr"], p[f"{name}_wi"]
        oc = wr.shape[0]
        q[f"{name}_w"] = combine_weights(wr.reshape(oc, -1).T,
                                         wi.reshape(oc, -1).T).astype(cd)
        q[f"{name}_b"] = combine_bias(p[f"{name}_br"],
                                      p[f"{name}_bi"]).astype(jnp.float32).reshape(1, -1)

    # fc1: packed flat index f = ((h*W + w)*2 + part)*C + c  (zero-copy NHWC flatten)
    #      torch flatten index   k = c*H*W + h*W + w          (per real/imag part)
    K = p["f1_wr"].shape[1]                     # 3136
    oc2 = p["c2_wr"].shape[0]                   # 64
    hw = int(round((K // oc2) ** 0.5))          # 7
    h = np.arange(hw)[:, None, None, None]
    w = np.arange(hw)[None, :, None, None]
    part = np.arange(2)[None, None, :, None]
    c = np.arange(oc2)[None, None, None, :]
    k = c * (hw * hw) + h * hw + w
    perm = (part * K + k).reshape(-1)           # packed-flat col -> combined-weight row
    w1 = combine_weights(p["f1_wr"].T, p["f1_wi"].T)
    q["f1_w"] = w1[perm, :].astype(cd)
    q["f1_b"] = combine_bias(p["f1_br"], p["f1_bi"]).astype(jnp.float32).reshape(1, -1)

    q["f2_w"] = combine_weights(p["f2_wr"].T, p["f2_wi"].T).astype(cd)
    q["f2_b"] = combine_bias(p["f2_br"], p["f2_bi"]).astype(jnp.float32).reshape(1, -1)
    return q


# ---------------------------------------------------------------------------
# Pallas kernel 1: packed complex matmul  [A_r|A_i] @ [[Wr,Wi],[-Wi,Wr]] + b (+ReLU)
#                  bf16 in, f32 accumulate/epilogue, bf16 out
# ---------------------------------------------------------------------------
def _cmatmul_kernel(relu, a_ref, w_ref, b_ref, o_ref):
    o = jnp.dot(a_ref[...], w_ref[...],
                preferred_element_type=jnp.float32) + b_ref[...]
    if relu:
        o = jnp.maximum(o, 0.0)
    o_ref[...] = o.astype(o_ref.dtype)


def complex_matmul_pallas(a_packed, w_comb, b_comb, relu=True):
    """(M, 2K) packed bf16 activations x (2K, 2N) combined bf16 weight -> (M, 2N) bf16."""
    m, k2 = a_packed.shape
    n2 = w_comb.shape[1]
    tm = _pick_row_tile(m)
    cost = pl.CostEstimate(
        flops=2 * m * k2 * n2,
        transcendentals=0,
        bytes_accessed=(m * k2 + k2 * n2 + m * n2) * 2 + n2 * 4)
    fn = pl.pallas_call(
        functools.partial(_cmatmul_kernel, relu),
        out_shape=jax.ShapeDtypeStruct((m, n2), jnp.bfloat16),
        grid=(pl.cdiv(m, tm),),
        in_specs=[
            pl.BlockSpec((tm, k2), lambda i: (i, 0)),
            pl.BlockSpec((k2, n2), lambda i: (0, 0)),
            pl.BlockSpec((1, n2), lambda i: (0, 0)),
        ],
        out_specs=pl.BlockSpec((tm, n2), lambda i: (i, 0)),
        compiler_params=pltpu.CompilerParams(
            dimension_semantics=("parallel",),
            vmem_limit_bytes=32 * 1024 * 1024),
        cost_estimate=cost,
    )
    return fn(a_packed.astype(jnp.bfloat16),
              w_comb.astype(jnp.bfloat16),
              b_comb.astype(jnp.float32))


# ---------------------------------------------------------------------------
# Pallas kernel 2: complex 2x2 / stride-2 max-modulus pool on packed [r|i] channels
#                  bf16 I/O, |z|^2 in f32
# ---------------------------------------------------------------------------
def _pool_kernel(x_ref, o_ref):
    x = x_ref[...]                          # (rows, 2, wo, 2*cp)  bf16
    cp = x.shape[-1] // 2                   # packed channels (= 2 * complex channels)
    half = cp // 2                          # complex channel count
    cands = (x[:, 0, :, :cp], x[:, 0, :, cp:],    # top-left,  top-right
             x[:, 1, :, :cp], x[:, 1, :, cp:])    # bot-left,  bot-right

    def magsq(z):
        s = z.astype(jnp.float32)
        s = s * s
        # |z|^2 replicated across both packed halves via an XLU lane roll
        return s + pltpu.roll(s, shift=half, axis=s.ndim - 1)

    best = cands[0]
    best_m = magsq(best)
    for cand in cands[1:]:
        m = magsq(cand)
        take = m > best_m                   # strict '>' => first candidate wins ties
        best = jnp.where(take, cand, best)
        best_m = jnp.where(take, m, best_m)
    o_ref[...] = best


def complex_maxpool2x2_pallas(xc):
    """xc: (n, h, w, cp) packed [real|imag] bf16 -> (n, h//2, w//2, cp) bf16."""
    n, h, w, cp = xc.shape
    ho, wo = h // 2, w // 2
    xc = xc[:, :ho * 2, :wo * 2, :]
    rows = n * ho
    # zero-copy reshape: window row -> outer axis, window column -> lane split.
    xw = xc.reshape(rows, 2, wo, 2 * cp)
    tr = min(rows, max(8, _round_up(pl.cdiv(rows, 8), 8)))   # >=2 grid steps (v7x)
    out = pl.pallas_call(
        _pool_kernel,
        out_shape=jax.ShapeDtypeStruct((rows, wo, cp), xc.dtype),
        grid=(pl.cdiv(rows, tr),),
        in_specs=[pl.BlockSpec((tr, 2, wo, 2 * cp), lambda i: (i, 0, 0, 0))],
        out_specs=pl.BlockSpec((tr, wo, cp), lambda i: (i, 0, 0)),
        compiler_params=pltpu.CompilerParams(
            dimension_semantics=("parallel",)),
    )(xw)
    return out.reshape(n, ho, wo, cp)


# ---------------------------------------------------------------------------
# Pallas kernel 3: fused fc1 + complex_relu + fc2 (packed GEMM) + abs + log_softmax
# ---------------------------------------------------------------------------
def _fc_head_kernel(a_ref, w1_ref, b1_ref, w2_ref, b2_ref, o_ref):
    h = jnp.dot(a_ref[...], w1_ref[...],
                preferred_element_type=jnp.float32) + b1_ref[...]
    h = jnp.maximum(h, 0.0)                                     # fc1 + complex_relu
    o = jnp.dot(h.astype(jnp.bfloat16), w2_ref[...],
                preferred_element_type=jnp.float32) + b2_ref[...]
    ncls = o.shape[-1] // 2
    o_r, o_i = o[:, :ncls], o[:, ncls:]
    mag = jnp.sqrt(o_r * o_r + o_i * o_i)                       # abs()
    z = mag - jnp.max(mag, axis=-1, keepdims=True)
    o_ref[...] = z - jnp.log(jnp.sum(jnp.exp(z), axis=-1, keepdims=True))


def fc_head_pallas(a_packed, w1, b1, w2, b2):
    m, k2 = a_packed.shape
    n1 = w1.shape[1]
    n2 = w2.shape[1]
    ncls = n2 // 2
    cost = pl.CostEstimate(
        flops=2 * m * k2 * n1 + 2 * m * n1 * n2,
        transcendentals=3 * m * ncls,
        bytes_accessed=(m * k2 + k2 * n1 + n1 * n2) * 2 + (n1 + n2 + m * ncls) * 4)
    return pl.pallas_call(
        _fc_head_kernel,
        out_shape=jax.ShapeDtypeStruct((m, ncls), jnp.float32),
        grid=(1,),
        in_specs=[
            pl.BlockSpec((m, k2), lambda i: (0, 0)),
            pl.BlockSpec((k2, n1), lambda i: (0, 0)),
            pl.BlockSpec((1, n1), lambda i: (0, 0)),
            pl.BlockSpec((n1, n2), lambda i: (0, 0)),
            pl.BlockSpec((1, n2), lambda i: (0, 0)),
        ],
        out_specs=pl.BlockSpec((m, ncls), lambda i: (0, 0)),
        compiler_params=pltpu.CompilerParams(
            dimension_semantics=("arbitrary",),
            vmem_limit_bytes=32 * 1024 * 1024),
        cost_estimate=cost,
    )(a_packed.astype(jnp.bfloat16), w1, b1, w2, b2)


# ---------------------------------------------------------------------------
# full forward pass (Pallas path, consumes prepared params)
# ---------------------------------------------------------------------------
def cvcnn_forward_pallas(xr, xi, q):
    # NCHW real / imag -> NHWC with packed channels [real | imag], bf16
    xc = jnp.concatenate([jnp.transpose(xr, (0, 2, 3, 1)),
                          jnp.transpose(xi, (0, 2, 3, 1))],
                         axis=-1).astype(jnp.bfloat16)

    # conv1 + complex_relu + complex_max_pool2d(2, 2)
    patches, (n, ho, wo) = im2col_nhwc(xc, 3)
    h1 = complex_matmul_pallas(patches, q['c1_w'], q['c1_b']).reshape(n, ho, wo, -1)
    h1 = complex_maxpool2x2_pallas(h1)

    # conv2 + complex_relu + complex_max_pool2d(2, 2)
    patches, (n, ho, wo) = im2col_nhwc(h1, 2)
    h2 = complex_matmul_pallas(patches, q['c2_w'], q['c2_b']).reshape(n, ho, wo, -1)
    h2 = complex_maxpool2x2_pallas(h2)

    # torch.flatten(x, 1): zero-copy flatten of the NHWC-packed activation;
    # fc1's weight rows were pre-permuted in prepare_params to absorb the layout.
    a = h2.reshape(n, -1)

    # fused fc1 + complex_relu + fc2 + abs + log_softmax
    return fc_head_pallas(a, q['f1_w'], q['f1_b'], q['f2_w'], q['f2_b'])


# ---------------------------------------------------------------------------
# pure-jnp reference (same math / compute dtypes, built from the RAW params,
# torch-order flatten and unpermuted fc1 weight -> also validates prepare_params)
# ---------------------------------------------------------------------------
def cvcnn_forward_ref(xr, xi, p):
    cd = jnp.bfloat16
    xc = jnp.concatenate([jnp.transpose(xr, (0, 2, 3, 1)),
                          jnp.transpose(xi, (0, 2, 3, 1))], axis=-1).astype(cd)

    def conv_block(acts, wr, wi, br, bi, k):
        patches, (n, ho, wo) = im2col_nhwc(acts, k)
        oc = wr.shape[0]
        w = combine_weights(wr.reshape(oc, -1).T, wi.reshape(oc, -1).T).astype(cd)
        b = combine_bias(br, bi).astype(jnp.float32)
        o = jnp.dot(patches.astype(cd), w, preferred_element_type=jnp.float32) + b[None]
        o = jnp.maximum(o, 0.0).astype(cd)
        return o.reshape(n, ho, wo, 2 * oc)

    def pool(x4):
        n, h, w, cp = x4.shape
        half = cp // 2
        ho, wo = h // 2, w // 2
        x = x4[:, :2 * ho, :2 * wo, :].reshape(n, ho, 2, wo, 2, cp)
        cands = (x[:, :, 0, :, 0, :], x[:, :, 0, :, 1, :],
                 x[:, :, 1, :, 0, :], x[:, :, 1, :, 1, :])

        def magsq(z):
            zf = z.astype(jnp.float32)
            return zf[..., :half] ** 2 + zf[..., half:] ** 2

        best = cands[0]
        best_m = magsq(best)
        for cand in cands[1:]:
            m = magsq(cand)
            take = m > best_m
            best = jnp.where(jnp.concatenate([take, take], axis=-1), cand, best)
            best_m = jnp.where(take, m, best_m)
        return best

    x1 = pool(conv_block(xc, p['c1_wr'], p['c1_wi'], p['c1_br'], p['c1_bi'], 3))
    x2 = pool(conv_block(x1, p['c2_wr'], p['c2_wi'], p['c2_br'], p['c2_bi'], 2))

    # torch.flatten(x, 1): (c, h, w) order per real/imag part
    n = x2.shape[0]
    oc = x2.shape[-1] // 2
    fr = jnp.transpose(x2[..., :oc], (0, 3, 1, 2)).reshape(n, -1)
    fi = jnp.transpose(x2[..., oc:], (0, 3, 1, 2)).reshape(n, -1)
    a = jnp.concatenate([fr, fi], axis=-1)

    w1 = combine_weights(p['f1_wr'].T, p['f1_wi'].T).astype(cd)
    b1 = combine_bias(p['f1_br'], p['f1_bi']).astype(jnp.float32)
    h = jnp.dot(a.astype(cd), w1, preferred_element_type=jnp.float32) + b1[None]
    h = jnp.maximum(h, 0.0).astype(cd)

    w2 = combine_weights(p['f2_wr'].T, p['f2_wi'].T).astype(cd)
    b2 = combine_bias(p['f2_br'], p['f2_bi']).astype(jnp.float32)
    o = jnp.dot(h, w2, preferred_element_type=jnp.float32) + b2[None]
    ncls = o.shape[-1] // 2
    mag = jnp.sqrt(o[:, :ncls] ** 2 + o[:, ncls:] ** 2)
    return jax.nn.log_softmax(mag, axis=-1)


# ---------------------------------------------------------------------------
# deterministic parameter init (PyTorch-default-like uniform(-1/sqrt(fan_in)))
# ---------------------------------------------------------------------------
def init_params(key):
    def uinit(k, shape, fan_in):
        b = 1.0 / float(np.sqrt(fan_in))
        return jax.random.uniform(k, shape, jnp.float32, -b, b)

    keys = jax.random.split(key, 16)
    p = {}
    p['c1_wr'] = uinit(keys[0], (64, 3, 3, 3), 3 * 3 * 3)
    p['c1_wi'] = uinit(keys[1], (64, 3, 3, 3), 3 * 3 * 3)
    p['c1_br'] = uinit(keys[2], (64,), 3 * 3 * 3)
    p['c1_bi'] = uinit(keys[3], (64,), 3 * 3 * 3)
    p['c2_wr'] = uinit(keys[4], (64, 64, 2, 2), 64 * 2 * 2)
    p['c2_wi'] = uinit(keys[5], (64, 64, 2, 2), 64 * 2 * 2)
    p['c2_br'] = uinit(keys[6], (64,), 64 * 2 * 2)
    p['c2_bi'] = uinit(keys[7], (64,), 64 * 2 * 2)
    p['f1_wr'] = uinit(keys[8], (128, 3136), 3136)
    p['f1_wi'] = uinit(keys[9], (128, 3136), 3136)
    p['f1_br'] = uinit(keys[10], (128,), 3136)
    p['f1_bi'] = uinit(keys[11], (128,), 3136)
    p['f2_wr'] = uinit(keys[12], (10, 128), 128)
    p['f2_wi'] = uinit(keys[13], (10, 128), 128)
    p['f2_br'] = uinit(keys[14], (10,), 128)
    p['f2_bi'] = uinit(keys[15], (10,), 128)
    return p


if __name__ == "__main__":
    key = jax.random.PRNGKey(0)
    kx, kp = jax.random.split(key)
    k1, k2 = jax.random.split(kx)
    # complex CIFAR-like input: (batch=2, C=3, H=32, W=32), real + imag parts
    xr = jax.random.normal(k1, (2, 3, 32, 32), jnp.float32)
    xi = jax.random.normal(k2, (2, 3, 32, 32), jnp.float32)
    params = init_params(kp)
    prepped = prepare_params(params)          # one-time combined bf16 weights / biases

    fwd_pallas = jax.jit(cvcnn_forward_pallas)
    out = jax.block_until_ready(fwd_pallas(xr, xi, prepped))
    assert out.shape == (2, 10)

    fwd_ref = jax.jit(cvcnn_forward_ref)
    ref = jax.block_until_ready(fwd_ref(xr, xi, params))
    np.testing.assert_allclose(np.asarray(out, np.float32),
                               np.asarray(ref, np.float32),
                               atol=2e-2, rtol=2e-2)
    print("KERNEL_OK")
</pallas_src>

<mosaic_0001>
module attributes {stable_mosaic.version = 11 : i64} {
  func.func @_cmatmul_kernel(%arg0: i32, %arg1: memref<512x54xbf16, #tpu.memory_space<vmem>>, %arg2: memref<54x128xbf16, #tpu.memory_space<vmem>>, %arg3: memref<1x128xf32, #tpu.memory_space<vmem>>, %arg4: memref<512x128xbf16, #tpu.memory_space<vmem>>) attributes {dimension_semantics = [#tpu.dimension_semantics<parallel>], iteration_bounds = array<i64: 4>, scalar_prefetch = 0 : i64, scratch_operands = 0 : i64, tpu.core_type = #tpu.core_type<tc>, window_params = [{transform_indices = @transform_0, window_bounds = array<i64: 512, 54>}, {pipeline_mode = #tpu.pipeline_mode<synchronous>, transform_indices = @transform_1, window_bounds = array<i64: 54, 128>}, {pipeline_mode = #tpu.pipeline_mode<synchronous>, transform_indices = @transform_2, window_bounds = array<i64: 1, 128>}, {transform_indices = @transform_3, window_bounds = array<i64: 512, 128>}]} {
    %c0 = arith.constant 0 : index
    %c0_0 = arith.constant 0 : index
    %0 = vector.load %arg1[%c0, %c0_0] : memref<512x54xbf16, #tpu.memory_space<vmem>>, vector<512x54xbf16>
    %c0_1 = arith.constant 0 : index
    %c0_2 = arith.constant 0 : index
    %1 = vector.load %arg2[%c0_1, %c0_2] : memref<54x128xbf16, #tpu.memory_space<vmem>>, vector<54x128xbf16>
    %cst = arith.constant dense<0.000000e+00> : vector<512x128xf32>
    %2 = tpu.matmul %0, %1, %cst {dimension_numbers = #tpu.dot_dimension_numbers<[1], [0], [0], [1], [0, 0, 1, 1], [], []>} : vector<512x54xbf16>, vector<54x128xbf16>, vector<512x128xf32> -> vector<512x128xf32>
    %c0_3 = arith.constant 0 : index
    %c0_4 = arith.constant 0 : index
    %3 = vector.load %arg3[%c0_3, %c0_4] : memref<1x128xf32, #tpu.memory_space<vmem>>, vector<1x128xf32>
    %4 = vector.broadcast %3 : vector<1x128xf32> to vector<512x128xf32>
    %5 = arith.addf %2, %4 : vector<512x128xf32>
    %cst_5 = arith.constant 0.000000e+00 : f32
    %6 = vector.broadcast %cst_5 : f32 to vector<512x128xf32>
    %7 = arith.maximumf %5, %6 : vector<512x128xf32>
    %8 = arith.truncf %7 : vector<512x128xf32> to vector<512x128xbf16>
    %c0_6 = arith.constant 0 : index
    %c0_7 = arith.constant 0 : index
    %9 = vector.load %arg4[%c0_6, %c0_7] : memref<512x128xbf16, #tpu.memory_space<vmem>>, vector<512x128xbf16>
    tpu.vector_store %arg4[%c0_6, %c0_7], %8 {strides = array<i32>} : memref<512x128xbf16, #tpu.memory_space<vmem>>, vector<512x128xbf16>,
    return
  }
  func.func @transform_0(%arg0: i32) -> (i32, i32) {
    %c0_i32 = arith.constant 0 : i32
    %c0_i32_0 = arith.constant 0 : i32
    return %arg0, %c0_i32 : i32, i32
  }
  func.func @transform_1(%arg0: i32) -> (i32, i32) {
    %c0_i32 = arith.constant 0 : i32
    %c0_i32_0 = arith.constant 0 : i32
    %c0_i32_1 = arith.constant 0 : i32
    return %c0_i32, %c0_i32_0 : i32, i32
  }
  func.func @transform_2(%arg0: i32) -> (i32, i32) {
    %c0_i32 = arith.constant 0 : i32
    %c0_i32_0 = arith.constant 0 : i32
    %c0_i32_1 = arith.constant 0 : i32
    return %c0_i32, %c0_i32_0 : i32, i32
  }
  func.func @transform_3(%arg0: i32) -> (i32, i32) {
    %c0_i32 = arith.constant 0 : i32
    %c0_i32_0 = arith.constant 0 : i32
    return %arg0, %c0_i32 : i32, i32
  }
}

module attributes {stable_mosaic.version = 11 : i64} {
  func.func @_pool_kernel(%arg0: i32, %arg1: memref<8x2x15x256xbf16, #tpu.memory_space<vmem>>, %arg2: memref<8x15x128xbf16, #tpu.memory_space<vmem>>) attributes {dimension_semantics = [#tpu.dimension_semantics<parallel>], iteration_bounds = array<i64: 4>, scalar_prefetch = 0 : i64, scratch_operands = 0 : i64, tpu.core_type = #tpu.core_type<tc>, window_params = [{transform_indices = @transform_0, window_bounds = array<i64: 8, 2, 15, 256>}, {transform_indices = @transform_1, window_bounds = array<i64: 8, 15, 128>}]} {
    %c0 = arith.constant 0 : index
    %c0_0 = arith.constant 0 : index
    %c0_1 = arith.constant 0 : index
    %c0_2 = arith.constant 0 : index
    %0 = vector.load %arg1[%c0, %c0_0, %c0_1, %c0_2] : memref<8x2x15x256xbf16, #tpu.memory_space<vmem>>, vector<8x2x15x256xbf16>
    %1 = vector.extract_strided_slice %0 {offsets = [0, 0, 0, 0], sizes = [8, 1, 15, 128], strides = [1, 1, 1, 1]} : vector<8x2x15x256xbf16> to vector<8x1x15x128xbf16>
    %2 = vector.shape_cast %1 : vector<8x1x15x128xbf16> to vector<8x15x128xbf16>
    %3 = vector.extract_strided_slice %0 {offsets = [0, 0, 0, 128], sizes = [8, 1, 15, 128], strides = [1, 1, 1, 1]} : vector<8x2x15x256xbf16> to vector<8x1x15x128xbf16>
    %4 = vector.shape_cast %3 : vector<8x1x15x128xbf16> to vector<8x15x128xbf16>
    %5 = vector.extract_strided_slice %0 {offsets = [0, 1, 0, 0], sizes = [8, 1, 15, 128], strides = [1, 1, 1, 1]} : vector<8x2x15x256xbf16> to vector<8x1x15x128xbf16>
    %6 = vector.shape_cast %5 : vector<8x1x15x128xbf16> to vector<8x15x128xbf16>
    %7 = vector.extract_strided_slice %0 {offsets = [0, 1, 0, 128], sizes = [8, 1, 15, 128], strides = [1, 1, 1, 1]} : vector<8x2x15x256xbf16> to vector<8x1x15x128xbf16>
    %8 = vector.shape_cast %7 : vector<8x1x15x128xbf16> to vector<8x15x128xbf16>
    %9 = arith.extf %2 : vector<8x15x128xbf16> to vector<8x15x128xf32>
    %10 = arith.mulf %9, %9 : vector<8x15x128xf32>
    %c64_i32 = arith.constant 64 : i32
    %11 = tpu.dynamic_rotate %10 by %c64_i32 dim 2 : vector<8x15x128xf32>, i32 -> vector<8x15x128xf32>
    %12 = arith.addf %10, %11 : vector<8x15x128xf32>
    %13 = arith.extf %4 : vector<8x15x128xbf16> to vector<8x15x128xf32>
    %14 = arith.mulf %13, %13 : vector<8x15x128xf32>
    %c64_i32_3 = arith.constant 64 : i32
    %15 = tpu.dynamic_rotate %14 by %c64_i32_3 dim 2 : vector<8x15x128xf32>, i32 -> vector<8x15x128xf32>
    %16 = arith.addf %14, %15 : vector<8x15x128xf32>
    %17 = arith.cmpf ogt, %16, %12 : vector<8x15x128xf32>
    %18 = arith.select %17, %4, %2 : vector<8x15x128xi1>, vector<8x15x128xbf16>
    %19 = arith.select %17, %16, %12 : vector<8x15x128xi1>, vector<8x15x128xf32>
    %20 = arith.extf %6 : vector<8x15x128xbf16> to vector<8x15x128xf32>
    %21 = arith.mulf %20, %20 : vector<8x15x128xf32>
    %c64_i32_4 = arith.constant 64 : i32
    %22 = tpu.dynamic_rotate %21 by %c64_i32_4 dim 2 : vector<8x15x128xf32>, i32 -> vector<8x15x128xf32>
    %23 = arith.addf %21, %22 : vector<8x15x128xf32>
    %24 = arith.cmpf ogt, %23, %19 : vector<8x15x128xf32>
    %25 = arith.select %24, %6, %18 : vector<8x15x128xi1>, vector<8x15x128xbf16>
    %26 = arith.select %24, %23, %19 : vector<8x15x128xi1>, vector<8x15x128xf32>
    %27 = arith.extf %8 : vector<8x15x128xbf16> to vector<8x15x128xf32>
    %28 = arith.mulf %27, %27 : vector<8x15x128xf32>
    %c64_i32_5 = arith.constant 64 : i32
    %29 = tpu.dynamic_rotate %28 by %c64_i32_5 dim 2 : vector<8x15x128xf32>, i32 -> vector<8x15x128xf32>
    %30 = arith.addf %28, %29 : vector<8x15x128xf32>
    %31 = arith.cmpf ogt, %30, %26 : vector<8x15x128xf32>
    %32 = arith.select %31, %8, %25 : vector<8x15x128xi1>, vector<8x15x128xbf16>
    %c0_6 = arith.constant 0 : index
    %c0_7 = arith.constant 0 : index
    %c0_8 = arith.constant 0 : index
    %33 = vector.load %arg2[%c0_6, %c0_7, %c0_8] : memref<8x15x128xbf16, #tpu.memory_space<vmem>>, vector<8x15x128xbf16>
    tpu.vector_store %arg2[%c0_6, %c0_7, %c0_8], %32 {strides = array<i32>} : memref<8x15x128xbf16, #tpu.memory_space<vmem>>, vector<8x15x128xbf16>,
    return
  }
  func.func @transform_0(%arg0: i32) -> (i32, i32, i32, i32) {
    %c0_i32 = arith.constant 0 : i32
    %c0_i32_0 = arith.constant 0 : i32
    %c0_i32_1 = arith.constant 0 : i32
    %c0_i32_2 = arith.constant 0 : i32
    return %arg0, %c0_i32, %c0_i32_0, %c0_i32_1 : i32, i32, i32, i32
  }
  func.func @transform_1(%arg0: i32) -> (i32, i32, i32) {
    %c0_i32 = arith.constant 0 : i32
    %c0_i32_0 = arith.constant 0 : i32
    %c0_i32_1 = arith.constant 0 : i32
    return %arg0, %c0_i32, %c0_i32_0 : i32, i32, i32
  }
}

module attributes {stable_mosaic.version = 11 : i64} {
  func.func @_cmatmul_kernel(%arg0: i32, %arg1: memref<256x512xbf16, #tpu.memory_space<vmem>>, %arg2: memref<512x128xbf16, #tpu.memory_space<vmem>>, %arg3: memref<1x128xf32, #tpu.memory_space<vmem>>, %arg4: memref<256x128xbf16, #tpu.memory_space<vmem>>) attributes {dimension_semantics = [#tpu.dimension_semantics<parallel>], iteration_bounds = array<i64: 2>, scalar_prefetch = 0 : i64, scratch_operands = 0 : i64, tpu.core_type = #tpu.core_type<tc>, window_params = [{transform_indices = @transform_0, window_bounds = array<i64: 256, 512>}, {pipeline_mode = #tpu.pipeline_mode<synchronous>, transform_indices = @transform_1, window_bounds = array<i64: 512, 128>}, {pipeline_mode = #tpu.pipeline_mode<synchronous>, transform_indices = @transform_2, window_bounds = array<i64: 1, 128>}, {transform_indices = @transform_3, window_bounds = array<i64: 256, 128>}]} {
    %c0 = arith.constant 0 : index
    %c0_0 = arith.constant 0 : index
    %0 = vector.load %arg1[%c0, %c0_0] : memref<256x512xbf16, #tpu.memory_space<vmem>>, vector<256x512xbf16>
    %c0_1 = arith.constant 0 : index
    %c0_2 = arith.constant 0 : index
    %1 = vector.load %arg2[%c0_1, %c0_2] : memref<512x128xbf16, #tpu.memory_space<vmem>>, vector<512x128xbf16>
    %cst = arith.constant dense<0.000000e+00> : vector<256x128xf32>
    %2 = tpu.matmul %0, %1, %cst {dimension_numbers = #tpu.dot_dimension_numbers<[1], [0], [0], [1], [0, 0, 1, 1], [], []>} : vector<256x512xbf16>, vector<512x128xbf16>, vector<256x128xf32> -> vector<256x128xf32>
    %c0_3 = arith.constant 0 : index
    %c0_4 = arith.constant 0 : index
    %3 = vector.load %arg3[%c0_3, %c0_4] : memref<1x128xf32, #tpu.memory_space<vmem>>, vector<1x128xf32>
    %4 = vector.broadcast %3 : vector<1x128xf32> to vector<256x128xf32>
    %5 = arith.addf %2, %4 : vector<256x128xf32>
    %cst_5 = arith.constant 0.000000e+00 : f32
    %6 = vector.broadcast %cst_5 : f32 to vector<256x128xf32>
    %7 = arith.maximumf %5, %6 : vector<256x128xf32>
    %8 = arith.truncf %7 : vector<256x128xf32> to vector<256x128xbf16>
    %c0_6 = arith.constant 0 : index
    %c0_7 = arith.constant 0 : index
    %9 = vector.load %arg4[%c0_6, %c0_7] : memref<256x128xbf16, #tpu.memory_space<vmem>>, vector<256x128xbf16>
    tpu.vector_store %arg4[%c0_6, %c0_7], %8 {strides = array<i32>} : memref<256x128xbf16, #tpu.memory_space<vmem>>, vector<256x128xbf16>,
    return
  }
  func.func @transform_0(%arg0: i32) -> (i32, i32) {
    %c0_i32 = arith.constant 0 : i32
    %c0_i32_0 = arith.constant 0 : i32
    return %arg0, %c0_i32 : i32, i32
  }
  func.func @transform_1(%arg0: i32) -> (i32, i32) {
    %c0_i32 = arith.constant 0 : i32
    %c0_i32_0 = arith.constant 0 : i32
    %c0_i32_1 = arith.constant 0 : i32
    return %c0_i32, %c0_i32_0 : i32, i32
  }
  func.func @transform_2(%arg0: i32) -> (i32, i32) {
    %c0_i32 = arith.constant 0 : i32
    %c0_i32_0 = arith.constant 0 : i32
    %c0_i32_1 = arith.constant 0 : i32
    return %c0_i32, %c0_i32_0 : i32, i32
  }
  func.func @transform_3(%arg0: i32) -> (i32, i32) {
    %c0_i32 = arith.constant 0 : i32
    %c0_i32_0 = arith.constant 0 : i32
    return %arg0, %c0_i32 : i32, i32
  }
}

module attributes {stable_mosaic.version = 11 : i64} {
  func.func @_pool_kernel(%arg0: i32, %arg1: memref<8x2x7x256xbf16, #tpu.memory_space<vmem>>, %arg2: memref<8x7x128xbf16, #tpu.memory_space<vmem>>) attributes {dimension_semantics = [#tpu.dimension_semantics<parallel>], iteration_bounds = array<i64: 2>, scalar_prefetch = 0 : i64, scratch_operands = 0 : i64, tpu.core_type = #tpu.core_type<tc>, window_params = [{transform_indices = @transform_0, window_bounds = array<i64: 8, 2, 7, 256>}, {transform_indices = @transform_1, window_bounds = array<i64: 8, 7, 128>}]} {
    %c0 = arith.constant 0 : index
    %c0_0 = arith.constant 0 : index
    %c0_1 = arith.constant 0 : index
    %c0_2 = arith.constant 0 : index
    %0 = vector.load %arg1[%c0, %c0_0, %c0_1, %c0_2] : memref<8x2x7x256xbf16, #tpu.memory_space<vmem>>, vector<8x2x7x256xbf16>
    %1 = vector.extract_strided_slice %0 {offsets = [0, 0, 0, 0], sizes = [8, 1, 7, 128], strides = [1, 1, 1, 1]} : vector<8x2x7x256xbf16> to vector<8x1x7x128xbf16>
    %2 = vector.shape_cast %1 : vector<8x1x7x128xbf16> to vector<8x7x128xbf16>
    %3 = vector.extract_strided_slice %0 {offsets = [0, 0, 0, 128], sizes = [8, 1, 7, 128], strides = [1, 1, 1, 1]} : vector<8x2x7x256xbf16> to vector<8x1x7x128xbf16>
    %4 = vector.shape_cast %3 : vector<8x1x7x128xbf16> to vector<8x7x128xbf16>
    %5 = vector.extract_strided_slice %0 {offsets = [0, 1, 0, 0], sizes = [8, 1, 7, 128], strides = [1, 1, 1, 1]} : vector<8x2x7x256xbf16> to vector<8x1x7x128xbf16>
    %6 = vector.shape_cast %5 : vector<8x1x7x128xbf16> to vector<8x7x128xbf16>
    %7 = vector.extract_strided_slice %0 {offsets = [0, 1, 0, 128], sizes = [8, 1, 7, 128], strides = [1, 1, 1, 1]} : vector<8x2x7x256xbf16> to vector<8x1x7x128xbf16>
    %8 = vector.shape_cast %7 : vector<8x1x7x128xbf16> to vector<8x7x128xbf16>
    %9 = arith.extf %2 : vector<8x7x128xbf16> to vector<8x7x128xf32>
    %10 = arith.mulf %9, %9 : vector<8x7x128xf32>
    %c64_i32 = arith.constant 64 : i32
    %11 = tpu.dynamic_rotate %10 by %c64_i32 dim 2 : vector<8x7x128xf32>, i32 -> vector<8x7x128xf32>
    %12 = arith.addf %10, %11 : vector<8x7x128xf32>
    %13 = arith.extf %4 : vector<8x7x128xbf16> to vector<8x7x128xf32>
    %14 = arith.mulf %13, %13 : vector<8x7x128xf32>
    %c64_i32_3 = arith.constant 64 : i32
    %15 = tpu.dynamic_rotate %14 by %c64_i32_3 dim 2 : vector<8x7x128xf32>, i32 -> vector<8x7x128xf32>
    %16 = arith.addf %14, %15 : vector<8x7x128xf32>
    %17 = arith.cmpf ogt, %16, %12 : vector<8x7x128xf32>
    %18 = arith.select %17, %4, %2 : vector<8x7x128xi1>, vector<8x7x128xbf16>
    %19 = arith.select %17, %16, %12 : vector<8x7x128xi1>, vector<8x7x128xf32>
    %20 = arith.extf %6 : vector<8x7x128xbf16> to vector<8x7x128xf32>
    %21 = arith.mulf %20, %20 : vector<8x7x128xf32>
    %c64_i32_4 = arith.constant 64 : i32
    %22 = tpu.dynamic_rotate %21 by %c64_i32_4 dim 2 : vector<8x7x128xf32>, i32 -> vector<8x7x128xf32>
    %23 = arith.addf %21, %22 : vector<8x7x128xf32>
    %24 = arith.cmpf ogt, %23, %19 : vector<8x7x128xf32>
    %25 = arith.select %24, %6, %18 : vector<8x7x128xi1>, vector<8x7x128xbf16>
    %26 = arith.select %24, %23, %19 : vector<8x7x128xi1>, vector<8x7x128xf32>
    %27 = arith.extf %8 : vector<8x7x128xbf16> to vector<8x7x128xf32>
    %28 = arith.mulf %27, %27 : vector<8x7x128xf32>
    %c64_i32_5 = arith.constant 64 : i32
    %29 = tpu.dynamic_rotate %28 by %c64_i32_5 dim 2 : vector<8x7x128xf32>, i32 -> vector<8x7x128xf32>
    %30 = arith.addf %28, %29 : vector<8x7x128xf32>
    %31 = arith.cmpf ogt, %30, %26 : vector<8x7x128xf32>
    %32 = arith.select %31, %8, %25 : vector<8x7x128xi1>, vector<8x7x128xbf16>
    %c0_6 = arith.constant 0 : index
    %c0_7 = arith.constant 0 : index
    %c0_8 = arith.constant 0 : index
    %33 = vector.load %arg2[%c0_6, %c0_7, %c0_8] : memref<8x7x128xbf16, #tpu.memory_space<vmem>>, vector<8x7x128xbf16>
    tpu.vector_store %arg2[%c0_6, %c0_7, %c0_8], %32 {strides = array<i32>} : memref<8x7x128xbf16, #tpu.memory_space<vmem>>, vector<8x7x128xbf16>,
    return
  }
  func.func @transform_0(%arg0: i32) -> (i32, i32, i32, i32) {
    %c0_i32 = arith.constant 0 : i32
    %c0_i32_0 = arith.constant 0 : i32
    %c0_i32_1 = arith.constant 0 : i32
    %c0_i32_2 = arith.constant 0 : i32
    return %arg0, %c0_i32, %c0_i32_0, %c0_i32_1 : i32, i32, i32, i32
  }
  func.func @transform_1(%arg0: i32) -> (i32, i32, i32) {
    %c0_i32 = arith.constant 0 : i32
    %c0_i32_0 = arith.constant 0 : i32
    %c0_i32_1 = arith.constant 0 : i32
    return %arg0, %c0_i32, %c0_i32_0 : i32, i32, i32
  }
}

module attributes {stable_mosaic.version = 11 : i64} {
  func.func @_fc_head_kernel(%arg0: i32, %arg1: memref<2x6272xbf16, #tpu.memory_space<vmem>>, %arg2: memref<6272x256xbf16, #tpu.memory_space<vmem>>, %arg3: memref<1x256xf32, #tpu.memory_space<vmem>>, %arg4: memref<256x20xbf16, #tpu.memory_space<vmem>>, %arg5: memref<1x20xf32, #tpu.memory_space<vmem>>, %arg6: memref<2x10xf32, #tpu.memory_space<vmem>>) attributes {dimension_semantics = [#tpu.dimension_semantics<arbitrary>], iteration_bounds = array<i64: 1>, scalar_prefetch = 0 : i64, scratch_operands = 0 : i64, tpu.core_type = #tpu.core_type<tc>, window_params = [{pipeline_mode = #tpu.pipeline_mode<synchronous>, transform_indices = @transform_0, window_bounds = array<i64: 2, 6272>}, {pipeline_mode = #tpu.pipeline_mode<synchronous>, transform_indices = @transform_1, window_bounds = array<i64: 6272, 256>}, {pipeline_mode = #tpu.pipeline_mode<synchronous>, transform_indices = @transform_2, window_bounds = array<i64: 1, 256>}, {pipeline_mode = #tpu.pipeline_mode<synchronous>, transform_indices = @transform_3, window_bounds = array<i64: 256, 20>}, {pipeline_mode = #tpu.pipeline_mode<synchronous>, transform_indices = @transform_4, window_bounds = array<i64: 1, 20>}, {pipeline_mode = #tpu.pipeline_mode<synchronous>, transform_indices = @transform_5, window_bounds = array<i64: 2, 10>}]} {
    %c0 = arith.constant 0 : index
    %c0_0 = arith.constant 0 : index
    %0 = vector.load %arg1[%c0, %c0_0] : memref<2x6272xbf16, #tpu.memory_space<vmem>>, vector<2x6272xbf16>
    %c0_1 = arith.constant 0 : index
    %c0_2 = arith.constant 0 : index
    %1 = vector.load %arg2[%c0_1, %c0_2] : memref<6272x256xbf16, #tpu.memory_space<vmem>>, vector<6272x256xbf16>
    %cst = arith.constant dense<0.000000e+00> : vector<2x256xf32>
    %2 = tpu.matmul %0, %1, %cst {dimension_numbers = #tpu.dot_dimension_numbers<[1], [0], [0], [1], [0, 0, 1, 1], [], []>} : vector<2x6272xbf16>, vector<6272x256xbf16>, vector<2x256xf32> -> vector<2x256xf32>
    %c0_3 = arith.constant 0 : index
    %c0_4 = arith.constant 0 : index
    %3 = vector.load %arg3[%c0_3, %c0_4] : memref<1x256xf32, #tpu.memory_space<vmem>>, vector<1x256xf32>
    %4 = vector.broadcast %3 : vector<1x256xf32> to vector<2x256xf32>
    %5 = arith.addf %2, %4 : vector<2x256xf32>
    %cst_5 = arith.constant 0.000000e+00 : f32
    %6 = vector.broadcast %cst_5 : f32 to vector<2x256xf32>
    %7 = arith.maximumf %5, %6 : vector<2x256xf32>
    %8 = arith.truncf %7 : vector<2x256xf32> to vector<2x256xbf16>
    %c0_6 = arith.constant 0 : index
    %c0_7 = arith.constant 0 : index
    %9 = vector.load %arg4[%c0_6, %c0_7] : memref<256x20xbf16, #tpu.memory_space<vmem>>, vector<256x20xbf16>
    %cst_8 = arith.constant dense<0.000000e+00> : vector<2x20xf32>
    %10 = tpu.matmul %8, %9, %cst_8 {dimension_numbers = #tpu.dot_dimension_numbers<[1], [0], [0], [1], [0, 0, 1, 1], [], []>} : vector<2x256xbf16>, vector<256x20xbf16>, vector<2x20xf32> -> vector<2x20xf32>
    %c0_9 = arith.constant 0 : index
    %c0_10 = arith.constant 0 : index
    %11 = vector.load %arg5[%c0_9, %c0_10] : memref<1x20xf32, #tpu.memory_space<vmem>>, vector<1x20xf32>
    %12 = vector.broadcast %11 : vector<1x20xf32> to vector<2x20xf32>
    %13 = arith.addf %10, %12 : vector<2x20xf32>
    %14 = vector.extract_strided_slice %13 {offsets = [0, 0], sizes = [2, 10], strides = [1, 1]} : vector<2x20xf32> to vector<2x10xf32>
    %15 = vector.extract_strided_slice %13 {offsets = [0, 10], sizes = [2, 10], strides = [1, 1]} : vector<2x20xf32> to vector<2x10xf32>
    %16 = arith.mulf %14, %14 : vector<2x10xf32>
    %17 = arith.mulf %15, %15 : vector<2x10xf32>
    %18 = arith.addf %16, %17 : vector<2x10xf32>
    %19 = math.sqrt %18 : vector<2x10xf32>
    %cst_11 = arith.constant dense<0xFF800000> : vector<2xf32>
    %20 = vector.multi_reduction <maximumf>, %19, %cst_11 [1] : vector<2x10xf32> to vector<2xf32>
    %21 = vector.shape_cast %20 : vector<2xf32> to vector<2x1xf32>
    %22 = vector.broadcast %21 : vector<2x1xf32> to vector<2x10xf32>
    %23 = arith.subf %19, %22 : vector<2x10xf32>
    %24 = math.exp %23 : vector<2x10xf32>
    %cst_12 = arith.constant dense<0.000000e+00> : vector<2xf32>
    %25 = vector.multi_reduction <add>, %24, %cst_12 [1] : vector<2x10xf32> to vector<2xf32>
    %26 = vector.shape_cast %25 : vector<2xf32> to vector<2x1xf32>
    %27 = math.log %26 : vector<2x1xf32>
    %28 = vector.broadcast %27 : vector<2x1xf32> to vector<2x10xf32>
    %29 = arith.subf %23, %28 : vector<2x10xf32>
    %c0_13 = arith.constant 0 : index
    %c0_14 = arith.constant 0 : index
    %30 = vector.load %arg6[%c0_13, %c0_14] : memref<2x10xf32, #tpu.memory_space<vmem>>, vector<2x10xf32>
    tpu.vector_store %arg6[%c0_13, %c0_14], %29 {strides = array<i32>} : memref<2x10xf32, #tpu.memory_space<vmem>>, vector<2x10xf32>,
    return
  }
  func.func @transform_0(%arg0: i32) -> (i32, i32) {
    %c0_i32 = arith.constant 0 : i32
    %c0_i32_0 = arith.constant 0 : i32
    %c0_i32_1 = arith.constant 0 : i32
    return %c0_i32, %c0_i32_0 : i32, i32
  }
  func.func @transform_1(%arg0: i32) -> (i32, i32) {
    %c0_i32 = arith.constant 0 : i32
    %c0_i32_0 = arith.constant 0 : i32
    %c0_i32_1 = arith.constant 0 : i32
    return %c0_i32, %c0_i32_0 : i32, i32
  }
  func.func @transform_2(%arg0: i32) -> (i32, i32) {
    %c0_i32 = arith.constant 0 : i32
    %c0_i32_0 = arith.constant 0 : i32
    %c0_i32_1 = arith.constant 0 : i32
    return %c0_i32, %c0_i32_0 : i32, i32
  }
  func.func @transform_3(%arg0: i32) -> (i32, i32) {
    %c0_i32 = arith.constant 0 : i32
    %c0_i32_0 = arith.constant 0 : i32
    %c0_i32_1 = arith.constant 0 : i32
    return %c0_i32, %c0_i32_0 : i32, i32
  }
  func.func @transform_4(%arg0: i32) -> (i32, i32) {
    %c0_i32 = arith.constant 0 : i32
    %c0_i32_0 = arith.constant 0 : i32
    %c0_i32_1 = arith.constant 0 : i32
    return %c0_i32, %c0_i32_0 : i32, i32
  }
  func.func @transform_5(%arg0: i32) -> (i32, i32) {
    %c0_i32 = arith.constant 0 : i32
    %c0_i32_0 = arith.constant 0 : i32
    %c0_i32_1 = arith.constant 0 : i32
    return %c0_i32, %c0_i32_0 : i32, i32
  }
}

</mosaic_0001>

<bundles_post_ra>
// kernel: cvcnn_forward_pallas.5
= control target key start
LH: loop header
LB: loop body
LE: loop exit
PB: predicated region body
PF: predicated region fallthrough
CT: control target
= control target key end

     0   :  { %s2457_s12 = smov 0   ;;  %s2459_s13 = smov 0   ;;  %s2875_s0 = inlined_call_operand.vmem [shape: bf16[1800,54], index: 0, kind: input, shape index: {}]   ;;  %s2876_s1 = inlined_call_operand.vmem [shape: bf16[54,128], index: 1, kind: input, shape index: {}]   ;;  %s2877_s2 = inlined_call_operand.vmem [shape: f32[1,128], index: 2, kind: input, shape index: {}]   ;;  %s2878_s3 = inlined_call_operand.vmem [shape: bf16[1800,128], index: 3, kind: output, shape index: {}]  }
   0x1   :  { %s2461_s14 = smov 0  }
   0x2 LB: > { %s2470_s15 = sadd.s32 4294967295, %s2403_s14   ;;  %s2472_s16 = sadd.s32 1, %s2403_s14   ;;  %s2403_s14 = sphi %s2461_s14, %s2885_s14   ;;  %s2399_s13 = sphi %s2459_s13, %s2884_s13   ;;  %s2395_s12 = sphi %s2457_s12, %s2883_s12  }
   0x3   : > { %s85_s17 = ssub.s32 %s2403_s14, %s2472_s16  ;;  %s88_s18 = sadd.s32 1, %s2399_s13 }
   0x4   : > { %p86_p0 = scmp.eq.s32.totalorder %s85_s17, 0  ;;  %p98_p1 = scmp.ne.s32.totalorder %s2399_s13, %s2395_s12 }
   0x5   : > { %p99_p2 = scmp.eq.s32.totalorder %s2470_s15, 3  ;;  %p1695_p3 = scmp.ge.s32.totalorder %s2403_s14, 1 }
   0x6   : > { %s2480_s19 = scalar_select %p86_p0, %s2399_s13, %s88_s18  }
   0x7   : > { %p2482_p4 = por %p99_p2, %p98_p1  ;;  %p146_p5 = scmp.lt.s32.totalorder %s2403_s14, 5 }
   0x9   : > { %p147_p6 = pnand %p1695_p3, %p146_p5 }
   0xa   : > { %v2313_v0 = vld [vmem:[%s2876_s1] sm:$0xff] (!%p147_p6)   ;;  %v2314_v1 = vld [vmem:[%s2876_s1 + $0x8] sm:$0xff] (!%p147_p6)   ;;  %s2493_s25 = sshll.u32 (!%p147_p6), %s2470_s15, 6  ;;  %v2315_v2 = vld [vmem:[%s2876_s1 + $0x10] sm:$0xff] (!%p147_p6)   ;;  %vm452_vm0 = vcmask (!%p147_p6), 441344   ;;  %vm549_vm1 = vcmask (!%p147_p6), 1042432  }
   0xb   : > { %150 = sbr.rel (%p147_p6) target bundleno = 397 (0x18d), region = 32  ;;  %2143 = vmatprep.subr.bf16.mxu0 (!%p147_p6), %v2313_v0  ;;  %2215 = vmatprep.subr.bf16.mxu1 (!%p147_p6), %v2313_v0  ;;  %p178_p7 = scmp.lt.s32.totalorder (!%p147_p6), %s2493_s25, 224  ;;  %v2316_v3 = vld [vmem:[%s2876_s1 + $0x18] ss:$0 sps:$4 sm:$0x77] (!%p147_p6)  }
   0xc   : > { %2144 = vmatpush3.bf16.msra.mxu0 (!%p147_p6), %v2313_v0  ;;  %2219 = vmatpush3.bf16.msra.mxu1 (!%p147_p6), %v2313_v0  ;;  %v551_v6 = vsel (!%p147_p6), %vm549_vm1, %v2316_v3, 0  ;;  %v2575_v37 = vld [vmem:[%s2877_s2] ss:$0 sm:$0xff] (!%p147_p6)  ;;  %s170_s10 = sand.u32 (!%p147_p6), 1, %s2395_s12  }
   0xd   : > { %2145 = vmatprep.subr.bf16.mxu0 (!%p147_p6), %v2314_v1  ;;  %2216 = vmatprep.subr.bf16.mxu1 (!%p147_p6), %v2314_v1  ;;  %s1696_s11 = sshll.u32 (!%p147_p6), %s170_s10, 8 }
   0xe   : > { %s2586_s12 = scalar_lea.vmem (!%p147_p6), [#allocation2], %s1696_s11  }
  0x10   : > { %2146 = vmatpush3.bf16.msra.mxu0 (!%p147_p6), %v2314_v1  ;;  %2220 = vmatpush3.bf16.msra.mxu1 (!%p147_p6), %v2314_v1 }
  0x11   : > { %2147 = vmatprep.subr.bf16.mxu0 (!%p147_p6), %v2315_v2  ;;  %2217 = vmatprep.subr.bf16.mxu1 (!%p147_p6), %v2315_v2 }
  0x12   : > { %s179_s28 = scalar_select %p178_p7, %s2493_s25, 224 }
  0x13   : > { %s1234_s14 = ssub.s32 (%p2482_p4), 225, %s2493_s25  ;;  %s1913_s17 = sshll.u32 (%p2482_p4), %s2470_s15, 8 }
  0x14   : > { %s1698_s29 = sshll.u32 %s179_s28, 2  ;;  %2148 = vmatpush3.bf16.msra.mxu0 %v2315_v2  ;;  %2221 = vmatpush3.bf16.msra.mxu1 %v2315_v2  ;;  %p1235_p8 = scmp.lt.s32.totalorder (%p2482_p4), %s1234_s14, 64 }
  0x15   : > { %s2506_s7 = scalar_lea.vmem %s2875_s0, %s1698_s29  ;;  %2223 = vmatprep.subr.msk.bf16.mxu0 %vm549_vm1, %v2316_v3  ;;  %2224 = vmatprep.subr.msk.bf16.mxu1 %vm549_vm1, %v2316_v3  ;;  %s2683_s22 = scalar_lea.vmem (%p2482_p4), %s2878_s3, %s1913_s17  }
  0x16   : > { %v2317_v4 = vld [vmem:[%s2506_s7] sm:$0xff]   ;;  %v2319_v7 = vld [vmem:[%s2506_s7 + $0x8] sm:$0xff]   ;;  %v2321_v9 = vld [vmem:[%s2506_s7 + $0x10] sm:$0xff]  }
  0x17   : > { %v2318_v5 = vld [vmem:[%s2506_s7 + $0x80] sm:$0xff]   ;;  %2151 = vmatprep.mubr.msk.bf16.mxu0 %vm452_vm0, %v2317_v4  ;;  %v2320_v8 = vld [vmem:[%s2506_s7 + $0x88] sm:$0xff]   ;;  %v2322_v10 = vld [vmem:[%s2506_s7 + $0x90] sm:$0xff]  }
  0x18   : > { %2183 = vmatprep.mubr.msk.bf16.mxu1 %vm452_vm0, %v2318_v5  ;;  %2150 = vmatpush3.bf16.msra.mxu0 %v551_v6  ;;  %v2323_v11 = vld [vmem:[%s2506_s7 + $0x18] sm:$0xff]   ;;  %v2325_v13 = vld [vmem:[%s2506_s7 + $0x20] sm:$0xff]   ;;  %v2327_v15 = vld [vmem:[%s2506_s7 + $0x28] sm:$0xff]  }
  0x19   : > { %2222 = vmatpush3.bf16.msra.mxu1 %v551_v6  ;;  %v2324_v12 = vld [vmem:[%s2506_s7 + $0x98] sm:$0xff]   ;;  %v2326_v14 = vld [vmem:[%s2506_s7 + $0xa0] sm:$0xff]   ;;  %v2328_v16 = vld [vmem:[%s2506_s7 + $0xa8] sm:$0xff]  }
  0x1a   : > { %v2329_v17 = vld [vmem:[%s2506_s7 + $0x30] sm:$0xff]   ;;  %v2331_v19 = vld [vmem:[%s2506_s7 + $0x38] sm:$0xff]   ;;  %v2333_v21 = vld [vmem:[%s2506_s7 + $0x40] sm:$0xff]  }
  0x1b   : > { %2152 = vmatmul.mubr.msk.bf16.vlgmr.msra.gmra.mrb[0].mxu0 %vm452_vm0, %v2319_v7  ;;  %v2330_v18 = vld [vmem:[%s2506_s7 + $0xb0] sm:$0xff]   ;;  %v2332_v20 = vld [vmem:[%s2506_s7 + $0xb8] sm:$0xff]   ;;  %v2334_v22 = vld [vmem:[%s2506_s7 + $0xc0] sm:$0xff]  }
  0x1c   : > { %2184 = vmatmul.mubr.msk.bf16.vlgmr.msra.gmra.mrb[0].mxu1 %vm452_vm0, %v2320_v8  ;;  %2155 = vmatprep.mubr.msk.bf16.mxu0 %vm452_vm0, %v2321_v9  ;;  %v2335_v23 = vld [vmem:[%s2506_s7 + $0x48] sm:$0xff]   ;;  %v2337_v25 = vld [vmem:[%s2506_s7 + $0x50] sm:$0xff]   ;;  %v2339_v27 = vld [vmem:[%s2506_s7 + $0x58] sm:$0xff]  }
  0x1d   : > { %2187 = vmatprep.mubr.msk.bf16.mxu1 %vm452_vm0, %v2322_v10  ;;  %v2336_v24 = vld [vmem:[%s2506_s7 + $0xc8] sm:$0xff]   ;;  %v2338_v26 = vld [vmem:[%s2506_s7 + $0xd0] sm:$0xff]   ;;  %v2340_v28 = vld [vmem:[%s2506_s7 + $0xd8] sm:$0xff]  }
  0x1e   : > { %v2341_v29 = vld [vmem:[%s2506_s7 + $0x60] sm:$0xff]   ;;  %v2343_v31 = vld [vmem:[%s2506_s7 + $0x68] sm:$0xff]   ;;  %v2345_v33 = vld [vmem:[%s2506_s7 + $0x70] sm:$0xff]  }
  0x1f   : > { %v2342_v30 = vld [vmem:[%s2506_s7 + $0xe0] sm:$0xff]   ;;  %v2344_v32 = vld [vmem:[%s2506_s7 + $0xe8] sm:$0xff]   ;;  %v2346_v34 = vld [vmem:[%s2506_s7 + $0xf0] sm:$0xff]  }
  0x20   : > { %v2347_v35 = vld [vmem:[%s2506_s7 + $0x78] sm:$0xff]  }
  0x21   : > { %v2348_v36 = vld [vmem:[%s2506_s7 + $0xf8] sm:$0xff]  }
  0x23   : > { %2156 = vmatmul.mubr.msk.bf16.gmra.mrb[4].mxu0 %vm452_vm0, %v2323_v11 }
  0x24   : > { %2188 = vmatmul.mubr.msk.bf16.gmra.mrb[4].mxu1 %vm452_vm0, %v2324_v12  ;;  %2159 = vmatprep.mubr.msk.bf16.mxu0 %vm452_vm0, %v2325_v13 }
  0x25   : > { %2191 = vmatprep.mubr.msk.bf16.mxu1 %vm452_vm0, %v2326_v14 }
  0x2b   : > { %2160 = vmatmul.mubr.msk.bf16.gmra.mrb[8].mxu0 %vm452_vm0, %v2327_v15 }
  0x2c   : > { %2192 = vmatmul.mubr.msk.bf16.gmra.mrb[8].mxu1 %vm452_vm0, %v2328_v16  ;;  %2163 = vmatprep.mubr.msk.bf16.mxu0 %vm452_vm0, %v2329_v17 }
  0x2d   : > { %2195 = vmatprep.mubr.msk.bf16.mxu1 %vm452_vm0, %v2330_v18 }
  0x33   : > { %2164 = vmatmul.mubr.msk.bf16.gmra.mrb[12].mxu0 %vm452_vm0, %v2331_v19 }
  0x34   : > { %2196 = vmatmul.mubr.msk.bf16.gmra.mrb[12].mxu1 %vm452_vm0, %v2332_v20  ;;  %2167 = vmatprep.mubr.msk.bf16.mxu0 %vm452_vm0, %v2333_v21 }
  0x35   : > { %2199 = vmatprep.mubr.msk.bf16.mxu1 %vm452_vm0, %v2334_v22 }
  0x3b   : > { %2168 = vmatmul.mubr.msk.bf16.gmra.mrb[16].mxu0 %vm452_vm0, %v2335_v23 }
  0x3c   : > { %2200 = vmatmul.mubr.msk.bf16.gmra.mrb[16].mxu1 %vm452_vm0, %v2336_v24  ;;  %2171 = vmatprep.mubr.msk.bf16.mxu0 %vm452_vm0, %v2337_v25 }
  0x3d   : > { %2203 = vmatprep.mubr.msk.bf16.mxu1 %vm452_vm0, %v2338_v26 }
  0x43   : > { %2172 = vmatmul.mubr.msk.bf16.gmra.mrb[20].mxu0 %vm452_vm0, %v2339_v27 }
  0x44   : > { %2204 = vmatmul.mubr.msk.bf16.gmra.mrb[20].mxu1 %vm452_vm0, %v2340_v28  ;;  %2175 = vmatprep.mubr.msk.bf16.mxu0 %vm452_vm0, %v2341_v29 }
  0x45   : > { %2207 = vmatprep.mubr.msk.bf16.mxu1 %vm452_vm0, %v2342_v30 }
  0x4b   : > { %2176 = vmatmul.mubr.msk.bf16.gmra.mrb[24].mxu0 %vm452_vm0, %v2343_v31 }
  0x4c   : > { %2208 = vmatmul.mubr.msk.bf16.gmra.mrb[24].mxu1 %vm452_vm0, %v2344_v32  ;;  %2179 = vmatprep.mubr.msk.bf16.mxu0 %vm452_vm0, %v2345_v33 }
  0x4d   : > { %2211 = vmatprep.mubr.msk.bf16.mxu1 %vm452_vm0, %v2346_v34 }
  0x53   : > { %2180 = vmatmul.mubr.msk.bf16.gmra.mrb[28].mxu0 %vm452_vm0, %v2347_v35 }
  0x54   : > { %2212 = vmatmul.mubr.msk.bf16.gmra.mrb[28].mxu1 %vm452_vm0, %v2348_v36 }
  0xee   : > { %v2153_v38 = vpop.f32.mrb[0].mxu0 }
  0xef   : > { %v2185_v39 = vpop.f32.mrb[0].mxu1  ;;  %v596_v40 = vadd.f32 %v2153_v38, %v2575_v37  ;;  %v587_v42 = vpop.f32.mrb[1].mxu0 }
  0xf0   : > { %v724_v41 = vadd.f32 %v2185_v39, %v2575_v37  ;;  %v715_v43 = vpop.f32.mrb[1].mxu1  ;;  %v588_v44 = vadd.f32 %v2575_v37, %v587_v42  ;;  %v2154_v46 = vpop.f32.mrb[2].mxu0 }
  0xf1   : > { %v716_v45 = vadd.f32 %v2575_v37, %v715_v43  ;;  %v2186_v47 = vpop.f32.mrb[2].mxu1  ;;  %v599_v48 = vadd.f32 %v2154_v46, %v2575_v37  ;;  %v590_v50 = vpop.f32.mrb[3].mxu0  ;;  %v844_v54 = vmax.f32 %v596_v40, 0.0 }
  0xf2   : > { %v727_v49 = vadd.f32 %v2186_v47, %v2575_v37  ;;  %v718_v51 = vpop.f32.mrb[3].mxu1  ;;  %v591_v52 = vadd.f32 %v2575_v37, %v590_v50  ;;  %v876_v55 = vmax.f32 %v724_v41, 0.0  ;;  %v842_v58 = vmax.f32 %v588_v44, 0.0 }
  0xf3   : > { %v719_v53 = vadd.f32 %v2575_v37, %v718_v51  ;;  %v845_v56 = vmax.f32 %v599_v48, 0.0  ;;  %v874_v59 = vmax.f32 %v716_v45, 0.0 }
  0xf4   : > { %v877_v57 = vmax.f32 %v727_v49, 0.0  ;;  %v843_v60 = vmax.f32 %v591_v52, 0.0 }
  0xf5   : > { %v875_v61 = vmax.f32 %v719_v53, 0.0  ;;  %v1924_v62 = vpack.c.bf16 %v845_v56, %v844_v54 }
  0xf6   : > { %v2004_v63 = vpack.c.bf16 %v877_v57, %v876_v55  ;;  %v1919_v0 = vpack.c.bf16 %v843_v60, %v842_v58  ;;  %v2157_v2 = vpop.f32.mrb[4].mxu0 }
  0xf7   : > { %v1999_v1 = vpack.c.bf16 %v875_v61, %v874_v59  ;;  %v2189_v3 = vpop.f32.mrb[4].mxu1  ;;  %2076 = vst [vmem:[%s2586_s12 + $0x8] sm:$0xff] %v1924_v62   ;;  %v612_v4 = vadd.f32 %v2157_v2, %v2575_v37  ;;  %v603_v6 = vpop.f32.mrb[5].mxu0 }
  0xf8   : > { %2092 = vst [vmem:[%s2586_s12 + $0x88] sm:$0xff] %v2004_v63   ;;  %v740_v5 = vadd.f32 %v2189_v3, %v2575_v37  ;;  %v731_v7 = vpop.f32.mrb[5].mxu1  ;;  %1920 = vst [vmem:[%s2586_s12] sm:$0xff] %v1919_v0   ;;  %v604_v8 = vadd.f32 %v2575_v37, %v603_v6  ;;  %v2158_v10 = vpop.f32.mrb[6].mxu0 }
  0xf9   : > { %2091 = vst [vmem:[%s2586_s12 + $0x80] sm:$0xff] %v1999_v1   ;;  %v732_v9 = vadd.f32 %v2575_v37, %v731_v7  ;;  %v2190_v11 = vpop.f32.mrb[6].mxu1  ;;  %v615_v12 = vadd.f32 %v2158_v10, %v2575_v37  ;;  %v606_v14 = vpop.f32.mrb[7].mxu0  ;;  %v848_v18 = vmax.f32 %v612_v4, 0.0 }
  0xfa   : > { %v743_v13 = vadd.f32 %v2190_v11, %v2575_v37  ;;  %v734_v15 = vpop.f32.mrb[7].mxu1  ;;  %v607_v16 = vadd.f32 %v2575_v37, %v606_v14  ;;  %v880_v19 = vmax.f32 %v740_v5, 0.0  ;;  %v846_v22 = vmax.f32 %v604_v8, 0.0 }
  0xfb   : > { %v735_v17 = vadd.f32 %v2575_v37, %v734_v15  ;;  %v849_v20 = vmax.f32 %v615_v12, 0.0  ;;  %v878_v23 = vmax.f32 %v732_v9, 0.0 }
  0xfc   : > { %v881_v21 = vmax.f32 %v743_v13, 0.0  ;;  %v847_v24 = vmax.f32 %v607_v16, 0.0 }
  0xfd   : > { %v879_v25 = vmax.f32 %v735_v17, 0.0  ;;  %v1934_v26 = vpack.c.bf16 %v849_v20, %v848_v18 }
  0xfe   : > { %v2014_v27 = vpack.c.bf16 %v881_v21, %v880_v19  ;;  %v1929_v28 = vpack.c.bf16 %v847_v24, %v846_v22  ;;  %v2161_v30 = vpop.f32.mrb[8].mxu0 }
  0xff   : > { %v2009_v29 = vpack.c.bf16 %v879_v25, %v878_v23  ;;  %v2193_v31 = vpop.f32.mrb[8].mxu1  ;;  %2078 = vst [vmem:[%s2586_s12 + $0x18] sm:$0xff] %v1934_v26   ;;  %v628_v32 = vadd.f32 %v2161_v30, %v2575_v37  ;;  %v619_v34 = vpop.f32.mrb[9].mxu0 }
 0x100   : > { %2094 = vst [vmem:[%s2586_s12 + $0x98] sm:$0xff] %v2014_v27   ;;  %v756_v33 = vadd.f32 %v2193_v31, %v2575_v37  ;;  %v747_v35 = vpop.f32.mrb[9].mxu1  ;;  %2077 = vst [vmem:[%s2586_s12 + $0x10] sm:$0xff] %v1929_v28   ;;  %v620_v36 = vadd.f32 %v2575_v37, %v619_v34  ;;  %v2162_v39 = vpop.f32.mrb[10].mxu0 }
 0x101   : > { %2093 = vst [vmem:[%s2586_s12 + $0x90] sm:$0xff] %v2009_v29   ;;  %v748_v38 = vadd.f32 %v2575_v37, %v747_v35  ;;  %v2194_v40 = vpop.f32.mrb[10].mxu1  ;;  %v631_v41 = vadd.f32 %v2162_v39, %v2575_v37  ;;  %v622_v43 = vpop.f32.mrb[11].mxu0  ;;  %v852_v47 = vmax.f32 %v628_v32, 0.0 }
 0x102   : > { %v759_v42 = vadd.f32 %v2194_v40, %v2575_v37  ;;  %v750_v44 = vpop.f32.mrb[11].mxu1  ;;  %v623_v45 = vadd.f32 %v2575_v37, %v622_v43  ;;  %v884_v48 = vmax.f32 %v756_v33, 0.0  ;;  %v850_v51 = vmax.f32 %v620_v36, 0.0 }
 0x103   : > { %v751_v46 = vadd.f32 %v2575_v37, %v750_v44  ;;  %v853_v49 = vmax.f32 %v631_v41, 0.0  ;;  %v882_v52 = vmax.f32 %v748_v38, 0.0 }
 0x104   : > { %v885_v50 = vmax.f32 %v759_v42, 0.0  ;;  %v851_v53 = vmax.f32 %v623_v45, 0.0 }
 0x105   : > { %v883_v54 = vmax.f32 %v751_v46, 0.0  ;;  %v1944_v55 = vpack.c.bf16 %v853_v49, %v852_v47 }
 0x106   : > { %v2024_v56 = vpack.c.bf16 %v885_v50, %v884_v48  ;;  %v1939_v57 = vpack.c.bf16 %v851_v53, %v850_v51  ;;  %v2165_v59 = vpop.f32.mrb[12].mxu0 }
 0x107   : > { %v2019_v58 = vpack.c.bf16 %v883_v54, %v882_v52  ;;  %v2197_v60 = vpop.f32.mrb[12].mxu1  ;;  %2080 = vst [vmem:[%s2586_s12 + $0x28] sm:$0xff] %v1944_v55   ;;  %v644_v61 = vadd.f32 %v2165_v59, %v2575_v37  ;;  %v635_v63 = vpop.f32.mrb[13].mxu0 }
 0x108   : > { %2096 = vst [vmem:[%s2586_s12 + $0xa8] sm:$0xff] %v2024_v56   ;;  %v772_v62 = vadd.f32 %v2197_v60, %v2575_v37  ;;  %v763_v0 = vpop.f32.mrb[13].mxu1  ;;  %2079 = vst [vmem:[%s2586_s12 + $0x20] sm:$0xff] %v1939_v57   ;;  %v636_v1 = vadd.f32 %v2575_v37, %v635_v63  ;;  %v2166_v3 = vpop.f32.mrb[14].mxu0 }
 0x109   : > { %2095 = vst [vmem:[%s2586_s12 + $0xa0] sm:$0xff] %v2019_v58   ;;  %v764_v2 = vadd.f32 %v2575_v37, %v763_v0  ;;  %v2198_v4 = vpop.f32.mrb[14].mxu1  ;;  %v647_v5 = vadd.f32 %v2166_v3, %v2575_v37  ;;  %v638_v7 = vpop.f32.mrb[15].mxu0  ;;  %v856_v11 = vmax.f32 %v644_v61, 0.0 }
 0x10a   : > { %v775_v6 = vadd.f32 %v2198_v4, %v2575_v37  ;;  %v766_v8 = vpop.f32.mrb[15].mxu1  ;;  %v639_v9 = vadd.f32 %v2575_v37, %v638_v7  ;;  %v888_v12 = vmax.f32 %v772_v62, 0.0  ;;  %v854_v15 = vmax.f32 %v636_v1, 0.0 }
 0x10b   : > { %v767_v10 = vadd.f32 %v2575_v37, %v766_v8  ;;  %v857_v13 = vmax.f32 %v647_v5, 0.0  ;;  %v886_v16 = vmax.f32 %v764_v2, 0.0 }
 0x10c   : > { %v889_v14 = vmax.f32 %v775_v6, 0.0  ;;  %v855_v17 = vmax.f32 %v639_v9, 0.0 }
 0x10d   : > { %v887_v18 = vmax.f32 %v767_v10, 0.0  ;;  %v1954_v19 = vpack.c.bf16 %v857_v13, %v856_v11 }
 0x10e   : > { %v2034_v20 = vpack.c.bf16 %v889_v14, %v888_v12  ;;  %v1949_v21 = vpack.c.bf16 %v855_v17, %v854_v15  ;;  %v2169_v23 = vpop.f32.mrb[16].mxu0 }
 0x10f   : > { %v2029_v22 = vpack.c.bf16 %v887_v18, %v886_v16  ;;  %v2201_v24 = vpop.f32.mrb[16].mxu1  ;;  %2082 = vst [vmem:[%s2586_s12 + $0x38] sm:$0xff] %v1954_v19   ;;  %v660_v25 = vadd.f32 %v2169_v23, %v2575_v37  ;;  %v651_v27 = vpop.f32.mrb[17].mxu0 }
 0x110   : > { %2098 = vst [vmem:[%s2586_s12 + $0xb8] sm:$0xff] %v2034_v20   ;;  %v788_v26 = vadd.f32 %v2201_v24, %v2575_v37  ;;  %v779_v28 = vpop.f32.mrb[17].mxu1  ;;  %2081 = vst [vmem:[%s2586_s12 + $0x30] sm:$0xff] %v1949_v21   ;;  %v652_v29 = vadd.f32 %v2575_v37, %v651_v27  ;;  %v2170_v31 = vpop.f32.mrb[18].mxu0 }
 0x111   : > { %2097 = vst [vmem:[%s2586_s12 + $0xb0] sm:$0xff] %v2029_v22   ;;  %v780_v30 = vadd.f32 %v2575_v37, %v779_v28  ;;  %v2202_v32 = vpop.f32.mrb[18].mxu1  ;;  %v663_v33 = vadd.f32 %v2170_v31, %v2575_v37  ;;  %v654_v35 = vpop.f32.mrb[19].mxu0  ;;  %v860_v40 = vmax.f32 %v660_v25, 0.0 }
 0x112   : > { %v791_v34 = vadd.f32 %v2202_v32, %v2575_v37  ;;  %v782_v36 = vpop.f32.mrb[19].mxu1  ;;  %v655_v38 = vadd.f32 %v2575_v37, %v654_v35  ;;  %v892_v41 = vmax.f32 %v788_v26, 0.0  ;;  %v858_v44 = vmax.f32 %v652_v29, 0.0 }
 0x113   : > { %v783_v39 = vadd.f32 %v2575_v37, %v782_v36  ;;  %v861_v42 = vmax.f32 %v663_v33, 0.0  ;;  %v890_v45 = vmax.f32 %v780_v30, 0.0 }
 0x114   : > { %v893_v43 = vmax.f32 %v791_v34, 0.0  ;;  %v859_v46 = vmax.f32 %v655_v38, 0.0 }
 0x115   : > { %v891_v47 = vmax.f32 %v783_v39, 0.0  ;;  %v1964_v48 = vpack.c.bf16 %v861_v42, %v860_v40 }
 0x116   : > { %v2044_v49 = vpack.c.bf16 %v893_v43, %v892_v41  ;;  %v1959_v50 = vpack.c.bf16 %v859_v46, %v858_v44  ;;  %v2173_v52 = vpop.f32.mrb[20].mxu0 }
 0x117   : > { %v2039_v51 = vpack.c.bf16 %v891_v47, %v890_v45  ;;  %v2205_v53 = vpop.f32.mrb[20].mxu1  ;;  %2084 = vst [vmem:[%s2586_s12 + $0x48] sm:$0xff] %v1964_v48   ;;  %v676_v54 = vadd.f32 %v2173_v52, %v2575_v37  ;;  %v667_v56 = vpop.f32.mrb[21].mxu0 }
 0x118   : > { %2100 = vst [vmem:[%s2586_s12 + $0xc8] sm:$0xff] %v2044_v49   ;;  %v804_v55 = vadd.f32 %v2205_v53, %v2575_v37  ;;  %v795_v57 = vpop.f32.mrb[21].mxu1  ;;  %2083 = vst [vmem:[%s2586_s12 + $0x40] sm:$0xff] %v1959_v50   ;;  %v668_v58 = vadd.f32 %v2575_v37, %v667_v56  ;;  %v2174_v60 = vpop.f32.mrb[22].mxu0 }
 0x119   : > { %2099 = vst [vmem:[%s2586_s12 + $0xc0] sm:$0xff] %v2039_v51   ;;  %v796_v59 = vadd.f32 %v2575_v37, %v795_v57  ;;  %v2206_v61 = vpop.f32.mrb[22].mxu1  ;;  %v679_v62 = vadd.f32 %v2174_v60, %v2575_v37  ;;  %v670_v0 = vpop.f32.mrb[23].mxu0  ;;  %v864_v4 = vmax.f32 %v676_v54, 0.0 }
 0x11a   : > { %v807_v63 = vadd.f32 %v2206_v61, %v2575_v37  ;;  %v798_v1 = vpop.f32.mrb[23].mxu1  ;;  %v671_v2 = vadd.f32 %v2575_v37, %v670_v0  ;;  %v896_v5 = vmax.f32 %v804_v55, 0.0  ;;  %v862_v8 = vmax.f32 %v668_v58, 0.0 }
 0x11b   : > { %v799_v3 = vadd.f32 %v2575_v37, %v798_v1  ;;  %v865_v6 = vmax.f32 %v679_v62, 0.0  ;;  %v894_v9 = vmax.f32 %v796_v59, 0.0 }
 0x11c   : > { %v897_v7 = vmax.f32 %v807_v63, 0.0  ;;  %v863_v10 = vmax.f32 %v671_v2, 0.0 }
 0x11d   : > { %v895_v11 = vmax.f32 %v799_v3, 0.0  ;;  %v1974_v12 = vpack.c.bf16 %v865_v6, %v864_v4 }
 0x11e   : > { %v2054_v13 = vpack.c.bf16 %v897_v7, %v896_v5  ;;  %v1969_v14 = vpack.c.bf16 %v863_v10, %v862_v8  ;;  %v2177_v16 = vpop.f32.mrb[24].mxu0 }
 0x11f   : > { %v2049_v15 = vpack.c.bf16 %v895_v11, %v894_v9  ;;  %v2209_v17 = vpop.f32.mrb[24].mxu1  ;;  %2086 = vst [vmem:[%s2586_s12 + $0x58] sm:$0xff] %v1974_v12   ;;  %v692_v18 = vadd.f32 %v2177_v16, %v2575_v37  ;;  %v683_v20 = vpop.f32.mrb[25].mxu0 }
 0x120   : > { %2102 = vst [vmem:[%s2586_s12 + $0xd8] sm:$0xff] %v2054_v13   ;;  %v820_v19 = vadd.f32 %v2209_v17, %v2575_v37  ;;  %v811_v21 = vpop.f32.mrb[25].mxu1  ;;  %2085 = vst [vmem:[%s2586_s12 + $0x50] sm:$0xff] %v1969_v14   ;;  %v684_v22 = vadd.f32 %v2575_v37, %v683_v20  ;;  %v2178_v24 = vpop.f32.mrb[26].mxu0 }
 0x121   : > { %2101 = vst [vmem:[%s2586_s12 + $0xd0] sm:$0xff] %v2049_v15   ;;  %v812_v23 = vadd.f32 %v2575_v37, %v811_v21  ;;  %v2210_v25 = vpop.f32.mrb[26].mxu1  ;;  %v695_v26 = vadd.f32 %v2178_v24, %v2575_v37  ;;  %v686_v28 = vpop.f32.mrb[27].mxu0  ;;  %v868_v32 = vmax.f32 %v692_v18, 0.0 }
 0x122   : > { %v823_v27 = vadd.f32 %v2210_v25, %v2575_v37  ;;  %v814_v29 = vpop.f32.mrb[27].mxu1  ;;  %v687_v30 = vadd.f32 %v2575_v37, %v686_v28  ;;  %v900_v33 = vmax.f32 %v820_v19, 0.0  ;;  %v866_v36 = vmax.f32 %v684_v22, 0.0 }
 0x123   : > { %v815_v31 = vadd.f32 %v2575_v37, %v814_v29  ;;  %v869_v34 = vmax.f32 %v695_v26, 0.0  ;;  %v898_v38 = vmax.f32 %v812_v23, 0.0 }
 0x124   : > { %v901_v35 = vmax.f32 %v823_v27, 0.0  ;;  %v867_v39 = vmax.f32 %v687_v30, 0.0 }
 0x125   : > { %v899_v40 = vmax.f32 %v815_v31, 0.0  ;;  %v1984_v41 = vpack.c.bf16 %v869_v34, %v868_v32 }
 0x126   : > { %v2064_v42 = vpack.c.bf16 %v901_v35, %v900_v33  ;;  %v1979_v43 = vpack.c.bf16 %v867_v39, %v866_v36  ;;  %v2181_v45 = vpop.f32.mrb[28].mxu0 }
 0x127   : > { %v2059_v44 = vpack.c.bf16 %v899_v40, %v898_v38  ;;  %v2213_v46 = vpop.f32.mrb[28].mxu1  ;;  %2088 = vst [vmem:[%s2586_s12 + $0x68] sm:$0xff] %v1984_v41   ;;  %v708_v47 = vadd.f32 %v2181_v45, %v2575_v37  ;;  %v699_v49 = vpop.f32.mrb[29].mxu0 }
 0x128   : > { %2104 = vst [vmem:[%s2586_s12 + $0xe8] sm:$0xff] %v2064_v42   ;;  %v836_v48 = vadd.f32 %v2213_v46, %v2575_v37  ;;  %v827_v50 = vpop.f32.mrb[29].mxu1  ;;  %2087 = vst [vmem:[%s2586_s12 + $0x60] sm:$0xff] %v1979_v43   ;;  %v700_v51 = vadd.f32 %v2575_v37, %v699_v49  ;;  %v2182_v53 = vpop.f32.mrb[30].mxu0 }
 0x129   : > { %2103 = vst [vmem:[%s2586_s12 + $0xe0] sm:$0xff] %v2059_v44   ;;  %v828_v52 = vadd.f32 %v2575_v37, %v827_v50  ;;  %v2214_v54 = vpop.f32.mrb[30].mxu1  ;;  %v711_v55 = vadd.f32 %v2182_v53, %v2575_v37  ;;  %v702_v57 = vpop.f32.mrb[31].mxu0  ;;  %v872_v61 = vmax.f32 %v708_v47, 0.0 }
 0x12a   : > { %v839_v56 = vadd.f32 %v2214_v54, %v2575_v37  ;;  %v830_v58 = vpop.f32.mrb[31].mxu1  ;;  %v703_v59 = vadd.f32 %v2575_v37, %v702_v57  ;;  %v904_v62 = vmax.f32 %v836_v48, 0.0  ;;  %v870_v1 = vmax.f32 %v700_v51, 0.0 }
 0x12b   : > { %v831_v60 = vadd.f32 %v2575_v37, %v830_v58  ;;  %v873_v63 = vmax.f32 %v711_v55, 0.0  ;;  %v902_v2 = vmax.f32 %v828_v52, 0.0  ;;  %1232 = sbr.rel (!%p2482_p4) target bundleno = 397 (0x18d), region = 36 }
 0x12c   : > { %v905_v0 = vmax.f32 %v839_v56, 0.0  ;;  %v871_v3 = vmax.f32 %v703_v59, 0.0 }
 0x12d   : > { %v903_v4 = vmax.f32 %v831_v60, 0.0  ;;  %v1994_v5 = vpack.c.bf16 %v873_v63, %v872_v61 }
 0x12e   : > { %v2074_v6 = vpack.c.bf16 %v905_v0, %v904_v62  ;;  %v1989_v7 = vpack.c.bf16 %v871_v3, %v870_v1 }
 0x12f   : > { %v2069_v8 = vpack.c.bf16 %v903_v4, %v902_v2  ;;  %2090 = vst [vmem:[%s2586_s12 + $0x78] sm:$0xff] %v1994_v5  }
 0x130   : > { %2106 = vst [vmem:[%s2586_s12 + $0xf8] sm:$0xff] %v2074_v6   ;;  %2089 = vst [vmem:[%s2586_s12 + $0x70] sm:$0xff] %v1989_v7  }
 0x131   : > { %2105 = vst [vmem:[%s2586_s12 + $0xf0] sm:$0xff] %v2069_v8  }
 0x132   : > { %s2887_s14 = smov (!%p1235_p8, %s1234_s14), 64 }
 0x133   : > { %s1834_s23 = sshll.u32 %s2887_s14, 6 }
 0x134   : > { %p1837_p9 = scmp.eq.s32.totalorder %s1834_s23, 0 }
 0x135   : > { %s2689_s24 = sshrl.u32 (!%p1837_p9), %s2887_s14, 6 }
 0x136   : > { %1243 = sbr.rel (%p1837_p9) target bundleno = 397 (0x18d), region = 40  ;;  %p1838_p10 = scmp.le.s32.totalorder (!%p1837_p9), %s2689_s24, 0 }
 0x13d   : > { %1648 = sbr.rel (%p1838_p10) target bundleno = 376 (0x178), region = 112  ;;  %s2880_s15 = smov (!%p1838_p10), %s2683_s22 }
 0x13e   : > { %s2881_s20 = smov (!%p1838_p10), %s2586_s12  ;;  %s2698_s25 = smov (!%p1838_p10), 0  }
 0x13f   : > { %s2700_s26 = smov (!%p1838_p10), 0  }
 0x144 LB: >> { %v1259_v37 = vld [vmem:[%s2411_s20] sm:$0xf]  ;;  %v1261_v9 = vld [vmem:[%s2411_s20 + $0x4] sm:$0xf]  ;;  %v1263_v10 = vld [vmem:[%s2411_s20 + $0x8] sm:$0xf]  ;;  %s2419_s26 = sphi %s2700_s26, %s1253_s26   ;;  %s2415_s25 = sphi %s2698_s25, %s2882_s25   ;;  %s2411_s20 = sphi %s2881_s20, %s1392_s20   ;;  %s2407_s15 = sphi %s2880_s15, %s1393_s15  }
 0x145   : >> { %1260 = vst [vmem:[%s2407_s15] sm:$0xf] %v1259_v37  ;;  %1262 = vst [vmem:[%s2407_s15 + $0x4] sm:$0xf] %v1261_v9  ;;  %v1265_v11 = vld [vmem:[%s2411_s20 + $0xc] sm:$0xf]  ;;  %s1387_s27 = sadd.s32 1, %s2415_s25 }
 0x146   : >> { %1264 = vst [vmem:[%s2407_s15 + $0x8] sm:$0xf] %v1263_v10  ;;  %v1267_v12 = vld [vmem:[%s2411_s20 + $0x10] sm:$0xf]  ;;  %v1269_v13 = vld [vmem:[%s2411_s20 + $0x14] sm:$0xf]  ;;  %p1388_p11 = scmp.ge.s32.totalorder %s1387_s27, %s2689_s24 }
 0x147   : >> { %1266 = vst [vmem:[%s2407_s15 + $0xc] sm:$0xf] %v1265_v11  ;;  %1268 = vst [vmem:[%s2407_s15 + $0x10] sm:$0xf] %v1267_v12  ;;  %v1271_v14 = vld [vmem:[%s2411_s20 + $0x18] sm:$0xf] }
 0x148   : >> { %1270 = vst [vmem:[%s2407_s15 + $0x14] sm:$0xf] %v1269_v13  ;;  %v1273_v15 = vld [vmem:[%s2411_s20 + $0x1c] sm:$0xf]  ;;  %v1275_v16 = vld [vmem:[%s2411_s20 + $0x20] sm:$0xf] }
 0x149   : >> { %1272 = vst [vmem:[%s2407_s15 + $0x18] sm:$0xf] %v1271_v14  ;;  %1274 = vst [vmem:[%s2407_s15 + $0x1c] sm:$0xf] %v1273_v15  ;;  %v1277_v17 = vld [vmem:[%s2411_s20 + $0x24] sm:$0xf] }
 0x14a   : >> { %1276 = vst [vmem:[%s2407_s15 + $0x20] sm:$0xf] %v1275_v16  ;;  %v1279_v18 = vld [vmem:[%s2411_s20 + $0x28] sm:$0xf]  ;;  %v1281_v19 = vld [vmem:[%s2411_s20 + $0x2c] sm:$0xf] }
 0x14b   : >> { %1278 = vst [vmem:[%s2407_s15 + $0x24] sm:$0xf] %v1277_v17  ;;  %1280 = vst [vmem:[%s2407_s15 + $0x28] sm:$0xf] %v1279_v18  ;;  %v1283_v20 = vld [vmem:[%s2411_s20 + $0x30] sm:$0xf] }
 0x14c   : >> { %1282 = vst [vmem:[%s2407_s15 + $0x2c] sm:$0xf] %v1281_v19  ;;  %v1285_v21 = vld [vmem:[%s2411_s20 + $0x34] sm:$0xf]  ;;  %v1287_v22 = vld [vmem:[%s2411_s20 + $0x38] sm:$0xf] }
 0x14d   : >> { %1284 = vst [vmem:[%s2407_s15 + $0x30] sm:$0xf] %v1283_v20  ;;  %1286 = vst [vmem:[%s2407_s15 + $0x34] sm:$0xf] %v1285_v21  ;;  %v1289_v23 = vld [vmem:[%s2411_s20 + $0x3c] sm:$0xf] }
 0x14e   : >> { %1288 = vst [vmem:[%s2407_s15 + $0x38] sm:$0xf] %v1287_v22  ;;  %v1291_v24 = vld [vmem:[%s2411_s20 + $0x40] sm:$0xf]  ;;  %v1293_v25 = vld [vmem:[%s2411_s20 + $0x44] sm:$0xf] }
 0x14f   : >> { %1290 = vst [vmem:[%s2407_s15 + $0x3c] sm:$0xf] %v1289_v23  ;;  %1292 = vst [vmem:[%s2407_s15 + $0x40] sm:$0xf] %v1291_v24  ;;  %v1295_v26 = vld [vmem:[%s2411_s20 + $0x48] sm:$0xf] }
 0x150   : >> { %1294 = vst [vmem:[%s2407_s15 + $0x44] sm:$0xf] %v1293_v25  ;;  %v1297_v27 = vld [vmem:[%s2411_s20 + $0x4c] sm:$0xf]  ;;  %v1299_v28 = vld [vmem:[%s2411_s20 + $0x50] sm:$0xf] }
 0x151   : >> { %1296 = vst [vmem:[%s2407_s15 + $0x48] sm:$0xf] %v1295_v26  ;;  %1298 = vst [vmem:[%s2407_s15 + $0x4c] sm:$0xf] %v1297_v27  ;;  %v1301_v29 = vld [vmem:[%s2411_s20 + $0x54] sm:$0xf] }
 0x152   : >> { %1300 = vst [vmem:[%s2407_s15 + $0x50] sm:$0xf] %v1299_v28  ;;  %v1303_v30 = vld [vmem:[%s2411_s20 + $0x58] sm:$0xf]  ;;  %v1305_v31 = vld [vmem:[%s2411_s20 + $0x5c] sm:$0xf] }
 0x153   : >> { %1302 = vst [vmem:[%s2407_s15 + $0x54] sm:$0xf] %v1301_v29  ;;  %1304 = vst [vmem:[%s2407_s15 + $0x58] sm:$0xf] %v1303_v30  ;;  %v1307_v32 = vld [vmem:[%s2411_s20 + $0x60] sm:$0xf] }
 0x154   : >> { %1306 = vst [vmem:[%s2407_s15 + $0x5c] sm:$0xf] %v1305_v31  ;;  %v1309_v33 = vld [vmem:[%s2411_s20 + $0x64] sm:$0xf]  ;;  %v1311_v34 = vld [vmem:[%s2411_s20 + $0x68] sm:$0xf] }
 0x155   : >> { %1308 = vst [vmem:[%s2407_s15 + $0x60] sm:$0xf] %v1307_v32  ;;  %1310 = vst [vmem:[%s2407_s15 + $0x64] sm:$0xf] %v1309_v33  ;;  %v1313_v35 = vld [vmem:[%s2411_s20 + $0x6c] sm:$0xf] }
 0x156   : >> { %1312 = vst [vmem:[%s2407_s15 + $0x68] sm:$0xf] %v1311_v34  ;;  %v1315_v36 = vld [vmem:[%s2411_s20 + $0x70] sm:$0xf]  ;;  %v1317_v38 = vld [vmem:[%s2411_s20 + $0x74] sm:$0xf] }
 0x157   : >> { %1314 = vst [vmem:[%s2407_s15 + $0x6c] sm:$0xf] %v1313_v35  ;;  %1316 = vst [vmem:[%s2407_s15 + $0x70] sm:$0xf] %v1315_v36  ;;  %v1319_v39 = vld [vmem:[%s2411_s20 + $0x78] sm:$0xf] }
 0x158   : >> { %1318 = vst [vmem:[%s2407_s15 + $0x74] sm:$0xf] %v1317_v38  ;;  %v1321_v40 = vld [vmem:[%s2411_s20 + $0x7c] sm:$0xf]  ;;  %v1323_v41 = vld [vmem:[%s2411_s20 + $0x80] sm:$0xf] }
 0x159   : >> { %1320 = vst [vmem:[%s2407_s15 + $0x78] sm:$0xf] %v1319_v39  ;;  %1322 = vst [vmem:[%s2407_s15 + $0x7c] sm:$0xf] %v1321_v40  ;;  %v1325_v42 = vld [vmem:[%s2411_s20 + $0x84] sm:$0xf] }
 0x15a   : >> { %1324 = vst [vmem:[%s2407_s15 + $0x80] sm:$0xf] %v1323_v41  ;;  %v1327_v43 = vld [vmem:[%s2411_s20 + $0x88] sm:$0xf]  ;;  %v1329_v44 = vld [vmem:[%s2411_s20 + $0x8c] sm:$0xf] }
 0x15b   : >> { %1326 = vst [vmem:[%s2407_s15 + $0x84] sm:$0xf] %v1325_v42  ;;  %1328 = vst [vmem:[%s2407_s15 + $0x88] sm:$0xf] %v1327_v43  ;;  %v1331_v45 = vld [vmem:[%s2411_s20 + $0x90] sm:$0xf] }
 0x15c   : >> { %1330 = vst [vmem:[%s2407_s15 + $0x8c] sm:$0xf] %v1329_v44  ;;  %v1333_v46 = vld [vmem:[%s2411_s20 + $0x94] sm:$0xf]  ;;  %v1335_v47 = vld [vmem:[%s2411_s20 + $0x98] sm:$0xf] }
 0x15d   : >> { %1332 = vst [vmem:[%s2407_s15 + $0x90] sm:$0xf] %v1331_v45  ;;  %1334 = vst [vmem:[%s2407_s15 + $0x94] sm:$0xf] %v1333_v46  ;;  %v1337_v48 = vld [vmem:[%s2411_s20 + $0x9c] sm:$0xf] }
 0x15e   : >> { %1336 = vst [vmem:[%s2407_s15 + $0x98] sm:$0xf] %v1335_v47  ;;  %v1339_v49 = vld [vmem:[%s2411_s20 + $0xa0] sm:$0xf]  ;;  %v1341_v50 = vld [vmem:[%s2411_s20 + $0xa4] sm:$0xf] }
 0x15f   : >> { %1338 = vst [vmem:[%s2407_s15 + $0x9c] sm:$0xf] %v1337_v48  ;;  %1340 = vst [vmem:[%s2407_s15 + $0xa0] sm:$0xf] %v1339_v49  ;;  %v1343_v51 = vld [vmem:[%s2411_s20 + $0xa8] sm:$0xf] }
 0x160   : >> { %1342 = vst [vmem:[%s2407_s15 + $0xa4] sm:$0xf] %v1341_v50  ;;  %v1345_v52 = vld [vmem:[%s2411_s20 + $0xac] sm:$0xf]  ;;  %v1347_v53 = vld [vmem:[%s2411_s20 + $0xb0] sm:$0xf] }
 0x161   : >> { %1344 = vst [vmem:[%s2407_s15 + $0xa8] sm:$0xf] %v1343_v51  ;;  %1346 = vst [vmem:[%s2407_s15 + $0xac] sm:$0xf] %v1345_v52  ;;  %v1349_v54 = vld [vmem:[%s2411_s20 + $0xb4] sm:$0xf] }
 0x162   : >> { %1348 = vst [vmem:[%s2407_s15 + $0xb0] sm:$0xf] %v1347_v53  ;;  %v1351_v55 = vld [vmem:[%s2411_s20 + $0xb8] sm:$0xf]  ;;  %v1353_v56 = vld [vmem:[%s2411_s20 + $0xbc] sm:$0xf] }
 0x163   : >> { %1350 = vst [vmem:[%s2407_s15 + $0xb4] sm:$0xf] %v1349_v54  ;;  %1352 = vst [vmem:[%s2407_s15 + $0xb8] sm:$0xf] %v1351_v55  ;;  %v1355_v57 = vld [vmem:[%s2411_s20 + $0xc0] sm:$0xf] }
 0x164   : >> { %1354 = vst [vmem:[%s2407_s15 + $0xbc] sm:$0xf] %v1353_v56  ;;  %v1357_v58 = vld [vmem:[%s2411_s20 + $0xc4] sm:$0xf]  ;;  %v1359_v59 = vld [vmem:[%s2411_s20 + $0xc8] sm:$0xf] }
 0x165   : >> { %1356 = vst [vmem:[%s2407_s15 + $0xc0] sm:$0xf] %v1355_v57  ;;  %1358 = vst [vmem:[%s2407_s15 + $0xc4] sm:$0xf] %v1357_v58  ;;  %v1361_v60 = vld [vmem:[%s2411_s20 + $0xcc] sm:$0xf] }
 0x166   : >> { %1360 = vst [vmem:[%s2407_s15 + $0xc8] sm:$0xf] %v1359_v59  ;;  %v1363_v61 = vld [vmem:[%s2411_s20 + $0xd0] sm:$0xf]  ;;  %v1365_v62 = vld [vmem:[%s2411_s20 + $0xd4] sm:$0xf] }
 0x167   : >> { %1362 = vst [vmem:[%s2407_s15 + $0xcc] sm:$0xf] %v1361_v60  ;;  %1364 = vst [vmem:[%s2407_s15 + $0xd0] sm:$0xf] %v1363_v61  ;;  %v1367_v63 = vld [vmem:[%s2411_s20 + $0xd8] sm:$0xf] }
 0x168   : >> { %1366 = vst [vmem:[%s2407_s15 + $0xd4] sm:$0xf] %v1365_v62  ;;  %v1369_v0 = vld [vmem:[%s2411_s20 + $0xdc] sm:$0xf]  ;;  %v1371_v1 = vld [vmem:[%s2411_s20 + $0xe0] sm:$0xf] }
 0x169   : >> { %1368 = vst [vmem:[%s2407_s15 + $0xd8] sm:$0xf] %v1367_v63  ;;  %1370 = vst [vmem:[%s2407_s15 + $0xdc] sm:$0xf] %v1369_v0  ;;  %v1373_v2 = vld [vmem:[%s2411_s20 + $0xe4] sm:$0xf] }
 0x16a   : >> { %1372 = vst [vmem:[%s2407_s15 + $0xe0] sm:$0xf] %v1371_v1  ;;  %v1375_v3 = vld [vmem:[%s2411_s20 + $0xe8] sm:$0xf]  ;;  %v1377_v4 = vld [vmem:[%s2411_s20 + $0xec] sm:$0xf] }
 0x16b   : >> { %1374 = vst [vmem:[%s2407_s15 + $0xe4] sm:$0xf] %v1373_v2  ;;  %1376 = vst [vmem:[%s2407_s15 + $0xe8] sm:$0xf] %v1375_v3  ;;  %v1379_v5 = vld [vmem:[%s2411_s20 + $0xf0] sm:$0xf] }
 0x16c   : >> { %1378 = vst [vmem:[%s2407_s15 + $0xec] sm:$0xf] %v1377_v4  ;;  %v1381_v6 = vld [vmem:[%s2411_s20 + $0xf4] sm:$0xf]  ;;  %v1383_v7 = vld [vmem:[%s2411_s20 + $0xf8] sm:$0xf] }
 0x16d   : >> { %1380 = vst [vmem:[%s2407_s15 + $0xf0] sm:$0xf] %v1379_v5  ;;  %1382 = vst [vmem:[%s2407_s15 + $0xf4] sm:$0xf] %v1381_v6  ;;  %v1385_v8 = vld [vmem:[%s2411_s20 + $0xfc] sm:$0xf] }
 0x16e   : >> { %1384 = vst [vmem:[%s2407_s15 + $0xf8] sm:$0xf] %v1383_v7  ;;  %1386 = vst [vmem:[%s2407_s15 + $0xfc] sm:$0xf] %v1385_v8  ;;  %s2889_s27 = smov (%p1388_p11, %s1387_s27), 0  ;;  %s1253_s26 = sadd.s32 1, %s2419_s26  }
 0x16f   : >> { %s1839_s28 = sshll.u32 %s2889_s27, 8  ;;  %p1252_p12 = scmp.ge.s32.totalorder %s1253_s26, %s2689_s24 }
 0x170   : >> { %s1392_s20 = scalar_lea.vmem %s2586_s12, %s1839_s28 [#allocation2]   ;;  %s1393_s15 = scalar_lea.vmem %s2683_s22, %s1839_s28  }
 0x171   : >> { %s2882_s25 = smov %s2889_s27  ;;  %1255 = sbr.rel (!%p1252_p12) target bundleno = 324 (0x144), region = 118 }
 0x178 PF: > { %s2857_s29 = sand.u32 63, %s2887_s14   ;;  %s1914_s30 = sshll.u32 %s2689_s24, 8 }
 0x179   : > { %s1398_s4 = scalar_lea.vmem %s2586_s12, %s1914_s30 [#allocation2]   ;;  %s1400_s5 = scalar_lea.vmem %s2683_s22, %s1914_s30  }
 0x17a   : > { %p1844_p13 = scmp.le.s32.totalorder %s2857_s29, 0 }
 0x17b   : > { %s2421_s6 = smov (!%p1844_p13), %s1400_s5   ;;  %s2425_s7 = smov (!%p1844_p13), %s1398_s4  }
 0x17c   : > { %1662 = sbr.rel (%p1844_p13) target bundleno = 397 (0x18d), region = 123  ;;  %s2429_s8 = smov (!%p1844_p13), 0  }
 0x17d   : > { %s2433_s9 = smov (!%p1844_p13), 0  }
 0x183 LB: >> { %v1410_v37 = vld [vmem:[%s2427_s7] sm:$0xf]  ;;  %s1412_s10 = sadd.s32 1, %s2431_s8  ;;  %s1404_s9 = sadd.s32 1, %s2435_s9   ;;  %s2435_s9 = sphi %s2433_s9, %s1404_s9   ;;  %s2431_s8 = sphi %s2429_s8, %s2430_s8   ;;  %s2427_s7 = sphi %s2425_s7, %s1417_s7   ;;  %s2423_s6 = sphi %s2421_s6, %s1418_s6  }
 0x184   : >> { %1411 = vst [vmem:[%s2423_s6] sm:$0xf] %v1410_v37  ;;  %p1413_p0 = scmp.ge.s32.totalorder %s1412_s10, %s2857_s29  ;;  %p1403_p1 = scmp.ge.s32.totalorder %s1404_s9, %s2857_s29 }
 0x186   : >> { %s2891_s10 = smov (%p1413_p0, %s1412_s10), 0  ;;  %1406 = sbr.rel (!%p1403_p1) target bundleno = 387 (0x183), region = 129 }
 0x187   : >> { %s1845_s11 = sshll.u32 %s2891_s10, 2  ;;  %s2430_s8 = smov %s2891_s10  }
 0x188   : >> { %s1417_s7 = scalar_lea.vmem %s1398_s4, %s1845_s11 [#allocation2]   ;;  %s1418_s6 = scalar_lea.vmem %s1400_s5, %s1845_s11  }
 0x18d PF: > { %p10_p2 = scmp.ge.s32.totalorder %s2472_s16, 6   ;;  %s2883_s12 = smov %s2399_s13 }
 0x18e   : > { %s2884_s13 = smov %s2480_s19  ;;  %s2885_s14 = smov %s2472_s16 }
 0x18f   :  { %12 = sbr.rel (!%p10_p2) target bundleno = 2 (0x2), region = 140 }

// kernel: cvcnn_forward_pallas.6
= control target key start
LH: loop header
LB: loop body
LE: loop exit
PB: predicated region body
PF: predicated region fallthrough
CT: control target
= control target key end

     0   :  { %s1317_s6 = smov 0   ;;  %s1319_s7 = smov 0   ;;  %s2754_s0 = inlined_call_operand.vmem [shape: bf16[30,2,15,256], index: 0, kind: input, shape index: {}]   ;;  %s2755_s1 = inlined_call_operand.vmem [shape: bf16[30,15,128], index: 1, kind: output, shape index: {}]  }
   0x1   :  { %s1321_s8 = smov 0  }
   0x2 LB: > { %s1330_s9 = sadd.s32 4294967295, %s1272_s8   ;;  %s1332_s10 = sadd.s32 1, %s1272_s8   ;;  %s1272_s8 = sphi %s1321_s8, %s3182_s8   ;;  %s1268_s7 = sphi %s1319_s7, %s3181_s7   ;;  %s1264_s6 = sphi %s1317_s6, %s3180_s6  }
   0x3   : > { %s41_s11 = ssub.s32 %s1272_s8, %s1332_s10  ;;  %s44_s12 = sadd.s32 1, %s1268_s7 }
   0x4   : > { %p42_p0 = scmp.eq.s32.totalorder %s41_s11, 0  ;;  %p54_p1 = scmp.ne.s32.totalorder %s1268_s7, %s1264_s6 }
   0x5   : > { %p55_p2 = scmp.eq.s32.totalorder %s1330_s9, 3  ;;  %p1096_p3 = scmp.ge.s32.totalorder %s1272_s8, 1 }
   0x6   : > { %s1340_s13 = scalar_select %p42_p0, %s1268_s7, %s44_s12  }
   0x7   : > { %p1342_p4 = por %p55_p2, %p54_p1  ;;  %p103_p5 = scmp.lt.s32.totalorder %s1272_s8, 5 }
   0x9   : > { %p104_p6 = pnand %p1096_p3, %p103_p5 }
   0xb   : > { %107 = sbr.rel (%p104_p6) target bundleno = 341 (0x155), region = 24 }
  0x12   : > { %s1347_s15 = sshll.u32 %s1330_s9, 3  ;;  %s1306_s21 = smov 64   ;;  %vm782_vm11 = vcmask 1043456   ;;  %vm783_vm12 = vsmask.f32 3328 }
  0x13   : > { %p138_p7 = scmp.lt.s32.totalorder %s1347_s15, 29  ;;  %s127_s22 = sand.u32 1, %s1264_s6  }
  0x14   : > { %s2181_s23 = sshll.u32 %s127_s22, 6  ;;  %s824_s25 = ssub.s32 (%p1342_p4), 30, %s1347_s15 }
  0x15   : > { %s139_s16 = scalar_select %p138_p7, %s1347_s15, 29 }
  0x16   : > { %s2301_s24 = scalar_lea.vmem [#allocation2], %s2181_s23   ;;  %s1124_s26 = sshll.u32 (%p1342_p4), %s1330_s9, 6 }
  0x17   : > { %s1121_s17 = sshll.u32 %s139_s16, 5  ;;  %p825_p8 = scmp.lt.s32.totalorder (%p1342_p4), %s824_s25, 8 }
  0x18   : > { %s1354_s20 = scalar_lea.vmem %s2754_s0, %s1121_s17  ;;  %s2655_s29 = scalar_lea.vmem (%p1342_p4), %s2755_s1, %s1124_s26  }
  0x19   : > { %v1357_v0 = vld [vmem:[%s1354_s20 + $0x20] sm:$0xff]  ;;  %v1363_v2 = vld [vmem:[%s1354_s20 + $0x28] sm:$0xff] }
  0x1a   : > { %v1360_v1 = vld [vmem:[%s1354_s20] sm:$0xff]  ;;  %2891 = vst [vmem:[#allocation3_spill] sm:$0xff] %v1363_v2  ;;  %v287_v3 = vunpack.c.l.bf16 %v1357_v0  ;;  %v288_v5 = vunpack.c.l.bf16 %v1363_v2  ;;  %v1369_v6 = vld [vmem:[%s1354_s20 + $0x8] sm:$0xff]  ;;  %v2766_v52 = vrot.slane %v1363_v2, 4  ;;  %v2771_v53 = vrot.slane %v1357_v0, 4 }
  0x1b   : > { %v285_v4 = vunpack.c.l.bf16 %v1360_v1  ;;  %2892 = vst [vmem:[#allocation4_spill] sm:$0xff] %v1369_v6  ;;  %v286_v7 = vunpack.c.l.bf16 %v1369_v6  ;;  %v1373_v8 = vld [vmem:[%s1354_s20 + $0x48] sm:$0xff]  ;;  %v1376_v9 = vld [vmem:[%s1354_s20 + $0x40] sm:$0xff]  ;;  %v2767_v43 = vrot.slane %v1369_v6, 4  ;;  %v2770_v47 = vrot.slane %v1360_v1, 4 }
  0x1c   : > { %2893 = vst [vmem:[#allocation5_spill] sm:$0xff] %v1373_v8  ;;  %v1378_v10 = vmul.f32 %v287_v3, %v287_v3  ;;  %v1386_v12 = vmul.f32 %v288_v5, %v288_v5  ;;  %v290_v14 = vunpack.c.l.bf16 %v1373_v8  ;;  %v289_v15 = vunpack.c.l.bf16 %v1376_v9  ;;  %v1393_v16 = vld [vmem:[%s1354_s20 + $0x68] sm:$0xff]  ;;  %v1396_v17 = vld [vmem:[%s1354_s20 + $0x60] sm:$0xff] }
  0x1d   : > { %v1380_v11 = vmul.f32 %v285_v4, %v285_v4  ;;  %v1388_v13 = vmul.f32 %v286_v7, %v286_v7  ;;  %2894 = vst [vmem:[#allocation6_spill] sm:$0xff] %v1393_v16  ;;  %2895 = vst [vmem:[#allocation7_spill] sm:$0xff] %v1396_v17  ;;  %v292_v20 = vunpack.c.l.bf16 %v1393_v16  ;;  %v291_v21 = vunpack.c.l.bf16 %v1396_v17  ;;  %v1409_v22 = vld [vmem:[%s1354_s20 + $0x88] sm:$0xff]  ;;  %v1412_v23 = vld [vmem:[%s1354_s20 + $0x80] sm:$0xff] }
  0x1e   : > { %321 = vrot.lane.b32.xlu1 %v1378_v10, %s1306_s21  ;;  %v1402_v18 = vmul.f32 %v290_v14, %v290_v14  ;;  %v1404_v19 = vmul.f32 %v289_v15, %v289_v15  ;;  %2896 = vst [vmem:[#allocation8_spill] sm:$0xff] %v1409_v22  ;;  %2897 = vst [vmem:[#allocation9_spill] sm:$0xff] %v1412_v23  ;;  %v294_v26 = vunpack.c.l.bf16 %v1409_v22  ;;  %v293_v27 = vunpack.c.l.bf16 %v1412_v23  ;;  %v1425_v28 = vld [vmem:[%s1354_s20 + $0xa8] sm:$0xff]  ;;  %v1428_v29 = vld [vmem:[%s1354_s20 + $0xa0] sm:$0xff] }
  0x1f   : > { %317 = vrot.lane.b32.xlu0 %v1380_v11, %s1306_s21  ;;  %v1418_v24 = vmul.f32 %v292_v20, %v292_v20  ;;  %v1420_v25 = vmul.f32 %v291_v21, %v291_v21  ;;  %2898 = vst [vmem:[#allocation10_spill] sm:$0xff] %v1425_v28  ;;  %2899 = vst [vmem:[#allocation11_spill] sm:$0xff] %v1428_v29  ;;  %v296_v32 = vunpack.c.l.bf16 %v1425_v28  ;;  %v295_v33 = vunpack.c.l.bf16 %v1428_v29  ;;  %v1441_v34 = vld [vmem:[%s1354_s20 + $0xc8] sm:$0xff]  ;;  %v1444_v35 = vld [vmem:[%s1354_s20 + $0xc0] sm:$0xff] }
  0x20   : > { %v1434_v30 = vmul.f32 %v294_v26, %v294_v26  ;;  %v1436_v31 = vmul.f32 %v293_v27, %v293_v27  ;;  %2900 = vst [vmem:[#allocation12_spill] sm:$0xff] %v1441_v34  ;;  %2901 = vst [vmem:[#allocation13_spill] sm:$0xff] %v1444_v35  ;;  %v298_v38 = vunpack.c.l.bf16 %v1441_v34  ;;  %v297_v39 = vunpack.c.l.bf16 %v1444_v35  ;;  %v1457_v40 = vld [vmem:[%s1354_s20 + $0xe8] sm:$0xff]  ;;  %v1460_v41 = vld [vmem:[%s1354_s20 + $0xe0] sm:$0xff] }
  0x21   : > { %v1450_v36 = vmul.f32 %v296_v32, %v296_v32  ;;  %v1452_v37 = vmul.f32 %v295_v33, %v295_v33  ;;  %2902 = vst [vmem:[#allocation14_spill] sm:$0xff] %v1457_v40  ;;  %2903 = vst [vmem:[#allocation15_spill] sm:$0xff] %v1460_v41  ;;  %v300_v42 = vunpack.c.l.bf16 %v1457_v40  ;;  %v299_v46 = vunpack.c.l.bf16 %v1460_v41 }
  0x22   : > { %323 = vrot.lane.b32.xlu1 %v1386_v12, %s1306_s21  ;;  %v1468_v44 = vmul.f32 %v298_v38, %v298_v38  ;;  %v1470_v45 = vmul.f32 %v297_v39, %v297_v39  ;;  %v366_v49 = vunpack.c.l.bf16 %v2767_v43  ;;  %v365_v51 = vunpack.c.l.bf16 %v2770_v47  ;;  %v1620_v43 = vld [vmem:[%s1354_s20 + $0x98] sm:$0xff] }
  0x23   : > { %319 = vrot.lane.b32.xlu0 %v1388_v13, %s1306_s21  ;;  %v1474_v48 = vmul.f32 %v300_v42, %v300_v42  ;;  %v1482_v50 = vmul.f32 %v299_v46, %v299_v46  ;;  %v2764_v54 = vrot.slane %v1373_v8, 4  ;;  %v2769_v55 = vrot.slane %v1376_v9, 4  ;;  %2917 = vst [vmem:[#allocation29_spill] sm:$0xff] %v1620_v43  ;;  %v1633_v47 = vld [vmem:[%s1354_s20 + $0xf8] sm:$0xff] }
  0x24   : > { %v1494_v56 = vmul.f32 %v366_v49, %v366_v49  ;;  %v1496_v57 = vmul.f32 %v365_v51, %v365_v51  ;;  %v368_v58 = vunpack.c.l.bf16 %v2766_v52  ;;  %v367_v59 = vunpack.c.l.bf16 %v2771_v53  ;;  %v1617_v52 = vld [vmem:[%s1354_s20 + $0xb8] sm:$0xff]  ;;  %2920 = vst [vmem:[#allocation32_spill] sm:$0xff] %v1633_v47 }
  0x25   : > { %2904 = vst [vmem:[#allocation16_spill] sm:$0xff] %v1482_v50  ;;  %v370_v60 = vunpack.c.l.bf16 %v2764_v54  ;;  %v2763_v61 = vrot.slane %v1393_v16, 4  ;;  %v369_v3 = vunpack.c.l.bf16 %v2769_v55  ;;  %v2768_v4 = vrot.slane %v1396_v17, 4  ;;  %2916 = vst [vmem:[#allocation28_spill] sm:$0xff] %v1617_v52  ;;  %v1636_v53 = vld [vmem:[%s1354_s20 + $0xd8] sm:$0xff]  ;;  %v1700_v16 = vld [vmem:[%s1354_s20 + $0xd0] sm:$0xff] }
  0x26   : > { %327 = vrot.lane.b32.xlu1 %v1402_v18, %s1306_s21  ;;  %v1509_v62 = vmul.f32 %v368_v58, %v368_v58  ;;  %v1511_v63 = vmul.f32 %v367_v59, %v367_v59  ;;  %v2758_v7 = vrot.slane %v1409_v22, 4  ;;  %v2765_v21 = vrot.slane %v1412_v23, 4  ;;  %2921 = vst [vmem:[#allocation33_spill] sm:$0xff] %v1636_v53  ;;  %2931 = vst [vmem:[#allocation43_spill] sm:$0xff] %v1700_v16 }
  0x27   : > { %325 = vrot.lane.b32.xlu0 %v1404_v19, %s1306_s21  ;;  %v372_v5 = vunpack.c.l.bf16 %v2763_v61  ;;  %v1523_v14 = vmul.f32 %v370_v60, %v370_v60  ;;  %v1525_v15 = vmul.f32 %v369_v3, %v369_v3  ;;  %v371_v20 = vunpack.c.l.bf16 %v2768_v4  ;;  %v1604_v61 = vld [vmem:[%s1354_s20 + $0x58] sm:$0xff] }
  0x28   : > { %v374_v27 = vunpack.c.l.bf16 %v2758_v7  ;;  %v373_v33 = vunpack.c.l.bf16 %v2765_v21  ;;  %v2759_v38 = vrot.slane %v1425_v28, 4  ;;  %v2756_v39 = vrot.slane %v1428_v29, 4  ;;  %v1585_v7 = vld [vmem:[%s1354_s20 + $0x38] sm:$0xff]  ;;  %2913 = vst [vmem:[#allocation25_spill] sm:$0xff] %v1604_v61  ;;  %v1668_v28 = vld [vmem:[%s1354_s20 + $0x50] sm:$0xff] }
  0x29   : > { %v1530_v26 = vmul.f32 %v372_v5, %v372_v5  ;;  %v1538_v32 = vmul.f32 %v371_v20, %v371_v20  ;;  %v2757_v42 = vrot.slane %v1441_v34, 4  ;;  %v2762_v46 = vrot.slane %v1444_v35, 4  ;;  %2908 = vst [vmem:[#allocation20_spill] sm:$0xff] %v1585_v7  ;;  %v1652_v34 = vld [vmem:[%s1354_s20 + $0x10] sm:$0xff]  ;;  %2927 = vst [vmem:[#allocation39_spill] sm:$0xff] %v1668_v28 }
  0x2a   : > { %331 = vrot.lane.b32.xlu1 %v1418_v24, %s1306_s21  ;;  %v1550_v49 = vmul.f32 %v374_v27, %v374_v27  ;;  %v1552_v51 = vmul.f32 %v373_v33, %v373_v33  ;;  %v376_v58 = vunpack.c.l.bf16 %v2759_v38  ;;  %v375_v59 = vunpack.c.l.bf16 %v2756_v39  ;;  %v1588_v38 = vld [vmem:[%s1354_s20 + $0x18] sm:$0xff] }
  0x2b   : > { %329 = vrot.lane.b32.xlu0 %v1420_v25, %s1306_s21  ;;  %v378_v60 = vunpack.c.l.bf16 %v2757_v42  ;;  %v2760_v3 = vrot.slane %v1460_v41, 4  ;;  %v377_v27 = vunpack.c.l.bf16 %v2762_v46  ;;  %v2761_v33 = vrot.slane %v1457_v40, 4  ;;  %2909 = vst [vmem:[#allocation21_spill] sm:$0xff] %v1588_v38  ;;  %v1601_v46 = vld [vmem:[%s1354_s20 + $0x78] sm:$0xff] }
  0x2c   : > { %v1565_v5 = vmul.f32 %v376_v58, %v376_v58  ;;  %v1567_v20 = vmul.f32 %v375_v59, %v375_v59  ;;  %2912 = vst [vmem:[#allocation24_spill] sm:$0xff] %v1601_v46  ;;  %v516_v54 = vunpack.c.l.bf16 %v1601_v46  ;;  %v514_v21 = vunpack.c.l.bf16 %v1604_v61 }
  0x2d   : > { %v1576_v39 = vmul.f32 %v378_v60, %v378_v60  ;;  %v1578_v42 = vmul.f32 %v377_v27, %v377_v27  ;;  %v379_v58 = vunpack.c.l.bf16 %v2760_v3  ;;  %v380_v59 = vunpack.c.l.bf16 %v2761_v33 }
  0x2e   : > { %335 = vrot.lane.b32.xlu1 %v1434_v30, %s1306_s21  ;;  %2905 = vst [vmem:[#allocation17_spill] sm:$0xff] %v1565_v5  ;;  %2906 = vst [vmem:[#allocation18_spill] sm:$0xff] %v1567_v20  ;;  %v512_v3 = vunpack.c.l.bf16 %v1585_v7  ;;  %v510_v33 = vunpack.c.l.bf16 %v1588_v38  ;;  %v520_v4 = vunpack.c.l.bf16 %v1617_v52  ;;  %v518_v55 = vunpack.c.l.bf16 %v1620_v43 }
  0x2f   : > { %333 = vrot.lane.b32.xlu0 %v1436_v31, %s1306_s21  ;;  %2907 = vst [vmem:[#allocation19_spill] sm:$0xff] %v1576_v39  ;;  %v1594_v60 = vmul.f32 %v379_v58, %v379_v58  ;;  %v1596_v27 = vmul.f32 %v380_v59, %v380_v59  ;;  %v524_v41 = vunpack.c.l.bf16 %v1633_v47  ;;  %v522_v29 = vunpack.c.l.bf16 %v1636_v53 }
  0x30   : > { %v1610_v58 = vmul.f32 %v512_v3, %v512_v3  ;;  %v1612_v59 = vmul.f32 %v510_v33, %v510_v33  ;;  %v1626_v3 = vmul.f32 %v516_v54, %v516_v54  ;;  %v1628_v33 = vmul.f32 %v514_v21, %v514_v21 }
  0x31   : > { %2910 = vst [vmem:[#allocation22_spill] sm:$0xff] %v1594_v60  ;;  %2911 = vst [vmem:[#allocation23_spill] sm:$0xff] %v1596_v27  ;;  %v1642_v54 = vmul.f32 %v520_v4, %v520_v4  ;;  %v1644_v21 = vmul.f32 %v518_v55, %v518_v55  ;;  %v1658_v4 = vmul.f32 %v524_v41, %v524_v41  ;;  %v509_v22 = vunpack.c.l.bf16 %v1652_v34 }
  0x32   : > { %339 = vrot.lane.b32.xlu1 %v1450_v36, %s1306_s21  ;;  %2914 = vst [vmem:[#allocation26_spill] sm:$0xff] %v1610_v58  ;;  %2915 = vst [vmem:[#allocation27_spill] sm:$0xff] %v1612_v59  ;;  %v1660_v55 = vmul.f32 %v522_v29, %v522_v29  ;;  %v513_v35 = vunpack.c.l.bf16 %v1668_v28  ;;  %v2812_v6 = vrot.slane %v1601_v46, 4 }
  0x33   : > { %337 = vrot.lane.b32.xlu0 %v1452_v37, %s1306_s21  ;;  %2918 = vst [vmem:[#allocation30_spill] sm:$0xff] %v1626_v3  ;;  %2919 = vst [vmem:[#allocation31_spill] sm:$0xff] %v1628_v33  ;;  %v1676_v29 = vmul.f32 %v509_v22, %v509_v22 }
  0x34   : > { %2922 = vst [vmem:[#allocation34_spill] sm:$0xff] %v1642_v54  ;;  %2923 = vst [vmem:[#allocation35_spill] sm:$0xff] %v1644_v21 }
  0x35   : > { %2924 = vst [vmem:[#allocation36_spill] sm:$0xff] %v1658_v4  ;;  %2925 = vst [vmem:[#allocation37_spill] sm:$0xff] %v1660_v55 }
  0x36   : > { %343 = vrot.lane.b32.xlu1 %v1468_v44, %s1306_s21 }
  0x37   : > { %341 = vrot.lane.b32.xlu0 %v1470_v45, %s1306_s21 }
  0x3a   : > { %347 = vrot.lane.b32.xlu1 %v1474_v48, %s1306_s21 }
  0x3b   : > { %345 = vrot.lane.b32.xlu0 %v1482_v50, %s1306_s21  ;;  %v1665_v50 = vld [vmem:[%s1354_s20 + $0x70] sm:$0xff] }
  0x3c   : > { %2926 = vst [vmem:[#allocation38_spill] sm:$0xff] %v1665_v50 }
  0x3e   : > { %399 = vrot.lane.b32.xlu1 %v1494_v56, %s1306_s21 }
  0x3f   : > { %397 = vrot.lane.b32.xlu0 %v1496_v57, %s1306_s21 }
  0x42   : > { %403 = vrot.lane.b32.xlu1 %v1509_v62, %s1306_s21 }
  0x43   : > { %401 = vrot.lane.b32.xlu0 %v1511_v63, %s1306_s21 }
  0x46   : > { %407 = vrot.lane.b32.xlu1 %v1523_v14, %s1306_s21 }
  0x47   : > { %405 = vrot.lane.b32.xlu0 %v1525_v15, %s1306_s21 }
  0x4a   : > { %411 = vrot.lane.b32.xlu1 %v1530_v26, %s1306_s21 }
  0x4b   : > { %409 = vrot.lane.b32.xlu0 %v1538_v32, %s1306_s21 }
  0x4e   : > { %415 = vrot.lane.b32.xlu1 %v1550_v49, %s1306_s21 }
  0x4f   : > { %413 = vrot.lane.b32.xlu0 %v1552_v51, %s1306_s21 }
  0x52   : > { %419 = vrot.lane.b32.xlu1 %v1565_v5, %s1306_s21 }
  0x53   : > { %417 = vrot.lane.b32.xlu0 %v1567_v20, %s1306_s21  ;;  %v1697_v20 = vld [vmem:[%s1354_s20 + $0xf0] sm:$0xff] }
  0x54   : > { %2930 = vst [vmem:[#allocation42_spill] sm:$0xff] %v1697_v20  ;;  %v523_v8 = vunpack.c.l.bf16 %v1697_v20 }
  0x56   : > { %423 = vrot.lane.b32.xlu1 %v1576_v39, %s1306_s21  ;;  %v521_v39 = vunpack.c.l.bf16 %v1700_v16  ;;  %v1714_v23 = vmul.f32 %v523_v8, %v523_v8  ;;  %v2822_v8 = vrot.slane %v1633_v47, 4 }
  0x57   : > { %421 = vrot.lane.b32.xlu0 %v1578_v42, %s1306_s21 }
  0x58   : > { %2934 = vst [vmem:[#allocation46_spill] sm:$0xff] %v1714_v23  ;;  %v1716_v2 = vmul.f32 %v521_v39, %v521_v39  ;;  %v2823_v39 = vrot.slane %v1636_v53, 4  ;;  %v668_v46 = vunpack.c.l.bf16 %v2822_v8  ;;  %v2835_v53 = vrot.slane %v1668_v28, 4 }
  0x5a   : > { %425 = vrot.lane.b32.xlu1 %v1594_v60, %s1306_s21  ;;  %v1649_v60 = vld [vmem:[%s1354_s20 + $0x30] sm:$0xff]  ;;  %2935 = vst [vmem:[#allocation47_spill] sm:$0xff] %v1716_v2 }
  0x5b   : > { %427 = vrot.lane.b32.xlu0 %v1596_v27, %s1306_s21  ;;  %v511_v40 = vunpack.c.l.bf16 %v1649_v60  ;;  %v2808_v27 = vrot.slane %v1588_v38, 4 }
  0x5d   : > { %v1674_v41 = vmul.f32 %v511_v40, %v511_v40  ;;  %v1692_v40 = vmul.f32 %v513_v35, %v513_v35 }
  0x5e   : > { %547 = vrot.lane.b32.xlu1 %v1610_v58, %s1306_s21 }
  0x5f   : > { %543 = vrot.lane.b32.xlu0 %v1612_v59, %s1306_s21  ;;  %v2815_v59 = vrot.slane %v1604_v61, 4  ;;  %v2941_v61 = vrot.slane %v1620_v43, 4  ;;  %v1770_v43 = vmul.f32 %v668_v46, %v668_v46 }
  0x61   : > { %v658_v38 = vunpack.c.l.bf16 %v2815_v59  ;;  %v662_v59 = vunpack.c.l.bf16 %v2941_v61  ;;  %v2829_v61 = vrot.slane %v1652_v34, 4  ;;  %2944 = vst [vmem:[#allocation54_spill] sm:$0xff] %v1770_v43 }
  0x62   : > { %555 = vrot.lane.b32.xlu1 %v1626_v3, %s1306_s21  ;;  %v2807_v3 = vrot.slane %v1585_v7, 4  ;;  %v666_v7 = vunpack.c.l.bf16 %v2823_v39  ;;  %v2833_v39 = vrot.slane %v1665_v50, 4 }
  0x63   : > { %551 = vrot.lane.b32.xlu0 %v1628_v33, %s1306_s21  ;;  %v1684_v33 = vld [vmem:[%s1354_s20 + $0x90] sm:$0xff] }
  0x64   : > { %2929 = vst [vmem:[#allocation41_spill] sm:$0xff] %v1684_v33  ;;  %v1772_v8 = vmul.f32 %v666_v7, %v666_v7 }
  0x66   : > { %563 = vrot.lane.b32.xlu1 %v1642_v54, %s1306_s21  ;;  %v1681_v54 = vld [vmem:[%s1354_s20 + $0xb0] sm:$0xff]  ;;  %2945 = vst [vmem:[#allocation55_spill] sm:$0xff] %v1772_v8 }
  0x67   : > { %559 = vrot.lane.b32.xlu0 %v1644_v21, %s1306_s21  ;;  %v515_v21 = vunpack.c.l.bf16 %v1665_v50  ;;  %2928 = vst [vmem:[#allocation40_spill] sm:$0xff] %v1681_v54  ;;  %v519_v22 = vunpack.c.l.bf16 %v1681_v54 }
  0x69   : > { %v1708_v35 = vmul.f32 %v519_v22, %v519_v22  ;;  %v656_v22 = vunpack.c.l.bf16 %v2807_v3 }
  0x6a   : > { %571 = vrot.lane.b32.xlu1 %v1658_v4, %s1306_s21  ;;  %v1690_v4 = vmul.f32 %v515_v21, %v515_v21 }
  0x6b   : > { %567 = vrot.lane.b32.xlu0 %v1660_v55, %s1306_s21  ;;  %v517_v55 = vunpack.c.l.bf16 %v1684_v33  ;;  %2932 = vst [vmem:[#allocation44_spill] sm:$0xff] %v1708_v35 }
  0x6d   : > { %v1710_v21 = vmul.f32 %v517_v55, %v517_v55  ;;  %v654_v55 = vunpack.c.l.bf16 %v2808_v27  ;;  %v660_v27 = vunpack.c.l.bf16 %v2812_v6 }
  0x6e   : > { %545 = vrot.lane.b32.xlu1 %v1674_v41, %s1306_s21 }
  0x6f   : > { %541 = vrot.lane.b32.xlu0 %v1676_v29, %s1306_s21  ;;  %2933 = vst [vmem:[#allocation45_spill] sm:$0xff] %v1710_v21  ;;  %v1736_v3 = vmul.f32 %v654_v55, %v654_v55  ;;  %v1750_v55 = vmul.f32 %v658_v38, %v658_v38 }
  0x71   : > { %2937 = vst [vmem:[#allocation49_spill] sm:$0xff] %v1736_v3  ;;  %2939 = vst [vmem:[#allocation51_spill] sm:$0xff] %v1750_v55 }
  0x72   : > { %553 = vrot.lane.b32.xlu1 %v1690_v4, %s1306_s21 }
  0x73   : > { %549 = vrot.lane.b32.xlu0 %v1692_v40, %s1306_s21 }
  0x76   : > { %561 = vrot.lane.b32.xlu1 %v1708_v35, %s1306_s21  ;;  %v1734_v35 = vmul.f32 %v656_v22, %v656_v22  ;;  %v1748_v22 = vmul.f32 %v660_v27, %v660_v27  ;;  %v1766_v27 = vmul.f32 %v662_v59, %v662_v59  ;;  %v653_v59 = vunpack.c.l.bf16 %v2829_v61 }
  0x77   : > { %557 = vrot.lane.b32.xlu0 %v1710_v21, %s1306_s21  ;;  %v659_v61 = vunpack.c.l.bf16 %v2833_v39 }
  0x78   : > { %2936 = vst [vmem:[#allocation48_spill] sm:$0xff] %v1734_v35  ;;  %2938 = vst [vmem:[#allocation50_spill] sm:$0xff] %v1748_v22 }
  0x79   : > { %2943 = vst [vmem:[#allocation53_spill] sm:$0xff] %v1766_v27 }
  0x7a   : > { %569 = vrot.lane.b32.xlu1 %v1714_v23, %s1306_s21  ;;  %v2940_v23 = vrot.slane %v1617_v52, 4  ;;  %v657_v52 = vunpack.c.l.bf16 %v2835_v53 }
  0x7b   : > { %565 = vrot.lane.b32.xlu0 %v1716_v2, %s1306_s21 }
  0x7c   : > { %v664_v6 = vunpack.c.l.bf16 %v2940_v23  ;;  %v2828_v23 = vrot.slane %v1649_v60, 4 }
  0x7e   : > { %691 = vrot.lane.b32.xlu1 %v1734_v35, %s1306_s21  ;;  %v1764_v38 = vmul.f32 %v664_v6, %v664_v6  ;;  %v655_v6 = vunpack.c.l.bf16 %v2828_v23  ;;  %v1792_v23 = vmul.f32 %v653_v59, %v653_v59  ;;  %v1806_v59 = vmul.f32 %v657_v52, %v657_v52 }
  0x7f   : > { %687 = vrot.lane.b32.xlu0 %v1736_v3, %s1306_s21  ;;  %v2954_v52 = vrot.slane %v1697_v20, 4 }
  0x80   : > { %2942 = vst [vmem:[#allocation52_spill] sm:$0xff] %v1764_v38  ;;  %v1790_v47 = vmul.f32 %v655_v6, %v655_v6  ;;  %2947 = vst [vmem:[#allocation57_spill] sm:$0xff] %v1792_v23  ;;  %v1804_v6 = vmul.f32 %v659_v61, %v659_v61 }
  0x81   : > { %2949 = vst [vmem:[#allocation59_spill] sm:$0xff] %v1806_v59 }
  0x82   : > { %699 = vrot.lane.b32.xlu1 %v1748_v22, %s1306_s21  ;;  %2946 = vst [vmem:[#allocation56_spill] sm:$0xff] %v1790_v47  ;;  %2948 = vst [vmem:[#allocation58_spill] sm:$0xff] %v1804_v6 }
  0x83   : > { %695 = vrot.lane.b32.xlu0 %v1750_v55, %s1306_s21 }
  0x86   : > { %707 = vrot.lane.b32.xlu1 %v1764_v38, %s1306_s21 }
  0x87   : > { %703 = vrot.lane.b32.xlu0 %v1766_v27, %s1306_s21 }
  0x8a   : > { %715 = vrot.lane.b32.xlu1 %v1770_v43, %s1306_s21  ;;  %v2951_v43 = vrot.slane %v1684_v33, 4 }
  0x8b   : > { %711 = vrot.lane.b32.xlu0 %v1772_v8, %s1306_s21  ;;  %v2950_v8 = vrot.slane %v1681_v54, 4 }
  0x8c   : > { %v661_v53 = vunpack.c.l.bf16 %v2951_v43 }
  0x8d   : > { %v663_v39 = vunpack.c.l.bf16 %v2950_v8  ;;  %v2955_v8 = vrot.slane %v1700_v16, 4 }
  0x8e   : > { %689 = vrot.lane.b32.xlu1 %v1790_v47, %s1306_s21  ;;  %v1818_v61 = vmul.f32 %v661_v53, %v661_v53 }
  0x8f   : > { %685 = vrot.lane.b32.xlu0 %v1792_v23, %s1306_s21  ;;  %v1816_v7 = vmul.f32 %v663_v39, %v663_v39  ;;  %v667_v23 = vunpack.c.l.bf16 %v2954_v52  ;;  %v665_v54 = vunpack.c.l.bf16 %v2955_v8 }
  0x90   : > { %v322_v27 = vpop.permute.xlu1 %321  ;;  %2953 = vst [vmem:[#allocation61_spill] sm:$0xff] %v1818_v61 }
  0x91   : > { %v318_v46 = vpop.permute.xlu0 %317  ;;  %2952 = vst [vmem:[#allocation60_spill] sm:$0xff] %v1816_v7  ;;  %v1832_v39 = vmul.f32 %v667_v23, %v667_v23  ;;  %v1834_v53 = vmul.f32 %v665_v54, %v665_v54  ;;  %v351_v28 = vadd.f32 %v322_v27, %v1378_v10 }
  0x92   : > { %697 = vrot.lane.b32.xlu1 %v1804_v6, %s1306_s21 }
  0x93   : > { %693 = vrot.lane.b32.xlu0 %v1806_v59, %s1306_s21  ;;  %2956 = vst [vmem:[#allocation62_spill] sm:$0xff] %v1832_v39  ;;  %2957 = vst [vmem:[#allocation63_spill] sm:$0xff] %v1834_v53 }
  0x94   : > { %v1824_v47 = vpop.permute.xlu1 %323 }
  0x95   : > { %v1826_v43 = vpop.permute.xlu0 %319 }
  0x96   : > { %705 = vrot.lane.b32.xlu1 %v1816_v7, %s1306_s21 }
  0x97   : > { %701 = vrot.lane.b32.xlu0 %v1818_v61, %s1306_s21 }
  0x98   : > { %v1836_v59 = vpop.permute.xlu1 %327 }
  0x99   : > { %v326_v52 = vpop.permute.xlu0 %325 }
  0x9a   : > { %713 = vrot.lane.b32.xlu1 %v1832_v39, %s1306_s21 }
  0x9b   : > { %709 = vrot.lane.b32.xlu0 %v1834_v53, %s1306_s21  ;;  %v349_v53 = vadd.f32 %v318_v46, %v1380_v11  ;;  %v353_v11 = vadd.f32 %v326_v52, %v1404_v19 }
  0x9c   : > { %v1842_v8 = vpop.permute.xlu1 %331 }
  0x9d   : > { %v330_v20 = vpop.permute.xlu0 %329 }
  0x9e   : > { %v355_v10 = vadd.f32 %v330_v20, %v1420_v25 }
  0xa0   : > { %v1844_v7 = vpop.permute.xlu1 %335 }
  0xa1   : > { %v334_v6 = vpop.permute.xlu0 %333 }
  0xa2   : > { %v1879_v19 = vadd.f32 %v334_v6, %v1436_v31 }
  0xa4   : > { %v1846_v61 = vpop.permute.xlu1 %339 }
  0xa5   : > { %v1848_v23 = vpop.permute.xlu0 %337 }
  0xa8   : > { %v1850_v54 = vpop.permute.xlu1 %343 }
  0xa9   : > { %v342_v38 = vpop.permute.xlu0 %341 }
  0xac   : > { %v1852_v55 = vpop.permute.xlu1 %347 }
  0xad   : > { %v1854_v22 = vpop.permute.xlu0 %345 }
  0xae   : > { %2958 = vst [vmem:[#allocation64_spill] sm:$0xff] %v1854_v22 }
  0xb0   : > { %v400_v39 = vpop.permute.xlu1 %399 }
  0xb1   : > { %v398_v16 = vpop.permute.xlu0 %397 }
  0xb2   : > { %v429_v3 = vadd.f32 %v398_v16, %v1496_v57 }
  0xb4   : > { %vm445_vm0 = vcmp.gt.f32.partialorder %v429_v3, %v349_v53  ;;  %v404_v35 = vpop.permute.xlu1 %403 }
  0xb5   : > { %v402_v33 = vpop.permute.xlu0 %401  ;;  %v1859_v2 = vsel %vm445_vm0, %v429_v3, %v349_v53  ;;  %vm1941_vm8 = vmpackc.low %vm445_vm0, %vm445_vm0  ;;  %v1959_v3 = vadd.f32 %v1842_v8, %v1418_v24  ;;  %v1984_v24 = vadd.f32 %v1846_v61, %v1450_v36  ;;  %v2981_v36 = vrot.slane %v1360_v1, 4 }
  0xb6   : > { %v431_v21 = vadd.f32 %v402_v33, %v1511_v63  ;;  %v2031_v61 = vadd.f32 %v1850_v54, %v1468_v44  ;;  %v2035_v53 = vadd.f32 %v1852_v55, %v1474_v48  ;;  %v2991_v54 = vld [vmem:[#allocation26_spill] sm:$0xff]  ;;  %v3018_v48 = vld [vmem:[#allocation19_spill] sm:$0xff] }
  0xb8   : > { %vm447_vm1 = vcmp.gt.f32.partialorder %v431_v21, %v351_v28  ;;  %v408_v50 = vpop.permute.xlu1 %407 }
  0xb9   : > { %v406_v5 = vpop.permute.xlu0 %405  ;;  %v1864_v22 = vsel %vm447_vm1, %v431_v21, %v351_v28  ;;  %vm463_vm9 = vmpackc.low %vm447_vm1, %vm447_vm1  ;;  %v434_v28 = vadd.f32 %v408_v50, %v1523_v14  ;;  %v2978_v50 = vrot.slane %v1357_v0, 4  ;;  %v2005_v21 = vsel %vm1941_vm8, %v2981_v36, %v1360_v1 }
  0xba   : > { %v433_v16 = vadd.f32 %v406_v5, %v1525_v15  ;;  %v2027_v1 = vadd.f32 %v1848_v23, %v1452_v37 }
  0xbb   : > { %v1989_v14 = vsel %vm463_vm9, %v2978_v50, %v1357_v0  ;;  %v3046_v0 = vld [vmem:[#allocation13_spill] sm:$0xff] }
  0xbc   : > { %vm449_vm2 = vcmp.gt.f32.partialorder %v433_v16, %v353_v11  ;;  %v412_v57 = vpop.permute.xlu1 %411 }
  0xbd   : > { %v410_v46 = vpop.permute.xlu0 %409  ;;  %v1869_v58 = vsel %vm449_vm2, %v433_v16, %v353_v11  ;;  %vm1963_vm10 = vmpackc.low %vm449_vm2, %vm449_vm2 }
  0xbe   : > { %v435_v63 = vadd.f32 %v410_v46, %v1538_v32  ;;  %v1895_v46 = vadd.f32 %v342_v38, %v1470_v45 }
  0xc0   : > { %vm451_vm3 = vcmp.gt.f32.partialorder %v435_v63, %v355_v10  ;;  %v1873_v33 = vpop.permute.xlu1 %415  ;;  %2962 = vst [vmem:[#allocation68_spill] sm:$0xff] %v1895_v46 }
  0xc1   : > { %v414_v27 = vpop.permute.xlu0 %413  ;;  %v1876_v17 = vsel %vm451_vm3, %v435_v63, %v355_v10  ;;  %vm1970_vm14 = vmpackc.low %vm451_vm3, %vm451_vm3  ;;  %v438_v44 = vadd.f32 %v1873_v33, %v1550_v49  ;;  %v2989_v49 = vld [vmem:[#allocation7_spill] sm:$0xff]  ;;  %v2994_v10 = vld [vmem:[#allocation17_spill] sm:$0xff] }
  0xc2   : > { %v437_v15 = vadd.f32 %v414_v27, %v1552_v51  ;;  %v2990_v8 = vrot.slane %v2989_v49, 4  ;;  %v2995_v33 = vld [vmem:[#allocation27_spill] sm:$0xff] }
  0xc4   : > { %vm453_vm4 = vcmp.gt.f32.partialorder %v437_v15, %v1879_v19  ;;  %v1883_v5 = vpop.permute.xlu1 %419  ;;  %v2073_v23 = vsel %vm1970_vm14, %v2990_v8, %v2989_v49  ;;  %v3013_v8 = vld [vmem:[#allocation23_spill] sm:$0xff] }
  0xc5   : > { %v1885_v52 = vpop.permute.xlu0 %417  ;;  %v1890_v25 = vsel %vm453_vm4, %v437_v15, %v1879_v19  ;;  %vm2052_vm9 = vmpackc.low %vm453_vm4, %vm453_vm4  ;;  %v440_v63 = vadd.f32 %v1883_v5, %v2994_v10  ;;  %v2996_v15 = vld [vmem:[#allocation38_spill] sm:$0xff] }
  0xc6   : > { %2959 = vst [vmem:[#allocation65_spill] sm:$0xff] %v1885_v52  ;;  %2960 = vst [vmem:[#allocation66_spill] sm:$0xff] %v1890_v25  ;;  %v3015_v10 = vld [vmem:[#allocation30_spill] sm:$0xff] }
  0xc8   : > { %v1892_v32 = vpop.permute.xlu1 %423 }
  0xc9   : > { %2961 = vst [vmem:[#allocation67_spill] sm:$0xff] %v1892_v32  ;;  %v422_v20 = vpop.permute.xlu0 %421 }
  0xca   : > { %v1898_v31 = vadd.f32 %v422_v20, %v1578_v42  ;;  %v1918_v20 = vadd.f32 %v400_v39, %v1494_v56  ;;  %v432_v56 = vadd.f32 %v404_v35, %v1509_v62  ;;  %v354_v62 = vadd.f32 %v1836_v59, %v1402_v18 }
  0xcb   : > { %v1980_v18 = vadd.f32 %v1844_v7, %v1434_v30  ;;  %v2997_v39 = vmov 0 }
  0xcc   : > { %vm2872_vm5 = vcmp.gt.f32.partialorder %v1898_v31, %v1895_v46  ;;  %v1902_v51 = vpop.permute.xlu1 %425  ;;  %vm450_vm8 = vcmp.gt.f32.partialorder %v434_v28, %v354_v62 }
  0xcd   : > { %2963 = vst [vmem:[#allocation69_spill] sm:$0xff] %v1902_v51  ;;  %v1904_v6 = vpop.permute.xlu0 %427  ;;  %v1911_v27 = vsel %vm2872_vm5, %v1898_v31, %v1895_v46  ;;  %vm2113_vm14 = vmpackc.low %vm450_vm8, %vm450_vm8 }
  0xce   : > { %2964 = vst [vmem:[#allocation70_spill] sm:$0xff] %v1904_v6  ;;  %2965 = vst [vmem:[#allocation71_spill] sm:$0xff] %v1911_v27  ;;  %v350_v6 = vadd.f32 %v1826_v43, %v1388_v13 }
  0xd0   : > { %v548_v52 = vpop.permute.xlu1 %547  ;;  %vm446_vm6 = vcmp.gt.f32.partialorder %v1918_v20, %v350_v6 }
  0xd1   : > { %v544_v45 = vpop.permute.xlu0 %543  ;;  %vm1934_vm7 = vmpackc.low %vm446_vm6, %vm446_vm6  ;;  %v576_v11 = vadd.f32 %v548_v52, %v2991_v54 }
  0xd2   : > { %v574_v19 = vadd.f32 %v544_v45, %v2995_v33 }
  0xd4   : > { %v1913_v38 = vpop.permute.xlu1 %555 }
  0xd5   : > { %v1915_v42 = vpop.permute.xlu0 %551  ;;  %v3014_v54 = vld [vmem:[#allocation70_spill] sm:$0xff]  ;;  %v580_v33 = vadd.f32 %v1913_v38, %v3015_v10  ;;  %v3020_v38 = vmov 0 }
  0xd6   : > { %2966 = vst [vmem:[#allocation72_spill] sm:$0xff] %v1915_v42  ;;  %v3006_v42 = vld [vmem:[#allocation3_spill] sm:$0xff] }
  0xd8   : > { %v1920_v32 = vpop.permute.xlu1 %563 }
  0xd9   : > { %v1922_v51 = vpop.permute.xlu0 %559 }
  0xda   : > { %2967 = vst [vmem:[#allocation73_spill] sm:$0xff] %v1922_v51 }
  0xdc   : > { %v1927_v46 = vpop.permute.xlu1 %571 }
  0xdd   : > { %2968 = vst [vmem:[#allocation74_spill] sm:$0xff] %v1927_v46  ;;  %v1929_v27 = vpop.permute.xlu0 %567 }
  0xde   : > { %2969 = vst [vmem:[#allocation75_spill] sm:$0xff] %v1929_v27  ;;  %v352_v27 = vadd.f32 %v1824_v47, %v1386_v12  ;;  %v3001_v12 = vld [vmem:[#allocation4_spill] sm:$0xff] }
  0xdf   : > { %v3002_v5 = vrot.slane %v3001_v12, 4 }
  0xe0   : > { %v546_v13 = vpop.permute.xlu1 %545  ;;  %vm448_vm13 = vcmp.gt.f32.partialorder %v432_v56, %v352_v27 }
  0xe1   : > { %v542_v43 = vpop.permute.xlu0 %541  ;;  %v1950_v46 = vadd.f32 %v546_v13, %v1674_v41  ;;  %v436_v41 = vadd.f32 %v412_v57, %v1530_v26  ;;  %vm2039_vm3 = vmpackc.low %vm448_vm13, %vm448_vm13  ;;  %v2999_v13 = vld [vmem:[#allocation45_spill] sm:$0xff]  ;;  %v2109_v45 = vsel %vm1934_vm7, %v3002_v5, %v3001_v12  ;;  %v496_v50 = vsel %vm448_vm13, %v432_v56, %v352_v27  ;;  %v3019_v12 = vld [vmem:[#allocation67_spill] sm:$0xff] }
  0xe2   : > { %v1953_v51 = vadd.f32 %v542_v43, %v1676_v29  ;;  %v2168_v5 = vadd.f32 %v3019_v12, %v3018_v48  ;;  %v3029_v12 = vld [vmem:[#allocation68_spill] sm:$0xff]  ;;  %v3034_v27 = vld [vmem:[#allocation18_spill] sm:$0xff] }
  0xe3   : > { %vm2871_vm15 = vcmp.gt.f32.partialorder %v1950_v46, %v1864_v22  ;;  %vm452_vm5 = vcmp.gt.f32.partialorder %v436_v41, %v1959_v3 }
  0xe4   : > { %vm2870_vm0 = vcmp.gt.f32.partialorder %v1953_v51, %v1859_v2  ;;  %vm1996_vm1 = vmpackc.low %vm2871_vm15, %vm2871_vm15  ;;  %v554_v30 = vpop.permute.xlu1 %553  ;;  %v500_v47 = vsel %vm452_vm5, %v436_v41, %v1959_v3  ;;  %v3040_v41 = vld [vmem:[#allocation71_spill] sm:$0xff] }
  0xe5   : > { %v550_v35 = vpop.permute.xlu0 %549  ;;  %vm2015_vm2 = vmpackc.low %vm2870_vm0, %vm2870_vm0  ;;  %v2020_v7 = vadd.f32 %v554_v30, %v1690_v4  ;;  %v494_v30 = vsel %vm446_vm6, %v1918_v20, %v350_v6  ;;  %vm454_vm6 = vcmp.gt.f32.partialorder %v438_v44, %v1980_v18  ;;  %v2142_v6 = vsel %vm450_vm8, %v434_v28, %v354_v62  ;;  %v3010_v20 = vld [vmem:[#allocation9_spill] sm:$0xff] }
  0xe6   : > { %v2023_v59 = vadd.f32 %v550_v35, %v1692_v40  ;;  %v2988_v40 = vrot.slane %v1376_v9, 4  ;;  %v3005_v35 = vld [vmem:[#allocation39_spill] sm:$0xff]  ;;  %vm2136_vm7 = vmpackc.low %vm452_vm5, %vm452_vm5  ;;  %v3011_v56 = vrot.slane %v3010_v20, 4  ;;  %v2227_v3 = vsel %vm454_vm6, %v438_v44, %v1980_v18  ;;  %v3050_v44 = vld [vmem:[#allocation48_spill] sm:$0xff] }
  0xe7   : > { %vm2874_vm0 = vcmp.gt.f32.partialorder %v2020_v7, %v1876_v17  ;;  %vm2161_vm8 = vmand %vm782_vm11, %vm783_vm12  ;;  %vm3030_vm11 = vcmp.gt.f32.partialorder %v1898_v31, %v3029_v12  ;;  %v3039_v12 = vld [vmem:[#allocation72_spill] sm:$0xff]  ;;  %v3130_v28 = vsel %vm1996_vm1, %v1649_v60, %v1989_v14  ;;  %v3137_v14 = vrot.slane %v1652_v34, 4 }
  0xe8   : > { %vm2873_vm15 = vcmp.gt.f32.partialorder %v2023_v59, %v1869_v58  ;;  %v2065_v55 = vsel %vm1963_vm10, %v2988_v40, %v1376_v9  ;;  %vm2080_vm4 = vmpackc.low %vm2874_vm0, %vm2874_vm0  ;;  %v2084_v9 = vpop.permute.xlu1 %561  ;;  %v3007_v40 = vrot.slane %v3006_v42, 4  ;;  %v2151_v4 = vsel %vm2052_vm9, %v3011_v56, %v3010_v20  ;;  %v3025_v20 = vld [vmem:[#allocation5_spill] sm:$0xff] }
  0xe9   : > { %v558_v57 = vpop.permute.xlu0 %557  ;;  %vm2097_vm10 = vmpackc.low %vm2873_vm15, %vm2873_vm15  ;;  %3012 = vst [vmem:[#allocation26_spill] sm:$0xff] %v2151_v4  ;;  %vm456_vm15 = vcmp.gt.f32.partialorder %v440_v63, %v1984_v24  ;;  %vm2877_vm9 = vcmp.gt.f32.partialorder %v574_v19, %v494_v30  ;;  %v3026_v56 = vrot.slane %v3025_v20, 4  ;;  %v3047_v4 = vrot.slane %v3046_v0, 4 }
  0xea   : > { %v2998_v39 = vsel %vm2097_vm10, 4294967295, %v2997_v39  ;;  %v2102_v43 = vadd.f32 %v558_v57, %v2999_v13  ;;  %v2131_v49 = vsel %vm2039_vm3, %v3007_v40, %v3006_v42  ;;  %v444_v57 = vadd.f32 %v3014_v54, %v3013_v8  ;;  %v3023_v42 = vld [vmem:[#allocation47_spill] sm:$0xff]  ;;  %v3027_v54 = vld [vmem:[#allocation6_spill] sm:$0xff]  ;;  %vm2201_vm12 = vmpackc.low %vm3030_vm11, %vm3030_vm11 }
  0xeb   : > { %vm592_vm3 = vcmp.gt.f32.partialorder %v576_v11, %v496_v50  ;;  %v2188_v8 = vsel %vm2113_vm14, %v3026_v56, %v3025_v20  ;;  %v3028_v10 = vrot.slane %v3027_v54, 4  ;;  %v3035_v56 = vld [vmem:[#allocation65_spill] sm:$0xff]  ;;  %vm2234_vm11 = vmpackc.low %vm2877_vm9, %vm2877_vm9  ;;  %vm3138_vm1 = vcmp.gt.f32.partialorder %v2020_v7, %v1876_v17 }
  0xec   : > { %3000 = vst [vmem:[#allocation7_spill] sm:$0xff] %v2102_v43  ;;  %vm2875_vm13 = vcmp.gt.f32.partialorder %v2102_v43, %v1890_v25  ;;  %v2157_v13 = vpop.permute.xlu1 %569  ;;  %vm2218_vm14 = vmpackc.low %vm592_vm3, %vm592_vm3  ;;  %v640_v25 = vsel %vm592_vm3, %v576_v11, %v496_v50  ;;  %v789_v11 = vld [vmem:[%s2301_s24 + $0xc] sm:$0xf]  ;;  %v3150_v16 = vrot.slane %v3005_v35, 4 }
  0xed   : > { %v566_v62 = vpop.permute.xlu0 %565  ;;  %vm2174_vm0 = vmpackc.low %vm2875_vm13, %vm2875_vm13  ;;  %v2195_v48 = vsel %vm2136_vm7, %v3028_v10, %v3027_v54  ;;  %v2214_v54 = vadd.f32 %v3035_v56, %v3034_v27  ;;  %v3038_v10 = vld [vmem:[#allocation31_spill] sm:$0xff]  ;;  %v2241_v56 = vsel %vm456_vm15, %v440_v63, %v1984_v24 }
  0xee   : > { %v3021_v38 = vsel %vm2174_vm0, 4294967295, %v3020_v38  ;;  %v2179_v40 = vadd.f32 %v566_v62, %v3023_v42  ;;  %v578_v36 = vadd.f32 %v3039_v12, %v3038_v10  ;;  %v3043_v10 = vld [vmem:[#allocation34_spill] sm:$0xff]  ;;  %vm2250_vm7 = vmpackc.low %vm454_vm6, %vm454_vm6  ;;  %v3051_v42 = vld [vmem:[#allocation49_spill] sm:$0xff]  ;;  %vm3061_vm0 = vcmp.gt.f32.partialorder %v444_v57, %v2035_v53 }
  0xef   : > { %3022 = vst [vmem:[#allocation17_spill] sm:$0xff] %v3021_v38  ;;  %v2245_v12 = vadd.f32 %v1920_v32, %v3043_v10  ;;  %v2261_v32 = vsel %vm2201_vm12, %v3047_v4, %v3046_v0  ;;  %vm2276_vm6 = vmpackc.low %vm456_vm15, %vm456_vm15  ;;  %v3054_v0 = vld [vmem:[#allocation35_spill] sm:$0xff]  ;;  %v3055_v4 = vld [vmem:[#allocation73_spill] sm:$0xff]  ;;  %vm3057_vm12 = vcmp.gt.f32.partialorder %v574_v19, %v494_v30  ;;  %v2298_v63 = vsel %vm3061_vm0, %v444_v57, %v2035_v53 }
  0xf0   : > { %3024 = vst [vmem:[#allocation27_spill] sm:$0xff] %v2179_v40  ;;  %vm2886_vm5 = vcmp.gt.f32.partialorder %v2179_v40, %v3040_v41  ;;  %v692_v20 = vpop.permute.xlu1 %691  ;;  %v582_v62 = vadd.f32 %v3055_v4, %v3054_v0  ;;  %v3056_v40 = vld [vmem:[#allocation43_spill] sm:$0xff]  ;;  %v3068_v53 = vld [vmem:[#allocation74_spill] sm:$0xff] }
  0xf1   : > { %v688_v52 = vpop.permute.xlu0 %687  ;;  %vm2267_vm9 = vmpackc.low %vm2886_vm5, %vm2886_vm5  ;;  %v720_v10 = vadd.f32 %v692_v20, %v3050_v44  ;;  %v638_v20 = vsel %vm3057_vm12, %v574_v19, %v494_v30  ;;  %vm3058_vm5 = vcmp.gt.f32.partialorder %v580_v33, %v500_v47  ;;  %v3074_v0 = vld [vmem:[#allocation50_spill] sm:$0xff] }
  0xf2   : > { %v718_v38 = vadd.f32 %v688_v52, %v3051_v42  ;;  %v633_v41 = vsel %vm2267_vm9, %v3056_v40, %v2261_v32  ;;  %vm2290_vm13 = vmpackc.low %vm3058_vm5, %vm3058_vm5  ;;  %v3065_v52 = vld [vmem:[#allocation20_spill] sm:$0xff]  ;;  %v785_v42 = vld [vmem:[%s2301_s24 + $0x4] sm:$0xf] }
  0xf3   : > { %vm736_vm10 = vcmp.gt.f32.partialorder %v720_v10, %v640_v25  ;;  %vm3062_vm12 = vmmov %vm3061_vm0  ;;  %v624_v50 = vsel %vm2218_vm14, %v3065_v52, %v2131_v49  ;;  %v3066_v25 = vld [vmem:[#allocation21_spill] sm:$0xff]  ;;  %vm3069_vm14 = vcmp.gt.f32.partialorder %v2168_v5, %v2031_v61  ;;  %vm3073_vm0 = vcmp.gt.f32.partialorder %v580_v33, %v500_v47 }
  0xf4   : > { %vm734_vm3 = vcmp.gt.f32.partialorder %v718_v38, %v638_v20  ;;  %vm2307_vm5 = vmpackc.low %vm3062_vm12, %vm3062_vm12  ;;  %v622_v30 = vsel %vm2234_vm11, %v3066_v25, %v2109_v45  ;;  %v3067_v38 = vld [vmem:[#allocation36_spill] sm:$0xff]  ;;  %v700_v44 = vpop.permute.xlu1 %699  ;;  %v3072_v45 = vrot.slane %v3065_v52, 4  ;;  %v644_v27 = vsel %vm3073_vm0, %v580_v33, %v500_v47  ;;  %v3075_v20 = vld [vmem:[#allocation51_spill] sm:$0xff] }
  0xf5   : > { %v2323_v57 = vadd.f32 %v3068_v53, %v3067_v38  ;;  %vm752_vm12 = vmpackc.low %vm736_vm10, %vm736_vm10  ;;  %v696_v10 = vpop.permute.xlu0 %695  ;;  %v724_v4 = vadd.f32 %v700_v44, %v3074_v0  ;;  %vm3076_vm10 = vcmp.gt.f32.partialorder %v578_v36, %v2142_v6  ;;  %vm3081_vm0 = vcmp.gt.f32.partialorder %v2245_v12, %v2241_v56 }
  0xf6   : > { %vm2330_vm15 = vmpackc.low %vm3069_vm14, %vm3069_vm14  ;;  %v768_v31 = vsel %vm752_vm12, %v3072_v45, %v624_v50  ;;  %v722_v38 = vadd.f32 %v696_v10, %v3075_v20  ;;  %v3079_v50 = vrot.slane %v3066_v25, 4  ;;  %v3084_v10 = vld [vmem:[#allocation37_spill] sm:$0xff]  ;;  %v3085_v45 = vld [vmem:[#allocation75_spill] sm:$0xff] }
  0xf7   : > { %vm750_vm11 = vmpackc.low %vm734_vm3, %vm734_vm3  ;;  %v790_v52 = vsel %vm2161_vm8, %v768_v31, %v789_v11  ;;  %v586_v0 = vadd.f32 %v3085_v45, %v3084_v10  ;;  %v797_v25 = vld [vmem:[%s2301_s24 + $0x1c] sm:$0xf]  ;;  %v3088_v31 = vld [vmem:[#allocation24_spill] sm:$0xff] }
  0xf8   : > { %vm2342_vm9 = vmpackc.low %vm3076_vm10, %vm3076_vm10  ;;  %v766_v33 = vsel %vm750_vm11, %v3079_v50, %v622_v30  ;;  %791 = vst [vmem:[%s2301_s24 + $0xc] sm:$0xf] %v790_v52  ;;  %vm740_vm11 = vcmp.gt.f32.partialorder %v724_v4, %v644_v27  ;;  %v3086_v30 = vld [vmem:[#allocation10_spill] sm:$0xff]  ;;  %v628_v20 = vsel %vm2290_vm13, %v3088_v31, %v2195_v48  ;;  %v793_v27 = vld [vmem:[%s2301_s24 + $0x14] sm:$0xf]  ;;  %v708_v43 = vpop.permute.xlu1 %707  ;;  %v3091_v24 = vrot.slane %v3088_v31, 4 }
  0xf9   : > { %vm3080_vm3 = vmmov %vm3076_vm10  ;;  %v786_v11 = vsel %vm2161_vm8, %v766_v33, %v785_v42  ;;  %v704_v4 = vpop.permute.xlu0 %703  ;;  %v3092_v50 = vld [vmem:[#allocation52_spill] sm:$0xff] }
  0xfa   : > { %v642_v47 = vsel %vm3080_vm3, %v578_v36, %v2142_v6  ;;  %vm2358_vm12 = vmpackc.low %vm3081_vm0, %vm3081_vm0  ;;  %v3087_v36 = vrot.slane %v3086_v30, 4  ;;  %vm604_vm3 = vcmp.gt.f32.partialorder %v2323_v57, %v2298_v63  ;;  %787 = vst [vmem:[%s2301_s24 + $0x4] sm:$0xf] %v786_v11  ;;  %v728_v33 = vadd.f32 %v708_v43, %v3092_v50  ;;  %v3106_v43 = vld [vmem:[#allocation28_spill] sm:$0xff] }
  0xfb   : > { %vm738_vm10 = vcmp.gt.f32.partialorder %v722_v38, %v642_v47  ;;  %vm3089_vm0 = vmmov %vm3069_vm14  ;;  %v3090_v38 = vld [vmem:[#allocation25_spill] sm:$0xff]  ;;  %v3108_v37 = vrot.slane %v3106_v43, 4 }
  0xfc   : > { %v488_v6 = vsel %vm2276_vm6, %v3087_v36, %v3086_v30  ;;  %v506_v42 = vsel %vm3089_vm0, %v2168_v5, %v2031_v61  ;;  %vm756_vm14 = vmpackc.low %vm740_vm11, %vm740_vm11  ;;  %v626_v48 = vsel %vm2342_vm9, %v3090_v38, %v2188_v8  ;;  %v3093_v47 = vld [vmem:[#allocation53_spill] sm:$0xff]  ;;  %vm3094_vm6 = vcmp.gt.f32.partialorder %v582_v62, %v2227_v3  ;;  %v805_v36 = vld [vmem:[%s2301_s24 + $0x2c] sm:$0xf] }
  0xfd   : > { %v772_v52 = vsel %vm756_vm14, %v3091_v24, %v628_v20  ;;  %vm754_vm13 = vmpackc.low %vm738_vm10, %vm738_vm10  ;;  %v726_v61 = vadd.f32 %v704_v4, %v3093_v47  ;;  %v3097_v8 = vrot.slane %v3090_v38, 4  ;;  %vm3098_vm9 = vcmp.gt.f32.partialorder %v2245_v12, %v2241_v56  ;;  %v801_v4 = vld [vmem:[%s2301_s24 + $0x24] sm:$0xf]  ;;  %v716_v38 = vpop.permute.xlu1 %715  ;;  %v3107_v24 = vld [vmem:[#allocation29_spill] sm:$0xff] }
  0xfe   : > { %vm2397_vm11 = vmpackc.low %vm3094_vm6, %vm3094_vm6  ;;  %v798_v53 = vsel %vm2161_vm8, %v772_v52, %v797_v25  ;;  %v648_v45 = vsel %vm3098_vm9, %v2245_v12, %v2241_v56  ;;  %vm602_vm0 = vcmp.gt.f32.partialorder %v586_v0, %v506_v42  ;;  %v3102_v56 = vld [vmem:[#allocation16_spill] sm:$0xff]  ;;  %vm455_vm9 = vcmp.gt.f32.partialorder %v2214_v54, %v2027_v1 }
  0xff   : > { %v770_v10 = vsel %vm754_vm13, %v3097_v8, %v626_v48  ;;  %vm3099_vm14 = vmmov %vm3094_vm6  ;;  %799 = vst [vmem:[%s2301_s24 + $0x1c] sm:$0xf] %v798_v53  ;;  %vm744_vm13 = vcmp.gt.f32.partialorder %v728_v33, %v648_v45  ;;  %v3103_v12 = vld [vmem:[#allocation64_spill] sm:$0xff]  ;;  %v712_v48 = vpop.permute.xlu0 %711  ;;  %v3109_v33 = vld [vmem:[#allocation54_spill] sm:$0xff]  ;;  %v3113_v5 = vrot.slane %v3107_v24, 4  ;;  %v650_v45 = vsel %vm602_vm0, %v586_v0, %v506_v42 }
 0x100   : > { %v646_v11 = vsel %vm3099_vm14, %v582_v62, %v2227_v3  ;;  %vm2417_vm10 = vmpackc.low %vm604_vm3, %vm604_vm3  ;;  %v794_v30 = vsel %vm2161_vm8, %v770_v10, %v793_v27  ;;  %v2427_v31 = vadd.f32 %v3103_v12, %v3102_v56  ;;  %v3104_v3 = vld [vmem:[#allocation8_spill] sm:$0xff]  ;;  %v632_v27 = vsel %vm2358_vm12, %v3106_v43, %v488_v6  ;;  %v813_v12 = vld [vmem:[%s2301_s24 + $0x3c] sm:$0xf] }
 0x101   : > { %vm742_vm6 = vcmp.gt.f32.partialorder %v726_v61, %v646_v11  ;;  %v3105_v62 = vrot.slane %v3104_v3, 4  ;;  %795 = vst [vmem:[%s2301_s24 + $0x14] sm:$0xf] %v794_v30  ;;  %vm760_vm14 = vmpackc.low %vm744_vm13, %vm744_vm13  ;;  %v732_v47 = vadd.f32 %v716_v38, %v3109_v33  ;;  %v3110_v61 = vld [vmem:[#allocation55_spill] sm:$0xff]  ;;  %v652_v10 = vsel %vm604_vm3, %v2323_v57, %v2298_v63  ;;  %v3114_v11 = vld [vmem:[#allocation14_spill] sm:$0xff]  ;;  %v690_v38 = vpop.permute.xlu1 %689 }
 0x102   : > { %v776_v50 = vsel %vm760_vm14, %v3108_v37, %v632_v27  ;;  %v730_v44 = vadd.f32 %v712_v48, %v3110_v61  ;;  %vm2450_vm12 = vmpackc.low %vm602_vm0, %vm602_vm0  ;;  %v3115_v30 = vrot.slane %v3114_v11, 4  ;;  %v3118_v57 = vld [vmem:[#allocation22_spill] sm:$0xff]  ;;  %v3119_v0 = vld [vmem:[#allocation69_spill] sm:$0xff]  ;;  %vm3127_vm3 = vcmp.gt.f32.partialorder %v1950_v46, %v1864_v22 }
 0x103   : > { %v486_v20 = vsel %vm2250_vm7, %v3105_v62, %v3104_v3  ;;  %vm758_vm7 = vmpackc.low %vm742_vm6, %vm742_vm6  ;;  %v806_v53 = vsel %vm2161_vm8, %v776_v50, %v805_v36  ;;  %v3116_v3 = vld [vmem:[#allocation12_spill] sm:$0xff]  ;;  %v443_v42 = vadd.f32 %v3119_v0, %v3118_v57  ;;  %v686_v48 = vpop.permute.xlu0 %685  ;;  %v3125_v33 = vld [vmem:[#allocation57_spill] sm:$0xff]  ;;  %v639_v6 = vsel %vm3127_vm3, %v1950_v46, %v1864_v22 }
 0x104   : > { %v630_v52 = vsel %vm2397_vm11, %v3107_v24, %v486_v20  ;;  %v492_v56 = vsel %vm2307_vm5, %v3115_v30, %v3114_v11  ;;  %807 = vst [vmem:[%s2301_s24 + $0x2c] sm:$0xf] %v806_v53  ;;  %vm748_vm11 = vcmp.gt.f32.partialorder %v732_v47, %v652_v10  ;;  %vm746_vm13 = vcmp.gt.f32.partialorder %v730_v44, %v650_v45  ;;  %v3120_v20 = vld [vmem:[#allocation32_spill] sm:$0xff]  ;;  %v3122_v24 = vld [vmem:[#allocation33_spill] sm:$0xff]  ;;  %v3129_v22 = vld [vmem:[#allocation46_spill] sm:$0xff] }
 0x105   : > { %v774_v8 = vsel %vm758_vm7, %v3113_v5, %v630_v52  ;;  %v3117_v62 = vrot.slane %v3116_v3, 4  ;;  %v636_v19 = vsel %vm2417_vm10, %v3120_v20, %v492_v56  ;;  %v3121_v43 = vld [vmem:[#allocation44_spill] sm:$0xff]  ;;  %vm764_vm5 = vmpackc.low %vm748_vm11, %vm748_vm11  ;;  %v3123_v52 = vrot.slane %v3120_v20, 4  ;;  %v3132_v11 = vld [vmem:[#allocation58_spill] sm:$0xff] }
 0x106   : > { %v802_v36 = vsel %vm2161_vm8, %v774_v8, %v801_v4  ;;  %v583_v27 = vadd.f32 %v2084_v9, %v3121_v43  ;;  %v809_v4 = vld [vmem:[%s2301_s24 + $0x34] sm:$0xf]  ;;  %v3124_v25 = vld [vmem:[#allocation56_spill] sm:$0xff]  ;;  %v717_v47 = vadd.f32 %v686_v48, %v3125_v33  ;;  %v3126_v61 = vrot.slane %v3122_v24, 4  ;;  %v3133_v56 = vld [vmem:[#allocation59_spill] sm:$0xff] }
 0x107   : > { %v490_v63 = vsel %vm2330_vm15, %v3117_v62, %v3116_v3  ;;  %803 = vst [vmem:[%s2301_s24 + $0x24] sm:$0xf] %v802_v36  ;;  %v780_v37 = vsel %vm764_vm5, %v3123_v52, %v636_v19  ;;  %vm762_vm15 = vmpackc.low %vm746_vm13, %vm746_vm13  ;;  %v719_v50 = vadd.f32 %v690_v38, %v3124_v25  ;;  %vm3128_vm10 = vcmp.gt.f32.partialorder %v1953_v51, %v1859_v2  ;;  %v3145_v62 = vld [vmem:[#allocation61_spill] sm:$0xff]  ;;  %v3151_v20 = vld [vmem:[#allocation66_spill] sm:$0xff] }
 0x108   : > { %v634_v49 = vsel %vm2450_vm12, %v3122_v24, %v490_v63  ;;  %v814_v9 = vsel %vm2161_vm8, %v780_v37, %v813_v12  ;;  %v637_v53 = vsel %vm3128_vm10, %v1953_v51, %v1859_v2  ;;  %v503_v5 = vsel %vm455_vm9, %v2214_v54, %v2027_v1  ;;  %v698_v2 = vpop.permute.xlu1 %697  ;;  %v694_v51 = vpop.permute.xlu0 %693  ;;  %vm2533_vm11 = vmpackc.low %vm455_vm9, %vm455_vm9  ;;  %v3144_v12 = vld [vmem:[#allocation60_spill] sm:$0xff]  ;;  %v3152_v19 = vld [vmem:[#allocation7_spill] sm:$0xff] }
 0x109   : > { %v778_v44 = vsel %vm762_vm15, %v3126_v61, %v634_v49  ;;  %815 = vst [vmem:[%s2301_s24 + $0x3c] sm:$0xf] %v814_v9  ;;  %vm735_vm0 = vcmp.gt.f32.partialorder %v719_v50, %v639_v6  ;;  %vm733_vm6 = vcmp.gt.f32.partialorder %v717_v47, %v637_v53  ;;  %vm459_vm14 = vcmp.gt.f32.partialorder %v443_v42, %v2427_v31  ;;  %v3154_v43 = vld [vmem:[#allocation11_spill] sm:$0xff]  ;;  %v3160_v52 = vld [vmem:[#allocation62_spill] sm:$0xff]  ;;  %v3162_v33 = vld [vmem:[#allocation17_spill] sm:$0xff] }
 0x10a   : > { %v810_v8 = vsel %vm2161_vm8, %v778_v44, %v809_v4  ;;  %vm599_vm7 = vcmp.gt.f32.partialorder %v583_v27, %v503_v5  ;;  %v587_v46 = vadd.f32 %v2157_v13, %v3129_v22  ;;  %vm751_vm12 = vmpackc.low %vm735_vm0, %vm735_vm0  ;;  %v3131_v10 = vrot.slane %v1649_v60, 4  ;;  %v3161_v25 = vld [vmem:[#allocation63_spill] sm:$0xff]  ;;  %v3164_v47 = vld [vmem:[#allocation41_spill] sm:$0xff] }
 0x10b   : > { %811 = vst [vmem:[%s2301_s24 + $0x34] sm:$0xf] %v810_v8  ;;  %vm749_vm8 = vmpackc.low %vm733_vm6, %vm733_vm6  ;;  %v723_v30 = vadd.f32 %v698_v2, %v3132_v11  ;;  %v721_v36 = vadd.f32 %v694_v51, %v3133_v56  ;;  %v3136_v60 = vsel %vm2015_vm2, %v1652_v34, %v2005_v21  ;;  %v643_v1 = vsel %vm3138_vm1, %v2020_v7, %v1876_v17  ;;  %v3165_v9 = vld [vmem:[#allocation26_spill] sm:$0xff]  ;;  %v3169_v8 = vld [vmem:[#allocation27_spill] sm:$0xff] }
 0x10c   : > { %v767_v45 = vsel %vm751_vm12, %v3131_v10, %v3130_v28  ;;  %v765_v29 = vsel %vm749_vm8, %v3137_v14, %v3136_v60  ;;  %vm3139_vm9 = vcmp.gt.f32.partialorder %v2023_v59, %v1869_v58  ;;  %vm2557_vm13 = vmpackc.low %vm599_vm7, %vm599_vm7  ;;  %v507_v34 = vsel %vm459_vm14, %v443_v42, %v2427_v31  ;;  %v706_v17 = vpop.permute.xlu1 %705  ;;  %v702_v26 = vpop.permute.xlu0 %701  ;;  %v1216_v42 = vld [vmem:[%s1354_s20 + $0xa0] sm:$0xff] }
 0x10d   : > { %788 = vst [vmem:[%s2301_s24 + $0x8] sm:$0xf] %v767_v45  ;;  %v641_v54 = vsel %vm3139_vm9, %v2023_v59, %v1869_v58  ;;  %781 = vst [vmem:[%s2301_s24] sm:$0xf] %v765_v29  ;;  %vm739_vm2 = vcmp.gt.f32.partialorder %v723_v30, %v643_v1  ;;  %vm603_vm15 = vcmp.gt.f32.partialorder %v587_v46, %v507_v34  ;;  %v3143_v7 = vrot.slane %v2996_v15, 4  ;;  %v1217_v2 = vld [vmem:[%s1354_s20 + $0xe0] sm:$0xff]  ;;  %v3173_v45 = vld [vmem:[#allocation42_spill] sm:$0xff] }
 0x10e   : > { %vm737_vm5 = vcmp.gt.f32.partialorder %v721_v36, %v641_v54  ;;  %vm755_vm3 = vmpackc.low %vm739_vm2, %vm739_vm2  ;;  %v3142_v58 = vsel %vm2080_vm4, %v2996_v15, %v2073_v23  ;;  %v727_v3 = vadd.f32 %v706_v17, %v3144_v12  ;;  %v725_v63 = vadd.f32 %v702_v26, %v3145_v62  ;;  %v3171_v51 = vld [vmem:[#allocation15_spill] sm:$0xff] }
 0x10f   : > { %v771_v59 = vsel %vm755_vm3, %v3143_v7, %v3142_v58  ;;  %vm753_vm10 = vmpackc.low %vm737_vm5, %vm737_vm5  ;;  %vm3148_vm6 = vnez %v2998_v39  ;;  %v647_v0 = vsel %vm599_vm7, %v583_v27, %v503_v5  ;;  %vm3153_vm4 = vcmp.gt.f32.partialorder %v3152_v19, %v3151_v20  ;;  %v3168_v5 = vld [vmem:[#allocation71_spill] sm:$0xff] }
 0x110   : > { %vm2577_vm0 = vmpackc.low %vm459_vm14, %vm459_vm14  ;;  %796 = vst [vmem:[%s2301_s24 + $0x18] sm:$0xf] %v771_v59  ;;  %v3149_v23 = vsel %vm3148_vm6, %v3005_v35, %v2065_v55  ;;  %v645_v31 = vsel %vm3153_vm4, %v3152_v19, %v3151_v20  ;;  %v3155_v4 = vrot.slane %v3154_v43, 4  ;;  %vm743_vm7 = vcmp.gt.f32.partialorder %v727_v3, %v647_v0  ;;  %v3158_v35 = vld [vmem:[#allocation40_spill] sm:$0xff]  ;;  %v714_v38 = vpop.permute.xlu1 %713  ;;  %v710_v48 = vpop.permute.xlu0 %709 }
 0x111   : > { %v769_v15 = vsel %vm753_vm10, %v3150_v16, %v3149_v23  ;;  %vm2602_vm14 = vmpackc.low %vm603_vm15, %vm603_vm15  ;;  %vm741_vm12 = vcmp.gt.f32.partialorder %v725_v63, %v645_v31  ;;  %v3159_v24 = vrot.slane %v3158_v35, 4  ;;  %v731_v37 = vadd.f32 %v714_v38, %v3160_v52 }
 0x112   : > { %v487_v39 = vsel %vm2533_vm11, %v3155_v4, %v1216_v42  ;;  %792 = vst [vmem:[%s2301_s24 + $0x10] sm:$0xf] %v769_v15  ;;  %vm759_vm8 = vmpackc.low %vm743_vm7, %vm743_vm7  ;;  %v729_v50 = vadd.f32 %v710_v48, %v3161_v25  ;;  %vm3163_vm1 = vnez %v3162_v33  ;;  %v3167_v44 = vrot.slane %v3164_v47, 4 }
 0x113   : > { %v631_v27 = vsel %vm2557_vm13, %v3158_v35, %v487_v39  ;;  %vm757_vm11 = vmpackc.low %vm741_vm12, %vm741_vm12  ;;  %v3166_v61 = vsel %vm3163_vm1, %v3164_v47, %v3165_v9  ;;  %v651_v53 = vsel %vm603_vm15, %v587_v46, %v507_v34  ;;  %vm3170_vm9 = vcmp.gt.f32.partialorder %v3169_v8, %v3168_v5  ;;  %822 = sbr.rel (!%p1342_p4) target bundleno = 341 (0x155), region = 28 }
 0x114   : > { %v775_v49 = vsel %vm759_vm8, %v3159_v24, %v631_v27  ;;  %v773_v6 = vsel %vm757_vm11, %v3167_v44, %v3166_v61  ;;  %v649_v22 = vsel %vm3170_vm9, %v3169_v8, %v3168_v5  ;;  %v3172_v28 = vrot.slane %v3171_v51, 4 }
 0x115   : > { %804 = vst [vmem:[%s2301_s24 + $0x28] sm:$0xf] %v775_v49  ;;  %800 = vst [vmem:[%s2301_s24 + $0x20] sm:$0xf] %v773_v6  ;;  %vm747_vm13 = vcmp.gt.f32.partialorder %v731_v37, %v651_v53  ;;  %vm745_vm2 = vcmp.gt.f32.partialorder %v729_v50, %v649_v22  ;;  %v3174_v46 = vrot.slane %v3173_v45, 4  ;;  %v3176_v56 = vrot.slane %v3056_v40, 4 }
 0x116   : > { %v491_v10 = vsel %vm2577_vm0, %v3172_v28, %v1217_v2  ;;  %vm763_vm5 = vmpackc.low %vm747_vm13, %vm747_vm13 }
 0x117   : > { %v635_v11 = vsel %vm2602_vm14, %v3173_v45, %v491_v10  ;;  %vm761_vm15 = vmpackc.low %vm745_vm2, %vm745_vm2 }
 0x118   : > { %v779_v30 = vsel %vm763_vm5, %v3174_v46, %v635_v11  ;;  %v777_v36 = vsel %vm761_vm15, %v3176_v56, %v633_v41 }
 0x119   : > { %812 = vst [vmem:[%s2301_s24 + $0x38] sm:$0xf] %v779_v30  ;;  %808 = vst [vmem:[%s2301_s24 + $0x30] sm:$0xf] %v777_v36 }
 0x11a   : > { %s3184_s25 = smov (!%p825_p8, %s824_s25), 8 }
 0x11b   : > { %s1122_s30 = sshll.u32 %s3184_s25, 7  ;;  %s1108_s2 = sshll.u32 %s3184_s25, 1 }
 0x11c   : > { %p1109_p9 = scmp.eq.s32.totalorder %s1122_s30, 0 }
 0x11d   : > { %s2663_s3 = sshrl.u32 (!%p1109_p9), %s1108_s2, 4 }
 0x11e   : > { %836 = sbr.rel (%p1109_p9) target bundleno = 341 (0x155), region = 32  ;;  %p1110_p10 = scmp.le.s32.totalorder (!%p1109_p9), %s2663_s3, 0 }
 0x125   : > { %1049 = sbr.rel (%p1110_p10) target bundleno = 320 (0x140), region = 104  ;;  %s3177_s4 = smov (!%p1110_p10), %s2655_s29 }
 0x126   : > { %s3178_s5 = smov (!%p1110_p10), %s2301_s24  ;;  %s2672_s6 = smov (!%p1110_p10), 0  }
 0x127   : > { %s2674_s8 = smov (!%p1110_p10), 0  }
 0x12c LB: >> { %v852_v40 = vld [vmem:[%s1280_s5] sm:$0xf]  ;;  %v854_v41 = vld [vmem:[%s1280_s5 + $0x4] sm:$0xf]  ;;  %v856_v32 = vld [vmem:[%s1280_s5 + $0x8] sm:$0xf]  ;;  %s1288_s8 = sphi %s2674_s8, %s846_s8   ;;  %s1284_s6 = sphi %s2672_s6, %s3179_s6   ;;  %s1280_s5 = sphi %s3178_s5, %s889_s5   ;;  %s1276_s4 = sphi %s3177_s4, %s890_s4  }
 0x12d   : >> { %853 = vst [vmem:[%s1276_s4] sm:$0xf] %v852_v40  ;;  %855 = vst [vmem:[%s1276_s4 + $0x4] sm:$0xf] %v854_v41  ;;  %v858_v18 = vld [vmem:[%s1280_s5 + $0xc] sm:$0xf]  ;;  %s884_s9 = sadd.s32 1, %s1284_s6 }
 0x12e   : >> { %857 = vst [vmem:[%s1276_s4 + $0x8] sm:$0xf] %v856_v32  ;;  %v860_v13 = vld [vmem:[%s1280_s5 + $0x10] sm:$0xf]  ;;  %v862_v60 = vld [vmem:[%s1280_s5 + $0x14] sm:$0xf]  ;;  %p885_p11 = scmp.ge.s32.totalorder %s884_s9, %s2663_s3 }
 0x12f   : >> { %859 = vst [vmem:[%s1276_s4 + $0xc] sm:$0xf] %v858_v18  ;;  %861 = vst [vmem:[%s1276_s4 + $0x10] sm:$0xf] %v860_v13  ;;  %v864_v14 = vld [vmem:[%s1280_s5 + $0x18] sm:$0xf] }
 0x130   : >> { %863 = vst [vmem:[%s1276_s4 + $0x14] sm:$0xf] %v862_v60  ;;  %v866_v29 = vld [vmem:[%s1280_s5 + $0x1c] sm:$0xf]  ;;  %v868_v1 = vld [vmem:[%s1280_s5 + $0x20] sm:$0xf] }
 0x131   : >> { %865 = vst [vmem:[%s1276_s4 + $0x18] sm:$0xf] %v864_v14  ;;  %867 = vst [vmem:[%s1276_s4 + $0x1c] sm:$0xf] %v866_v29  ;;  %v870_v54 = vld [vmem:[%s1280_s5 + $0x24] sm:$0xf] }
 0x132   : >> { %869 = vst [vmem:[%s1276_s4 + $0x20] sm:$0xf] %v868_v1  ;;  %v872_v21 = vld [vmem:[%s1280_s5 + $0x28] sm:$0xf]  ;;  %v874_v34 = vld [vmem:[%s1280_s5 + $0x2c] sm:$0xf] }
 0x133   : >> { %871 = vst [vmem:[%s1276_s4 + $0x24] sm:$0xf] %v870_v54  ;;  %873 = vst [vmem:[%s1276_s4 + $0x28] sm:$0xf] %v872_v21  ;;  %v876_v17 = vld [vmem:[%s1280_s5 + $0x30] sm:$0xf] }
 0x134   : >> { %875 = vst [vmem:[%s1276_s4 + $0x2c] sm:$0xf] %v874_v34  ;;  %v878_v26 = vld [vmem:[%s1280_s5 + $0x34] sm:$0xf]  ;;  %v880_v58 = vld [vmem:[%s1280_s5 + $0x38] sm:$0xf] }
 0x135   : >> { %877 = vst [vmem:[%s1276_s4 + $0x30] sm:$0xf] %v876_v17  ;;  %879 = vst [vmem:[%s1276_s4 + $0x34] sm:$0xf] %v878_v26  ;;  %v882_v7 = vld [vmem:[%s1280_s5 + $0x3c] sm:$0xf] }
 0x136   : >> { %881 = vst [vmem:[%s1276_s4 + $0x38] sm:$0xf] %v880_v58  ;;  %883 = vst [vmem:[%s1276_s4 + $0x3c] sm:$0xf] %v882_v7  ;;  %s3186_s9 = smov (%p885_p11, %s884_s9), 0  ;;  %s846_s8 = sadd.s32 1, %s1288_s8  }
 0x137   : >> { %s1111_s11 = sshll.u32 %s3186_s9, 6  ;;  %p845_p12 = scmp.ge.s32.totalorder %s846_s8, %s2663_s3 }
 0x138   : >> { %s889_s5 = scalar_lea.vmem %s2301_s24, %s1111_s11 [#allocation2]   ;;  %s890_s4 = scalar_lea.vmem %s2655_s29, %s1111_s11  }
 0x139   : >> { %s3179_s6 = smov %s3186_s9  ;;  %848 = sbr.rel (!%p845_p12) target bundleno = 300 (0x12c), region = 110 }
 0x140 PF: > { %s2736_s12 = sand.u32 15, %s1108_s2   ;;  %s1125_s14 = sshll.u32 %s2663_s3, 6 }
 0x141   : > { %s895_s15 = scalar_lea.vmem %s2301_s24, %s1125_s14 [#allocation2]   ;;  %s897_s16 = scalar_lea.vmem %s2655_s29, %s1125_s14  }
 0x142   : > { %p1116_p13 = scmp.le.s32.totalorder %s2736_s12, 0 }
 0x143   : > { %s1290_s17 = smov (!%p1116_p13), %s897_s16   ;;  %s1294_s18 = smov (!%p1116_p13), %s895_s15  }
 0x144   : > { %1063 = sbr.rel (%p1116_p13) target bundleno = 341 (0x155), region = 115  ;;  %s1298_s19 = smov (!%p1116_p13), 0  }
 0x145   : > { %s1302_s20 = smov (!%p1116_p13), 0  }
 0x14b LB: >> { %v907_v59 = vld [vmem:[%s1296_s18] sm:$0xf]  ;;  %s909_s21 = sadd.s32 1, %s1300_s19  ;;  %s901_s20 = sadd.s32 1, %s1304_s20   ;;  %s1304_s20 = sphi %s1302_s20, %s901_s20   ;;  %s1300_s19 = sphi %s1298_s19, %s1299_s19   ;;  %s1296_s18 = sphi %s1294_s18, %s914_s18   ;;  %s1292_s17 = sphi %s1290_s17, %s915_s17  }
 0x14c   : >> { %908 = vst [vmem:[%s1292_s17] sm:$0xf] %v907_v59  ;;  %p910_p0 = scmp.ge.s32.totalorder %s909_s21, %s2736_s12  ;;  %p900_p1 = scmp.ge.s32.totalorder %s901_s20, %s2736_s12 }
 0x14e   : >> { %s3188_s21 = smov (%p910_p0, %s909_s21), 0  ;;  %903 = sbr.rel (!%p900_p1) target bundleno = 331 (0x14b), region = 121 }
 0x14f   : >> { %s1117_s22 = sshll.u32 %s3188_s21, 2  ;;  %s1299_s19 = smov %s3188_s21  }
 0x150   : >> { %s914_s18 = scalar_lea.vmem %s895_s15, %s1117_s22 [#allocation2]   ;;  %s915_s17 = scalar_lea.vmem %s897_s16, %s1117_s22  }
 0x155 PF: > { %p8_p2 = scmp.ge.s32.totalorder %s1332_s10, 6   ;;  %s3180_s6 = smov %s1268_s7 }
 0x156   : > { %s3181_s7 = smov %s1340_s13  ;;  %s3182_s8 = smov %s1332_s10 }
 0x157   :  { %10 = sbr.rel (!%p8_p2) target bundleno = 2 (0x2), region = 132 }

// kernel: cvcnn_forward_pallas.7
= control target key start
LH: loop header
LB: loop body
LE: loop exit
PB: predicated region body
PF: predicated region fallthrough
CT: control target
= control target key end

     0   :  { %s2533_s12 = smov 0   ;;  %s2535_s13 = smov 0   ;;  %s2923_s0 = inlined_call_operand.vmem [shape: bf16[392,512], index: 0, kind: input, shape index: {}]   ;;  %s2924_s1 = inlined_call_operand.vmem [shape: bf16[512,128], index: 1, kind: input, shape index: {}]   ;;  %s2925_s2 = inlined_call_operand.vmem [shape: f32[1,128], index: 2, kind: input, shape index: {}]   ;;  %s2926_s3 = inlined_call_operand.vmem [shape: bf16[392,128], index: 3, kind: output, shape index: {}]  }
   0x1   :  { %s2537_s14 = smov 0  }
   0x2 LB: > { %s2546_s15 = sadd.s32 4294967295, %s2479_s14   ;;  %s2548_s16 = sadd.s32 1, %s2479_s14   ;;  %s2479_s14 = sphi %s2537_s14, %s2933_s14   ;;  %s2475_s13 = sphi %s2535_s13, %s2932_s13   ;;  %s2471_s12 = sphi %s2533_s12, %s2931_s12  }
   0x3   : > { %s85_s17 = ssub.s32 %s2479_s14, %s2548_s16  ;;  %s88_s18 = sadd.s32 1, %s2475_s13 }
   0x4   : > { %p86_p0 = scmp.eq.s32.totalorder %s85_s17, 0  ;;  %p98_p1 = scmp.ne.s32.totalorder %s2475_s13, %s2471_s12 }
   0x5   : > { %p99_p2 = scmp.eq.s32.totalorder %s2546_s15, 1  ;;  %p1703_p3 = scmp.ge.s32.totalorder %s2479_s14, 1 }
   0x6   : > { %s2556_s19 = scalar_select %p86_p0, %s2475_s13, %s88_s18  }
   0x7   : > { %p2558_p4 = por %p99_p2, %p98_p1  ;;  %p149_p5 = scmp.lt.s32.totalorder %s2479_s14, 3 }
   0x9   : > { %p150_p6 = pnand %p1703_p3, %p149_p5 }
   0xa   : > { %v2297_v0 = vld [vmem:[%s2924_s1 + $0x40] sm:$0xff] (!%p150_p6)   ;;  %v2301_v4 = vld [vmem:[%s2924_s1 + $0x48] sm:$0xff] (!%p150_p6)   ;;  %v2305_v8 = vld [vmem:[%s2924_s1 + $0x50] sm:$0xff] (!%p150_p6)   ;;  %s2611_s5 = sshll.u32 (!%p150_p6), %s2546_s15, 5  ;;  %s175_s4 = sand.u32 (!%p150_p6), 1, %s2471_s12  }
   0xb   : > { %153 = sbr.rel (%p150_p6) target bundleno = 460 (0x1cc), region = 32  ;;  %v2298_v1 = vld [vmem:[%s2924_s1 + $0xc0] sm:$0xff] (!%p150_p6)   ;;  %1985 = vmatprep.subr.bf16.mxu0 (!%p150_p6), %v2297_v0  ;;  %v2302_v5 = vld [vmem:[%s2924_s1 + $0xc8] sm:$0xff] (!%p150_p6)   ;;  %v2306_v9 = vld [vmem:[%s2924_s1 + $0xd0] sm:$0xff] (!%p150_p6)   ;;  %p184_p7 = scmp.lt.s32.totalorder (!%p150_p6), %s2611_s5, 48 }
   0xc   : > { %v2299_v2 = vld [vmem:[%s2924_s1] sm:$0xff] (!%p150_p6)   ;;  %2097 = vmatprep.subr.bf16.mxu1 (!%p150_p6), %v2298_v1  ;;  %v2303_v6 = vld [vmem:[%s2924_s1 + $0x8] sm:$0xff] (!%p150_p6)   ;;  %v2307_v10 = vld [vmem:[%s2924_s1 + $0x10] sm:$0xff] (!%p150_p6)   ;;  %s1704_s6 = sshll.u32 (!%p150_p6), %s175_s4, 7 }
   0xd   : > { %v2300_v3 = vld [vmem:[%s2924_s1 + $0x80] sm:$0xff] (!%p150_p6)   ;;  %1986 = vmatpush3.bf16.msra.mxu0 (!%p150_p6), %v2299_v2  ;;  %v2304_v7 = vld [vmem:[%s2924_s1 + $0x88] sm:$0xff] (!%p150_p6)   ;;  %v2308_v11 = vld [vmem:[%s2924_s1 + $0x90] sm:$0xff] (!%p150_p6)   ;;  %s2741_s12 = scalar_lea.vmem (!%p150_p6), [#allocation2], %s1704_s6  }
   0xe   : > { %2098 = vmatpush3.bf16.msra.mxu1 (!%p150_p6), %v2300_v3  ;;  %1987 = vmatprep.subr.bf16.mxu0 (!%p150_p6), %v2301_v4  ;;  %v2309_v12 = vld [vmem:[%s2924_s1 + $0x58] sm:$0xff] (!%p150_p6)   ;;  %v2313_v16 = vld [vmem:[%s2924_s1 + $0x60] sm:$0xff] (!%p150_p6)   ;;  %v2317_v20 = vld [vmem:[%s2924_s1 + $0x68] sm:$0xff] (!%p150_p6)  }
   0xf   : > { %2099 = vmatprep.subr.bf16.mxu1 (!%p150_p6), %v2302_v5  ;;  %v2310_v13 = vld [vmem:[%s2924_s1 + $0xd8] sm:$0xff] (!%p150_p6)   ;;  %v2314_v17 = vld [vmem:[%s2924_s1 + $0xe0] sm:$0xff] (!%p150_p6)   ;;  %v2318_v21 = vld [vmem:[%s2924_s1 + $0xe8] sm:$0xff] (!%p150_p6)  }
  0x10   : > { %v2311_v14 = vld [vmem:[%s2924_s1 + $0x18] sm:$0xff] (!%p150_p6)   ;;  %v2315_v18 = vld [vmem:[%s2924_s1 + $0x20] sm:$0xff] (!%p150_p6)   ;;  %v2319_v22 = vld [vmem:[%s2924_s1 + $0x28] sm:$0xff] (!%p150_p6)  }
  0x11   : > { %1988 = vmatpush3.bf16.msra.mxu0 (!%p150_p6), %v2303_v6  ;;  %v2312_v15 = vld [vmem:[%s2924_s1 + $0x98] sm:$0xff] (!%p150_p6)   ;;  %v2316_v19 = vld [vmem:[%s2924_s1 + $0xa0] sm:$0xff] (!%p150_p6)   ;;  %v2320_v23 = vld [vmem:[%s2924_s1 + $0xa8] sm:$0xff] (!%p150_p6)  }
  0x12   : > { %2100 = vmatpush3.bf16.msra.mxu1 %v2304_v7  ;;  %1989 = vmatprep.subr.bf16.mxu0 %v2305_v8  ;;  %s185_s26 = scalar_select %p184_p7, %s2611_s5, 48  ;;  %v2321_v24 = vld [vmem:[%s2924_s1 + $0x70] sm:$0xff]   ;;  %v2325_v28 = vld [vmem:[%s2924_s1 + $0x78] sm:$0xff]  }
  0x13   : > { %2101 = vmatprep.subr.bf16.mxu1 %v2306_v9  ;;  %v2322_v25 = vld [vmem:[%s2924_s1 + $0xf0] sm:$0xff]   ;;  %v2326_v29 = vld [vmem:[%s2924_s1 + $0xf8] sm:$0xff]   ;;  %s1370_s7 = ssub.s32 (%p2558_p4), 49, %s2611_s5  ;;  %s1887_s8 = sshll.u32 (%p2558_p4), %s2546_s15, 7 }
  0x14   : > { %v2323_v26 = vld [vmem:[%s2924_s1 + $0x30] sm:$0xff]   ;;  %s1854_s9 = sshll.u32 %s185_s26, 4  ;;  %v2327_v30 = vld [vmem:[%s2924_s1 + $0x38] sm:$0xff]   ;;  %p1371_p8 = scmp.lt.s32.totalorder (%p2558_p4), %s1370_s7, 32 }
  0x15   : > { %1990 = vmatpush3.bf16.msra.mxu0 %v2307_v10  ;;  %v2324_v27 = vld [vmem:[%s2924_s1 + $0xb0] sm:$0xff]   ;;  %s2660_s24 = scalar_lea.vmem %s2923_s0, %s1854_s9  ;;  %v2328_v31 = vld [vmem:[%s2924_s1 + $0xb8] sm:$0xff]   ;;  %s2795_s11 = scalar_lea.vmem (%p2558_p4), %s2926_s3, %s1887_s8  }
  0x16   : > { %2102 = vmatpush3.bf16.msra.mxu1 %v2308_v11  ;;  %1991 = vmatprep.subr.bf16.mxu0 %v2309_v12  ;;  %v2329_v32 = vld [vmem:[%s2660_s24] ss:$16 sps:$4 sm:$0xff]   ;;  %v2331_v33 = vld [vmem:[%s2660_s24 + $0x4] ss:$16 sps:$4 sm:$0xff]   ;;  %v2332_v34 = vld [vmem:[%s2660_s24 + $0x8] ss:$16 sps:$4 sm:$0xff]  }
  0x17   : > { %2103 = vmatprep.subr.bf16.mxu1 %v2310_v13  ;;  %v2334_v35 = vld [vmem:[%s2660_s24 + $0xc] ss:$16 sps:$4 sm:$0xff]   ;;  %880 = vmatprep.mubr.bf16.mxu0 %v2331_v33  ;;  %v2335_v36 = vld [vmem:[%s2660_s24 + $0x24] ss:$16 sps:$4 sm:$0xff]   ;;  %v2339_v38 = vld [vmem:[%s2660_s24 + $0x20] ss:$16 sps:$4 sm:$0xff]  }
  0x18   : > { %1041 = vmatprep.mubr.bf16.mxu1 %v2334_v35  ;;  %v2337_v37 = vld [vmem:[%s2660_s24 + $0x2c] ss:$16 sps:$4 sm:$0xff]   ;;  %v2340_v39 = vld [vmem:[%s2660_s24 + $0x28] ss:$16 sps:$4 sm:$0xff]   ;;  %v2341_v40 = vld [vmem:[%s2660_s24 + $0x44] ss:$16 sps:$4 sm:$0xff]  }
  0x19   : > { %1992 = vmatpush3.bf16.msra.mxu0 %v2311_v14  ;;  %v2343_v41 = vld [vmem:[%s2660_s24 + $0x4c] ss:$16 sps:$4 sm:$0xff]   ;;  %v2345_v42 = vld [vmem:[%s2660_s24 + $0x40] ss:$16 sps:$4 sm:$0xff]   ;;  %v2346_v43 = vld [vmem:[%s2660_s24 + $0x48] ss:$16 sps:$4 sm:$0xff]  }
  0x1a   : > { %2104 = vmatpush3.bf16.msra.mxu1 %v2312_v15  ;;  %1993 = vmatprep.subr.bf16.mxu0 %v2313_v16  ;;  %v2347_v44 = vld [vmem:[%s2660_s24 + $0x64] ss:$16 sps:$4 sm:$0xff]   ;;  %v2349_v45 = vld [vmem:[%s2660_s24 + $0x6c] ss:$16 sps:$4 sm:$0xff]   ;;  %v2351_v46 = vld [vmem:[%s2660_s24 + $0x60] ss:$16 sps:$4 sm:$0xff]  }
  0x1b   : > { %2105 = vmatprep.subr.bf16.mxu1 %v2314_v17  ;;  %v2352_v47 = vld [vmem:[%s2660_s24 + $0x68] ss:$16 sps:$4 sm:$0xff]   ;;  %v2353_v48 = vld [vmem:[%s2660_s24 + $0x84] ss:$16 sps:$4 sm:$0xff]   ;;  %v2355_v49 = vld [vmem:[%s2660_s24 + $0x8c] ss:$16 sps:$4 sm:$0xff]  }
  0x1c   : > { %v2357_v50 = vld [vmem:[%s2660_s24 + $0x80] ss:$16 sps:$4 sm:$0xff]   ;;  %v2358_v51 = vld [vmem:[%s2660_s24 + $0x88] ss:$16 sps:$4 sm:$0xff]   ;;  %v2359_v52 = vld [vmem:[%s2660_s24 + $0xa4] ss:$16 sps:$4 sm:$0xff]  }
  0x1d   : > { %1994 = vmatpush3.bf16.msra.mxu0 %v2315_v18  ;;  %v2361_v53 = vld [vmem:[%s2660_s24 + $0xac] ss:$16 sps:$4 sm:$0xff]   ;;  %v2363_v54 = vld [vmem:[%s2660_s24 + $0xa0] ss:$16 sps:$4 sm:$0xff]   ;;  %v2364_v55 = vld [vmem:[%s2660_s24 + $0xa8] ss:$16 sps:$4 sm:$0xff]  }
  0x1e   : > { %2106 = vmatpush3.bf16.msra.mxu1 %v2316_v19  ;;  %1995 = vmatprep.subr.bf16.mxu0 %v2317_v20  ;;  %v2365_v56 = vld [vmem:[%s2660_s24 + $0xc4] ss:$16 sps:$4 sm:$0xff]   ;;  %v2367_v57 = vld [vmem:[%s2660_s24 + $0xcc] ss:$16 sps:$4 sm:$0xff]   ;;  %v2369_v58 = vld [vmem:[%s2660_s24 + $0xc0] ss:$16 sps:$4 sm:$0xff]  }
  0x1f   : > { %2107 = vmatprep.subr.bf16.mxu1 %v2318_v21  ;;  %v2370_v59 = vld [vmem:[%s2660_s24 + $0xc8] ss:$16 sps:$4 sm:$0xff]   ;;  %v2371_v60 = vld [vmem:[%s2660_s24 + $0xe4] ss:$16 sps:$4 sm:$0xff]   ;;  %v2373_v61 = vld [vmem:[%s2660_s24 + $0xec] ss:$16 sps:$4 sm:$0xff]  }
  0x20   : > { %v2375_v62 = vld [vmem:[%s2660_s24 + $0xe0] ss:$16 sps:$4 sm:$0xff]   ;;  %v2376_v63 = vld [vmem:[%s2660_s24 + $0xe8] ss:$16 sps:$4 sm:$0xff]   ;;  %v2377_v0 = vld [vmem:[%s2660_s24 + $0x104] ss:$16 sps:$4 sm:$0xff]  }
  0x21   : > { %1996 = vmatpush3.bf16.msra.mxu0 %v2319_v22  ;;  %v2379_v1 = vld [vmem:[%s2660_s24 + $0x10c] ss:$16 sps:$4 sm:$0xff]   ;;  %v2381_v2 = vld [vmem:[%s2660_s24 + $0x100] ss:$16 sps:$4 sm:$0xff]   ;;  %v2382_v3 = vld [vmem:[%s2660_s24 + $0x108] ss:$16 sps:$4 sm:$0xff]  }
  0x22   : > { %2108 = vmatpush3.bf16.msra.mxu1 %v2320_v23  ;;  %1997 = vmatprep.subr.bf16.mxu0 %v2321_v24  ;;  %v2383_v4 = vld [vmem:[%s2660_s24 + $0x124] ss:$16 sps:$4 sm:$0xff]   ;;  %v2385_v5 = vld [vmem:[%s2660_s24 + $0x12c] ss:$16 sps:$4 sm:$0xff]   ;;  %v2387_v6 = vld [vmem:[%s2660_s24 + $0x120] ss:$16 sps:$4 sm:$0xff]  }
  0x23   : > { %2109 = vmatprep.subr.bf16.mxu1 %v2322_v25  ;;  %v2388_v7 = vld [vmem:[%s2660_s24 + $0x128] ss:$16 sps:$4 sm:$0xff]   ;;  %v2389_v8 = vld [vmem:[%s2660_s24 + $0x144] ss:$16 sps:$4 sm:$0xff]   ;;  %v2391_v9 = vld [vmem:[%s2660_s24 + $0x14c] ss:$16 sps:$4 sm:$0xff]  }
  0x24   : > { %v2393_v10 = vld [vmem:[%s2660_s24 + $0x140] ss:$16 sps:$4 sm:$0xff]   ;;  %v2394_v11 = vld [vmem:[%s2660_s24 + $0x148] ss:$16 sps:$4 sm:$0xff]   ;;  %v2395_v12 = vld [vmem:[%s2660_s24 + $0x164] ss:$16 sps:$4 sm:$0xff]  }
  0x25   : > { %1998 = vmatpush3.bf16.msra.mxu0 %v2323_v26  ;;  %v2397_v13 = vld [vmem:[%s2660_s24 + $0x16c] ss:$16 sps:$4 sm:$0xff]   ;;  %v2399_v14 = vld [vmem:[%s2660_s24 + $0x160] ss:$16 sps:$4 sm:$0xff]   ;;  %v2400_v15 = vld [vmem:[%s2660_s24 + $0x168] ss:$16 sps:$4 sm:$0xff]  }
  0x26   : > { %2110 = vmatpush3.bf16.msra.mxu1 %v2324_v27  ;;  %1999 = vmatprep.subr.bf16.mxu0 %v2325_v28  ;;  %v2401_v16 = vld [vmem:[%s2660_s24 + $0x184] ss:$16 sps:$4 sm:$0xff]   ;;  %v2403_v17 = vld [vmem:[%s2660_s24 + $0x18c] ss:$16 sps:$4 sm:$0xff]   ;;  %v2405_v18 = vld [vmem:[%s2660_s24 + $0x180] ss:$16 sps:$4 sm:$0xff]  }
  0x27   : > { %2111 = vmatprep.subr.bf16.mxu1 %v2326_v29  ;;  %v2406_v19 = vld [vmem:[%s2660_s24 + $0x188] ss:$16 sps:$4 sm:$0xff]   ;;  %v2407_v20 = vld [vmem:[%s2660_s24 + $0x1a4] ss:$16 sps:$4 sm:$0xff]   ;;  %v2409_v21 = vld [vmem:[%s2660_s24 + $0x1ac] ss:$16 sps:$4 sm:$0xff]  }
  0x28   : > { %v2411_v22 = vld [vmem:[%s2660_s24 + $0x1a0] ss:$16 sps:$4 sm:$0xff]   ;;  %v2412_v23 = vld [vmem:[%s2660_s24 + $0x1a8] ss:$16 sps:$4 sm:$0xff]   ;;  %v2413_v24 = vld [vmem:[%s2660_s24 + $0x1c4] ss:$16 sps:$4 sm:$0xff]  }
  0x29   : > { %2000 = vmatpush3.bf16.msra.mxu0 %v2327_v30  ;;  %v2415_v25 = vld [vmem:[%s2660_s24 + $0x1cc] ss:$16 sps:$4 sm:$0xff]   ;;  %v2417_v26 = vld [vmem:[%s2660_s24 + $0x1c0] ss:$16 sps:$4 sm:$0xff]   ;;  %v2418_v27 = vld [vmem:[%s2660_s24 + $0x1c8] ss:$16 sps:$4 sm:$0xff]  }
  0x2a   : > { %2112 = vmatpush3.bf16.msra.mxu1 %v2328_v31  ;;  %v2419_v28 = vld [vmem:[%s2660_s24 + $0x1e4] ss:$16 sps:$4 sm:$0xff]   ;;  %v2421_v29 = vld [vmem:[%s2660_s24 + $0x1ec] ss:$16 sps:$4 sm:$0xff]   ;;  %v2423_v30 = vld [vmem:[%s2660_s24 + $0x1e0] ss:$16 sps:$4 sm:$0xff]  }
  0x2b   : > { %v2424_v31 = vld [vmem:[%s2660_s24 + $0x1e8] ss:$16 sps:$4 sm:$0xff]  }
  0x2c   : > { %881 = vmatmul.mubr.bf16.vlgmr.msra.gmra.mrb[0].mxu0 %v2329_v32 }
  0x2d   : > { %1042 = vmatmul.mubr.bf16.vlgmr.msra.gmra.mrb[0].mxu1 %v2332_v34  ;;  %888 = vmatprep.mubr.bf16.mxu0 %v2335_v36  ;;  %v2735_v34 = vld [vmem:[%s2925_s2] ss:$0 sm:$0xff] }
  0x2e   : > { %1049 = vmatprep.mubr.bf16.mxu1 %v2337_v37 }
  0x34   : > { %889 = vmatmul.mubr.bf16.gmra.mrb[4].mxu0 %v2339_v38 }
  0x35   : > { %1050 = vmatmul.mubr.bf16.gmra.mrb[4].mxu1 %v2340_v39  ;;  %896 = vmatprep.mubr.bf16.mxu0 %v2341_v40 }
  0x36   : > { %1057 = vmatprep.mubr.bf16.mxu1 %v2343_v41 }
  0x3c   : > { %897 = vmatmul.mubr.bf16.gmra.mrb[8].mxu0 %v2345_v42 }
  0x3d   : > { %1058 = vmatmul.mubr.bf16.gmra.mrb[8].mxu1 %v2346_v43  ;;  %904 = vmatprep.mubr.bf16.mxu0 %v2347_v44 }
  0x3e   : > { %1065 = vmatprep.mubr.bf16.mxu1 %v2349_v45 }
  0x44   : > { %905 = vmatmul.mubr.bf16.gmra.mrb[12].mxu0 %v2351_v46 }
  0x45   : > { %1066 = vmatmul.mubr.bf16.gmra.mrb[12].mxu1 %v2352_v47  ;;  %912 = vmatprep.mubr.bf16.mxu0 %v2353_v48 }
  0x46   : > { %1073 = vmatprep.mubr.bf16.mxu1 %v2355_v49 }
  0x4c   : > { %913 = vmatmul.mubr.bf16.gmra.mrb[16].mxu0 %v2357_v50 }
  0x4d   : > { %1074 = vmatmul.mubr.bf16.gmra.mrb[16].mxu1 %v2358_v51  ;;  %920 = vmatprep.mubr.bf16.mxu0 %v2359_v52 }
  0x4e   : > { %1081 = vmatprep.mubr.bf16.mxu1 %v2361_v53 }
  0x54   : > { %921 = vmatmul.mubr.bf16.gmra.mrb[20].mxu0 %v2363_v54 }
  0x55   : > { %1082 = vmatmul.mubr.bf16.gmra.mrb[20].mxu1 %v2364_v55  ;;  %928 = vmatprep.mubr.bf16.mxu0 %v2365_v56 }
  0x56   : > { %1089 = vmatprep.mubr.bf16.mxu1 %v2367_v57 }
  0x5c   : > { %929 = vmatmul.mubr.bf16.gmra.mrb[24].mxu0 %v2369_v58 }
  0x5d   : > { %1090 = vmatmul.mubr.bf16.gmra.mrb[24].mxu1 %v2370_v59  ;;  %936 = vmatprep.mubr.bf16.mxu0 %v2371_v60 }
  0x5e   : > { %1097 = vmatprep.mubr.bf16.mxu1 %v2373_v61 }
  0x64   : > { %937 = vmatmul.mubr.bf16.gmra.mrb[28].mxu0 %v2375_v62 }
  0x65   : > { %1098 = vmatmul.mubr.bf16.gmra.mrb[28].mxu1 %v2376_v63  ;;  %944 = vmatprep.mubr.bf16.mxu0 %v2377_v0 }
  0x66   : > { %1105 = vmatprep.mubr.bf16.mxu1 %v2379_v1 }
  0x6c   : > { %945 = vmatmul.mubr.bf16.gmra.mrb[32].mxu0 %v2381_v2 }
  0x6d   : > { %1106 = vmatmul.mubr.bf16.gmra.mrb[32].mxu1 %v2382_v3  ;;  %952 = vmatprep.mubr.bf16.mxu0 %v2383_v4 }
  0x6e   : > { %1113 = vmatprep.mubr.bf16.mxu1 %v2385_v5 }
  0x74   : > { %953 = vmatmul.mubr.bf16.gmra.mrb[36].mxu0 %v2387_v6 }
  0x75   : > { %1114 = vmatmul.mubr.bf16.gmra.mrb[36].mxu1 %v2388_v7  ;;  %960 = vmatprep.mubr.bf16.mxu0 %v2389_v8 }
  0x76   : > { %1121 = vmatprep.mubr.bf16.mxu1 %v2391_v9 }
  0x7c   : > { %961 = vmatmul.mubr.bf16.gmra.mrb[40].mxu0 %v2393_v10 }
  0x7d   : > { %1122 = vmatmul.mubr.bf16.gmra.mrb[40].mxu1 %v2394_v11  ;;  %968 = vmatprep.mubr.bf16.mxu0 %v2395_v12 }
  0x7e   : > { %1129 = vmatprep.mubr.bf16.mxu1 %v2397_v13 }
  0x84   : > { %969 = vmatmul.mubr.bf16.gmra.mrb[44].mxu0 %v2399_v14 }
  0x85   : > { %1130 = vmatmul.mubr.bf16.gmra.mrb[44].mxu1 %v2400_v15  ;;  %976 = vmatprep.mubr.bf16.mxu0 %v2401_v16 }
  0x86   : > { %1137 = vmatprep.mubr.bf16.mxu1 %v2403_v17 }
  0x8c   : > { %977 = vmatmul.mubr.bf16.gmra.mrb[48].mxu0 %v2405_v18 }
  0x8d   : > { %1138 = vmatmul.mubr.bf16.gmra.mrb[48].mxu1 %v2406_v19  ;;  %984 = vmatprep.mubr.bf16.mxu0 %v2407_v20 }
  0x8e   : > { %1145 = vmatprep.mubr.bf16.mxu1 %v2409_v21 }
  0x94   : > { %985 = vmatmul.mubr.bf16.gmra.mrb[52].mxu0 %v2411_v22 }
  0x95   : > { %1146 = vmatmul.mubr.bf16.gmra.mrb[52].mxu1 %v2412_v23  ;;  %992 = vmatprep.mubr.bf16.mxu0 %v2413_v24 }
  0x96   : > { %1153 = vmatprep.mubr.bf16.mxu1 %v2415_v25 }
  0x9c   : > { %993 = vmatmul.mubr.bf16.gmra.mrb[56].mxu0 %v2417_v26 }
  0x9d   : > { %1154 = vmatmul.mubr.bf16.gmra.mrb[56].mxu1 %v2418_v27  ;;  %1000 = vmatprep.mubr.bf16.mxu0 %v2419_v28 }
  0x9e   : > { %1161 = vmatprep.mubr.bf16.mxu1 %v2421_v29 }
  0xa4   : > { %1001 = vmatmul.mubr.bf16.gmra.mrb[60].mxu0 %v2423_v30 }
  0xa5   : > { %1162 = vmatmul.mubr.bf16.gmra.mrb[60].mxu1 %v2424_v31 }
  0xff   : > { %v2001_v32 = vpop.f32.mrb[0].mxu0 }
 0x100   : > { %v2113_v33 = vpop.f32.mrb[0].mxu1  ;;  %v2002_v35 = vpop.f32.mrb[1].mxu0 }
 0x101   : > { %v2003_v36 = vadd.f32 %v2002_v35, %v2001_v32  ;;  %v2114_v37 = vpop.f32.mrb[1].mxu1  ;;  %v2004_v38 = vpop.f32.mrb[2].mxu0 }
 0x102   : > { %v2115_v39 = vadd.f32 %v2114_v37, %v2113_v33  ;;  %v2116_v40 = vpop.f32.mrb[2].mxu1  ;;  %v2005_v41 = vpop.f32.mrb[3].mxu0 }
 0x103   : > { %v883_v42 = vadd.f32 %v2003_v36, %v2735_v34  ;;  %v2006_v43 = vadd.f32 %v2005_v41, %v2004_v38  ;;  %v2117_v44 = vpop.f32.mrb[3].mxu1 }
 0x104   : > { %v2118_v45 = vadd.f32 %v2117_v44, %v2116_v40 }
 0x105   : > { %v1044_v46 = vadd.f32 %v2115_v39, %v883_v42  ;;  %v886_v47 = vadd.f32 %v2006_v43, %v2735_v34 }
 0x107   : > { %v1047_v48 = vadd.f32 %v2118_v45, %v886_v47  ;;  %v2007_v49 = vpop.f32.mrb[4].mxu0  ;;  %v1170_v52 = vmax.f32 %v1044_v46, 0.0 }
 0x108   : > { %v2119_v50 = vpop.f32.mrb[4].mxu1  ;;  %v2008_v51 = vpop.f32.mrb[5].mxu0 }
 0x109   : > { %v1171_v53 = vmax.f32 %v1047_v48, 0.0  ;;  %v2009_v54 = vadd.f32 %v2008_v51, %v2007_v49  ;;  %v2120_v55 = vpop.f32.mrb[5].mxu1  ;;  %v2010_v56 = vpop.f32.mrb[6].mxu0 }
 0x10a   : > { %v2121_v57 = vadd.f32 %v2120_v55, %v2119_v50  ;;  %v2122_v58 = vpop.f32.mrb[6].mxu1  ;;  %v2011_v59 = vpop.f32.mrb[7].mxu0 }
 0x10b   : > { %v1893_v60 = vpack.c.bf16 %v1171_v53, %v1170_v52  ;;  %v891_v61 = vadd.f32 %v2009_v54, %v2735_v34  ;;  %v2012_v62 = vadd.f32 %v2011_v59, %v2010_v56  ;;  %v2123_v63 = vpop.f32.mrb[7].mxu1 }
 0x10c   : > { %v2124_v0 = vadd.f32 %v2123_v63, %v2122_v58 }
 0x10d   : > { %1894 = vst [vmem:[%s2741_s12] sm:$0xff] %v1893_v60   ;;  %v1052_v1 = vadd.f32 %v2121_v57, %v891_v61  ;;  %v894_v2 = vadd.f32 %v2012_v62, %v2735_v34 }
 0x10f   : > { %v1055_v3 = vadd.f32 %v2124_v0, %v894_v2  ;;  %v2013_v4 = vpop.f32.mrb[8].mxu0  ;;  %v1172_v7 = vmax.f32 %v1052_v1, 0.0 }
 0x110   : > { %v2125_v5 = vpop.f32.mrb[8].mxu1  ;;  %v2014_v6 = vpop.f32.mrb[9].mxu0 }
 0x111   : > { %v1173_v8 = vmax.f32 %v1055_v3, 0.0  ;;  %v2015_v9 = vadd.f32 %v2014_v6, %v2013_v4  ;;  %v2126_v10 = vpop.f32.mrb[9].mxu1  ;;  %v2016_v11 = vpop.f32.mrb[10].mxu0 }
 0x112   : > { %v2127_v12 = vadd.f32 %v2126_v10, %v2125_v5  ;;  %v2128_v13 = vpop.f32.mrb[10].mxu1  ;;  %v2017_v14 = vpop.f32.mrb[11].mxu0 }
 0x113   : > { %v1898_v15 = vpack.c.bf16 %v1173_v8, %v1172_v7  ;;  %v899_v16 = vadd.f32 %v2015_v9, %v2735_v34  ;;  %v2018_v17 = vadd.f32 %v2017_v14, %v2016_v11  ;;  %v2129_v18 = vpop.f32.mrb[11].mxu1 }
 0x114   : > { %v2130_v19 = vadd.f32 %v2129_v18, %v2128_v13 }
 0x115   : > { %1970 = vst [vmem:[%s2741_s12 + $0x8] sm:$0xff] %v1898_v15   ;;  %v1060_v20 = vadd.f32 %v2127_v12, %v899_v16  ;;  %v902_v21 = vadd.f32 %v2018_v17, %v2735_v34 }
 0x117   : > { %v1063_v22 = vadd.f32 %v2130_v19, %v902_v21  ;;  %v2019_v23 = vpop.f32.mrb[12].mxu0  ;;  %v1174_v26 = vmax.f32 %v1060_v20, 0.0 }
 0x118   : > { %v2131_v24 = vpop.f32.mrb[12].mxu1  ;;  %v2020_v25 = vpop.f32.mrb[13].mxu0 }
 0x119   : > { %v1175_v27 = vmax.f32 %v1063_v22, 0.0  ;;  %v2021_v28 = vadd.f32 %v2020_v25, %v2019_v23  ;;  %v2132_v29 = vpop.f32.mrb[13].mxu1  ;;  %v2022_v30 = vpop.f32.mrb[14].mxu0 }
 0x11a   : > { %v2133_v31 = vadd.f32 %v2132_v29, %v2131_v24  ;;  %v2134_v32 = vpop.f32.mrb[14].mxu1  ;;  %v2023_v33 = vpop.f32.mrb[15].mxu0 }
 0x11b   : > { %v1903_v35 = vpack.c.bf16 %v1175_v27, %v1174_v26  ;;  %v907_v36 = vadd.f32 %v2021_v28, %v2735_v34  ;;  %v2024_v37 = vadd.f32 %v2023_v33, %v2022_v30  ;;  %v2135_v38 = vpop.f32.mrb[15].mxu1 }
 0x11c   : > { %v2136_v39 = vadd.f32 %v2135_v38, %v2134_v32 }
 0x11d   : > { %1971 = vst [vmem:[%s2741_s12 + $0x10] sm:$0xff] %v1903_v35   ;;  %v1068_v40 = vadd.f32 %v2133_v31, %v907_v36  ;;  %v910_v41 = vadd.f32 %v2024_v37, %v2735_v34 }
 0x11f   : > { %v1071_v42 = vadd.f32 %v2136_v39, %v910_v41  ;;  %v2025_v43 = vpop.f32.mrb[16].mxu0  ;;  %v1176_v46 = vmax.f32 %v1068_v40, 0.0 }
 0x120   : > { %v2137_v44 = vpop.f32.mrb[16].mxu1  ;;  %v2026_v45 = vpop.f32.mrb[17].mxu0 }
 0x121   : > { %v1177_v47 = vmax.f32 %v1071_v42, 0.0  ;;  %v2027_v48 = vadd.f32 %v2026_v45, %v2025_v43  ;;  %v2138_v49 = vpop.f32.mrb[17].mxu1  ;;  %v2028_v50 = vpop.f32.mrb[18].mxu0 }
 0x122   : > { %v2139_v51 = vadd.f32 %v2138_v49, %v2137_v44  ;;  %v2140_v52 = vpop.f32.mrb[18].mxu1  ;;  %v2029_v53 = vpop.f32.mrb[19].mxu0 }
 0x123   : > { %v1908_v54 = vpack.c.bf16 %v1177_v47, %v1176_v46  ;;  %v915_v55 = vadd.f32 %v2027_v48, %v2735_v34  ;;  %v2030_v56 = vadd.f32 %v2029_v53, %v2028_v50  ;;  %v2141_v57 = vpop.f32.mrb[19].mxu1 }
 0x124   : > { %v2142_v58 = vadd.f32 %v2141_v57, %v2140_v52 }
 0x125   : > { %1972 = vst [vmem:[%s2741_s12 + $0x18] sm:$0xff] %v1908_v54   ;;  %v1076_v59 = vadd.f32 %v2139_v51, %v915_v55  ;;  %v918_v60 = vadd.f32 %v2030_v56, %v2735_v34 }
 0x127   : > { %v1079_v61 = vadd.f32 %v2142_v58, %v918_v60  ;;  %v2031_v62 = vpop.f32.mrb[20].mxu0  ;;  %v1178_v1 = vmax.f32 %v1076_v59, 0.0 }
 0x128   : > { %v2143_v63 = vpop.f32.mrb[20].mxu1  ;;  %v2032_v0 = vpop.f32.mrb[21].mxu0 }
 0x129   : > { %v1179_v2 = vmax.f32 %v1079_v61, 0.0  ;;  %v2033_v3 = vadd.f32 %v2032_v0, %v2031_v62  ;;  %v2144_v4 = vpop.f32.mrb[21].mxu1  ;;  %v2034_v5 = vpop.f32.mrb[22].mxu0 }
 0x12a   : > { %v2145_v6 = vadd.f32 %v2144_v4, %v2143_v63  ;;  %v2146_v7 = vpop.f32.mrb[22].mxu1  ;;  %v2035_v8 = vpop.f32.mrb[23].mxu0 }
 0x12b   : > { %v1913_v9 = vpack.c.bf16 %v1179_v2, %v1178_v1  ;;  %v923_v10 = vadd.f32 %v2033_v3, %v2735_v34  ;;  %v2036_v11 = vadd.f32 %v2035_v8, %v2034_v5  ;;  %v2147_v12 = vpop.f32.mrb[23].mxu1 }
 0x12c   : > { %v2148_v13 = vadd.f32 %v2147_v12, %v2146_v7 }
 0x12d   : > { %1973 = vst [vmem:[%s2741_s12 + $0x20] sm:$0xff] %v1913_v9   ;;  %v1084_v14 = vadd.f32 %v2145_v6, %v923_v10  ;;  %v926_v15 = vadd.f32 %v2036_v11, %v2735_v34 }
 0x12f   : > { %v1087_v16 = vadd.f32 %v2148_v13, %v926_v15  ;;  %v2037_v17 = vpop.f32.mrb[24].mxu0  ;;  %v1180_v20 = vmax.f32 %v1084_v14, 0.0 }
 0x130   : > { %v2149_v18 = vpop.f32.mrb[24].mxu1  ;;  %v2038_v19 = vpop.f32.mrb[25].mxu0 }
 0x131   : > { %v1181_v21 = vmax.f32 %v1087_v16, 0.0  ;;  %v2039_v22 = vadd.f32 %v2038_v19, %v2037_v17  ;;  %v2150_v23 = vpop.f32.mrb[25].mxu1  ;;  %v2040_v24 = vpop.f32.mrb[26].mxu0 }
 0x132   : > { %v2151_v25 = vadd.f32 %v2150_v23, %v2149_v18  ;;  %v2152_v26 = vpop.f32.mrb[26].mxu1  ;;  %v2041_v27 = vpop.f32.mrb[27].mxu0 }
 0x133   : > { %v1918_v28 = vpack.c.bf16 %v1181_v21, %v1180_v20  ;;  %v931_v29 = vadd.f32 %v2039_v22, %v2735_v34  ;;  %v2042_v30 = vadd.f32 %v2041_v27, %v2040_v24  ;;  %v2153_v31 = vpop.f32.mrb[27].mxu1 }
 0x134   : > { %v2154_v32 = vadd.f32 %v2153_v31, %v2152_v26 }
 0x135   : > { %1974 = vst [vmem:[%s2741_s12 + $0x28] sm:$0xff] %v1918_v28   ;;  %v1092_v33 = vadd.f32 %v2151_v25, %v931_v29  ;;  %v934_v35 = vadd.f32 %v2042_v30, %v2735_v34 }
 0x137   : > { %v1095_v36 = vadd.f32 %v2154_v32, %v934_v35  ;;  %v2043_v37 = vpop.f32.mrb[28].mxu0  ;;  %v1182_v40 = vmax.f32 %v1092_v33, 0.0 }
 0x138   : > { %v2155_v38 = vpop.f32.mrb[28].mxu1  ;;  %v2044_v39 = vpop.f32.mrb[29].mxu0 }
 0x139   : > { %v1183_v41 = vmax.f32 %v1095_v36, 0.0  ;;  %v2045_v42 = vadd.f32 %v2044_v39, %v2043_v37  ;;  %v2156_v43 = vpop.f32.mrb[29].mxu1  ;;  %v2046_v44 = vpop.f32.mrb[30].mxu0 }
 0x13a   : > { %v2157_v45 = vadd.f32 %v2156_v43, %v2155_v38  ;;  %v2158_v46 = vpop.f32.mrb[30].mxu1  ;;  %v2047_v47 = vpop.f32.mrb[31].mxu0 }
 0x13b   : > { %v1923_v48 = vpack.c.bf16 %v1183_v41, %v1182_v40  ;;  %v939_v49 = vadd.f32 %v2045_v42, %v2735_v34  ;;  %v2048_v50 = vadd.f32 %v2047_v47, %v2046_v44  ;;  %v2159_v51 = vpop.f32.mrb[31].mxu1 }
 0x13c   : > { %v2160_v52 = vadd.f32 %v2159_v51, %v2158_v46 }
 0x13d   : > { %1975 = vst [vmem:[%s2741_s12 + $0x30] sm:$0xff] %v1923_v48   ;;  %v1100_v53 = vadd.f32 %v2157_v45, %v939_v49  ;;  %v942_v54 = vadd.f32 %v2048_v50, %v2735_v34 }
 0x13f   : > { %v1103_v55 = vadd.f32 %v2160_v52, %v942_v54  ;;  %v2049_v56 = vpop.f32.mrb[32].mxu0  ;;  %v1184_v59 = vmax.f32 %v1100_v53, 0.0 }
 0x140   : > { %v2161_v57 = vpop.f32.mrb[32].mxu1  ;;  %v2050_v58 = vpop.f32.mrb[33].mxu0 }
 0x141   : > { %v1185_v60 = vmax.f32 %v1103_v55, 0.0  ;;  %v2051_v61 = vadd.f32 %v2050_v58, %v2049_v56  ;;  %v2162_v62 = vpop.f32.mrb[33].mxu1  ;;  %v2052_v63 = vpop.f32.mrb[34].mxu0 }
 0x142   : > { %v2163_v0 = vadd.f32 %v2162_v62, %v2161_v57  ;;  %v2164_v1 = vpop.f32.mrb[34].mxu1  ;;  %v2053_v2 = vpop.f32.mrb[35].mxu0 }
 0x143   : > { %v1928_v3 = vpack.c.bf16 %v1185_v60, %v1184_v59  ;;  %v947_v4 = vadd.f32 %v2051_v61, %v2735_v34  ;;  %v2054_v5 = vadd.f32 %v2053_v2, %v2052_v63  ;;  %v2165_v6 = vpop.f32.mrb[35].mxu1 }
 0x144   : > { %v2166_v7 = vadd.f32 %v2165_v6, %v2164_v1 }
 0x145   : > { %1976 = vst [vmem:[%s2741_s12 + $0x38] sm:$0xff] %v1928_v3   ;;  %v1108_v8 = vadd.f32 %v2163_v0, %v947_v4  ;;  %v950_v9 = vadd.f32 %v2054_v5, %v2735_v34 }
 0x147   : > { %v1111_v10 = vadd.f32 %v2166_v7, %v950_v9  ;;  %v2055_v11 = vpop.f32.mrb[36].mxu0  ;;  %v1186_v14 = vmax.f32 %v1108_v8, 0.0 }
 0x148   : > { %v2167_v12 = vpop.f32.mrb[36].mxu1  ;;  %v2056_v13 = vpop.f32.mrb[37].mxu0 }
 0x149   : > { %v1187_v15 = vmax.f32 %v1111_v10, 0.0  ;;  %v2057_v16 = vadd.f32 %v2056_v13, %v2055_v11  ;;  %v2168_v17 = vpop.f32.mrb[37].mxu1  ;;  %v2058_v18 = vpop.f32.mrb[38].mxu0 }
 0x14a   : > { %v2169_v19 = vadd.f32 %v2168_v17, %v2167_v12  ;;  %v2170_v20 = vpop.f32.mrb[38].mxu1  ;;  %v2059_v21 = vpop.f32.mrb[39].mxu0 }
 0x14b   : > { %v1933_v22 = vpack.c.bf16 %v1187_v15, %v1186_v14  ;;  %v955_v23 = vadd.f32 %v2057_v16, %v2735_v34  ;;  %v2060_v24 = vadd.f32 %v2059_v21, %v2058_v18  ;;  %v2171_v25 = vpop.f32.mrb[39].mxu1 }
 0x14c   : > { %v2172_v26 = vadd.f32 %v2171_v25, %v2170_v20 }
 0x14d   : > { %1977 = vst [vmem:[%s2741_s12 + $0x40] sm:$0xff] %v1933_v22   ;;  %v1116_v27 = vadd.f32 %v2169_v19, %v955_v23  ;;  %v958_v28 = vadd.f32 %v2060_v24, %v2735_v34 }
 0x14f   : > { %v1119_v29 = vadd.f32 %v2172_v26, %v958_v28  ;;  %v2061_v30 = vpop.f32.mrb[40].mxu0  ;;  %v1188_v33 = vmax.f32 %v1116_v27, 0.0 }
 0x150   : > { %v2173_v31 = vpop.f32.mrb[40].mxu1  ;;  %v2062_v32 = vpop.f32.mrb[41].mxu0 }
 0x151   : > { %v1189_v35 = vmax.f32 %v1119_v29, 0.0  ;;  %v2063_v36 = vadd.f32 %v2062_v32, %v2061_v30  ;;  %v2174_v37 = vpop.f32.mrb[41].mxu1  ;;  %v2064_v38 = vpop.f32.mrb[42].mxu0 }
 0x152   : > { %v2175_v39 = vadd.f32 %v2174_v37, %v2173_v31  ;;  %v2176_v40 = vpop.f32.mrb[42].mxu1  ;;  %v2065_v41 = vpop.f32.mrb[43].mxu0 }
 0x153   : > { %v1938_v42 = vpack.c.bf16 %v1189_v35, %v1188_v33  ;;  %v963_v43 = vadd.f32 %v2063_v36, %v2735_v34  ;;  %v2066_v44 = vadd.f32 %v2065_v41, %v2064_v38  ;;  %v2177_v45 = vpop.f32.mrb[43].mxu1 }
 0x154   : > { %v2178_v46 = vadd.f32 %v2177_v45, %v2176_v40 }
 0x155   : > { %1978 = vst [vmem:[%s2741_s12 + $0x48] sm:$0xff] %v1938_v42   ;;  %v1124_v47 = vadd.f32 %v2175_v39, %v963_v43  ;;  %v966_v48 = vadd.f32 %v2066_v44, %v2735_v34 }
 0x157   : > { %v1127_v49 = vadd.f32 %v2178_v46, %v966_v48  ;;  %v2067_v50 = vpop.f32.mrb[44].mxu0  ;;  %v1190_v53 = vmax.f32 %v1124_v47, 0.0 }
 0x158   : > { %v2179_v51 = vpop.f32.mrb[44].mxu1  ;;  %v2068_v52 = vpop.f32.mrb[45].mxu0 }
 0x159   : > { %v1191_v54 = vmax.f32 %v1127_v49, 0.0  ;;  %v2069_v55 = vadd.f32 %v2068_v52, %v2067_v50  ;;  %v2180_v56 = vpop.f32.mrb[45].mxu1  ;;  %v2070_v57 = vpop.f32.mrb[46].mxu0 }
 0x15a   : > { %v2181_v58 = vadd.f32 %v2180_v56, %v2179_v51  ;;  %v2182_v59 = vpop.f32.mrb[46].mxu1  ;;  %v2071_v60 = vpop.f32.mrb[47].mxu0 }
 0x15b   : > { %v1943_v61 = vpack.c.bf16 %v1191_v54, %v1190_v53  ;;  %v971_v62 = vadd.f32 %v2069_v55, %v2735_v34  ;;  %v2072_v63 = vadd.f32 %v2071_v60, %v2070_v57  ;;  %v2183_v0 = vpop.f32.mrb[47].mxu1 }
 0x15c   : > { %v2184_v1 = vadd.f32 %v2183_v0, %v2182_v59 }
 0x15d   : > { %1979 = vst [vmem:[%s2741_s12 + $0x50] sm:$0xff] %v1943_v61   ;;  %v1132_v2 = vadd.f32 %v2181_v58, %v971_v62  ;;  %v974_v3 = vadd.f32 %v2072_v63, %v2735_v34 }
 0x15f   : > { %v1135_v4 = vadd.f32 %v2184_v1, %v974_v3  ;;  %v2073_v5 = vpop.f32.mrb[48].mxu0  ;;  %v1192_v8 = vmax.f32 %v1132_v2, 0.0 }
 0x160   : > { %v2185_v6 = vpop.f32.mrb[48].mxu1  ;;  %v2074_v7 = vpop.f32.mrb[49].mxu0 }
 0x161   : > { %v1193_v9 = vmax.f32 %v1135_v4, 0.0  ;;  %v2075_v10 = vadd.f32 %v2074_v7, %v2073_v5  ;;  %v2186_v11 = vpop.f32.mrb[49].mxu1  ;;  %v2076_v12 = vpop.f32.mrb[50].mxu0 }
 0x162   : > { %v2187_v13 = vadd.f32 %v2186_v11, %v2185_v6  ;;  %v2188_v14 = vpop.f32.mrb[50].mxu1  ;;  %v2077_v15 = vpop.f32.mrb[51].mxu0 }
 0x163   : > { %v1948_v16 = vpack.c.bf16 %v1193_v9, %v1192_v8  ;;  %v979_v17 = vadd.f32 %v2075_v10, %v2735_v34  ;;  %v2078_v18 = vadd.f32 %v2077_v15, %v2076_v12  ;;  %v2189_v19 = vpop.f32.mrb[51].mxu1 }
 0x164   : > { %v2190_v20 = vadd.f32 %v2189_v19, %v2188_v14 }
 0x165   : > { %1980 = vst [vmem:[%s2741_s12 + $0x58] sm:$0xff] %v1948_v16   ;;  %v1140_v21 = vadd.f32 %v2187_v13, %v979_v17  ;;  %v982_v22 = vadd.f32 %v2078_v18, %v2735_v34 }
 0x167   : > { %v1143_v23 = vadd.f32 %v2190_v20, %v982_v22  ;;  %v2079_v24 = vpop.f32.mrb[52].mxu0  ;;  %v1194_v27 = vmax.f32 %v1140_v21, 0.0 }
 0x168   : > { %v2191_v25 = vpop.f32.mrb[52].mxu1  ;;  %v2080_v26 = vpop.f32.mrb[53].mxu0 }
 0x169   : > { %v1195_v28 = vmax.f32 %v1143_v23, 0.0  ;;  %v2081_v29 = vadd.f32 %v2080_v26, %v2079_v24  ;;  %v2192_v30 = vpop.f32.mrb[53].mxu1  ;;  %v2082_v31 = vpop.f32.mrb[54].mxu0 }
 0x16a   : > { %v2193_v32 = vadd.f32 %v2192_v30, %v2191_v25  ;;  %v2194_v33 = vpop.f32.mrb[54].mxu1  ;;  %v2083_v35 = vpop.f32.mrb[55].mxu0 }
 0x16b   : > { %v1953_v36 = vpack.c.bf16 %v1195_v28, %v1194_v27  ;;  %v987_v37 = vadd.f32 %v2081_v29, %v2735_v34  ;;  %v2084_v38 = vadd.f32 %v2083_v35, %v2082_v31  ;;  %v2195_v39 = vpop.f32.mrb[55].mxu1 }
 0x16c   : > { %v2196_v40 = vadd.f32 %v2195_v39, %v2194_v33 }
 0x16d   : > { %1981 = vst [vmem:[%s2741_s12 + $0x60] sm:$0xff] %v1953_v36   ;;  %v1148_v41 = vadd.f32 %v2193_v32, %v987_v37  ;;  %v990_v42 = vadd.f32 %v2084_v38, %v2735_v34 }
 0x16f   : > { %v1151_v43 = vadd.f32 %v2196_v40, %v990_v42  ;;  %v2085_v44 = vpop.f32.mrb[56].mxu0  ;;  %v1196_v47 = vmax.f32 %v1148_v41, 0.0 }
 0x170   : > { %v2197_v45 = vpop.f32.mrb[56].mxu1  ;;  %v2086_v46 = vpop.f32.mrb[57].mxu0 }
 0x171   : > { %v1197_v48 = vmax.f32 %v1151_v43, 0.0  ;;  %v2087_v49 = vadd.f32 %v2086_v46, %v2085_v44  ;;  %v2198_v50 = vpop.f32.mrb[57].mxu1  ;;  %v2088_v51 = vpop.f32.mrb[58].mxu0 }
 0x172   : > { %v2199_v52 = vadd.f32 %v2198_v50, %v2197_v45  ;;  %v2200_v53 = vpop.f32.mrb[58].mxu1  ;;  %v2089_v54 = vpop.f32.mrb[59].mxu0 }
 0x173   : > { %v1958_v55 = vpack.c.bf16 %v1197_v48, %v1196_v47  ;;  %v995_v56 = vadd.f32 %v2087_v49, %v2735_v34  ;;  %v2090_v57 = vadd.f32 %v2089_v54, %v2088_v51  ;;  %v2201_v58 = vpop.f32.mrb[59].mxu1 }
 0x174   : > { %v2202_v59 = vadd.f32 %v2201_v58, %v2200_v53 }
 0x175   : > { %1982 = vst [vmem:[%s2741_s12 + $0x68] sm:$0xff] %v1958_v55   ;;  %v1156_v60 = vadd.f32 %v2199_v52, %v995_v56  ;;  %v998_v61 = vadd.f32 %v2090_v57, %v2735_v34 }
 0x177   : > { %v1159_v62 = vadd.f32 %v2202_v59, %v998_v61  ;;  %v2091_v63 = vpop.f32.mrb[60].mxu0  ;;  %v1198_v2 = vmax.f32 %v1156_v60, 0.0 }
 0x178   : > { %v2203_v0 = vpop.f32.mrb[60].mxu1  ;;  %v2092_v1 = vpop.f32.mrb[61].mxu0 }
 0x179   : > { %v1199_v3 = vmax.f32 %v1159_v62, 0.0  ;;  %v2093_v4 = vadd.f32 %v2092_v1, %v2091_v63  ;;  %v2204_v5 = vpop.f32.mrb[61].mxu1  ;;  %v2094_v6 = vpop.f32.mrb[62].mxu0 }
 0x17a   : > { %v2205_v7 = vadd.f32 %v2204_v5, %v2203_v0  ;;  %v2206_v8 = vpop.f32.mrb[62].mxu1  ;;  %v2095_v9 = vpop.f32.mrb[63].mxu0 }
 0x17b   : > { %v1963_v10 = vpack.c.bf16 %v1199_v3, %v1198_v2  ;;  %v1003_v11 = vadd.f32 %v2093_v4, %v2735_v34  ;;  %v2096_v12 = vadd.f32 %v2095_v9, %v2094_v6  ;;  %v2207_v13 = vpop.f32.mrb[63].mxu1 }
 0x17c   : > { %v2208_v14 = vadd.f32 %v2207_v13, %v2206_v8 }
 0x17d   : > { %1983 = vst [vmem:[%s2741_s12 + $0x70] sm:$0xff] %v1963_v10   ;;  %v1164_v15 = vadd.f32 %v2205_v7, %v1003_v11  ;;  %v1006_v16 = vadd.f32 %v2096_v12, %v2735_v34 }
 0x17f   : > { %v1167_v17 = vadd.f32 %v2208_v14, %v1006_v16  ;;  %v1200_v18 = vmax.f32 %v1164_v15, 0.0  ;;  %1368 = sbr.rel (!%p2558_p4) target bundleno = 460 (0x1cc), region = 36 }
 0x181   : > { %v1201_v19 = vmax.f32 %v1167_v17, 0.0 }
 0x183   : > { %v1968_v20 = vpack.c.bf16 %v1201_v19, %v1200_v18 }
 0x185   : > { %1984 = vst [vmem:[%s2741_s12 + $0x78] sm:$0xff] %v1968_v20  }
 0x186   : > { %s2935_s7 = smov (!%p1371_p8, %s1370_s7), 32 }
 0x187   : > { %s1839_s14 = sshll.u32 %s2935_s7, 6 }
 0x188   : > { %p1842_p9 = scmp.eq.s32.totalorder %s1839_s14, 0 }
 0x189   : > { %s2801_s17 = sshrl.u32 (!%p1842_p9), %s2935_s7, 5 }
 0x18a   : > { %1379 = sbr.rel (%p1842_p9) target bundleno = 460 (0x1cc), region = 40  ;;  %p1843_p10 = scmp.le.s32.totalorder (!%p1842_p9), %s2801_s17, 0 }
 0x191   : > { %1656 = sbr.rel (%p1843_p10) target bundleno = 439 (0x1b7), region = 112  ;;  %s2928_s15 = smov (!%p1843_p10), %s2795_s11 }
 0x192   : > { %s2929_s20 = smov (!%p1843_p10), %s2741_s12  ;;  %s2810_s5 = smov (!%p1843_p10), 0  }
 0x193   : > { %s2812_s18 = smov (!%p1843_p10), 0  }
 0x198 LB: >> { %v1395_v34 = vld [vmem:[%s2487_s20] sm:$0xf]  ;;  %v1397_v21 = vld [vmem:[%s2487_s20 + $0x4] sm:$0xf]  ;;  %v1399_v22 = vld [vmem:[%s2487_s20 + $0x8] sm:$0xf]  ;;  %s2495_s18 = sphi %s2812_s18, %s1389_s18   ;;  %s2491_s5 = sphi %s2810_s5, %s2930_s5   ;;  %s2487_s20 = sphi %s2929_s20, %s1464_s20   ;;  %s2483_s15 = sphi %s2928_s15, %s1465_s15  }
 0x199   : >> { %1396 = vst [vmem:[%s2483_s15] sm:$0xf] %v1395_v34  ;;  %1398 = vst [vmem:[%s2483_s15 + $0x4] sm:$0xf] %v1397_v21  ;;  %v1401_v23 = vld [vmem:[%s2487_s20 + $0xc] sm:$0xf]  ;;  %s1459_s21 = sadd.s32 1, %s2491_s5 }
 0x19a   : >> { %1400 = vst [vmem:[%s2483_s15 + $0x8] sm:$0xf] %v1399_v22  ;;  %v1403_v24 = vld [vmem:[%s2487_s20 + $0x10] sm:$0xf]  ;;  %v1405_v25 = vld [vmem:[%s2487_s20 + $0x14] sm:$0xf]  ;;  %p1460_p11 = scmp.ge.s32.totalorder %s1459_s21, %s2801_s17 }
 0x19b   : >> { %1402 = vst [vmem:[%s2483_s15 + $0xc] sm:$0xf] %v1401_v23  ;;  %1404 = vst [vmem:[%s2483_s15 + $0x10] sm:$0xf] %v1403_v24  ;;  %v1407_v26 = vld [vmem:[%s2487_s20 + $0x18] sm:$0xf] }
 0x19c   : >> { %1406 = vst [vmem:[%s2483_s15 + $0x14] sm:$0xf] %v1405_v25  ;;  %v1409_v27 = vld [vmem:[%s2487_s20 + $0x1c] sm:$0xf]  ;;  %v1411_v28 = vld [vmem:[%s2487_s20 + $0x20] sm:$0xf] }
 0x19d   : >> { %1408 = vst [vmem:[%s2483_s15 + $0x18] sm:$0xf] %v1407_v26  ;;  %1410 = vst [vmem:[%s2483_s15 + $0x1c] sm:$0xf] %v1409_v27  ;;  %v1413_v29 = vld [vmem:[%s2487_s20 + $0x24] sm:$0xf] }
 0x19e   : >> { %1412 = vst [vmem:[%s2483_s15 + $0x20] sm:$0xf] %v1411_v28  ;;  %v1415_v30 = vld [vmem:[%s2487_s20 + $0x28] sm:$0xf]  ;;  %v1417_v31 = vld [vmem:[%s2487_s20 + $0x2c] sm:$0xf] }
 0x19f   : >> { %1414 = vst [vmem:[%s2483_s15 + $0x24] sm:$0xf] %v1413_v29  ;;  %1416 = vst [vmem:[%s2483_s15 + $0x28] sm:$0xf] %v1415_v30  ;;  %v1419_v32 = vld [vmem:[%s2487_s20 + $0x30] sm:$0xf] }
 0x1a0   : >> { %1418 = vst [vmem:[%s2483_s15 + $0x2c] sm:$0xf] %v1417_v31  ;;  %v1421_v33 = vld [vmem:[%s2487_s20 + $0x34] sm:$0xf]  ;;  %v1423_v35 = vld [vmem:[%s2487_s20 + $0x38] sm:$0xf] }
 0x1a1   : >> { %1420 = vst [vmem:[%s2483_s15 + $0x30] sm:$0xf] %v1419_v32  ;;  %1422 = vst [vmem:[%s2483_s15 + $0x34] sm:$0xf] %v1421_v33  ;;  %v1425_v36 = vld [vmem:[%s2487_s20 + $0x3c] sm:$0xf] }
 0x1a2   : >> { %1424 = vst [vmem:[%s2483_s15 + $0x38] sm:$0xf] %v1423_v35  ;;  %v1427_v37 = vld [vmem:[%s2487_s20 + $0x40] sm:$0xf]  ;;  %v1429_v38 = vld [vmem:[%s2487_s20 + $0x44] sm:$0xf] }
 0x1a3   : >> { %1426 = vst [vmem:[%s2483_s15 + $0x3c] sm:$0xf] %v1425_v36  ;;  %1428 = vst [vmem:[%s2483_s15 + $0x40] sm:$0xf] %v1427_v37  ;;  %v1431_v39 = vld [vmem:[%s2487_s20 + $0x48] sm:$0xf] }
 0x1a4   : >> { %1430 = vst [vmem:[%s2483_s15 + $0x44] sm:$0xf] %v1429_v38  ;;  %v1433_v40 = vld [vmem:[%s2487_s20 + $0x4c] sm:$0xf]  ;;  %v1435_v41 = vld [vmem:[%s2487_s20 + $0x50] sm:$0xf] }
 0x1a5   : >> { %1432 = vst [vmem:[%s2483_s15 + $0x48] sm:$0xf] %v1431_v39  ;;  %1434 = vst [vmem:[%s2483_s15 + $0x4c] sm:$0xf] %v1433_v40  ;;  %v1437_v42 = vld [vmem:[%s2487_s20 + $0x54] sm:$0xf] }
 0x1a6   : >> { %1436 = vst [vmem:[%s2483_s15 + $0x50] sm:$0xf] %v1435_v41  ;;  %v1439_v43 = vld [vmem:[%s2487_s20 + $0x58] sm:$0xf]  ;;  %v1441_v44 = vld [vmem:[%s2487_s20 + $0x5c] sm:$0xf] }
 0x1a7   : >> { %1438 = vst [vmem:[%s2483_s15 + $0x54] sm:$0xf] %v1437_v42  ;;  %1440 = vst [vmem:[%s2483_s15 + $0x58] sm:$0xf] %v1439_v43  ;;  %v1443_v45 = vld [vmem:[%s2487_s20 + $0x60] sm:$0xf] }
 0x1a8   : >> { %1442 = vst [vmem:[%s2483_s15 + $0x5c] sm:$0xf] %v1441_v44  ;;  %v1445_v46 = vld [vmem:[%s2487_s20 + $0x64] sm:$0xf]  ;;  %v1447_v47 = vld [vmem:[%s2487_s20 + $0x68] sm:$0xf] }
 0x1a9   : >> { %1444 = vst [vmem:[%s2483_s15 + $0x60] sm:$0xf] %v1443_v45  ;;  %1446 = vst [vmem:[%s2483_s15 + $0x64] sm:$0xf] %v1445_v46  ;;  %v1449_v48 = vld [vmem:[%s2487_s20 + $0x6c] sm:$0xf] }
 0x1aa   : >> { %1448 = vst [vmem:[%s2483_s15 + $0x68] sm:$0xf] %v1447_v47  ;;  %v1451_v49 = vld [vmem:[%s2487_s20 + $0x70] sm:$0xf]  ;;  %v1453_v50 = vld [vmem:[%s2487_s20 + $0x74] sm:$0xf] }
 0x1ab   : >> { %1450 = vst [vmem:[%s2483_s15 + $0x6c] sm:$0xf] %v1449_v48  ;;  %1452 = vst [vmem:[%s2483_s15 + $0x70] sm:$0xf] %v1451_v49  ;;  %v1455_v51 = vld [vmem:[%s2487_s20 + $0x78] sm:$0xf] }
 0x1ac   : >> { %1454 = vst [vmem:[%s2483_s15 + $0x74] sm:$0xf] %v1453_v50  ;;  %v1457_v52 = vld [vmem:[%s2487_s20 + $0x7c] sm:$0xf]  ;;  %1456 = vst [vmem:[%s2483_s15 + $0x78] sm:$0xf] %v1455_v51 }
 0x1ad   : >> { %1458 = vst [vmem:[%s2483_s15 + $0x7c] sm:$0xf] %v1457_v52  ;;  %s2937_s21 = smov (%p1460_p11, %s1459_s21), 0  ;;  %s1389_s18 = sadd.s32 1, %s2495_s18  }
 0x1ae   : >> { %s1844_s22 = sshll.u32 %s2937_s21, 7  ;;  %p1388_p12 = scmp.ge.s32.totalorder %s1389_s18, %s2801_s17 }
 0x1af   : >> { %s1464_s20 = scalar_lea.vmem %s2741_s12, %s1844_s22 [#allocation2]   ;;  %s1465_s15 = scalar_lea.vmem %s2795_s11, %s1844_s22  }
 0x1b0   : >> { %s2930_s5 = smov %s2937_s21  ;;  %1391 = sbr.rel (!%p1388_p12) target bundleno = 408 (0x198), region = 118 }
 0x1b7 PF: > { %s2905_s23 = sand.u32 31, %s2935_s7   ;;  %s1888_s24 = sshll.u32 %s2801_s17, 7 }
 0x1b8   : > { %s1470_s25 = scalar_lea.vmem %s2741_s12, %s1888_s24 [#allocation2]   ;;  %s1472_s26 = scalar_lea.vmem %s2795_s11, %s1888_s24  }
 0x1b9   : > { %p1849_p13 = scmp.le.s32.totalorder %s2905_s23, 0 }
 0x1ba   : > { %s2497_s27 = smov (!%p1849_p13), %s1472_s26   ;;  %s2501_s28 = smov (!%p1849_p13), %s1470_s25  }
 0x1bb   : > { %1670 = sbr.rel (%p1849_p13) target bundleno = 460 (0x1cc), region = 123  ;;  %s2505_s29 = smov (!%p1849_p13), 0  }
 0x1bc   : > { %s2509_s30 = smov (!%p1849_p13), 0  }
 0x1c2 LB: >> { %v1482_v53 = vld [vmem:[%s2503_s28] sm:$0xf]  ;;  %s1484_s4 = sadd.s32 1, %s2507_s29  ;;  %s1476_s30 = sadd.s32 1, %s2511_s30   ;;  %s2511_s30 = sphi %s2509_s30, %s1476_s30   ;;  %s2507_s29 = sphi %s2505_s29, %s2506_s29   ;;  %s2503_s28 = sphi %s2501_s28, %s1489_s28   ;;  %s2499_s27 = sphi %s2497_s27, %s1490_s27  }
 0x1c3   : >> { %1483 = vst [vmem:[%s2499_s27] sm:$0xf] %v1482_v53  ;;  %p1485_p0 = scmp.ge.s32.totalorder %s1484_s4, %s2905_s23  ;;  %p1475_p1 = scmp.ge.s32.totalorder %s1476_s30, %s2905_s23 }
 0x1c5   : >> { %s2939_s4 = smov (%p1485_p0, %s1484_s4), 0  ;;  %1478 = sbr.rel (!%p1475_p1) target bundleno = 450 (0x1c2), region = 129 }
 0x1c6   : >> { %s1850_s6 = sshll.u32 %s2939_s4, 2  ;;  %s2506_s29 = smov %s2939_s4  }
 0x1c7   : >> { %s1489_s28 = scalar_lea.vmem %s1470_s25, %s1850_s6 [#allocation2]   ;;  %s1490_s27 = scalar_lea.vmem %s1472_s26, %s1850_s6  }
 0x1cc PF: > { %p10_p2 = scmp.ge.s32.totalorder %s2548_s16, 4   ;;  %s2931_s12 = smov %s2475_s13 }
 0x1cd   : > { %s2932_s13 = smov %s2556_s19  ;;  %s2933_s14 = smov %s2548_s16 }
 0x1ce   :  { %12 = sbr.rel (!%p10_p2) target bundleno = 2 (0x2), region = 140 }

// kernel: cvcnn_forward_pallas.8
= control target key start
LH: loop header
LB: loop body
LE: loop exit
PB: predicated region body
PF: predicated region fallthrough
CT: control target
= control target key end

     0   :  { %s949_s6 = smov 0   ;;  %s951_s7 = smov 0   ;;  %s1587_s0 = inlined_call_operand.vmem [shape: bf16[14,2,7,256], index: 0, kind: input, shape index: {}]   ;;  %s1588_s1 = inlined_call_operand.vmem [shape: bf16[14,7,128], index: 1, kind: output, shape index: {}]  }
   0x1   :  { %s953_s8 = smov 0  }
   0x2 LB: > { %s962_s9 = sadd.s32 4294967295, %s904_s8   ;;  %s964_s10 = sadd.s32 1, %s904_s8   ;;  %s904_s8 = sphi %s953_s8, %s1703_s8   ;;  %s900_s7 = sphi %s951_s7, %s1702_s7   ;;  %s896_s6 = sphi %s949_s6, %s1701_s6  }
   0x3   : > { %s41_s11 = ssub.s32 %s904_s8, %s964_s10  ;;  %s44_s12 = sadd.s32 1, %s900_s7 }
   0x4   : > { %p42_p0 = scmp.eq.s32.totalorder %s41_s11, 0  ;;  %p54_p1 = scmp.ne.s32.totalorder %s900_s7, %s896_s6 }
   0x5   : > { %p55_p2 = scmp.eq.s32.totalorder %s962_s9, 1  ;;  %p735_p3 = scmp.ge.s32.totalorder %s904_s8, 1 }
   0x6   : > { %s972_s13 = scalar_select %p42_p0, %s900_s7, %s44_s12  }
   0x7   : > { %p974_p4 = por %p55_p2, %p54_p1  ;;  %p101_p5 = scmp.lt.s32.totalorder %s904_s8, 3 }
   0x9   : > { %p102_p6 = pnand %p735_p3, %p101_p5 }
   0xb   : > { %105 = sbr.rel (%p102_p6) target bundleno = 267 (0x10b), region = 24 }
  0x12   : > { %s979_s15 = sshll.u32 %s962_s9, 3  ;;  %s938_s21 = smov 64   ;;  %vm463_vm6 = vcmask 1043456   ;;  %vm464_vm7 = vsmask.f32 3328 }
  0x13   : > { %p134_p7 = scmp.lt.s32.totalorder %s979_s15, 13  ;;  %s124_s22 = sand.u32 1, %s896_s6   ;;  %vm1288_vm14 = vmand %vm463_vm6, %vm464_vm7 }
  0x14   : > { %s1276_s23 = sshll.u32 %s124_s22, 5  ;;  %s498_s25 = ssub.s32 (%p974_p4), 14, %s979_s15 }
  0x15   : > { %s135_s16 = scalar_select %p134_p7, %s979_s15, 13 }
  0x16   : > { %s1353_s24 = scalar_lea.vmem [#allocation2], %s1276_s23   ;;  %s758_s26 = sshll.u32 (%p974_p4), %s962_s9, 5 }
  0x17   : > { %s757_s17 = sshll.u32 %s135_s16, 4  ;;  %p499_p8 = scmp.lt.s32.totalorder (%p974_p4), %s498_s25, 8 }
  0x18   : > { %s986_s20 = scalar_lea.vmem %s1587_s0, %s757_s17  ;;  %s1533_s29 = scalar_lea.vmem (%p974_p4), %s1588_s1, %s758_s26  }
  0x19   : > { %v989_v0 = vld [vmem:[%s986_s20 + $0x20] sm:$0xff]  ;;  %v995_v2 = vld [vmem:[%s986_s20 + $0x30] sm:$0xff]  ;;  %v1097_v46 = vld [vmem:[%s986_s20 + $0x18] sm:$0xff] }
  0x1a   : > { %v992_v1 = vld [vmem:[%s986_s20] sm:$0xff]  ;;  %v217_v3 = vunpack.c.l.bf16 %v989_v0  ;;  %v218_v5 = vunpack.c.l.bf16 %v995_v2  ;;  %v1001_v6 = vld [vmem:[%s986_s20 + $0x10] sm:$0xff]  ;;  %v1602_v28 = vrot.slane %v995_v2, 4  ;;  %v1601_v29 = vrot.slane %v989_v0, 4  ;;  %v1100_v47 = vld [vmem:[%s986_s20 + $0x8] sm:$0xff] }
  0x1b   : > { %v215_v4 = vunpack.c.l.bf16 %v992_v1  ;;  %v216_v7 = vunpack.c.l.bf16 %v1001_v6  ;;  %v1005_v8 = vld [vmem:[%s986_s20 + $0x50] sm:$0xff]  ;;  %v1008_v9 = vld [vmem:[%s986_s20 + $0x40] sm:$0xff]  ;;  %v1604_v19 = vrot.slane %v1001_v6, 4  ;;  %v1603_v23 = vrot.slane %v992_v1, 4  ;;  %v1113_v52 = vld [vmem:[%s986_s20 + $0x38] sm:$0xff] }
  0x1c   : > { %1626 = vst [vmem:[#allocation3_spill] sm:$0xff] %v1008_v9  ;;  %v1010_v10 = vmul.f32 %v217_v3, %v217_v3  ;;  %v1018_v12 = vmul.f32 %v218_v5, %v218_v5  ;;  %v220_v14 = vunpack.c.l.bf16 %v1005_v8  ;;  %v219_v15 = vunpack.c.l.bf16 %v1008_v9  ;;  %v1025_v16 = vld [vmem:[%s986_s20 + $0x70] sm:$0xff]  ;;  %v1028_v17 = vld [vmem:[%s986_s20 + $0x60] sm:$0xff]  ;;  %v1116_v53 = vld [vmem:[%s986_s20 + $0x28] sm:$0xff] }
  0x1d   : > { %v1012_v11 = vmul.f32 %v215_v4, %v215_v4  ;;  %v1020_v13 = vmul.f32 %v216_v7, %v216_v7  ;;  %1627 = vst [vmem:[#allocation4_spill] sm:$0xff] %v1025_v16  ;;  %1628 = vst [vmem:[#allocation5_spill] sm:$0xff] %v1028_v17  ;;  %v222_v18 = vunpack.c.l.bf16 %v1025_v16  ;;  %v221_v22 = vunpack.c.l.bf16 %v1028_v17  ;;  %v1129_v58 = vld [vmem:[%s986_s20 + $0x58] sm:$0xff]  ;;  %v1132_v59 = vld [vmem:[%s986_s20 + $0x48] sm:$0xff] }
  0x1e   : > { %235 = vrot.lane.b32.xlu1 %v1010_v10, %s938_s21  ;;  %v1036_v20 = vmul.f32 %v220_v14, %v220_v14  ;;  %v1038_v21 = vmul.f32 %v219_v15, %v219_v15  ;;  %v256_v25 = vunpack.c.l.bf16 %v1604_v19  ;;  %v255_v27 = vunpack.c.l.bf16 %v1603_v23  ;;  %1629 = vst [vmem:[#allocation6_spill] sm:$0xff] %v1116_v53  ;;  %1630 = vst [vmem:[#allocation7_spill] sm:$0xff] %v1129_v58  ;;  %v1145_v3 = vld [vmem:[%s986_s20 + $0x78] sm:$0xff]  ;;  %v1148_v4 = vld [vmem:[%s986_s20 + $0x68] sm:$0xff] }
  0x1f   : > { %231 = vrot.lane.b32.xlu0 %v1012_v11, %s938_s21  ;;  %v1042_v24 = vmul.f32 %v222_v18, %v222_v18  ;;  %v1050_v26 = vmul.f32 %v221_v22, %v221_v22  ;;  %v1598_v30 = vrot.slane %v1005_v8, 4  ;;  %v1595_v31 = vrot.slane %v1008_v9, 4  ;;  %1631 = vst [vmem:[#allocation8_spill] sm:$0xff] %v1132_v59  ;;  %1632 = vst [vmem:[#allocation9_spill] sm:$0xff] %v1145_v3 }
  0x20   : > { %v1062_v32 = vmul.f32 %v256_v25, %v256_v25  ;;  %v1064_v33 = vmul.f32 %v255_v27, %v255_v27  ;;  %v258_v34 = vunpack.c.l.bf16 %v1602_v28  ;;  %v257_v35 = vunpack.c.l.bf16 %v1601_v29  ;;  %1633 = vst [vmem:[#allocation10_spill] sm:$0xff] %v1148_v4 }
  0x21   : > { %v260_v36 = vunpack.c.l.bf16 %v1598_v30  ;;  %v1590_v37 = vrot.slane %v1025_v16, 4  ;;  %v259_v40 = vunpack.c.l.bf16 %v1595_v31  ;;  %v1589_v41 = vrot.slane %v1028_v17, 4 }
  0x22   : > { %237 = vrot.lane.b32.xlu1 %v1018_v12, %s938_s21  ;;  %v1077_v38 = vmul.f32 %v258_v34, %v258_v34  ;;  %v1079_v39 = vmul.f32 %v257_v35, %v257_v35  ;;  %v328_v50 = vunpack.c.l.bf16 %v1097_v46  ;;  %v327_v51 = vunpack.c.l.bf16 %v1100_v47 }
  0x23   : > { %233 = vrot.lane.b32.xlu0 %v1020_v13, %s938_s21  ;;  %v1088_v42 = vmul.f32 %v260_v36, %v260_v36  ;;  %v1090_v43 = vmul.f32 %v259_v40, %v259_v40  ;;  %v262_v44 = vunpack.c.l.bf16 %v1590_v37  ;;  %v261_v45 = vunpack.c.l.bf16 %v1589_v41 }
  0x24   : > { %v1122_v54 = vmul.f32 %v328_v50, %v328_v50  ;;  %v1124_v55 = vmul.f32 %v327_v51, %v327_v51  ;;  %v330_v56 = vunpack.c.l.bf16 %v1113_v52  ;;  %v329_v57 = vunpack.c.l.bf16 %v1116_v53 }
  0x25   : > { %v1106_v48 = vmul.f32 %v262_v44, %v262_v44  ;;  %v1108_v49 = vmul.f32 %v261_v45, %v261_v45  ;;  %v332_v62 = vunpack.c.l.bf16 %v1129_v58  ;;  %v331_v63 = vunpack.c.l.bf16 %v1132_v59 }
  0x26   : > { %241 = vrot.lane.b32.xlu1 %v1036_v20, %s938_s21  ;;  %v1138_v60 = vmul.f32 %v330_v56, %v330_v56  ;;  %v1140_v61 = vmul.f32 %v329_v57, %v329_v57  ;;  %v334_v5 = vunpack.c.l.bf16 %v1145_v3  ;;  %v333_v7 = vunpack.c.l.bf16 %v1148_v4 }
  0x27   : > { %239 = vrot.lane.b32.xlu0 %v1038_v21, %s938_s21  ;;  %v1156_v14 = vmul.f32 %v332_v62, %v332_v62  ;;  %v1158_v15 = vmul.f32 %v331_v63, %v331_v63  ;;  %v1600_v18 = vrot.slane %v1097_v46, 4  ;;  %v1599_v22 = vrot.slane %v1100_v47, 4 }
  0x28   : > { %v1162_v25 = vmul.f32 %v334_v5, %v334_v5  ;;  %v1164_v27 = vmul.f32 %v333_v7, %v333_v7  ;;  %v1597_v36 = vrot.slane %v1113_v52, 4  ;;  %v1596_v40 = vrot.slane %v1116_v53, 4 }
  0x29   : > { %v400_v34 = vunpack.c.l.bf16 %v1600_v18  ;;  %v399_v35 = vunpack.c.l.bf16 %v1599_v22  ;;  %v1592_v44 = vrot.slane %v1129_v58, 4  ;;  %v1591_v45 = vrot.slane %v1132_v59, 4 }
  0x2a   : > { %245 = vrot.lane.b32.xlu1 %v1042_v24, %s938_s21  ;;  %v402_v56 = vunpack.c.l.bf16 %v1597_v36  ;;  %v401_v57 = vunpack.c.l.bf16 %v1596_v40  ;;  %v1593_v62 = vrot.slane %v1145_v3, 4  ;;  %v1594_v63 = vrot.slane %v1148_v4, 4 }
  0x2b   : > { %243 = vrot.lane.b32.xlu0 %v1050_v26, %s938_s21  ;;  %v1182_v50 = vmul.f32 %v400_v34, %v400_v34  ;;  %v1184_v51 = vmul.f32 %v399_v35, %v399_v35  ;;  %v404_v34 = vunpack.c.l.bf16 %v1592_v44  ;;  %v403_v35 = vunpack.c.l.bf16 %v1591_v45 }
  0x2c   : > { %v1196_v5 = vmul.f32 %v402_v56, %v402_v56  ;;  %v1198_v7 = vmul.f32 %v401_v57, %v401_v57  ;;  %v406_v56 = vunpack.c.l.bf16 %v1593_v62  ;;  %v405_v57 = vunpack.c.l.bf16 %v1594_v63 }
  0x2d   : > { %v1208_v41 = vmul.f32 %v404_v34, %v404_v34  ;;  %v1210_v37 = vmul.f32 %v403_v35, %v403_v35 }
  0x2e   : > { %273 = vrot.lane.b32.xlu1 %v1062_v32, %s938_s21  ;;  %v1220_v45 = vmul.f32 %v406_v56, %v406_v56  ;;  %v1222_v44 = vmul.f32 %v405_v57, %v405_v57 }
  0x2f   : > { %271 = vrot.lane.b32.xlu0 %v1064_v33, %s938_s21  ;;  %1634 = vst [vmem:[#allocation11_spill] sm:$0xff] %v1208_v41  ;;  %1635 = vst [vmem:[#allocation12_spill] sm:$0xff] %v1210_v37 }
  0x30   : > { %1636 = vst [vmem:[#allocation13_spill] sm:$0xff] %v1220_v45  ;;  %1637 = vst [vmem:[#allocation14_spill] sm:$0xff] %v1222_v44 }
  0x32   : > { %277 = vrot.lane.b32.xlu1 %v1077_v38, %s938_s21 }
  0x33   : > { %275 = vrot.lane.b32.xlu0 %v1079_v39, %s938_s21 }
  0x36   : > { %281 = vrot.lane.b32.xlu1 %v1088_v42, %s938_s21 }
  0x37   : > { %279 = vrot.lane.b32.xlu0 %v1090_v43, %s938_s21 }
  0x3a   : > { %285 = vrot.lane.b32.xlu1 %v1106_v48, %s938_s21 }
  0x3b   : > { %283 = vrot.lane.b32.xlu0 %v1108_v49, %s938_s21 }
  0x3e   : > { %345 = vrot.lane.b32.xlu1 %v1122_v54, %s938_s21 }
  0x3f   : > { %343 = vrot.lane.b32.xlu0 %v1124_v55, %s938_s21 }
  0x42   : > { %349 = vrot.lane.b32.xlu1 %v1138_v60, %s938_s21 }
  0x43   : > { %347 = vrot.lane.b32.xlu0 %v1140_v61, %s938_s21 }
  0x46   : > { %353 = vrot.lane.b32.xlu1 %v1156_v14, %s938_s21 }
  0x47   : > { %351 = vrot.lane.b32.xlu0 %v1158_v15, %s938_s21 }
  0x4a   : > { %357 = vrot.lane.b32.xlu1 %v1162_v25, %s938_s21 }
  0x4b   : > { %355 = vrot.lane.b32.xlu0 %v1164_v27, %s938_s21 }
  0x4e   : > { %417 = vrot.lane.b32.xlu1 %v1182_v50, %s938_s21 }
  0x4f   : > { %415 = vrot.lane.b32.xlu0 %v1184_v51, %s938_s21 }
  0x52   : > { %421 = vrot.lane.b32.xlu1 %v1196_v5, %s938_s21 }
  0x53   : > { %419 = vrot.lane.b32.xlu0 %v1198_v7, %s938_s21 }
  0x56   : > { %425 = vrot.lane.b32.xlu1 %v1208_v41, %s938_s21 }
  0x57   : > { %423 = vrot.lane.b32.xlu0 %v1210_v37, %s938_s21 }
  0x5a   : > { %429 = vrot.lane.b32.xlu1 %v1220_v45, %s938_s21 }
  0x5b   : > { %427 = vrot.lane.b32.xlu0 %v1222_v44, %s938_s21 }
  0x90   : > { %v236_v34 = vpop.permute.xlu1 %235 }
  0x91   : > { %v232_v35 = vpop.permute.xlu0 %231  ;;  %v249_v53 = vadd.f32 %v236_v34, %v1010_v10 }
  0x92   : > { %v247_v9 = vadd.f32 %v232_v35, %v1012_v11  ;;  %v466_v35 = vld [vmem:[%s1353_s24] sm:$0xf]  ;;  %v487_v11 = vld [vmem:[%s1353_s24 + $0x1c] sm:$0xf] }
  0x94   : > { %v238_v62 = vpop.permute.xlu1 %237 }
  0x95   : > { %v234_v63 = vpop.permute.xlu0 %233  ;;  %v250_v41 = vadd.f32 %v238_v62, %v1018_v12 }
  0x96   : > { %v248_v59 = vadd.f32 %v234_v63, %v1020_v13 }
  0x98   : > { %v242_v31 = vpop.permute.xlu1 %241 }
  0x99   : > { %v240_v40 = vpop.permute.xlu0 %239 }
  0x9c   : > { %v246_v36 = vpop.permute.xlu1 %245 }
  0x9d   : > { %v244_v30 = vpop.permute.xlu0 %243 }
  0xa0   : > { %v274_v22 = vpop.permute.xlu1 %273 }
  0xa1   : > { %v272_v18 = vpop.permute.xlu0 %271  ;;  %v288_v17 = vadd.f32 %v274_v22, %v1062_v32 }
  0xa2   : > { %v287_v16 = vadd.f32 %v272_v18, %v1064_v33 }
  0xa3   : > { %vm296_vm0 = vcmp.gt.f32.partialorder %v288_v17, %v248_v59 }
  0xa4   : > { %v278_v56 = vpop.permute.xlu1 %277  ;;  %vm295_vm1 = vcmp.gt.f32.partialorder %v287_v16, %v247_v9  ;;  %vm1241_vm3 = vmpackc.low %vm296_vm0, %vm296_vm0 }
  0xa5   : > { %v276_v29 = vpop.permute.xlu0 %275  ;;  %v290_v58 = vadd.f32 %v278_v56, %v1077_v38  ;;  %v252_v38 = vadd.f32 %v242_v31, %v1036_v20  ;;  %vm1252_vm5 = vmpackc.low %vm295_vm1, %vm295_vm1  ;;  %v475_v20 = vld [vmem:[%s1353_s24 + $0xc] sm:$0xf] }
  0xa6   : > { %v289_v37 = vadd.f32 %v276_v29, %v1079_v39  ;;  %v251_v29 = vadd.f32 %v240_v40, %v1038_v21  ;;  %v254_v39 = vadd.f32 %v246_v36, %v1042_v24  ;;  %v320_v21 = vsel %vm296_vm0, %v288_v17, %v248_v59 }
  0xa7   : > { %vm298_vm2 = vcmp.gt.f32.partialorder %v290_v58, %v250_v41  ;;  %v1645_v17 = vrot.slane %v992_v1, 4  ;;  %v1651_v59 = vrot.slane %v989_v0, 4 }
  0xa8   : > { %v282_v57 = vpop.permute.xlu1 %281  ;;  %vm297_vm4 = vcmp.gt.f32.partialorder %v289_v37, %v249_v53  ;;  %vm1258_vm8 = vmpackc.low %vm298_vm2, %vm298_vm2 }
  0xa9   : > { %v280_v28 = vpop.permute.xlu0 %279  ;;  %v292_v32 = vadd.f32 %v282_v57, %v1088_v42  ;;  %vm305_vm10 = vmpackc.low %vm297_vm4, %vm297_vm4 }
  0xaa   : > { %v291_v12 = vadd.f32 %v280_v28, %v1090_v43 }
  0xab   : > { %vm300_vm9 = vcmp.gt.f32.partialorder %v292_v32, %v252_v38 }
  0xac   : > { %v286_v23 = vpop.permute.xlu1 %285  ;;  %vm299_vm12 = vcmp.gt.f32.partialorder %v291_v12, %v251_v29  ;;  %vm1301_vm15 = vmpackc.low %vm300_vm9, %vm300_vm9 }
  0xad   : > { %v284_v19 = vpop.permute.xlu0 %283  ;;  %v294_v28 = vadd.f32 %v286_v23, %v1106_v48  ;;  %v319_v23 = vsel %vm295_vm1, %v287_v16, %v247_v9  ;;  %v1648_v9 = vrot.slane %v995_v2, 4  ;;  %v321_v48 = vsel %vm297_vm4, %v289_v37, %v249_v53  ;;  %vm1334_vm4 = vmpackc.low %vm299_vm12, %vm299_vm12  ;;  %v478_v53 = vld [vmem:[%s1353_s24 + $0x10] sm:$0xf] }
  0xaf   : > { %v1297_v16 = vsel %vm1258_vm8, %v1648_v9, %v995_v2  ;;  %vm302_vm0 = vcmp.gt.f32.partialorder %v294_v28, %v254_v39 }
  0xb0   : > { %v346_v4 = vpop.permute.xlu1 %345 }
  0xb1   : > { %v344_v3 = vpop.permute.xlu0 %343  ;;  %v360_v13 = vadd.f32 %v346_v4, %v1122_v54  ;;  %v1266_v54 = vadd.f32 %v244_v30, %v1050_v26  ;;  %v311_v26 = vsel %vm1252_vm5, %v1645_v17, %v992_v1  ;;  %v1284_v30 = vadd.f32 %v284_v19, %v1108_v49 }
  0xb2   : > { %v359_v10 = vadd.f32 %v344_v3, %v1124_v55  ;;  %v1644_v55 = vrot.slane %v1001_v6, 4  ;;  %v322_v19 = vsel %vm298_vm2, %v290_v58, %v250_v41  ;;  %v323_v58 = vsel %vm299_vm12, %v291_v12, %v251_v29 }
  0xb3   : > { %vm368_vm11 = vcmp.gt.f32.partialorder %v360_v13, %v320_v21  ;;  %vm301_vm5 = vcmp.gt.f32.partialorder %v1284_v30, %v1266_v54  ;;  %v1667_v12 = vrot.slane %v1100_v47, 4 }
  0xb4   : > { %v350_v44 = vpop.permute.xlu1 %349  ;;  %v312_v3 = vsel %vm1241_vm3, %v1644_v55, %v1001_v6  ;;  %vm367_vm13 = vcmp.gt.f32.partialorder %v359_v10, %v319_v23  ;;  %vm1315_vm1 = vmpackc.low %vm368_vm11, %vm368_vm11  ;;  %v392_v40 = vsel %vm368_vm11, %v360_v13, %v320_v21  ;;  %v472_v21 = vld [vmem:[%s1353_s24 + $0x8] sm:$0xf]  ;;  %v1672_v55 = vrot.slane %v1113_v52, 4 }
  0xb5   : > { %v348_v45 = vpop.permute.xlu0 %347  ;;  %v362_v24 = vadd.f32 %v350_v44, %v1138_v60  ;;  %v1311_v60 = vsel %vm305_vm10, %v1651_v59, %v989_v0  ;;  %vm1324_vm2 = vmpackc.low %vm367_vm13, %vm367_vm13  ;;  %v324_v0 = vsel %vm300_vm9, %v292_v32, %v252_v38  ;;  %v391_v44 = vsel %vm367_vm13, %v359_v10, %v319_v23  ;;  %v1673_v23 = vld [vmem:[#allocation11_spill] sm:$0xff]  ;;  %v481_v59 = vld [vmem:[%s1353_s24 + $0x14] sm:$0xf] }
  0xb6   : > { %v361_v49 = vadd.f32 %v348_v45, %v1140_v61  ;;  %vm1358_vm10 = vmpackc.low %vm302_vm0, %vm302_vm0  ;;  %v384_v62 = vsel %vm1315_vm1, %v1097_v46, %v312_v3  ;;  %v383_v63 = vsel %vm1324_vm2, %v1100_v47, %v311_v26  ;;  %v1670_v47 = vrot.slane %v1005_v8, 4  ;;  %v1674_v26 = vld [vmem:[#allocation12_spill] sm:$0xff]  ;;  %v1686_v45 = vld [vmem:[#allocation14_spill] sm:$0xff] }
  0xb7   : > { %vm370_vm3 = vcmp.gt.f32.partialorder %v362_v24, %v322_v19  ;;  %vm1377_vm13 = vmpackc.low %vm301_vm5, %vm301_vm5 }
  0xb8   : > { %v354_v33 = vpop.permute.xlu1 %353  ;;  %vm1345_vm6 = vmpackc.low %vm370_vm3, %vm370_vm3  ;;  %vm369_vm7 = vcmp.gt.f32.partialorder %v361_v49, %v321_v48  ;;  %v316_v31 = vsel %vm1301_vm15, %v1670_v47, %v1005_v8 }
  0xb9   : > { %v352_v18 = vpop.permute.xlu0 %351  ;;  %v1320_v4 = vadd.f32 %v354_v33, %v1156_v14  ;;  %v1664_v33 = vrot.slane %v1097_v46, 4  ;;  %vm1388_vm1 = vmpackc.low %vm369_vm7, %vm369_vm7  ;;  %v393_v29 = vsel %vm369_vm7, %v361_v49, %v321_v48  ;;  %v1685_v14 = vld [vmem:[#allocation13_spill] sm:$0xff] }
  0xba   : > { %v363_v36 = vadd.f32 %v352_v18, %v1158_v15  ;;  %v469_v15 = vld [vmem:[%s1353_s24 + $0x4] sm:$0xf] }
  0xbb   : > { %vm372_vm11 = vcmp.gt.f32.partialorder %v1320_v4, %v324_v0 }
  0xbc   : > { %v358_v42 = vpop.permute.xlu1 %357  ;;  %vm371_vm2 = vcmp.gt.f32.partialorder %v363_v36, %v323_v58  ;;  %v396_v1 = vsel %vm372_vm11, %v1320_v4, %v324_v0 }
  0xbd   : > { %v356_v43 = vpop.permute.xlu0 %355  ;;  %v1370_v34 = vadd.f32 %v358_v42, %v1162_v25  ;;  %v394_v25 = vsel %vm370_vm3, %v362_v24, %v322_v19  ;;  %vm1400_vm3 = vmpackc.low %vm372_vm11, %vm372_vm11  ;;  %v1671_v42 = vld [vmem:[#allocation6_spill] sm:$0xff]  ;;  %v395_v19 = vsel %vm371_vm2, %v363_v36, %v323_v58 }
  0xc0   : > { %v418_v41 = vpop.permute.xlu1 %417 }
  0xc1   : > { %v416_v37 = vpop.permute.xlu0 %415  ;;  %v432_v61 = vadd.f32 %v418_v41, %v1182_v50  ;;  %v1350_v50 = vsel %vm302_vm0, %v294_v28, %v254_v39  ;;  %v386_v28 = vsel %vm1345_vm6, %v1113_v52, %v1297_v16  ;;  %v1677_v16 = vrot.slane %v1671_v42, 4  ;;  %v1682_v41 = vld [vmem:[#allocation7_spill] sm:$0xff] }
  0xc2   : > { %v431_v22 = vadd.f32 %v416_v37, %v1184_v51  ;;  %vm374_vm7 = vcmp.gt.f32.partialorder %v1370_v34, %v1350_v50  ;;  %v388_v37 = vsel %vm1400_vm3, %v1682_v41, %v316_v31  ;;  %v1684_v36 = vrot.slane %v1682_v41, 4 }
  0xc3   : > { %vm440_vm8 = vcmp.gt.f32.partialorder %v432_v61, %v392_v40  ;;  %vm1453_vm6 = vmpackc.low %vm374_vm7, %vm374_vm7  ;;  %v1683_v61 = vld [vmem:[#allocation8_spill] sm:$0xff] }
  0xc4   : > { %vm439_vm9 = vcmp.gt.f32.partialorder %v431_v22, %v391_v44  ;;  %vm448_vm12 = vmpackc.low %vm440_vm8, %vm440_vm8  ;;  %v422_v56 = vpop.permute.xlu1 %421 }
  0xc5   : > { %v420_v57 = vpop.permute.xlu0 %419  ;;  %v456_v18 = vsel %vm448_vm12, %v1664_v33, %v384_v62  ;;  %vm447_vm0 = vmpackc.low %vm439_vm9, %vm439_vm9  ;;  %v434_v13 = vadd.f32 %v422_v56, %v1196_v5 }
  0xc6   : > { %v433_v38 = vadd.f32 %v420_v57, %v1198_v7  ;;  %v470_v46 = vsel %vm1288_vm14, %v456_v18, %v469_v15  ;;  %v455_v10 = vsel %vm447_vm0, %v1667_v12, %v383_v63  ;;  %v365_v7 = vadd.f32 %v356_v43, %v1164_v27  ;;  %v1690_v18 = vld [vmem:[#allocation4_spill] sm:$0xff]  ;;  %v1694_v12 = vld [vmem:[#allocation9_spill] sm:$0xff] }
  0xc7   : > { %471 = vst [vmem:[%s1353_s24 + $0x4] sm:$0xf] %v470_v46  ;;  %v467_v39 = vsel %vm1288_vm14, %v455_v10, %v466_v35  ;;  %vm442_vm8 = vcmp.gt.f32.partialorder %v434_v13, %v394_v25  ;;  %v325_v27 = vsel %vm301_vm5, %v1284_v30, %v1266_v54  ;;  %v385_v43 = vsel %vm1388_vm1, %v1671_v42, %v1311_v60  ;;  %vm1437_vm5 = vmpackc.low %vm371_vm2, %vm371_vm2  ;;  %v1680_v60 = vld [vmem:[#allocation3_spill] sm:$0xff]  ;;  %v1692_v46 = vld [vmem:[#allocation5_spill] sm:$0xff] }
  0xc8   : > { %vm441_vm9 = vcmp.gt.f32.partialorder %v433_v38, %v393_v29  ;;  %468 = vst [vmem:[%s1353_s24] sm:$0xf] %v467_v39  ;;  %vm450_vm12 = vmpackc.low %vm442_vm8, %vm442_vm8  ;;  %v426_v24 = vpop.permute.xlu1 %425  ;;  %vm373_vm0 = vcmp.gt.f32.partialorder %v365_v7, %v325_v27  ;;  %v1681_v2 = vrot.slane %v1680_v60, 4  ;;  %v1689_v35 = vrot.slane %v1683_v61, 4  ;;  %v484_v10 = vld [vmem:[%s1353_s24 + $0x18] sm:$0xf] }
  0xc9   : > { %v424_v8 = vpop.permute.xlu0 %423  ;;  %v458_v3 = vsel %vm450_vm12, %v1672_v55, %v386_v28  ;;  %vm449_vm15 = vmpackc.low %vm441_vm9, %vm441_vm9  ;;  %v436_v17 = vadd.f32 %v426_v24, %v1673_v23  ;;  %v398_v57 = vsel %vm374_vm7, %v1370_v34, %v1350_v50  ;;  %v397_v33 = vsel %vm373_vm0, %v365_v7, %v325_v27  ;;  %v1695_v29 = vld [vmem:[#allocation10_spill] sm:$0xff] }
  0xca   : > { %v435_v54 = vadd.f32 %v424_v8, %v1674_v26  ;;  %v476_v9 = vsel %vm1288_vm14, %v458_v3, %v475_v20  ;;  %v457_v52 = vsel %vm449_vm15, %v1677_v16, %v385_v43  ;;  %v315_v4 = vsel %vm1334_vm4, %v1681_v2, %v1680_v60  ;;  %vm1480_vm4 = vmpackc.low %vm373_vm0, %vm373_vm0 }
  0xcb   : > { %477 = vst [vmem:[%s1353_s24 + $0xc] sm:$0xf] %v476_v9  ;;  %v473_v49 = vsel %vm1288_vm14, %v457_v52, %v472_v21  ;;  %vm444_vm1 = vcmp.gt.f32.partialorder %v436_v17, %v396_v1  ;;  %v387_v22 = vsel %vm1437_vm5, %v1683_v61, %v315_v4  ;;  %v1691_v25 = vrot.slane %v1690_v18, 4 }
  0xcc   : > { %vm443_vm8 = vcmp.gt.f32.partialorder %v435_v54, %v395_v19  ;;  %474 = vst [vmem:[%s1353_s24 + $0x8] sm:$0xf] %v473_v49  ;;  %vm452_vm11 = vmpackc.low %vm444_vm1, %vm444_vm1  ;;  %v430_v0 = vpop.permute.xlu1 %429  ;;  %v1693_v50 = vrot.slane %v1692_v46, 4  ;;  %v1696_v7 = vrot.slane %v1694_v12, 4  ;;  %v1697_v32 = vrot.slane %v1695_v29, 4 }
  0xcd   : > { %v428_v58 = vpop.permute.xlu0 %427  ;;  %v460_v40 = vsel %vm452_vm11, %v1684_v36, %v388_v37  ;;  %vm451_vm2 = vmpackc.low %vm443_vm8, %vm443_vm8  ;;  %v438_v44 = vadd.f32 %v430_v0, %v1685_v14  ;;  %v318_v13 = vsel %vm1358_vm10, %v1691_v25, %v1690_v18 }
  0xce   : > { %v437_v15 = vadd.f32 %v428_v58, %v1686_v45  ;;  %v482_v63 = vsel %vm1288_vm14, %v460_v40, %v481_v59  ;;  %v459_v56 = vsel %vm451_vm2, %v1689_v35, %v387_v22  ;;  %v317_v34 = vsel %vm1377_vm13, %v1693_v50, %v1692_v46  ;;  %496 = sbr.rel (!%p974_p4) target bundleno = 267 (0x10b), region = 28 }
  0xcf   : > { %483 = vst [vmem:[%s1353_s24 + $0x14] sm:$0xf] %v482_v63  ;;  %v479_v38 = vsel %vm1288_vm14, %v459_v56, %v478_v53  ;;  %vm446_vm3 = vcmp.gt.f32.partialorder %v438_v44, %v398_v57  ;;  %v390_v51 = vsel %vm1453_vm6, %v1694_v12, %v318_v13  ;;  %v389_v5 = vsel %vm1480_vm4, %v1695_v29, %v317_v34 }
  0xd0   : > { %vm445_vm9 = vcmp.gt.f32.partialorder %v437_v15, %v397_v33  ;;  %480 = vst [vmem:[%s1353_s24 + $0x10] sm:$0xf] %v479_v38  ;;  %vm454_vm10 = vmpackc.low %vm446_vm3, %vm446_vm3 }
  0xd1   : > { %v462_v39 = vsel %vm454_vm10, %v1696_v7, %v390_v51  ;;  %vm453_vm7 = vmpackc.low %vm445_vm9, %vm445_vm9 }
  0xd2   : > { %v488_v20 = vsel %vm1288_vm14, %v462_v39, %v487_v11  ;;  %v461_v47 = vsel %vm453_vm7, %v1697_v32, %v389_v5 }
  0xd3   : > { %489 = vst [vmem:[%s1353_s24 + $0x1c] sm:$0xf] %v488_v20  ;;  %v485_v31 = vsel %vm1288_vm14, %v461_v47, %v484_v10 }
  0xd4   : > { %486 = vst [vmem:[%s1353_s24 + $0x18] sm:$0xf] %v485_v31 }
  0xd5   : > { %s1705_s25 = smov (!%p499_p8, %s498_s25), 8 }
  0xd6   : > { %s742_s30 = sshll.u32 %s1705_s25, 6 }
  0xd7   : > { %p745_p9 = scmp.eq.s32.totalorder %s742_s30, 0 }
  0xd8   : > { %s1539_s2 = sshrl.u32 (!%p745_p9), %s1705_s25, 3 }
  0xd9   : > { %507 = sbr.rel (%p745_p9) target bundleno = 267 (0x10b), region = 32  ;;  %p746_p10 = scmp.le.s32.totalorder (!%p745_p9), %s1539_s2, 0 }
  0xe0   : > { %688 = sbr.rel (%p746_p10) target bundleno = 246 (0xf6), region = 104  ;;  %s1698_s3 = smov (!%p746_p10), %s1533_s29 }
  0xe1   : > { %s1699_s4 = smov (!%p746_p10), %s1353_s24  ;;  %s1548_s5 = smov (!%p746_p10), 0  }
  0xe2   : > { %s1550_s6 = smov (!%p746_p10), 0  }
  0xe7 LB: >> { %v523_v6 = vld [vmem:[%s912_s4] sm:$0xf]  ;;  %v525_v28 = vld [vmem:[%s912_s4 + $0x4] sm:$0xf]  ;;  %v527_v27 = vld [vmem:[%s912_s4 + $0x8] sm:$0xf]  ;;  %s920_s6 = sphi %s1550_s6, %s517_s6   ;;  %s916_s5 = sphi %s1548_s5, %s1700_s5   ;;  %s912_s4 = sphi %s1699_s4, %s544_s4   ;;  %s908_s3 = sphi %s1698_s3, %s545_s3  }
  0xe8   : >> { %524 = vst [vmem:[%s908_s3] sm:$0xf] %v523_v6  ;;  %526 = vst [vmem:[%s908_s3 + $0x4] sm:$0xf] %v525_v28  ;;  %v529_v21 = vld [vmem:[%s912_s4 + $0xc] sm:$0xf]  ;;  %s539_s8 = sadd.s32 1, %s916_s5 }
  0xe9   : >> { %528 = vst [vmem:[%s908_s3 + $0x8] sm:$0xf] %v527_v27  ;;  %v531_v24 = vld [vmem:[%s912_s4 + $0x10] sm:$0xf]  ;;  %v533_v8 = vld [vmem:[%s912_s4 + $0x14] sm:$0xf]  ;;  %p540_p11 = scmp.ge.s32.totalorder %s539_s8, %s1539_s2 }
  0xea   : >> { %530 = vst [vmem:[%s908_s3 + $0xc] sm:$0xf] %v529_v21  ;;  %532 = vst [vmem:[%s908_s3 + $0x10] sm:$0xf] %v531_v24  ;;  %v535_v42 = vld [vmem:[%s912_s4 + $0x18] sm:$0xf] }
  0xeb   : >> { %534 = vst [vmem:[%s908_s3 + $0x14] sm:$0xf] %v533_v8  ;;  %v537_v43 = vld [vmem:[%s912_s4 + $0x1c] sm:$0xf]  ;;  %536 = vst [vmem:[%s908_s3 + $0x18] sm:$0xf] %v535_v42 }
  0xec   : >> { %538 = vst [vmem:[%s908_s3 + $0x1c] sm:$0xf] %v537_v43  ;;  %s1707_s8 = smov (%p540_p11, %s539_s8), 0  ;;  %s517_s6 = sadd.s32 1, %s920_s6  }
  0xed   : >> { %s747_s9 = sshll.u32 %s1707_s8, 5  ;;  %p516_p12 = scmp.ge.s32.totalorder %s517_s6, %s1539_s2 }
  0xee   : >> { %s544_s4 = scalar_lea.vmem %s1353_s24, %s747_s9 [#allocation2]   ;;  %s545_s3 = scalar_lea.vmem %s1533_s29, %s747_s9  }
  0xef   : >> { %s1700_s5 = smov %s1707_s8  ;;  %519 = sbr.rel (!%p516_p12) target bundleno = 231 (0xe7), region = 110 }
  0xf6 PF: > { %s1569_s11 = sand.u32 7, %s1705_s25   ;;  %s759_s12 = sshll.u32 %s1539_s2, 5 }
  0xf7   : > { %s550_s14 = scalar_lea.vmem %s1353_s24, %s759_s12 [#allocation2]   ;;  %s552_s15 = scalar_lea.vmem %s1533_s29, %s759_s12  }
  0xf8   : > { %p752_p13 = scmp.le.s32.totalorder %s1569_s11, 0 }
  0xf9   : > { %s922_s16 = smov (!%p752_p13), %s552_s15   ;;  %s926_s17 = smov (!%p752_p13), %s550_s14  }
  0xfa   : > { %702 = sbr.rel (%p752_p13) target bundleno = 267 (0x10b), region = 115  ;;  %s930_s18 = smov (!%p752_p13), 0  }
  0xfb   : > { %s934_s19 = smov (!%p752_p13), 0  }
 0x101 LB: >> { %v562_v55 = vld [vmem:[%s928_s17] sm:$0xf]  ;;  %s564_s20 = sadd.s32 1, %s932_s18  ;;  %s556_s19 = sadd.s32 1, %s936_s19   ;;  %s936_s19 = sphi %s934_s19, %s556_s19   ;;  %s932_s18 = sphi %s930_s18, %s931_s18   ;;  %s928_s17 = sphi %s926_s17, %s569_s17   ;;  %s924_s16 = sphi %s922_s16, %s570_s16  }
 0x102   : >> { %563 = vst [vmem:[%s924_s16] sm:$0xf] %v562_v55  ;;  %p565_p0 = scmp.ge.s32.totalorder %s564_s20, %s1569_s11  ;;  %p555_p1 = scmp.ge.s32.totalorder %s556_s19, %s1569_s11 }
 0x104   : >> { %s1709_s20 = smov (%p565_p0, %s564_s20), 0  ;;  %558 = sbr.rel (!%p555_p1) target bundleno = 257 (0x101), region = 121 }
 0x105   : >> { %s753_s21 = sshll.u32 %s1709_s20, 2  ;;  %s931_s18 = smov %s1709_s20  }
 0x106   : >> { %s569_s17 = scalar_lea.vmem %s550_s14, %s753_s21 [#allocation2]   ;;  %s570_s16 = scalar_lea.vmem %s552_s15, %s753_s21  }
 0x10b PF: > { %p8_p2 = scmp.ge.s32.totalorder %s964_s10, 4   ;;  %s1701_s6 = smov %s900_s7 }
 0x10c   : > { %s1702_s7 = smov %s972_s13  ;;  %s1703_s8 = smov %s964_s10 }
 0x10d   :  { %10 = sbr.rel (!%p8_p2) target bundleno = 2 (0x2), region = 132 }

// kernel: cvcnn_forward_pallas.9
= control target key start
LH: loop header
LB: loop body
LE: loop exit
PB: predicated region body
PF: predicated region fallthrough
CT: control target
= control target key end

     0   :  { %v815_v36 = vlaneseq  ;;  %v8510_v37 = vmov 1966171168   ;;  %s11214_s0 = inlined_call_operand.vmem [shape: bf16[2,6272], index: 0, kind: input, shape index: {}]   ;;  %s11215_s1 = inlined_call_operand.vmem [shape: bf16[6272,256], index: 1, kind: input, shape index: {}]   ;;  %s11216_s2 = inlined_call_operand.vmem [shape: f32[1,256], index: 2, kind: input, shape index: {}]   ;;  %s11217_s3 = inlined_call_operand.vmem [shape: bf16[256,20], index: 3, kind: input, shape index: {}]   ;;  %s11218_s4 = inlined_call_operand.vmem [shape: f32[1,20], index: 4, kind: input, shape index: {}]   ;;  %s11219_s5 = inlined_call_operand.hbm [shape: f32[2,10], index: 5, kind: output, shape index: {}]  }
   0x1   :  { %v7278_v0 = vld [vmem:[%s11215_s1 + $0x4] ss:$8 sps:$4 sm:$0xff]   ;;  %v7282_v2 = vld [vmem:[%s11215_s1] ss:$8 sps:$4 sm:$0xff]   ;;  %v7284_v4 = vld [vmem:[%s11215_s1 + $0x14] ss:$8 sps:$4 sm:$0xff]   ;;  %v834_v38 = vunpack.c.l.s4 %v8510_v37 }
   0x2   :  { %v7280_v1 = vld [vmem:[%s11215_s1 + $0xc04] ss:$8 sps:$4 sm:$0xff]   ;;  %5109 = vmatprep.subr.bf16.mxu1 %v7278_v0  ;;  %v7283_v3 = vld [vmem:[%s11215_s1 + $0xc00] ss:$8 sps:$4 sm:$0xff]   ;;  %v7286_v5 = vld [vmem:[%s11215_s1 + $0xc14] ss:$8 sps:$4 sm:$0xff]  }
   0x3   :  { %5601 = vmatprep.subr.bf16.mxu0 %v7280_v1  ;;  %5110 = vmatpush1.bf16.msra.mxu1 %v7282_v2  ;;  %v7288_v6 = vld [vmem:[%s11215_s1 + $0x10] ss:$8 sps:$4 sm:$0xff]   ;;  %v7290_v8 = vld [vmem:[%s11215_s1 + $0x24] ss:$8 sps:$4 sm:$0xff]   ;;  %v7294_v10 = vld [vmem:[%s11215_s1 + $0x20] ss:$8 sps:$4 sm:$0xff]   ;;  %v835_v43 = vunpack.c.0.s8 %v834_v38 }
   0x4   :  { %5602 = vmatpush1.bf16.msra.mxu0 %v7283_v3  ;;  %5111 = vmatprep.subr.bf16.mxu1 %v7284_v4  ;;  %v7289_v7 = vld [vmem:[%s11215_s1 + $0xc10] ss:$8 sps:$4 sm:$0xff]   ;;  %v7292_v9 = vld [vmem:[%s11215_s1 + $0xc24] ss:$8 sps:$4 sm:$0xff]   ;;  %v7295_v11 = vld [vmem:[%s11215_s1 + $0xc20] ss:$8 sps:$4 sm:$0xff]  }
   0x5   :  { %5603 = vmatprep.subr.bf16.mxu0 %v7286_v5  ;;  %v7296_v12 = vld [vmem:[%s11215_s1 + $0x34] ss:$8 sps:$4 sm:$0xff]   ;;  %v7300_v14 = vld [vmem:[%s11215_s1 + $0x30] ss:$8 sps:$4 sm:$0xff]   ;;  %v7302_v16 = vld [vmem:[%s11215_s1 + $0x44] ss:$8 sps:$4 sm:$0xff]  }
   0x6   :  { %v7298_v13 = vld [vmem:[%s11215_s1 + $0xc34] ss:$8 sps:$4 sm:$0xff]   ;;  %v7301_v15 = vld [vmem:[%s11215_s1 + $0xc30] ss:$8 sps:$4 sm:$0xff]   ;;  %v7304_v17 = vld [vmem:[%s11215_s1 + $0xc44] ss:$8 sps:$4 sm:$0xff]  }
   0x7   :  { %5112 = vmatpush1.bf16.msra.mxu1 %v7288_v6  ;;  %v7306_v18 = vld [vmem:[%s11215_s1 + $0x40] ss:$8 sps:$4 sm:$0xff]   ;;  %v7308_v20 = vld [vmem:[%s11215_s1 + $0x54] ss:$8 sps:$4 sm:$0xff]   ;;  %v7312_v22 = vld [vmem:[%s11215_s1 + $0x50] ss:$8 sps:$4 sm:$0xff]  }
   0x8   :  { %5604 = vmatpush1.bf16.msra.mxu0 %v7289_v7  ;;  %5113 = vmatprep.subr.bf16.mxu1 %v7290_v8  ;;  %v7307_v19 = vld [vmem:[%s11215_s1 + $0xc40] ss:$8 sps:$4 sm:$0xff]   ;;  %v7310_v21 = vld [vmem:[%s11215_s1 + $0xc54] ss:$8 sps:$4 sm:$0xff]   ;;  %v7313_v23 = vld [vmem:[%s11215_s1 + $0xc50] ss:$8 sps:$4 sm:$0xff]  }
   0x9   :  { %5605 = vmatprep.subr.bf16.mxu0 %v7292_v9  ;;  %v7314_v24 = vld [vmem:[%s11215_s1 + $0x64] ss:$8 sps:$4 sm:$0xff]   ;;  %v7318_v26 = vld [vmem:[%s11215_s1 + $0x60] ss:$8 sps:$4 sm:$0xff]   ;;  %v7320_v28 = vld [vmem:[%s11215_s1 + $0x74] ss:$8 sps:$4 sm:$0xff]  }
   0xa   :  { %v7316_v25 = vld [vmem:[%s11215_s1 + $0xc64] ss:$8 sps:$4 sm:$0xff]   ;;  %v7319_v27 = vld [vmem:[%s11215_s1 + $0xc60] ss:$8 sps:$4 sm:$0xff]   ;;  %v7322_v29 = vld [vmem:[%s11215_s1 + $0xc74] ss:$8 sps:$4 sm:$0xff]  }
   0xb   :  { %5114 = vmatpush1.bf16.msra.mxu1 %v7294_v10  ;;  %v7324_v30 = vld [vmem:[%s11215_s1 + $0x70] ss:$8 sps:$4 sm:$0xff]   ;;  %v7326_v32 = vld [vmem:[%s11215_s1 + $0x84] ss:$8 sps:$4 sm:$0xff]   ;;  %v7330_v34 = vld [vmem:[%s11215_s1 + $0x80] ss:$8 sps:$4 sm:$0xff]  }
   0xc   :  { %5606 = vmatpush1.bf16.msra.mxu0 %v7295_v11  ;;  %5115 = vmatprep.subr.bf16.mxu1 %v7296_v12  ;;  %v7325_v31 = vld [vmem:[%s11215_s1 + $0xc70] ss:$8 sps:$4 sm:$0xff]   ;;  %v7328_v33 = vld [vmem:[%s11215_s1 + $0xc84] ss:$8 sps:$4 sm:$0xff]   ;;  %v7331_v35 = vld [vmem:[%s11215_s1 + $0xc80] ss:$8 sps:$4 sm:$0xff]  }
   0xd   :  { %5607 = vmatprep.subr.bf16.mxu0 %v7298_v13  ;;  %v7332_v39 = vld [vmem:[%s11215_s1 + $0x94] ss:$8 sps:$4 sm:$0xff]   ;;  %v7336_v41 = vld [vmem:[%s11215_s1 + $0x90] ss:$8 sps:$4 sm:$0xff]   ;;  %v8661_v42 = vshrl.u32 %v815_v36, 7  ;;  %v8690_v52 = vld [vmem:[%s11214_s0] sm:$0xff] }
   0xe   :  { %v7334_v40 = vld [vmem:[%s11215_s1 + $0xc94] ss:$8 sps:$4 sm:$0xff]   ;;  %v7337_v44 = vld [vmem:[%s11215_s1 + $0xc90] ss:$8 sps:$4 sm:$0xff]   ;;  %v7338_v45 = vld [vmem:[%s11215_s1 + $0xa4] ss:$8 sps:$4 sm:$0xff]  }
   0xf   :  { %5116 = vmatpush1.bf16.msra.mxu1 %v7300_v14  ;;  %v7340_v46 = vld [vmem:[%s11215_s1 + $0xca4] ss:$8 sps:$4 sm:$0xff]   ;;  %v7342_v47 = vld [vmem:[%s11215_s1 + $0xa0] ss:$8 sps:$4 sm:$0xff]   ;;  %v8679_v49 = vsub.s32 %v835_v43, %v8661_v42  ;;  %v7344_v50 = vld [vmem:[%s11215_s1 + $0xb4] ss:$8 sps:$4 sm:$0xff]  }
  0x10   :  { %5608 = vmatpush1.bf16.msra.mxu0 %v7301_v15  ;;  %5117 = vmatprep.subr.bf16.mxu1 %v7302_v16  ;;  %v7343_v48 = vld [vmem:[%s11215_s1 + $0xca0] ss:$8 sps:$4 sm:$0xff]   ;;  %v7346_v51 = vld [vmem:[%s11215_s1 + $0xcb4] ss:$8 sps:$4 sm:$0xff]   ;;  %v7348_v53 = vld [vmem:[%s11215_s1 + $0xb0] ss:$8 sps:$4 sm:$0xff]  }
  0x11   :  { %5609 = vmatprep.subr.bf16.mxu0 %v7304_v17  ;;  %v839_v54 = vrot.slane %v8690_v52, %v8679_v49  ;;  %v7349_v55 = vld [vmem:[%s11215_s1 + $0xcb0] ss:$8 sps:$4 sm:$0xff]   ;;  %v7350_v57 = vld [vmem:[%s11215_s1 + $0xc4] ss:$8 sps:$4 sm:$0xff]   ;;  %v7354_v63 = vld [vmem:[%s11215_s1 + $0xc0] ss:$8 sps:$4 sm:$0xff]  }
  0x12   :  { %v8703_v56 = vld [vmem:[%s11214_s0 + $0x18] sm:$0xff]  ;;  %v7352_v58 = vld [vmem:[%s11215_s1 + $0xcc4] ss:$8 sps:$4 sm:$0xff]   ;;  %v7355_v0 = vld [vmem:[%s11215_s1 + $0xcc0] ss:$8 sps:$4 sm:$0xff]  }
  0x13   :  { %5118 = vmatpush1.bf16.msra.mxu1 %v7306_v18  ;;  %v847_v59 = vcombine.high %v839_v54, %v839_v54  ;;  %v986_v60 = vrot.slane %v8703_v56, %v8679_v49  ;;  %v7356_v1 = vld [vmem:[%s11215_s1 + $0xd4] ss:$8 sps:$4 sm:$0xff]   ;;  %v7360_v4 = vld [vmem:[%s11215_s1 + $0xd0] ss:$8 sps:$4 sm:$0xff]   ;;  %v7362_v6 = vld [vmem:[%s11215_s1 + $0xe4] ss:$8 sps:$4 sm:$0xff]   ;;  %v8764_v16 = vrot.slane %v839_v54, %v8679_v49 }
  0x14   :  { %5610 = vmatpush1.bf16.msra.mxu0 %v7307_v19  ;;  %5119 = vmatprep.subr.bf16.mxu1 %v7308_v20  ;;  %v7358_v2 = vld [vmem:[%s11215_s1 + $0xcd4] ss:$8 sps:$4 sm:$0xff]   ;;  %v7361_v5 = vld [vmem:[%s11215_s1 + $0xcd0] ss:$8 sps:$4 sm:$0xff]   ;;  %v7364_v7 = vld [vmem:[%s11215_s1 + $0xce4] ss:$8 sps:$4 sm:$0xff]  }
  0x15   :  { %5611 = vmatprep.subr.bf16.mxu0 %v7310_v21  ;;  %v869_v61 = vrot.slane %v847_v59, %v8679_v49  ;;  %v994_v62 = vcombine.high %v986_v60, %v986_v60  ;;  %v7366_v8 = vld [vmem:[%s11215_s1 + $0xe0] ss:$8 sps:$4 sm:$0xff]   ;;  %v7368_v10 = vld [vmem:[%s11215_s1 + $0xf4] ss:$8 sps:$4 sm:$0xff]   ;;  %v7372_v12 = vld [vmem:[%s11215_s1 + $0xf0] ss:$8 sps:$4 sm:$0xff]   ;;  %v8767_v17 = vrot.slane %v986_v60, %v8679_v49 }
  0x16   :  { %v7367_v9 = vld [vmem:[%s11215_s1 + $0xce0] ss:$8 sps:$4 sm:$0xff]   ;;  %v7370_v11 = vld [vmem:[%s11215_s1 + $0xcf4] ss:$8 sps:$4 sm:$0xff]   ;;  %v7373_v13 = vld [vmem:[%s11215_s1 + $0xcf0] ss:$8 sps:$4 sm:$0xff]  }
  0x17   :  { %5120 = vmatpush1.bf16.msra.mxu1 %v7312_v22  ;;  %v1016_v3 = vrot.slane %v994_v62, %v8679_v49  ;;  %5141 = vmatprep.mubr.bf16.mxu1 %v869_v61  ;;  %v7377_v14 = vld [vmem:[%s11215_s1 + $0x104] ss:$8 sps:$4 sm:$0xff]   ;;  %v7375_v18 = vld [vmem:[%s11215_s1 + $0x100] ss:$8 sps:$4 sm:$0xff]   ;;  %v7384_v20 = vld [vmem:[%s11215_s1 + $0x114] ss:$8 sps:$4 sm:$0xff]   ;;  %v879_v22 = vcombine.high %v869_v61, %v869_v61 }
  0x18   :  { %5612 = vmatpush1.bf16.msra.mxu0 %v7313_v23  ;;  %5121 = vmatprep.subr.bf16.mxu1 %v7314_v24  ;;  %v7381_v15 = vld [vmem:[%s11215_s1 + $0xd04] ss:$8 sps:$4 sm:$0xff]   ;;  %v7379_v19 = vld [vmem:[%s11215_s1 + $0xd00] ss:$8 sps:$4 sm:$0xff]   ;;  %v7387_v21 = vld [vmem:[%s11215_s1 + $0xd14] ss:$8 sps:$4 sm:$0xff]  }
  0x19   :  { %5613 = vmatprep.subr.bf16.mxu0 %v7316_v25  ;;  %5633 = vmatprep.mubr.bf16.mxu0 %v1016_v3  ;;  %v1026_v23 = vcombine.high %v1016_v3, %v1016_v3  ;;  %v7382_v24 = vld [vmem:[%s11215_s1 + $0x110] ss:$8 sps:$4 sm:$0xff]   ;;  %v7400_v36 = vld [vmem:[%s11215_s1 + $0x140] ss:$8 sps:$4 sm:$0xff]   ;;  %v7408_v38 = vld [vmem:[%s11215_s1 + $0x154] ss:$8 sps:$4 sm:$0xff]  }
  0x1a   :  { %v7385_v25 = vld [vmem:[%s11215_s1 + $0xd10] ss:$8 sps:$4 sm:$0xff]   ;;  %v7403_v37 = vld [vmem:[%s11215_s1 + $0xd40] ss:$8 sps:$4 sm:$0xff]   ;;  %v7414_v43 = vld [vmem:[%s11215_s1 + $0x164] ss:$8 sps:$4 sm:$0xff]  }
  0x1b   :  { %5122 = vmatpush1.bf16.msra.mxu1 %v7318_v26  ;;  %v7390_v26 = vld [vmem:[%s11215_s1 + $0x124] ss:$8 sps:$4 sm:$0xff]   ;;  %v7435_v59 = vld [vmem:[%s11215_s1 + $0xd94] ss:$8 sps:$4 sm:$0xff]   ;;  %v7430_v60 = vld [vmem:[%s11215_s1 + $0x190] ss:$8 sps:$4 sm:$0xff]  }
  0x1c   :  { %5614 = vmatpush1.bf16.msra.mxu0 %v7319_v27  ;;  %5123 = vmatprep.subr.bf16.mxu1 %v7320_v28  ;;  %v7393_v27 = vld [vmem:[%s11215_s1 + $0xd24] ss:$8 sps:$4 sm:$0xff]   ;;  %v7388_v28 = vld [vmem:[%s11215_s1 + $0x120] ss:$8 sps:$4 sm:$0xff]   ;;  %v7433_v61 = vld [vmem:[%s11215_s1 + $0xd90] ss:$8 sps:$4 sm:$0xff]  }
  0x1d   :  { %5615 = vmatprep.subr.bf16.mxu0 %v7322_v29  ;;  %v7391_v29 = vld [vmem:[%s11215_s1 + $0xd20] ss:$8 sps:$4 sm:$0xff]   ;;  %v7429_v54 = vld [vmem:[%s11215_s1 + $0xd84] ss:$8 sps:$4 sm:$0xff]   ;;  %v7447_v3 = vld [vmem:[%s11215_s1 + $0xdb4] ss:$8 sps:$4 sm:$0xff]  }
  0x1e   :  { %v7438_v62 = vld [vmem:[%s11215_s1 + $0x1a4] ss:$8 sps:$4 sm:$0xff]  }
  0x1f   :  { %5124 = vmatpush1.bf16.msra.mxu1 %v7324_v30  ;;  %v7396_v30 = vld [vmem:[%s11215_s1 + $0x134] ss:$8 sps:$4 sm:$0xff]  }
  0x20   :  { %5616 = vmatpush1.bf16.msra.mxu0 %v7325_v31  ;;  %5125 = vmatprep.subr.bf16.mxu1 %v7326_v32  ;;  %v7399_v31 = vld [vmem:[%s11215_s1 + $0xd34] ss:$8 sps:$4 sm:$0xff]   ;;  %v7394_v32 = vld [vmem:[%s11215_s1 + $0x130] ss:$8 sps:$4 sm:$0xff]  }
  0x21   :  { %5617 = vmatprep.subr.bf16.mxu0 %v7328_v33  ;;  %v7397_v33 = vld [vmem:[%s11215_s1 + $0xd30] ss:$8 sps:$4 sm:$0xff]  }
  0x23   :  { %5126 = vmatpush1.bf16.msra.mxu1 %v7330_v34  ;;  %v7402_v34 = vld [vmem:[%s11215_s1 + $0x144] ss:$8 sps:$4 sm:$0xff]  }
  0x24   :  { %5618 = vmatpush1.bf16.msra.mxu0 %v7331_v35  ;;  %5127 = vmatprep.subr.bf16.mxu1 %v7332_v39  ;;  %v7405_v35 = vld [vmem:[%s11215_s1 + $0xd44] ss:$8 sps:$4 sm:$0xff]   ;;  %v7411_v39 = vld [vmem:[%s11215_s1 + $0xd54] ss:$8 sps:$4 sm:$0xff]  }
  0x25   :  { %5619 = vmatprep.subr.bf16.mxu0 %v7334_v40  ;;  %v7406_v40 = vld [vmem:[%s11215_s1 + $0x150] ss:$8 sps:$4 sm:$0xff]  }
  0x27   :  { %5128 = vmatpush1.bf16.msra.mxu1 %v7336_v41  ;;  %v7409_v41 = vld [vmem:[%s11215_s1 + $0xd50] ss:$8 sps:$4 sm:$0xff]  }
  0x28   :  { %5620 = vmatpush1.bf16.msra.mxu0 %v7337_v44  ;;  %5129 = vmatprep.subr.bf16.mxu1 %v7338_v45  ;;  %v7417_v44 = vld [vmem:[%s11215_s1 + $0xd64] ss:$8 sps:$4 sm:$0xff]   ;;  %v7412_v45 = vld [vmem:[%s11215_s1 + $0x160] ss:$8 sps:$4 sm:$0xff]  }
  0x29   :  { %5621 = vmatprep.subr.bf16.mxu0 %v7340_v46  ;;  %v7415_v46 = vld [vmem:[%s11215_s1 + $0xd60] ss:$8 sps:$4 sm:$0xff]  }
  0x2b   :  { %5130 = vmatpush1.bf16.msra.mxu1 %v7342_v47  ;;  %v7420_v47 = vld [vmem:[%s11215_s1 + $0x174] ss:$8 sps:$4 sm:$0xff]  }
  0x2c   :  { %5622 = vmatpush1.bf16.msra.mxu0 %v7343_v48  ;;  %5131 = vmatprep.subr.bf16.mxu1 %v7344_v50  ;;  %v7423_v48 = vld [vmem:[%s11215_s1 + $0xd74] ss:$8 sps:$4 sm:$0xff]   ;;  %v7418_v50 = vld [vmem:[%s11215_s1 + $0x170] ss:$8 sps:$4 sm:$0xff]  }
  0x2d   :  { %5623 = vmatprep.subr.bf16.mxu0 %v7346_v51  ;;  %v7421_v51 = vld [vmem:[%s11215_s1 + $0xd70] ss:$8 sps:$4 sm:$0xff]  }
  0x2f   :  { %5132 = vmatpush1.bf16.msra.mxu1 %v7348_v53  ;;  %v7426_v53 = vld [vmem:[%s11215_s1 + $0x184] ss:$8 sps:$4 sm:$0xff]  }
  0x30   :  { %5624 = vmatpush1.bf16.msra.mxu0 %v7349_v55  ;;  %5133 = vmatprep.subr.bf16.mxu1 %v7350_v57  ;;  %v7424_v55 = vld [vmem:[%s11215_s1 + $0x180] ss:$8 sps:$4 sm:$0xff]  }
  0x31   :  { %5625 = vmatprep.subr.bf16.mxu0 %v7352_v58  ;;  %v7427_v57 = vld [vmem:[%s11215_s1 + $0xd80] ss:$8 sps:$4 sm:$0xff]   ;;  %v7432_v58 = vld [vmem:[%s11215_s1 + $0x194] ss:$8 sps:$4 sm:$0xff]  }
  0x33   :  { %5134 = vmatpush1.bf16.msra.mxu1 %v7354_v63  ;;  %v7441_v63 = vld [vmem:[%s11215_s1 + $0xda4] ss:$8 sps:$4 sm:$0xff]  }
  0x34   :  { %5626 = vmatpush1.bf16.msra.mxu0 %v7355_v0  ;;  %5135 = vmatprep.subr.bf16.mxu1 %v7356_v1  ;;  %v7436_v0 = vld [vmem:[%s11215_s1 + $0x1a0] ss:$8 sps:$4 sm:$0xff]  }
  0x35   :  { %5627 = vmatprep.subr.bf16.mxu0 %v7358_v2  ;;  %v7439_v1 = vld [vmem:[%s11215_s1 + $0xda0] ss:$8 sps:$4 sm:$0xff]   ;;  %v7444_v2 = vld [vmem:[%s11215_s1 + $0x1b4] ss:$8 sps:$4 sm:$0xff]  }
  0x37   :  { %5136 = vmatpush1.bf16.msra.mxu1 %v7360_v4  ;;  %v7442_v4 = vld [vmem:[%s11215_s1 + $0x1b0] ss:$8 sps:$4 sm:$0xff]  }
  0x38   :  { %5628 = vmatpush1.bf16.msra.mxu0 %v7361_v5  ;;  %5137 = vmatprep.subr.bf16.mxu1 %v7362_v6  ;;  %v7445_v5 = vld [vmem:[%s11215_s1 + $0xdb0] ss:$8 sps:$4 sm:$0xff]   ;;  %v7450_v6 = vld [vmem:[%s11215_s1 + $0x1c4] ss:$8 sps:$4 sm:$0xff]  }
  0x39   :  { %5629 = vmatprep.subr.bf16.mxu0 %v7364_v7  ;;  %v7453_v7 = vld [vmem:[%s11215_s1 + $0xdc4] ss:$8 sps:$4 sm:$0xff]  }
  0x3b   :  { %5138 = vmatpush1.bf16.msra.mxu1 %v7366_v8  ;;  %v7448_v8 = vld [vmem:[%s11215_s1 + $0x1c0] ss:$8 sps:$4 sm:$0xff]  }
  0x3c   :  { %5630 = vmatpush1.bf16.msra.mxu0 %v7367_v9  ;;  %5139 = vmatprep.subr.bf16.mxu1 %v7368_v10  ;;  %v7451_v9 = vld [vmem:[%s11215_s1 + $0xdc0] ss:$8 sps:$4 sm:$0xff]   ;;  %v7456_v10 = vld [vmem:[%s11215_s1 + $0x1d4] ss:$8 sps:$4 sm:$0xff]  }
  0x3d   :  { %5631 = vmatprep.subr.bf16.mxu0 %v7370_v11  ;;  %v7459_v11 = vld [vmem:[%s11215_s1 + $0xdd4] ss:$8 sps:$4 sm:$0xff]  }
  0x3f   :  { %5140 = vmatpush1.bf16.msra.mxu1 %v7372_v12  ;;  %v7454_v12 = vld [vmem:[%s11215_s1 + $0x1d0] ss:$8 sps:$4 sm:$0xff]  }
  0x40   :  { %5632 = vmatpush1.bf16.msra.mxu0 %v7373_v13  ;;  %5150 = vmatprep.subr.bf16.mxu1 %v7377_v14  ;;  %v7457_v13 = vld [vmem:[%s11215_s1 + $0xdd0] ss:$8 sps:$4 sm:$0xff]   ;;  %v7462_v14 = vld [vmem:[%s11215_s1 + $0x1e4] ss:$8 sps:$4 sm:$0xff]  }
  0x41   :  { %5642 = vmatprep.subr.bf16.mxu0 %v7381_v15  ;;  %v7465_v15 = vld [vmem:[%s11215_s1 + $0xde4] ss:$8 sps:$4 sm:$0xff]  }
  0x42   :  { %5142 = vmatmul.mubr.bf16.vlgmr.msra.gmra.mrb[0].mxu1 %v8764_v16 }
  0x43   :  { %5634 = vmatmul.mubr.bf16.vlgmr.msra.gmra.mrb[0].mxu0 %v8767_v17  ;;  %5151 = vmatpush1.bf16.msra.mxu1 %v7375_v18  ;;  %v832_v18 = vcombine.high %v8690_v52, %v8690_v52  ;;  %v7471_v52 = vld [vmem:[%s11215_s1 + $0xdf4] ss:$8 sps:$4 sm:$0xff]  }
  0x44   :  { %5643 = vmatpush1.bf16.msra.mxu0 %v7379_v19  ;;  %5152 = vmatprep.subr.bf16.mxu1 %v7384_v20  ;;  %v979_v19 = vcombine.high %v8703_v56, %v8703_v56  ;;  %v7460_v20 = vld [vmem:[%s11215_s1 + $0x1e0] ss:$8 sps:$4 sm:$0xff]  }
  0x45   :  { %5644 = vmatprep.subr.bf16.mxu0 %v7387_v21  ;;  %5182 = vmatprep.mubr.bf16.mxu1 %v879_v22  ;;  %v7463_v21 = vld [vmem:[%s11215_s1 + $0xde0] ss:$8 sps:$4 sm:$0xff]   ;;  %v7468_v22 = vld [vmem:[%s11215_s1 + $0x1f4] ss:$8 sps:$4 sm:$0xff]   ;;  %v8956_v56 = vrot.slane %v832_v18, %v8679_v49  ;;  %v7538_v18 = vld [vmem:[%s11215_s1 + $0x2b0] ss:$8 sps:$4 sm:$0xff]  }
  0x46   :  { %5674 = vmatprep.mubr.bf16.mxu0 %v1026_v23  ;;  %v8959_v23 = vrot.slane %v979_v19, %v8679_v49  ;;  %v7541_v19 = vld [vmem:[%s11215_s1 + $0xeb0] ss:$8 sps:$4 sm:$0xff]  }
  0x47   :  { %5153 = vmatpush1.bf16.msra.mxu1 %v7382_v24  ;;  %v7466_v24 = vld [vmem:[%s11215_s1 + $0x1f0] ss:$8 sps:$4 sm:$0xff]  }
  0x48   :  { %5645 = vmatpush1.bf16.msra.mxu0 %v7385_v25  ;;  %5154 = vmatprep.subr.bf16.mxu1 %v7390_v26  ;;  %v7469_v25 = vld [vmem:[%s11215_s1 + $0xdf0] ss:$8 sps:$4 sm:$0xff]   ;;  %v7474_v26 = vld [vmem:[%s11215_s1 + $0x204] ss:$8 sps:$4 sm:$0xff]  }
  0x49   :  { %5646 = vmatprep.subr.bf16.mxu0 %v7393_v27  ;;  %v7477_v27 = vld [vmem:[%s11215_s1 + $0xe04] ss:$8 sps:$4 sm:$0xff]  }
  0x4b   :  { %5155 = vmatpush1.bf16.msra.mxu1 %v7388_v28  ;;  %v848_v28 = vcombine.high %v8956_v56, %v8956_v56 }
  0x4c   :  { %5647 = vmatpush1.bf16.msra.mxu0 %v7391_v29  ;;  %5156 = vmatprep.subr.bf16.mxu1 %v7396_v30  ;;  %v995_v29 = vcombine.high %v8959_v23, %v8959_v23  ;;  %v877_v30 = vcombine.high %v8764_v16, %v8764_v16  ;;  %v7483_v16 = vld [vmem:[%s11215_s1 + $0xe14] ss:$8 sps:$4 sm:$0xff]  }
  0x4d   :  { %5648 = vmatprep.subr.bf16.mxu0 %v7399_v31  ;;  %v1024_v31 = vcombine.high %v8767_v17, %v8767_v17  ;;  %v8994_v17 = vrot.slane %v848_v28, %v8679_v49  ;;  %v7558_v28 = vld [vmem:[%s11215_s1 + $0x2e4] ss:$8 sps:$4 sm:$0xff]  }
  0x4f   :  { %5157 = vmatpush1.bf16.msra.mxu1 %v7394_v32  ;;  %v7472_v32 = vld [vmem:[%s11215_s1 + $0x200] ss:$8 sps:$4 sm:$0xff]  }
  0x50   :  { %5649 = vmatpush1.bf16.msra.mxu0 %v7397_v33  ;;  %5158 = vmatprep.subr.bf16.mxu1 %v7402_v34  ;;  %v7475_v33 = vld [vmem:[%s11215_s1 + $0xe00] ss:$8 sps:$4 sm:$0xff]   ;;  %v7480_v34 = vld [vmem:[%s11215_s1 + $0x214] ss:$8 sps:$4 sm:$0xff]  }
  0x51   :  { %5650 = vmatprep.subr.bf16.mxu0 %v7405_v35  ;;  %v8997_v35 = vrot.slane %v995_v29, %v8679_v49  ;;  %v7561_v29 = vld [vmem:[%s11215_s1 + $0xee4] ss:$8 sps:$4 sm:$0xff]  }
  0x53   :  { %5159 = vmatpush1.bf16.msra.mxu1 %v7400_v36  ;;  %v7478_v36 = vld [vmem:[%s11215_s1 + $0x210] ss:$8 sps:$4 sm:$0xff]  }
  0x54   :  { %5651 = vmatpush1.bf16.msra.mxu0 %v7403_v37  ;;  %5160 = vmatprep.subr.bf16.mxu1 %v7408_v38  ;;  %v7481_v37 = vld [vmem:[%s11215_s1 + $0xe10] ss:$8 sps:$4 sm:$0xff]   ;;  %v7486_v38 = vld [vmem:[%s11215_s1 + $0x224] ss:$8 sps:$4 sm:$0xff]  }
  0x55   :  { %5652 = vmatprep.subr.bf16.mxu0 %v7411_v39  ;;  %v7489_v39 = vld [vmem:[%s11215_s1 + $0xe24] ss:$8 sps:$4 sm:$0xff]  }
  0x57   :  { %5161 = vmatpush1.bf16.msra.mxu1 %v7406_v40  ;;  %v7484_v40 = vld [vmem:[%s11215_s1 + $0x220] ss:$8 sps:$4 sm:$0xff]  }
  0x58   :  { %5653 = vmatpush1.bf16.msra.mxu0 %v7409_v41  ;;  %5162 = vmatprep.subr.bf16.mxu1 %v7414_v43  ;;  %v7487_v41 = vld [vmem:[%s11215_s1 + $0xe20] ss:$8 sps:$4 sm:$0xff]   ;;  %v7492_v43 = vld [vmem:[%s11215_s1 + $0x234] ss:$8 sps:$4 sm:$0xff]  }
  0x59   :  { %5654 = vmatprep.subr.bf16.mxu0 %v7417_v44  ;;  %v7495_v44 = vld [vmem:[%s11215_s1 + $0xe34] ss:$8 sps:$4 sm:$0xff]  }
  0x5b   :  { %5163 = vmatpush1.bf16.msra.mxu1 %v7412_v45  ;;  %v7490_v45 = vld [vmem:[%s11215_s1 + $0x230] ss:$8 sps:$4 sm:$0xff]  }
  0x5c   :  { %5655 = vmatpush1.bf16.msra.mxu0 %v7415_v46  ;;  %5164 = vmatprep.subr.bf16.mxu1 %v7420_v47  ;;  %v7493_v46 = vld [vmem:[%s11215_s1 + $0xe30] ss:$8 sps:$4 sm:$0xff]   ;;  %v7498_v47 = vld [vmem:[%s11215_s1 + $0x244] ss:$8 sps:$4 sm:$0xff]  }
  0x5d   :  { %5656 = vmatprep.subr.bf16.mxu0 %v7423_v48  ;;  %v7501_v48 = vld [vmem:[%s11215_s1 + $0xe44] ss:$8 sps:$4 sm:$0xff]  }
  0x5f   :  { %5165 = vmatpush1.bf16.msra.mxu1 %v7418_v50  ;;  %v7496_v50 = vld [vmem:[%s11215_s1 + $0x240] ss:$8 sps:$4 sm:$0xff]  }
  0x60   :  { %5657 = vmatpush1.bf16.msra.mxu0 %v7421_v51  ;;  %5166 = vmatprep.subr.bf16.mxu1 %v7426_v53  ;;  %v7499_v51 = vld [vmem:[%s11215_s1 + $0xe40] ss:$8 sps:$4 sm:$0xff]   ;;  %v7504_v53 = vld [vmem:[%s11215_s1 + $0x254] ss:$8 sps:$4 sm:$0xff]  }
  0x61   :  { %5658 = vmatprep.subr.bf16.mxu0 %v7429_v54  ;;  %v7507_v54 = vld [vmem:[%s11215_s1 + $0xe54] ss:$8 sps:$4 sm:$0xff]  }
  0x63   :  { %5167 = vmatpush1.bf16.msra.mxu1 %v7424_v55  ;;  %v7502_v55 = vld [vmem:[%s11215_s1 + $0x250] ss:$8 sps:$4 sm:$0xff]  }
  0x64   :  { %5659 = vmatpush1.bf16.msra.mxu0 %v7427_v57  ;;  %5168 = vmatprep.subr.bf16.mxu1 %v7432_v58  ;;  %v7505_v57 = vld [vmem:[%s11215_s1 + $0xe50] ss:$8 sps:$4 sm:$0xff]   ;;  %v7510_v58 = vld [vmem:[%s11215_s1 + $0x264] ss:$8 sps:$4 sm:$0xff]  }
  0x65   :  { %5660 = vmatprep.subr.bf16.mxu0 %v7435_v59  ;;  %v7513_v59 = vld [vmem:[%s11215_s1 + $0xe64] ss:$8 sps:$4 sm:$0xff]  }
  0x67   :  { %5169 = vmatpush1.bf16.msra.mxu1 %v7430_v60  ;;  %v7508_v60 = vld [vmem:[%s11215_s1 + $0x260] ss:$8 sps:$4 sm:$0xff]  }
  0x68   :  { %5661 = vmatpush1.bf16.msra.mxu0 %v7433_v61  ;;  %5170 = vmatprep.subr.bf16.mxu1 %v7438_v62  ;;  %v7511_v61 = vld [vmem:[%s11215_s1 + $0xe60] ss:$8 sps:$4 sm:$0xff]   ;;  %v7516_v62 = vld [vmem:[%s11215_s1 + $0x274] ss:$8 sps:$4 sm:$0xff]  }
  0x69   :  { %5662 = vmatprep.subr.bf16.mxu0 %v7441_v63  ;;  %v7519_v63 = vld [vmem:[%s11215_s1 + $0xe74] ss:$8 sps:$4 sm:$0xff]  }
  0x6b   :  { %5171 = vmatpush1.bf16.msra.mxu1 %v7436_v0  ;;  %v7514_v0 = vld [vmem:[%s11215_s1 + $0x270] ss:$8 sps:$4 sm:$0xff]  }
  0x6c   :  { %5663 = vmatpush1.bf16.msra.mxu0 %v7439_v1  ;;  %5172 = vmatprep.subr.bf16.mxu1 %v7444_v2  ;;  %v7517_v1 = vld [vmem:[%s11215_s1 + $0xe70] ss:$8 sps:$4 sm:$0xff]   ;;  %v7522_v2 = vld [vmem:[%s11215_s1 + $0x284] ss:$8 sps:$4 sm:$0xff]  }
  0x6d   :  { %5664 = vmatprep.subr.bf16.mxu0 %v7447_v3  ;;  %v7525_v3 = vld [vmem:[%s11215_s1 + $0xe84] ss:$8 sps:$4 sm:$0xff]  }
  0x6f   :  { %5173 = vmatpush1.bf16.msra.mxu1 %v7442_v4  ;;  %v7520_v4 = vld [vmem:[%s11215_s1 + $0x280] ss:$8 sps:$4 sm:$0xff]  }
  0x70   :  { %5665 = vmatpush1.bf16.msra.mxu0 %v7445_v5  ;;  %5174 = vmatprep.subr.bf16.mxu1 %v7450_v6  ;;  %v7523_v5 = vld [vmem:[%s11215_s1 + $0xe80] ss:$8 sps:$4 sm:$0xff]   ;;  %v7528_v6 = vld [vmem:[%s11215_s1 + $0x294] ss:$8 sps:$4 sm:$0xff]  }
  0x71   :  { %5666 = vmatprep.subr.bf16.mxu0 %v7453_v7  ;;  %v7531_v7 = vld [vmem:[%s11215_s1 + $0xe94] ss:$8 sps:$4 sm:$0xff]  }
  0x73   :  { %5175 = vmatpush1.bf16.msra.mxu1 %v7448_v8  ;;  %v7526_v8 = vld [vmem:[%s11215_s1 + $0x290] ss:$8 sps:$4 sm:$0xff]  }
  0x74   :  { %5667 = vmatpush1.bf16.msra.mxu0 %v7451_v9  ;;  %5176 = vmatprep.subr.bf16.mxu1 %v7456_v10  ;;  %v7529_v9 = vld [vmem:[%s11215_s1 + $0xe90] ss:$8 sps:$4 sm:$0xff]   ;;  %v7534_v10 = vld [vmem:[%s11215_s1 + $0x2a4] ss:$8 sps:$4 sm:$0xff]  }
  0x75   :  { %5668 = vmatprep.subr.bf16.mxu0 %v7459_v11  ;;  %v7537_v11 = vld [vmem:[%s11215_s1 + $0xea4] ss:$8 sps:$4 sm:$0xff]  }
  0x77   :  { %5177 = vmatpush1.bf16.msra.mxu1 %v7454_v12  ;;  %v7532_v12 = vld [vmem:[%s11215_s1 + $0x2a0] ss:$8 sps:$4 sm:$0xff]  }
  0x78   :  { %5669 = vmatpush1.bf16.msra.mxu0 %v7457_v13  ;;  %5178 = vmatprep.subr.bf16.mxu1 %v7462_v14  ;;  %v7535_v13 = vld [vmem:[%s11215_s1 + $0xea0] ss:$8 sps:$4 sm:$0xff]   ;;  %v7540_v14 = vld [vmem:[%s11215_s1 + $0x2b4] ss:$8 sps:$4 sm:$0xff]  }
  0x79   :  { %5670 = vmatprep.subr.bf16.mxu0 %v7465_v15  ;;  %v7543_v15 = vld [vmem:[%s11215_s1 + $0xeb4] ss:$8 sps:$4 sm:$0xff]  }
  0x7b   :  { %5179 = vmatpush1.bf16.msra.mxu1 %v7460_v20  ;;  %v7546_v20 = vld [vmem:[%s11215_s1 + $0x2c4] ss:$8 sps:$4 sm:$0xff]  }
  0x7c   :  { %5671 = vmatpush1.bf16.msra.mxu0 %v7463_v21  ;;  %5180 = vmatprep.subr.bf16.mxu1 %v7468_v22  ;;  %v7549_v21 = vld [vmem:[%s11215_s1 + $0xec4] ss:$8 sps:$4 sm:$0xff]   ;;  %v7544_v22 = vld [vmem:[%s11215_s1 + $0x2c0] ss:$8 sps:$4 sm:$0xff]  }
  0x7d   :  { %5672 = vmatprep.subr.bf16.mxu0 %v7471_v52  ;;  %v7547_v52 = vld [vmem:[%s11215_s1 + $0xec0] ss:$8 sps:$4 sm:$0xff]  }
  0x7f   :  { %5181 = vmatpush1.bf16.msra.mxu1 %v7466_v24  ;;  %v7552_v24 = vld [vmem:[%s11215_s1 + $0x2d4] ss:$8 sps:$4 sm:$0xff]  }
  0x80   :  { %5673 = vmatpush1.bf16.msra.mxu0 %v7469_v25  ;;  %5191 = vmatprep.subr.bf16.mxu1 %v7474_v26  ;;  %v7555_v25 = vld [vmem:[%s11215_s1 + $0xed4] ss:$8 sps:$4 sm:$0xff]   ;;  %v7550_v26 = vld [vmem:[%s11215_s1 + $0x2d0] ss:$8 sps:$4 sm:$0xff]  }
  0x81   :  { %5683 = vmatprep.subr.bf16.mxu0 %v7477_v27  ;;  %v7553_v27 = vld [vmem:[%s11215_s1 + $0xed0] ss:$8 sps:$4 sm:$0xff]  }
  0x82   :  { %5183 = vmatmul.mubr.bf16.vlgmr.msra.gmra.mrb[0].mxu1 %v877_v30  ;;  %v7556_v30 = vld [vmem:[%s11215_s1 + $0x2e0] ss:$8 sps:$4 sm:$0xff]  }
  0x83   :  { %5675 = vmatmul.mubr.bf16.vlgmr.msra.gmra.mrb[0].mxu0 %v1024_v31  ;;  %5192 = vmatpush1.bf16.msra.mxu1 %v7472_v32  ;;  %v7559_v31 = vld [vmem:[%s11215_s1 + $0xee0] ss:$8 sps:$4 sm:$0xff]   ;;  %v7564_v32 = vld [vmem:[%s11215_s1 + $0x2f4] ss:$8 sps:$4 sm:$0xff]  }
  0x84   :  { %5684 = vmatpush1.bf16.msra.mxu0 %v7475_v33  ;;  %5193 = vmatprep.subr.bf16.mxu1 %v7480_v34  ;;  %v7567_v33 = vld [vmem:[%s11215_s1 + $0xef4] ss:$8 sps:$4 sm:$0xff]   ;;  %v7562_v34 = vld [vmem:[%s11215_s1 + $0x2f0] ss:$8 sps:$4 sm:$0xff]  }
  0x85   :  { %5685 = vmatprep.subr.bf16.mxu0 %v7483_v16  ;;  %5223 = vmatprep.mubr.bf16.mxu1 %v8994_v17  ;;  %v7565_v16 = vld [vmem:[%s11215_s1 + $0xef0] ss:$8 sps:$4 sm:$0xff]  }
  0x86   :  { %5715 = vmatprep.mubr.bf16.mxu0 %v8997_v35 }
  0x87   :  { %5194 = vmatpush1.bf16.msra.mxu1 %v7478_v36  ;;  %v7570_v36 = vld [vmem:[%s11215_s1 + $0x304] ss:$8 sps:$4 sm:$0xff]  }
  0x88   :  { %5686 = vmatpush1.bf16.msra.mxu0 %v7481_v37  ;;  %5195 = vmatprep.subr.bf16.mxu1 %v7486_v38  ;;  %v7573_v37 = vld [vmem:[%s11215_s1 + $0xf04] ss:$8 sps:$4 sm:$0xff]   ;;  %v9183_v38 = vrot.slane %v8956_v56, %v8679_v49  ;;  %v7576_v56 = vld [vmem:[%s11215_s1 + $0x314] ss:$8 sps:$4 sm:$0xff]  }
  0x89   :  { %5687 = vmatprep.subr.bf16.mxu0 %v7489_v39  ;;  %v9187_v39 = vrot.slane %v8959_v23, %v8679_v49  ;;  %v7579_v23 = vld [vmem:[%s11215_s1 + $0xf14] ss:$8 sps:$4 sm:$0xff]  }
  0x8b   :  { %5196 = vmatpush1.bf16.msra.mxu1 %v7484_v40  ;;  %v7568_v40 = vld [vmem:[%s11215_s1 + $0x300] ss:$8 sps:$4 sm:$0xff]  }
  0x8c   :  { %5688 = vmatpush1.bf16.msra.mxu0 %v7487_v41  ;;  %5197 = vmatprep.subr.bf16.mxu1 %v7492_v43  ;;  %v7571_v41 = vld [vmem:[%s11215_s1 + $0xf00] ss:$8 sps:$4 sm:$0xff]   ;;  %v880_v43 = vcombine.high %v8994_v17, %v8994_v17  ;;  %v7582_v17 = vld [vmem:[%s11215_s1 + $0x324] ss:$8 sps:$4 sm:$0xff]  }
  0x8d   :  { %5689 = vmatprep.subr.bf16.mxu0 %v7495_v44  ;;  %v1027_v44 = vcombine.high %v8997_v35, %v8997_v35  ;;  %v7585_v35 = vld [vmem:[%s11215_s1 + $0xf24] ss:$8 sps:$4 sm:$0xff]  }
  0x8f   :  { %5198 = vmatpush1.bf16.msra.mxu1 %v7490_v45  ;;  %v7574_v45 = vld [vmem:[%s11215_s1 + $0x310] ss:$8 sps:$4 sm:$0xff]  }
  0x90   :  { %5690 = vmatpush1.bf16.msra.mxu0 %v7493_v46  ;;  %5199 = vmatprep.subr.bf16.mxu1 %v7498_v47  ;;  %v7577_v46 = vld [vmem:[%s11215_s1 + $0xf10] ss:$8 sps:$4 sm:$0xff]   ;;  %v7580_v47 = vld [vmem:[%s11215_s1 + $0x320] ss:$8 sps:$4 sm:$0xff]  }
  0x91   :  { %5691 = vmatprep.subr.bf16.mxu0 %v7501_v48  ;;  %v7583_v48 = vld [vmem:[%s11215_s1 + $0xf20] ss:$8 sps:$4 sm:$0xff]  }
  0x93   :  { %5200 = vmatpush1.bf16.msra.mxu1 %v7496_v50  ;;  %v7588_v50 = vld [vmem:[%s11215_s1 + $0x334] ss:$8 sps:$4 sm:$0xff]  }
  0x94   :  { %5692 = vmatpush1.bf16.msra.mxu0 %v7499_v51  ;;  %5201 = vmatprep.subr.bf16.mxu1 %v7504_v53  ;;  %v7591_v51 = vld [vmem:[%s11215_s1 + $0xf34] ss:$8 sps:$4 sm:$0xff]   ;;  %v7586_v53 = vld [vmem:[%s11215_s1 + $0x330] ss:$8 sps:$4 sm:$0xff]  }
  0x95   :  { %5693 = vmatprep.subr.bf16.mxu0 %v7507_v54  ;;  %v7589_v54 = vld [vmem:[%s11215_s1 + $0xf30] ss:$8 sps:$4 sm:$0xff]  }
  0x97   :  { %5202 = vmatpush1.bf16.msra.mxu1 %v7502_v55  ;;  %v7594_v55 = vld [vmem:[%s11215_s1 + $0x344] ss:$8 sps:$4 sm:$0xff]  }
  0x98   :  { %5694 = vmatpush1.bf16.msra.mxu0 %v7505_v57  ;;  %5203 = vmatprep.subr.bf16.mxu1 %v7510_v58  ;;  %v7597_v57 = vld [vmem:[%s11215_s1 + $0xf44] ss:$8 sps:$4 sm:$0xff]   ;;  %v7592_v58 = vld [vmem:[%s11215_s1 + $0x340] ss:$8 sps:$4 sm:$0xff]  }
  0x99   :  { %5695 = vmatprep.subr.bf16.mxu0 %v7513_v59  ;;  %v7595_v59 = vld [vmem:[%s11215_s1 + $0xf40] ss:$8 sps:$4 sm:$0xff]  }
  0x9b   :  { %5204 = vmatpush1.bf16.msra.mxu1 %v7508_v60  ;;  %v7600_v60 = vld [vmem:[%s11215_s1 + $0x354] ss:$8 sps:$4 sm:$0xff]  }
  0x9c   :  { %5696 = vmatpush1.bf16.msra.mxu0 %v7511_v61  ;;  %5205 = vmatprep.subr.bf16.mxu1 %v7516_v62  ;;  %v7603_v61 = vld [vmem:[%s11215_s1 + $0xf54] ss:$8 sps:$4 sm:$0xff]   ;;  %v7598_v62 = vld [vmem:[%s11215_s1 + $0x350] ss:$8 sps:$4 sm:$0xff]  }
  0x9d   :  { %5697 = vmatprep.subr.bf16.mxu0 %v7519_v63  ;;  %v7601_v63 = vld [vmem:[%s11215_s1 + $0xf50] ss:$8 sps:$4 sm:$0xff]  }
  0x9f   :  { %5206 = vmatpush1.bf16.msra.mxu1 %v7514_v0  ;;  %v7606_v0 = vld [vmem:[%s11215_s1 + $0x364] ss:$8 sps:$4 sm:$0xff]  }
  0xa0   :  { %5698 = vmatpush1.bf16.msra.mxu0 %v7517_v1  ;;  %5207 = vmatprep.subr.bf16.mxu1 %v7522_v2  ;;  %v7609_v1 = vld [vmem:[%s11215_s1 + $0xf64] ss:$8 sps:$4 sm:$0xff]   ;;  %v7604_v2 = vld [vmem:[%s11215_s1 + $0x360] ss:$8 sps:$4 sm:$0xff]  }
  0xa1   :  { %5699 = vmatprep.subr.bf16.mxu0 %v7525_v3  ;;  %v7607_v3 = vld [vmem:[%s11215_s1 + $0xf60] ss:$8 sps:$4 sm:$0xff]  }
  0xa3   :  { %5208 = vmatpush1.bf16.msra.mxu1 %v7520_v4  ;;  %v7612_v4 = vld [vmem:[%s11215_s1 + $0x374] ss:$8 sps:$4 sm:$0xff]  }
  0xa4   :  { %5700 = vmatpush1.bf16.msra.mxu0 %v7523_v5  ;;  %5209 = vmatprep.subr.bf16.mxu1 %v7528_v6  ;;  %v7615_v5 = vld [vmem:[%s11215_s1 + $0xf74] ss:$8 sps:$4 sm:$0xff]   ;;  %v7610_v6 = vld [vmem:[%s11215_s1 + $0x370] ss:$8 sps:$4 sm:$0xff]  }
  0xa5   :  { %5701 = vmatprep.subr.bf16.mxu0 %v7531_v7  ;;  %v7613_v7 = vld [vmem:[%s11215_s1 + $0xf70] ss:$8 sps:$4 sm:$0xff]  }
  0xa7   :  { %5210 = vmatpush1.bf16.msra.mxu1 %v7526_v8  ;;  %v7618_v8 = vld [vmem:[%s11215_s1 + $0x384] ss:$8 sps:$4 sm:$0xff]  }
  0xa8   :  { %5702 = vmatpush1.bf16.msra.mxu0 %v7529_v9  ;;  %5211 = vmatprep.subr.bf16.mxu1 %v7534_v10  ;;  %v7621_v9 = vld [vmem:[%s11215_s1 + $0xf84] ss:$8 sps:$4 sm:$0xff]   ;;  %v7616_v10 = vld [vmem:[%s11215_s1 + $0x380] ss:$8 sps:$4 sm:$0xff]  }
  0xa9   :  { %5703 = vmatprep.subr.bf16.mxu0 %v7537_v11  ;;  %v7619_v11 = vld [vmem:[%s11215_s1 + $0xf80] ss:$8 sps:$4 sm:$0xff]  }
  0xab   :  { %5212 = vmatpush1.bf16.msra.mxu1 %v7532_v12  ;;  %v7624_v12 = vld [vmem:[%s11215_s1 + $0x394] ss:$8 sps:$4 sm:$0xff]  }
  0xac   :  { %5704 = vmatpush1.bf16.msra.mxu0 %v7535_v13  ;;  %5213 = vmatprep.subr.bf16.mxu1 %v7540_v14  ;;  %v7627_v13 = vld [vmem:[%s11215_s1 + $0xf94] ss:$8 sps:$4 sm:$0xff]   ;;  %v7622_v14 = vld [vmem:[%s11215_s1 + $0x390] ss:$8 sps:$4 sm:$0xff]  }
  0xad   :  { %5705 = vmatprep.subr.bf16.mxu0 %v7543_v15  ;;  %v7625_v15 = vld [vmem:[%s11215_s1 + $0xf90] ss:$8 sps:$4 sm:$0xff]  }
  0xaf   :  { %5214 = vmatpush1.bf16.msra.mxu1 %v7538_v18  ;;  %v7630_v18 = vld [vmem:[%s11215_s1 + $0x3a4] ss:$8 sps:$4 sm:$0xff]  }
  0xb0   :  { %5706 = vmatpush1.bf16.msra.mxu0 %v7541_v19  ;;  %5215 = vmatprep.subr.bf16.mxu1 %v7546_v20  ;;  %v7633_v19 = vld [vmem:[%s11215_s1 + $0xfa4] ss:$8 sps:$4 sm:$0xff]   ;;  %v7628_v20 = vld [vmem:[%s11215_s1 + $0x3a0] ss:$8 sps:$4 sm:$0xff]  }
  0xb1   :  { %5707 = vmatprep.subr.bf16.mxu0 %v7549_v21  ;;  %v7631_v21 = vld [vmem:[%s11215_s1 + $0xfa0] ss:$8 sps:$4 sm:$0xff]  }
  0xb3   :  { %5216 = vmatpush1.bf16.msra.mxu1 %v7544_v22  ;;  %v7636_v22 = vld [vmem:[%s11215_s1 + $0x3b4] ss:$8 sps:$4 sm:$0xff]  }
  0xb4   :  { %5708 = vmatpush1.bf16.msra.mxu0 %v7547_v52  ;;  %5217 = vmatprep.subr.bf16.mxu1 %v7552_v24  ;;  %v7639_v52 = vld [vmem:[%s11215_s1 + $0xfb4] ss:$8 sps:$4 sm:$0xff]   ;;  %v7634_v24 = vld [vmem:[%s11215_s1 + $0x3b0] ss:$8 sps:$4 sm:$0xff]  }
  0xb5   :  { %5709 = vmatprep.subr.bf16.mxu0 %v7555_v25  ;;  %v7637_v25 = vld [vmem:[%s11215_s1 + $0xfb0] ss:$8 sps:$4 sm:$0xff]  }
  0xb7   :  { %5218 = vmatpush1.bf16.msra.mxu1 %v7550_v26  ;;  %v7642_v26 = vld [vmem:[%s11215_s1 + $0x3c4] ss:$8 sps:$4 sm:$0xff]  }
  0xb8   :  { %5710 = vmatpush1.bf16.msra.mxu0 %v7553_v27  ;;  %5219 = vmatprep.subr.bf16.mxu1 %v7558_v28  ;;  %v7645_v27 = vld [vmem:[%s11215_s1 + $0xfc4] ss:$8 sps:$4 sm:$0xff]   ;;  %v7640_v28 = vld [vmem:[%s11215_s1 + $0x3c0] ss:$8 sps:$4 sm:$0xff]  }
  0xb9   :  { %5711 = vmatprep.subr.bf16.mxu0 %v7561_v29  ;;  %v7643_v29 = vld [vmem:[%s11215_s1 + $0xfc0] ss:$8 sps:$4 sm:$0xff]  }
  0xbb   :  { %5220 = vmatpush1.bf16.msra.mxu1 %v7556_v30  ;;  %v7648_v30 = vld [vmem:[%s11215_s1 + $0x3d4] ss:$8 sps:$4 sm:$0xff]  }
  0xbc   :  { %5712 = vmatpush1.bf16.msra.mxu0 %v7559_v31  ;;  %5221 = vmatprep.subr.bf16.mxu1 %v7564_v32  ;;  %v7651_v31 = vld [vmem:[%s11215_s1 + $0xfd4] ss:$8 sps:$4 sm:$0xff]   ;;  %v7646_v32 = vld [vmem:[%s11215_s1 + $0x3d0] ss:$8 sps:$4 sm:$0xff]  }
  0xbd   :  { %5713 = vmatprep.subr.bf16.mxu0 %v7567_v33  ;;  %v7649_v33 = vld [vmem:[%s11215_s1 + $0xfd0] ss:$8 sps:$4 sm:$0xff]  }
  0xbf   :  { %5222 = vmatpush1.bf16.msra.mxu1 %v7562_v34  ;;  %v7654_v34 = vld [vmem:[%s11215_s1 + $0x3e4] ss:$8 sps:$4 sm:$0xff]  }
  0xc0   :  { %5714 = vmatpush1.bf16.msra.mxu0 %v7565_v16  ;;  %5232 = vmatprep.subr.bf16.mxu1 %v7570_v36  ;;  %v7657_v16 = vld [vmem:[%s11215_s1 + $0xfe4] ss:$8 sps:$4 sm:$0xff]   ;;  %v7652_v36 = vld [vmem:[%s11215_s1 + $0x3e0] ss:$8 sps:$4 sm:$0xff]  }
  0xc1   :  { %5724 = vmatprep.subr.bf16.mxu0 %v7573_v37  ;;  %v7655_v37 = vld [vmem:[%s11215_s1 + $0xfe0] ss:$8 sps:$4 sm:$0xff]  }
  0xc2   :  { %5224 = vmatmul.mubr.bf16.vlgmr.msra.gmra.mrb[0].mxu1 %v9183_v38 }
  0xc3   :  { %5716 = vmatmul.mubr.bf16.vlgmr.msra.gmra.mrb[0].mxu0 %v9187_v39  ;;  %5233 = vmatpush1.bf16.msra.mxu1 %v7568_v40  ;;  %v9372_v40 = vld.sshfl [vmem:[%s11214_s0 + $0x8] sm:$0xff pattern:$0x75316420] }
  0xc4   :  { %5725 = vmatpush1.bf16.msra.mxu0 %v7571_v41  ;;  %5234 = vmatprep.subr.bf16.mxu1 %v7576_v56  ;;  %v9377_v41 = vld.sshfl [vmem:[%s11214_s0 + $0x20] sm:$0xff pattern:$0x75316420]  ;;  %v7660_v56 = vld [vmem:[%s11215_s1 + $0x3f4] ss:$8 sps:$4 sm:$0xff]  }
  0xc5   :  { %5726 = vmatprep.subr.bf16.mxu0 %v7579_v23  ;;  %5264 = vmatprep.mubr.bf16.mxu1 %v880_v43  ;;  %v7663_v23 = vld [vmem:[%s11215_s1 + $0xff4] ss:$8 sps:$4 sm:$0xff]   ;;  %v7658_v43 = vld [vmem:[%s11215_s1 + $0x3f0] ss:$8 sps:$4 sm:$0xff]  }
  0xc6   :  { %5756 = vmatprep.mubr.bf16.mxu0 %v1027_v44  ;;  %v7661_v44 = vld [vmem:[%s11215_s1 + $0xff0] ss:$8 sps:$4 sm:$0xff]  }
  0xc7   :  { %5235 = vmatpush1.bf16.msra.mxu1 %v7574_v45  ;;  %v7666_v45 = vld [vmem:[%s11215_s1 + $0x404] ss:$8 sps:$4 sm:$0xff]  }
  0xc8   :  { %5727 = vmatpush1.bf16.msra.mxu0 %v7577_v46  ;;  %5236 = vmatprep.subr.bf16.mxu1 %v7582_v17  ;;  %v7669_v46 = vld [vmem:[%s11215_s1 + $0x1004] ss:$8 sps:$4 sm:$0xff]   ;;  %v896_v17 = vcombine.high %v9372_v40, %v9372_v40 }
  0xc9   :  { %5728 = vmatprep.subr.bf16.mxu0 %v7585_v35  ;;  %v1043_v35 = vcombine.high %v9377_v41, %v9377_v41 }
  0xcb   :  { %5237 = vmatpush1.bf16.msra.mxu1 %v7580_v47  ;;  %v7664_v47 = vld [vmem:[%s11215_s1 + $0x400] ss:$8 sps:$4 sm:$0xff]  }
  0xcc   :  { %5729 = vmatpush1.bf16.msra.mxu0 %v7583_v48  ;;  %5238 = vmatprep.subr.bf16.mxu1 %v7588_v50  ;;  %v7667_v48 = vld [vmem:[%s11215_s1 + $0x1000] ss:$8 sps:$4 sm:$0xff]   ;;  %v878_v50 = vcombine.high %v9183_v38, %v9183_v38  ;;  %v9421_v38 = vrot.slane %v1043_v35, %v8679_v49  ;;  %v7753_v35 = vld [vmem:[%s11215_s1 + $0x10e4] ss:$8 sps:$4 sm:$0xff]  }
  0xcd   :  { %5730 = vmatprep.subr.bf16.mxu0 %v7591_v51  ;;  %v1025_v51 = vcombine.high %v9187_v39, %v9187_v39  ;;  %v7670_v39 = vld [vmem:[%s11215_s1 + $0x410] ss:$8 sps:$4 sm:$0xff]  }
  0xcf   :  { %5239 = vmatpush1.bf16.msra.mxu1 %v7586_v53  ;;  %v7672_v53 = vld [vmem:[%s11215_s1 + $0x414] ss:$8 sps:$4 sm:$0xff]  }
  0xd0   :  { %5731 = vmatpush1.bf16.msra.mxu0 %v7589_v54  ;;  %5240 = vmatprep.subr.bf16.mxu1 %v7594_v55  ;;  %v7675_v54 = vld [vmem:[%s11215_s1 + $0x1014] ss:$8 sps:$4 sm:$0xff]   ;;  %v9418_v55 = vrot.slane %v896_v17, %v8679_v49  ;;  %v7750_v17 = vld [vmem:[%s11215_s1 + $0x4e4] ss:$8 sps:$4 sm:$0xff]  }
  0xd1   :  { %5732 = vmatprep.subr.bf16.mxu0 %v7597_v57  ;;  %v7673_v57 = vld [vmem:[%s11215_s1 + $0x1010] ss:$8 sps:$4 sm:$0xff]  }
  0xd3   :  { %5241 = vmatpush1.bf16.msra.mxu1 %v7592_v58  ;;  %v7678_v58 = vld [vmem:[%s11215_s1 + $0x424] ss:$8 sps:$4 sm:$0xff]  }
  0xd4   :  { %5733 = vmatpush1.bf16.msra.mxu0 %v7595_v59  ;;  %5242 = vmatprep.subr.bf16.mxu1 %v7600_v60  ;;  %v7681_v59 = vld [vmem:[%s11215_s1 + $0x1024] ss:$8 sps:$4 sm:$0xff]   ;;  %v7676_v60 = vld [vmem:[%s11215_s1 + $0x420] ss:$8 sps:$4 sm:$0xff]  }
  0xd5   :  { %5734 = vmatprep.subr.bf16.mxu0 %v7603_v61  ;;  %v7679_v61 = vld [vmem:[%s11215_s1 + $0x1020] ss:$8 sps:$4 sm:$0xff]  }
  0xd7   :  { %5243 = vmatpush1.bf16.msra.mxu1 %v7598_v62  ;;  %v7684_v62 = vld [vmem:[%s11215_s1 + $0x434] ss:$8 sps:$4 sm:$0xff]  }
  0xd8   :  { %5735 = vmatpush1.bf16.msra.mxu0 %v7601_v63  ;;  %5244 = vmatprep.subr.bf16.mxu1 %v7606_v0  ;;  %v7687_v63 = vld [vmem:[%s11215_s1 + $0x1034] ss:$8 sps:$4 sm:$0xff]   ;;  %v7682_v0 = vld [vmem:[%s11215_s1 + $0x430] ss:$8 sps:$4 sm:$0xff]  }
  0xd9   :  { %5736 = vmatprep.subr.bf16.mxu0 %v7609_v1  ;;  %v7685_v1 = vld [vmem:[%s11215_s1 + $0x1030] ss:$8 sps:$4 sm:$0xff]  }
  0xdb   :  { %5245 = vmatpush1.bf16.msra.mxu1 %v7604_v2  ;;  %v7690_v2 = vld [vmem:[%s11215_s1 + $0x444] ss:$8 sps:$4 sm:$0xff]  }
  0xdc   :  { %5737 = vmatpush1.bf16.msra.mxu0 %v7607_v3  ;;  %5246 = vmatprep.subr.bf16.mxu1 %v7612_v4  ;;  %v7693_v3 = vld [vmem:[%s11215_s1 + $0x1044] ss:$8 sps:$4 sm:$0xff]   ;;  %v7688_v4 = vld [vmem:[%s11215_s1 + $0x440] ss:$8 sps:$4 sm:$0xff]  }
  0xdd   :  { %5738 = vmatprep.subr.bf16.mxu0 %v7615_v5  ;;  %v7691_v5 = vld [vmem:[%s11215_s1 + $0x1040] ss:$8 sps:$4 sm:$0xff]  }
  0xdf   :  { %5247 = vmatpush1.bf16.msra.mxu1 %v7610_v6  ;;  %v7696_v6 = vld [vmem:[%s11215_s1 + $0x454] ss:$8 sps:$4 sm:$0xff]  }
  0xe0   :  { %5739 = vmatpush1.bf16.msra.mxu0 %v7613_v7  ;;  %5248 = vmatprep.subr.bf16.mxu1 %v7618_v8  ;;  %v7699_v7 = vld [vmem:[%s11215_s1 + $0x1054] ss:$8 sps:$4 sm:$0xff]   ;;  %v7694_v8 = vld [vmem:[%s11215_s1 + $0x450] ss:$8 sps:$4 sm:$0xff]  }
  0xe1   :  { %5740 = vmatprep.subr.bf16.mxu0 %v7621_v9  ;;  %v7697_v9 = vld [vmem:[%s11215_s1 + $0x1050] ss:$8 sps:$4 sm:$0xff]  }
  0xe3   :  { %5249 = vmatpush1.bf16.msra.mxu1 %v7616_v10  ;;  %v7702_v10 = vld [vmem:[%s11215_s1 + $0x464] ss:$8 sps:$4 sm:$0xff]  }
  0xe4   :  { %5741 = vmatpush1.bf16.msra.mxu0 %v7619_v11  ;;  %5250 = vmatprep.subr.bf16.mxu1 %v7624_v12  ;;  %v7705_v11 = vld [vmem:[%s11215_s1 + $0x1064] ss:$8 sps:$4 sm:$0xff]   ;;  %v7700_v12 = vld [vmem:[%s11215_s1 + $0x460] ss:$8 sps:$4 sm:$0xff]  }
  0xe5   :  { %5742 = vmatprep.subr.bf16.mxu0 %v7627_v13  ;;  %v7703_v13 = vld [vmem:[%s11215_s1 + $0x1060] ss:$8 sps:$4 sm:$0xff]  }
  0xe7   :  { %5251 = vmatpush1.bf16.msra.mxu1 %v7622_v14  ;;  %v7708_v14 = vld [vmem:[%s11215_s1 + $0x474] ss:$8 sps:$4 sm:$0xff]  }
  0xe8   :  { %5743 = vmatpush1.bf16.msra.mxu0 %v7625_v15  ;;  %5252 = vmatprep.subr.bf16.mxu1 %v7630_v18  ;;  %v7711_v15 = vld [vmem:[%s11215_s1 + $0x1074] ss:$8 sps:$4 sm:$0xff]   ;;  %v7706_v18 = vld [vmem:[%s11215_s1 + $0x470] ss:$8 sps:$4 sm:$0xff]  }
  0xe9   :  { %5744 = vmatprep.subr.bf16.mxu0 %v7633_v19  ;;  %v7709_v19 = vld [vmem:[%s11215_s1 + $0x1070] ss:$8 sps:$4 sm:$0xff]  }
  0xeb   :  { %5253 = vmatpush1.bf16.msra.mxu1 %v7628_v20  ;;  %v7714_v20 = vld [vmem:[%s11215_s1 + $0x484] ss:$8 sps:$4 sm:$0xff]  }
  0xec   :  { %5745 = vmatpush1.bf16.msra.mxu0 %v7631_v21  ;;  %5254 = vmatprep.subr.bf16.mxu1 %v7636_v22  ;;  %v7717_v21 = vld [vmem:[%s11215_s1 + $0x1084] ss:$8 sps:$4 sm:$0xff]   ;;  %v7712_v22 = vld [vmem:[%s11215_s1 + $0x480] ss:$8 sps:$4 sm:$0xff]  }
  0xed   :  { %5746 = vmatprep.subr.bf16.mxu0 %v7639_v52  ;;  %v7715_v52 = vld [vmem:[%s11215_s1 + $0x1080] ss:$8 sps:$4 sm:$0xff]  }
  0xef   :  { %5255 = vmatpush1.bf16.msra.mxu1 %v7634_v24  ;;  %v7720_v24 = vld [vmem:[%s11215_s1 + $0x494] ss:$8 sps:$4 sm:$0xff]  }
  0xf0   :  { %5747 = vmatpush1.bf16.msra.mxu0 %v7637_v25  ;;  %5256 = vmatprep.subr.bf16.mxu1 %v7642_v26  ;;  %v7723_v25 = vld [vmem:[%s11215_s1 + $0x1094] ss:$8 sps:$4 sm:$0xff]   ;;  %v7718_v26 = vld [vmem:[%s11215_s1 + $0x490] ss:$8 sps:$4 sm:$0xff]  }
  0xf1   :  { %5748 = vmatprep.subr.bf16.mxu0 %v7645_v27  ;;  %v7721_v27 = vld [vmem:[%s11215_s1 + $0x1090] ss:$8 sps:$4 sm:$0xff]  }
  0xf3   :  { %5257 = vmatpush1.bf16.msra.mxu1 %v7640_v28  ;;  %v7726_v28 = vld [vmem:[%s11215_s1 + $0x4a4] ss:$8 sps:$4 sm:$0xff]  }
  0xf4   :  { %5749 = vmatpush1.bf16.msra.mxu0 %v7643_v29  ;;  %5258 = vmatprep.subr.bf16.mxu1 %v7648_v30  ;;  %v7729_v29 = vld [vmem:[%s11215_s1 + $0x10a4] ss:$8 sps:$4 sm:$0xff]   ;;  %v7724_v30 = vld [vmem:[%s11215_s1 + $0x4a0] ss:$8 sps:$4 sm:$0xff]  }
  0xf5   :  { %5750 = vmatprep.subr.bf16.mxu0 %v7651_v31  ;;  %v7727_v31 = vld [vmem:[%s11215_s1 + $0x10a0] ss:$8 sps:$4 sm:$0xff]  }
  0xf7   :  { %5259 = vmatpush1.bf16.msra.mxu1 %v7646_v32  ;;  %v7732_v32 = vld [vmem:[%s11215_s1 + $0x4b4] ss:$8 sps:$4 sm:$0xff]  }
  0xf8   :  { %5751 = vmatpush1.bf16.msra.mxu0 %v7649_v33  ;;  %5260 = vmatprep.subr.bf16.mxu1 %v7654_v34  ;;  %v7735_v33 = vld [vmem:[%s11215_s1 + $0x10b4] ss:$8 sps:$4 sm:$0xff]   ;;  %v7730_v34 = vld [vmem:[%s11215_s1 + $0x4b0] ss:$8 sps:$4 sm:$0xff]  }
  0xf9   :  { %5752 = vmatprep.subr.bf16.mxu0 %v7657_v16  ;;  %v7733_v16 = vld [vmem:[%s11215_s1 + $0x10b0] ss:$8 sps:$4 sm:$0xff]  }
  0xfb   :  { %5261 = vmatpush1.bf16.msra.mxu1 %v7652_v36  ;;  %v7738_v36 = vld [vmem:[%s11215_s1 + $0x4c4] ss:$8 sps:$4 sm:$0xff]  }
  0xfc   :  { %5753 = vmatpush1.bf16.msra.mxu0 %v7655_v37  ;;  %5262 = vmatprep.subr.bf16.mxu1 %v7660_v56  ;;  %v7741_v37 = vld [vmem:[%s11215_s1 + $0x10c4] ss:$8 sps:$4 sm:$0xff]   ;;  %v7736_v56 = vld [vmem:[%s11215_s1 + $0x4c0] ss:$8 sps:$4 sm:$0xff]  }
  0xfd   :  { %5754 = vmatprep.subr.bf16.mxu0 %v7663_v23  ;;  %v7739_v23 = vld [vmem:[%s11215_s1 + $0x10c0] ss:$8 sps:$4 sm:$0xff]  }
  0xff   :  { %5263 = vmatpush1.bf16.msra.mxu1 %v7658_v43  ;;  %v7744_v43 = vld [vmem:[%s11215_s1 + $0x4d4] ss:$8 sps:$4 sm:$0xff]  }
 0x100   :  { %5755 = vmatpush1.bf16.msra.mxu0 %v7661_v44  ;;  %5273 = vmatprep.subr.bf16.mxu1 %v7666_v45  ;;  %v7747_v44 = vld [vmem:[%s11215_s1 + $0x10d4] ss:$8 sps:$4 sm:$0xff]   ;;  %v7742_v45 = vld [vmem:[%s11215_s1 + $0x4d0] ss:$8 sps:$4 sm:$0xff]  }
 0x101   :  { %5765 = vmatprep.subr.bf16.mxu0 %v7669_v46  ;;  %v7745_v46 = vld [vmem:[%s11215_s1 + $0x10d0] ss:$8 sps:$4 sm:$0xff]  }
 0x102   :  { %5265 = vmatmul.mubr.bf16.vlgmr.msra.gmra.mrb[0].mxu1 %v878_v50  ;;  %v7756_v50 = vld [vmem:[%s11215_s1 + $0x4f4] ss:$8 sps:$4 sm:$0xff]  }
 0x103   :  { %5757 = vmatmul.mubr.bf16.vlgmr.msra.gmra.mrb[0].mxu0 %v1025_v51  ;;  %5274 = vmatpush1.bf16.msra.mxu1 %v7664_v47  ;;  %v7748_v47 = vld [vmem:[%s11215_s1 + $0x4e0] ss:$8 sps:$4 sm:$0xff]   ;;  %v7759_v51 = vld [vmem:[%s11215_s1 + $0x10f4] ss:$8 sps:$4 sm:$0xff]  }
 0x104   :  { %5766 = vmatpush1.bf16.msra.mxu0 %v7667_v48  ;;  %5275 = vmatprep.subr.bf16.mxu1 %v7672_v53  ;;  %v7751_v48 = vld [vmem:[%s11215_s1 + $0x10e0] ss:$8 sps:$4 sm:$0xff]   ;;  %v7754_v53 = vld [vmem:[%s11215_s1 + $0x4f0] ss:$8 sps:$4 sm:$0xff]  }
 0x105   :  { %5767 = vmatprep.subr.bf16.mxu0 %v7675_v54  ;;  %5305 = vmatprep.mubr.bf16.mxu1 %v9418_v55  ;;  %v7757_v54 = vld [vmem:[%s11215_s1 + $0x10f0] ss:$8 sps:$4 sm:$0xff]  }
 0x106   :  { %5797 = vmatprep.mubr.bf16.mxu0 %v9421_v38 }
 0x107   :  { %5276 = vmatpush1.bf16.msra.mxu1 %v7670_v39  ;;  %v7762_v39 = vld [vmem:[%s11215_s1 + $0x504] ss:$8 sps:$4 sm:$0xff]  }
 0x108   :  { %5768 = vmatpush1.bf16.msra.mxu0 %v7673_v57  ;;  %5277 = vmatprep.subr.bf16.mxu1 %v7678_v58  ;;  %v7765_v57 = vld [vmem:[%s11215_s1 + $0x1104] ss:$8 sps:$4 sm:$0xff]   ;;  %v9607_v58 = vrot.slane %v9372_v40, %v8679_v49  ;;  %v7768_v40 = vld [vmem:[%s11215_s1 + $0x514] ss:$8 sps:$4 sm:$0xff]  }
 0x109   :  { %5769 = vmatprep.subr.bf16.mxu0 %v7681_v59  ;;  %v9611_v59 = vrot.slane %v9377_v41, %v8679_v49  ;;  %v7771_v41 = vld [vmem:[%s11215_s1 + $0x1114] ss:$8 sps:$4 sm:$0xff]  }
 0x10b   :  { %5278 = vmatpush1.bf16.msra.mxu1 %v7676_v60  ;;  %v7760_v60 = vld [vmem:[%s11215_s1 + $0x500] ss:$8 sps:$4 sm:$0xff]  }
 0x10c   :  { %5770 = vmatpush1.bf16.msra.mxu0 %v7679_v61  ;;  %5279 = vmatprep.subr.bf16.mxu1 %v7684_v62  ;;  %v7763_v61 = vld [vmem:[%s11215_s1 + $0x1100] ss:$8 sps:$4 sm:$0xff]   ;;  %v928_v62 = vcombine.high %v9418_v55, %v9418_v55  ;;  %v7774_v55 = vld [vmem:[%s11215_s1 + $0x524] ss:$8 sps:$4 sm:$0xff]  }
 0x10d   :  { %5771 = vmatprep.subr.bf16.mxu0 %v7687_v63  ;;  %v1075_v63 = vcombine.high %v9421_v38, %v9421_v38  ;;  %v7777_v38 = vld [vmem:[%s11215_s1 + $0x1124] ss:$8 sps:$4 sm:$0xff]  }
 0x10f   :  { %5280 = vmatpush1.bf16.msra.mxu1 %v7682_v0  ;;  %v7766_v0 = vld [vmem:[%s11215_s1 + $0x510] ss:$8 sps:$4 sm:$0xff]  }
 0x110   :  { %5772 = vmatpush1.bf16.msra.mxu0 %v7685_v1  ;;  %5281 = vmatprep.subr.bf16.mxu1 %v7690_v2  ;;  %v7769_v1 = vld [vmem:[%s11215_s1 + $0x1110] ss:$8 sps:$4 sm:$0xff]   ;;  %v7772_v2 = vld [vmem:[%s11215_s1 + $0x520] ss:$8 sps:$4 sm:$0xff]  }
 0x111   :  { %5773 = vmatprep.subr.bf16.mxu0 %v7693_v3  ;;  %v7775_v3 = vld [vmem:[%s11215_s1 + $0x1120] ss:$8 sps:$4 sm:$0xff]  }
 0x113   :  { %5282 = vmatpush1.bf16.msra.mxu1 %v7688_v4  ;;  %v7780_v4 = vld [vmem:[%s11215_s1 + $0x534] ss:$8 sps:$4 sm:$0xff]  }
 0x114   :  { %5774 = vmatpush1.bf16.msra.mxu0 %v7691_v5  ;;  %5283 = vmatprep.subr.bf16.mxu1 %v7696_v6  ;;  %v7783_v5 = vld [vmem:[%s11215_s1 + $0x1134] ss:$8 sps:$4 sm:$0xff]   ;;  %v7778_v6 = vld [vmem:[%s11215_s1 + $0x530] ss:$8 sps:$4 sm:$0xff]  }
 0x115   :  { %5775 = vmatprep.subr.bf16.mxu0 %v7699_v7  ;;  %v7781_v7 = vld [vmem:[%s11215_s1 + $0x1130] ss:$8 sps:$4 sm:$0xff]  }
 0x117   :  { %5284 = vmatpush1.bf16.msra.mxu1 %v7694_v8  ;;  %v7786_v8 = vld [vmem:[%s11215_s1 + $0x544] ss:$8 sps:$4 sm:$0xff]  }
 0x118   :  { %5776 = vmatpush1.bf16.msra.mxu0 %v7697_v9  ;;  %5285 = vmatprep.subr.bf16.mxu1 %v7702_v10  ;;  %v7789_v9 = vld [vmem:[%s11215_s1 + $0x1144] ss:$8 sps:$4 sm:$0xff]   ;;  %v7784_v10 = vld [vmem:[%s11215_s1 + $0x540] ss:$8 sps:$4 sm:$0xff]  }
 0x119   :  { %5777 = vmatprep.subr.bf16.mxu0 %v7705_v11  ;;  %v7787_v11 = vld [vmem:[%s11215_s1 + $0x1140] ss:$8 sps:$4 sm:$0xff]  }
 0x11b   :  { %5286 = vmatpush1.bf16.msra.mxu1 %v7700_v12  ;;  %v7792_v12 = vld [vmem:[%s11215_s1 + $0x554] ss:$8 sps:$4 sm:$0xff]  }
 0x11c   :  { %5778 = vmatpush1.bf16.msra.mxu0 %v7703_v13  ;;  %5287 = vmatprep.subr.bf16.mxu1 %v7708_v14  ;;  %v7795_v13 = vld [vmem:[%s11215_s1 + $0x1154] ss:$8 sps:$4 sm:$0xff]   ;;  %v7790_v14 = vld [vmem:[%s11215_s1 + $0x550] ss:$8 sps:$4 sm:$0xff]  }
 0x11d   :  { %5779 = vmatprep.subr.bf16.mxu0 %v7711_v15  ;;  %v7793_v15 = vld [vmem:[%s11215_s1 + $0x1150] ss:$8 sps:$4 sm:$0xff]  }
 0x11f   :  { %5288 = vmatpush1.bf16.msra.mxu1 %v7706_v18  ;;  %v7798_v18 = vld [vmem:[%s11215_s1 + $0x564] ss:$8 sps:$4 sm:$0xff]  }
 0x120   :  { %5780 = vmatpush1.bf16.msra.mxu0 %v7709_v19  ;;  %5289 = vmatprep.subr.bf16.mxu1 %v7714_v20  ;;  %v7801_v19 = vld [vmem:[%s11215_s1 + $0x1164] ss:$8 sps:$4 sm:$0xff]   ;;  %v7796_v20 = vld [vmem:[%s11215_s1 + $0x560] ss:$8 sps:$4 sm:$0xff]  }
 0x121   :  { %5781 = vmatprep.subr.bf16.mxu0 %v7717_v21  ;;  %v7799_v21 = vld [vmem:[%s11215_s1 + $0x1160] ss:$8 sps:$4 sm:$0xff]  }
 0x123   :  { %5290 = vmatpush1.bf16.msra.mxu1 %v7712_v22  ;;  %v7804_v22 = vld [vmem:[%s11215_s1 + $0x574] ss:$8 sps:$4 sm:$0xff]  }
 0x124   :  { %5782 = vmatpush1.bf16.msra.mxu0 %v7715_v52  ;;  %5291 = vmatprep.subr.bf16.mxu1 %v7720_v24  ;;  %v7807_v52 = vld [vmem:[%s11215_s1 + $0x1174] ss:$8 sps:$4 sm:$0xff]   ;;  %v7802_v24 = vld [vmem:[%s11215_s1 + $0x570] ss:$8 sps:$4 sm:$0xff]  }
 0x125   :  { %5783 = vmatprep.subr.bf16.mxu0 %v7723_v25  ;;  %v7805_v25 = vld [vmem:[%s11215_s1 + $0x1170] ss:$8 sps:$4 sm:$0xff]  }
 0x127   :  { %5292 = vmatpush1.bf16.msra.mxu1 %v7718_v26  ;;  %v7810_v26 = vld [vmem:[%s11215_s1 + $0x584] ss:$8 sps:$4 sm:$0xff]  }
 0x128   :  { %5784 = vmatpush1.bf16.msra.mxu0 %v7721_v27  ;;  %5293 = vmatprep.subr.bf16.mxu1 %v7726_v28  ;;  %v7813_v27 = vld [vmem:[%s11215_s1 + $0x1184] ss:$8 sps:$4 sm:$0xff]   ;;  %v7808_v28 = vld [vmem:[%s11215_s1 + $0x580] ss:$8 sps:$4 sm:$0xff]  }
 0x129   :  { %5785 = vmatprep.subr.bf16.mxu0 %v7729_v29  ;;  %v7811_v29 = vld [vmem:[%s11215_s1 + $0x1180] ss:$8 sps:$4 sm:$0xff]  }
 0x12b   :  { %5294 = vmatpush1.bf16.msra.mxu1 %v7724_v30  ;;  %v7816_v30 = vld [vmem:[%s11215_s1 + $0x594] ss:$8 sps:$4 sm:$0xff]  }
 0x12c   :  { %5786 = vmatpush1.bf16.msra.mxu0 %v7727_v31  ;;  %5295 = vmatprep.subr.bf16.mxu1 %v7732_v32  ;;  %v7819_v31 = vld [vmem:[%s11215_s1 + $0x1194] ss:$8 sps:$4 sm:$0xff]   ;;  %v7814_v32 = vld [vmem:[%s11215_s1 + $0x590] ss:$8 sps:$4 sm:$0xff]  }
 0x12d   :  { %5787 = vmatprep.subr.bf16.mxu0 %v7735_v33  ;;  %v7817_v33 = vld [vmem:[%s11215_s1 + $0x1190] ss:$8 sps:$4 sm:$0xff]  }
 0x12f   :  { %5296 = vmatpush1.bf16.msra.mxu1 %v7730_v34  ;;  %v7822_v34 = vld [vmem:[%s11215_s1 + $0x5a4] ss:$8 sps:$4 sm:$0xff]  }
 0x130   :  { %5788 = vmatpush1.bf16.msra.mxu0 %v7733_v16  ;;  %5297 = vmatprep.subr.bf16.mxu1 %v7738_v36  ;;  %v7825_v16 = vld [vmem:[%s11215_s1 + $0x11a4] ss:$8 sps:$4 sm:$0xff]   ;;  %v7820_v36 = vld [vmem:[%s11215_s1 + $0x5a0] ss:$8 sps:$4 sm:$0xff]  }
 0x131   :  { %5789 = vmatprep.subr.bf16.mxu0 %v7741_v37  ;;  %v7823_v37 = vld [vmem:[%s11215_s1 + $0x11a0] ss:$8 sps:$4 sm:$0xff]  }
 0x133   :  { %5298 = vmatpush1.bf16.msra.mxu1 %v7736_v56  ;;  %v7828_v56 = vld [vmem:[%s11215_s1 + $0x5b4] ss:$8 sps:$4 sm:$0xff]  }
 0x134   :  { %5790 = vmatpush1.bf16.msra.mxu0 %v7739_v23  ;;  %5299 = vmatprep.subr.bf16.mxu1 %v7744_v43  ;;  %v7831_v23 = vld [vmem:[%s11215_s1 + $0x11b4] ss:$8 sps:$4 sm:$0xff]   ;;  %v7826_v43 = vld [vmem:[%s11215_s1 + $0x5b0] ss:$8 sps:$4 sm:$0xff]  }
 0x135   :  { %5791 = vmatprep.subr.bf16.mxu0 %v7747_v44  ;;  %v7829_v44 = vld [vmem:[%s11215_s1 + $0x11b0] ss:$8 sps:$4 sm:$0xff]  }
 0x137   :  { %5300 = vmatpush1.bf16.msra.mxu1 %v7742_v45  ;;  %v7834_v45 = vld [vmem:[%s11215_s1 + $0x5c4] ss:$8 sps:$4 sm:$0xff]  }
 0x138   :  { %5792 = vmatpush1.bf16.msra.mxu0 %v7745_v46  ;;  %5301 = vmatprep.subr.bf16.mxu1 %v7750_v17  ;;  %v7837_v46 = vld [vmem:[%s11215_s1 + $0x11c4] ss:$8 sps:$4 sm:$0xff]   ;;  %v7832_v17 = vld [vmem:[%s11215_s1 + $0x5c0] ss:$8 sps:$4 sm:$0xff]  }
 0x139   :  { %5793 = vmatprep.subr.bf16.mxu0 %v7753_v35  ;;  %v7835_v35 = vld [vmem:[%s11215_s1 + $0x11c0] ss:$8 sps:$4 sm:$0xff]  }
 0x13b   :  { %5302 = vmatpush1.bf16.msra.mxu1 %v7748_v47  ;;  %v7840_v47 = vld [vmem:[%s11215_s1 + $0x5d4] ss:$8 sps:$4 sm:$0xff]  }
 0x13c   :  { %5794 = vmatpush1.bf16.msra.mxu0 %v7751_v48  ;;  %5303 = vmatprep.subr.bf16.mxu1 %v7756_v50  ;;  %v7843_v48 = vld [vmem:[%s11215_s1 + $0x11d4] ss:$8 sps:$4 sm:$0xff]   ;;  %v7838_v50 = vld [vmem:[%s11215_s1 + $0x5d0] ss:$8 sps:$4 sm:$0xff]  }
 0x13d   :  { %5795 = vmatprep.subr.bf16.mxu0 %v7759_v51  ;;  %v7841_v51 = vld [vmem:[%s11215_s1 + $0x11d0] ss:$8 sps:$4 sm:$0xff]  }
 0x13f   :  { %5304 = vmatpush1.bf16.msra.mxu1 %v7754_v53  ;;  %v7846_v53 = vld [vmem:[%s11215_s1 + $0x5e4] ss:$8 sps:$4 sm:$0xff]  }
 0x140   :  { %5796 = vmatpush1.bf16.msra.mxu0 %v7757_v54  ;;  %5314 = vmatprep.subr.bf16.mxu1 %v7762_v39  ;;  %v7849_v54 = vld [vmem:[%s11215_s1 + $0x11e4] ss:$8 sps:$4 sm:$0xff]  }
 0x141   :  { %5806 = vmatprep.subr.bf16.mxu0 %v7765_v57  ;;  %v8482_v39 = vld [vmem:[%s11214_s0 + $0x8] sm:$0xff] }
 0x142   :  { %5306 = vmatmul.mubr.bf16.vlgmr.msra.gmra.mrb[0].mxu1 %v9607_v58  ;;  %v881_v57 = vcombine.high %v8482_v39, %v8482_v39  ;;  %v7924_v39 = vld [vmem:[%s11215_s1 + $0x6b4] ss:$8 sps:$4 sm:$0xff]  }
 0x143   :  { %5798 = vmatmul.mubr.bf16.vlgmr.msra.gmra.mrb[0].mxu0 %v9611_v59  ;;  %5315 = vmatpush1.bf16.msra.mxu1 %v7760_v60  ;;  %v8483_v60 = vld [vmem:[%s11214_s0 + $0x20] sm:$0xff] }
 0x144   :  { %5807 = vmatpush1.bf16.msra.mxu0 %v7763_v61  ;;  %5316 = vmatprep.subr.bf16.mxu1 %v7768_v40  ;;  %v1028_v61 = vcombine.high %v8483_v60, %v8483_v60  ;;  %v7844_v40 = vld [vmem:[%s11215_s1 + $0x5e0] ss:$8 sps:$4 sm:$0xff]   ;;  %v7922_v60 = vld [vmem:[%s11215_s1 + $0x6b0] ss:$8 sps:$4 sm:$0xff]  }
 0x145   :  { %5808 = vmatprep.subr.bf16.mxu0 %v7771_v41  ;;  %5346 = vmatprep.mubr.bf16.mxu1 %v928_v62  ;;  %v7847_v41 = vld [vmem:[%s11215_s1 + $0x11e0] ss:$8 sps:$4 sm:$0xff]   ;;  %v7852_v62 = vld [vmem:[%s11215_s1 + $0x5f4] ss:$8 sps:$4 sm:$0xff]  }
 0x146   :  { %5838 = vmatprep.mubr.bf16.mxu0 %v1075_v63  ;;  %v7855_v63 = vld [vmem:[%s11215_s1 + $0x11f4] ss:$8 sps:$4 sm:$0xff]  }
 0x147   :  { %5317 = vmatpush1.bf16.msra.mxu1 %v7766_v0  ;;  %v9806_v0 = vrot.slane %v881_v57, %v8679_v49  ;;  %v7927_v57 = vld [vmem:[%s11215_s1 + $0x12b4] ss:$8 sps:$4 sm:$0xff]  }
 0x148   :  { %5809 = vmatpush1.bf16.msra.mxu0 %v7769_v1  ;;  %5318 = vmatprep.subr.bf16.mxu1 %v7774_v55  ;;  %v9809_v1 = vrot.slane %v1028_v61, %v8679_v49  ;;  %v7850_v55 = vld [vmem:[%s11215_s1 + $0x5f0] ss:$8 sps:$4 sm:$0xff]  }
 0x149   :  { %5810 = vmatprep.subr.bf16.mxu0 %v7777_v38  ;;  %v7853_v38 = vld [vmem:[%s11215_s1 + $0x11f0] ss:$8 sps:$4 sm:$0xff]  }
 0x14a   :  { %v7925_v61 = vld [vmem:[%s11215_s1 + $0x12b0] ss:$8 sps:$4 sm:$0xff]  }
 0x14b   :  { %5319 = vmatpush1.bf16.msra.mxu1 %v7772_v2  ;;  %v7858_v2 = vld [vmem:[%s11215_s1 + $0x604] ss:$8 sps:$4 sm:$0xff]  }
 0x14c   :  { %5811 = vmatpush1.bf16.msra.mxu0 %v7775_v3  ;;  %5320 = vmatprep.subr.bf16.mxu1 %v7780_v4  ;;  %v7861_v3 = vld [vmem:[%s11215_s1 + $0x1204] ss:$8 sps:$4 sm:$0xff]   ;;  %v897_v4 = vcombine.high %v9806_v0, %v9806_v0 }
 0x14d   :  { %5812 = vmatprep.subr.bf16.mxu0 %v7783_v5  ;;  %v1044_v5 = vcombine.high %v9809_v1, %v9809_v1 }
 0x14f   :  { %5321 = vmatpush1.bf16.msra.mxu1 %v7778_v6  ;;  %v926_v6 = vcombine.high %v9607_v58, %v9607_v58  ;;  %v7867_v58 = vld [vmem:[%s11215_s1 + $0x1214] ss:$8 sps:$4 sm:$0xff]  }
 0x150   :  { %5813 = vmatpush1.bf16.msra.mxu0 %v7781_v7  ;;  %5322 = vmatprep.subr.bf16.mxu1 %v7786_v8  ;;  %v1073_v7 = vcombine.high %v9611_v59, %v9611_v59  ;;  %v7856_v8 = vld [vmem:[%s11215_s1 + $0x600] ss:$8 sps:$4 sm:$0xff]   ;;  %v9844_v59 = vrot.slane %v897_v4, %v8679_v49  ;;  %v7942_v4 = vld [vmem:[%s11215_s1 + $0x6e4] ss:$8 sps:$4 sm:$0xff]  }
 0x151   :  { %5814 = vmatprep.subr.bf16.mxu0 %v7789_v9  ;;  %v7859_v9 = vld [vmem:[%s11215_s1 + $0x1200] ss:$8 sps:$4 sm:$0xff]  }
 0x153   :  { %5323 = vmatpush1.bf16.msra.mxu1 %v7784_v10  ;;  %v7864_v10 = vld [vmem:[%s11215_s1 + $0x614] ss:$8 sps:$4 sm:$0xff]  }
 0x154   :  { %5815 = vmatpush1.bf16.msra.mxu0 %v7787_v11  ;;  %5324 = vmatprep.subr.bf16.mxu1 %v7792_v12  ;;  %v9847_v11 = vrot.slane %v1044_v5, %v8679_v49  ;;  %v7862_v12 = vld [vmem:[%s11215_s1 + $0x610] ss:$8 sps:$4 sm:$0xff]   ;;  %v7945_v5 = vld [vmem:[%s11215_s1 + $0x12e4] ss:$8 sps:$4 sm:$0xff]  }
 0x155   :  { %5816 = vmatprep.subr.bf16.mxu0 %v7795_v13  ;;  %v7865_v13 = vld [vmem:[%s11215_s1 + $0x1210] ss:$8 sps:$4 sm:$0xff]  }
 0x157   :  { %5325 = vmatpush1.bf16.msra.mxu1 %v7790_v14  ;;  %v7870_v14 = vld [vmem:[%s11215_s1 + $0x624] ss:$8 sps:$4 sm:$0xff]  }
 0x158   :  { %5817 = vmatpush1.bf16.msra.mxu0 %v7793_v15  ;;  %5326 = vmatprep.subr.bf16.mxu1 %v7798_v18  ;;  %v7873_v15 = vld [vmem:[%s11215_s1 + $0x1224] ss:$8 sps:$4 sm:$0xff]   ;;  %v7868_v18 = vld [vmem:[%s11215_s1 + $0x620] ss:$8 sps:$4 sm:$0xff]  }
 0x159   :  { %5818 = vmatprep.subr.bf16.mxu0 %v7801_v19  ;;  %v7871_v19 = vld [vmem:[%s11215_s1 + $0x1220] ss:$8 sps:$4 sm:$0xff]  }
 0x15b   :  { %5327 = vmatpush1.bf16.msra.mxu1 %v7796_v20  ;;  %v7876_v20 = vld [vmem:[%s11215_s1 + $0x634] ss:$8 sps:$4 sm:$0xff]  }
 0x15c   :  { %5819 = vmatpush1.bf16.msra.mxu0 %v7799_v21  ;;  %5328 = vmatprep.subr.bf16.mxu1 %v7804_v22  ;;  %v7879_v21 = vld [vmem:[%s11215_s1 + $0x1234] ss:$8 sps:$4 sm:$0xff]   ;;  %v7874_v22 = vld [vmem:[%s11215_s1 + $0x630] ss:$8 sps:$4 sm:$0xff]  }
 0x15d   :  { %5820 = vmatprep.subr.bf16.mxu0 %v7807_v52  ;;  %v7877_v52 = vld [vmem:[%s11215_s1 + $0x1230] ss:$8 sps:$4 sm:$0xff]  }
 0x15f   :  { %5329 = vmatpush1.bf16.msra.mxu1 %v7802_v24  ;;  %v7882_v24 = vld [vmem:[%s11215_s1 + $0x644] ss:$8 sps:$4 sm:$0xff]  }
 0x160   :  { %5821 = vmatpush1.bf16.msra.mxu0 %v7805_v25  ;;  %5330 = vmatprep.subr.bf16.mxu1 %v7810_v26  ;;  %v7885_v25 = vld [vmem:[%s11215_s1 + $0x1244] ss:$8 sps:$4 sm:$0xff]   ;;  %v7880_v26 = vld [vmem:[%s11215_s1 + $0x640] ss:$8 sps:$4 sm:$0xff]  }
 0x161   :  { %5822 = vmatprep.subr.bf16.mxu0 %v7813_v27  ;;  %v7883_v27 = vld [vmem:[%s11215_s1 + $0x1240] ss:$8 sps:$4 sm:$0xff]  }
 0x163   :  { %5331 = vmatpush1.bf16.msra.mxu1 %v7808_v28  ;;  %v7888_v28 = vld [vmem:[%s11215_s1 + $0x654] ss:$8 sps:$4 sm:$0xff]  }
 0x164   :  { %5823 = vmatpush1.bf16.msra.mxu0 %v7811_v29  ;;  %5332 = vmatprep.subr.bf16.mxu1 %v7816_v30  ;;  %v7891_v29 = vld [vmem:[%s11215_s1 + $0x1254] ss:$8 sps:$4 sm:$0xff]   ;;  %v7886_v30 = vld [vmem:[%s11215_s1 + $0x650] ss:$8 sps:$4 sm:$0xff]  }
 0x165   :  { %5824 = vmatprep.subr.bf16.mxu0 %v7819_v31  ;;  %v7889_v31 = vld [vmem:[%s11215_s1 + $0x1250] ss:$8 sps:$4 sm:$0xff]  }
 0x167   :  { %5333 = vmatpush1.bf16.msra.mxu1 %v7814_v32  ;;  %v7894_v32 = vld [vmem:[%s11215_s1 + $0x664] ss:$8 sps:$4 sm:$0xff]  }
 0x168   :  { %5825 = vmatpush1.bf16.msra.mxu0 %v7817_v33  ;;  %5334 = vmatprep.subr.bf16.mxu1 %v7822_v34  ;;  %v7897_v33 = vld [vmem:[%s11215_s1 + $0x1264] ss:$8 sps:$4 sm:$0xff]   ;;  %v7892_v34 = vld [vmem:[%s11215_s1 + $0x660] ss:$8 sps:$4 sm:$0xff]  }
 0x169   :  { %5826 = vmatprep.subr.bf16.mxu0 %v7825_v16  ;;  %v7895_v16 = vld [vmem:[%s11215_s1 + $0x1260] ss:$8 sps:$4 sm:$0xff]  }
 0x16b   :  { %5335 = vmatpush1.bf16.msra.mxu1 %v7820_v36  ;;  %v7900_v36 = vld [vmem:[%s11215_s1 + $0x674] ss:$8 sps:$4 sm:$0xff]  }
 0x16c   :  { %5827 = vmatpush1.bf16.msra.mxu0 %v7823_v37  ;;  %5336 = vmatprep.subr.bf16.mxu1 %v7828_v56  ;;  %v7903_v37 = vld [vmem:[%s11215_s1 + $0x1274] ss:$8 sps:$4 sm:$0xff]   ;;  %v7898_v56 = vld [vmem:[%s11215_s1 + $0x670] ss:$8 sps:$4 sm:$0xff]  }
 0x16d   :  { %5828 = vmatprep.subr.bf16.mxu0 %v7831_v23  ;;  %v7901_v23 = vld [vmem:[%s11215_s1 + $0x1270] ss:$8 sps:$4 sm:$0xff]  }
 0x16f   :  { %5337 = vmatpush1.bf16.msra.mxu1 %v7826_v43  ;;  %v7906_v43 = vld [vmem:[%s11215_s1 + $0x684] ss:$8 sps:$4 sm:$0xff]  }
 0x170   :  { %5829 = vmatpush1.bf16.msra.mxu0 %v7829_v44  ;;  %5338 = vmatprep.subr.bf16.mxu1 %v7834_v45  ;;  %v7909_v44 = vld [vmem:[%s11215_s1 + $0x1284] ss:$8 sps:$4 sm:$0xff]   ;;  %v7904_v45 = vld [vmem:[%s11215_s1 + $0x680] ss:$8 sps:$4 sm:$0xff]  }
 0x171   :  { %5830 = vmatprep.subr.bf16.mxu0 %v7837_v46  ;;  %v7907_v46 = vld [vmem:[%s11215_s1 + $0x1280] ss:$8 sps:$4 sm:$0xff]  }
 0x173   :  { %5339 = vmatpush1.bf16.msra.mxu1 %v7832_v17  ;;  %v7912_v17 = vld [vmem:[%s11215_s1 + $0x694] ss:$8 sps:$4 sm:$0xff]  }
 0x174   :  { %5831 = vmatpush1.bf16.msra.mxu0 %v7835_v35  ;;  %5340 = vmatprep.subr.bf16.mxu1 %v7840_v47  ;;  %v7915_v35 = vld [vmem:[%s11215_s1 + $0x1294] ss:$8 sps:$4 sm:$0xff]   ;;  %v7910_v47 = vld [vmem:[%s11215_s1 + $0x690] ss:$8 sps:$4 sm:$0xff]  }
 0x175   :  { %5832 = vmatprep.subr.bf16.mxu0 %v7843_v48  ;;  %v7913_v48 = vld [vmem:[%s11215_s1 + $0x1290] ss:$8 sps:$4 sm:$0xff]  }
 0x177   :  { %5341 = vmatpush1.bf16.msra.mxu1 %v7838_v50  ;;  %v7918_v50 = vld [vmem:[%s11215_s1 + $0x6a4] ss:$8 sps:$4 sm:$0xff]  }
 0x178   :  { %5833 = vmatpush1.bf16.msra.mxu0 %v7841_v51  ;;  %5342 = vmatprep.subr.bf16.mxu1 %v7846_v53  ;;  %v7921_v51 = vld [vmem:[%s11215_s1 + $0x12a4] ss:$8 sps:$4 sm:$0xff]   ;;  %v7916_v53 = vld [vmem:[%s11215_s1 + $0x6a0] ss:$8 sps:$4 sm:$0xff]  }
 0x179   :  { %5834 = vmatprep.subr.bf16.mxu0 %v7849_v54  ;;  %v7919_v54 = vld [vmem:[%s11215_s1 + $0x12a0] ss:$8 sps:$4 sm:$0xff]  }
 0x17b   :  { %5343 = vmatpush1.bf16.msra.mxu1 %v7844_v40  ;;  %v7930_v40 = vld [vmem:[%s11215_s1 + $0x6c4] ss:$8 sps:$4 sm:$0xff]  }
 0x17c   :  { %5835 = vmatpush1.bf16.msra.mxu0 %v7847_v41  ;;  %5344 = vmatprep.subr.bf16.mxu1 %v7852_v62  ;;  %v7933_v41 = vld [vmem:[%s11215_s1 + $0x12c4] ss:$8 sps:$4 sm:$0xff]   ;;  %v7928_v62 = vld [vmem:[%s11215_s1 + $0x6c0] ss:$8 sps:$4 sm:$0xff]  }
 0x17d   :  { %5836 = vmatprep.subr.bf16.mxu0 %v7855_v63  ;;  %v7931_v63 = vld [vmem:[%s11215_s1 + $0x12c0] ss:$8 sps:$4 sm:$0xff]  }
 0x17f   :  { %5345 = vmatpush1.bf16.msra.mxu1 %v7850_v55  ;;  %v7936_v55 = vld [vmem:[%s11215_s1 + $0x6d4] ss:$8 sps:$4 sm:$0xff]  }
 0x180   :  { %5837 = vmatpush1.bf16.msra.mxu0 %v7853_v38  ;;  %5355 = vmatprep.subr.bf16.mxu1 %v7858_v2  ;;  %v7939_v38 = vld [vmem:[%s11215_s1 + $0x12d4] ss:$8 sps:$4 sm:$0xff]   ;;  %v7934_v2 = vld [vmem:[%s11215_s1 + $0x6d0] ss:$8 sps:$4 sm:$0xff]  }
 0x181   :  { %5847 = vmatprep.subr.bf16.mxu0 %v7861_v3  ;;  %v7937_v3 = vld [vmem:[%s11215_s1 + $0x12d0] ss:$8 sps:$4 sm:$0xff]  }
 0x182   :  { %5347 = vmatmul.mubr.bf16.vlgmr.msra.gmra.mrb[0].mxu1 %v926_v6  ;;  %v7940_v6 = vld [vmem:[%s11215_s1 + $0x6e0] ss:$8 sps:$4 sm:$0xff]  }
 0x183   :  { %5839 = vmatmul.mubr.bf16.vlgmr.msra.gmra.mrb[0].mxu0 %v1073_v7  ;;  %5356 = vmatpush1.bf16.msra.mxu1 %v7856_v8  ;;  %v7943_v7 = vld [vmem:[%s11215_s1 + $0x12e0] ss:$8 sps:$4 sm:$0xff]   ;;  %v7948_v8 = vld [vmem:[%s11215_s1 + $0x6f4] ss:$8 sps:$4 sm:$0xff]  }
 0x184   :  { %5848 = vmatpush1.bf16.msra.mxu0 %v7859_v9  ;;  %5357 = vmatprep.subr.bf16.mxu1 %v7864_v10  ;;  %v7951_v9 = vld [vmem:[%s11215_s1 + $0x12f4] ss:$8 sps:$4 sm:$0xff]   ;;  %v7946_v10 = vld [vmem:[%s11215_s1 + $0x6f0] ss:$8 sps:$4 sm:$0xff]  }
 0x185   :  { %5849 = vmatprep.subr.bf16.mxu0 %v7867_v58  ;;  %5387 = vmatprep.mubr.bf16.mxu1 %v9844_v59  ;;  %v7949_v58 = vld [vmem:[%s11215_s1 + $0x12f0] ss:$8 sps:$4 sm:$0xff]  }
 0x186   :  { %5879 = vmatprep.mubr.bf16.mxu0 %v9847_v11 }
 0x187   :  { %5358 = vmatpush1.bf16.msra.mxu1 %v7862_v12  ;;  %v7955_v12 = vld [vmem:[%s11215_s1 + $0x704] ss:$8 sps:$4 sm:$0xff]  }
 0x188   :  { %5850 = vmatpush1.bf16.msra.mxu0 %v7865_v13  ;;  %5359 = vmatprep.subr.bf16.mxu1 %v7870_v14  ;;  %v7959_v13 = vld [vmem:[%s11215_s1 + $0x1304] ss:$8 sps:$4 sm:$0xff]   ;;  %v10033_v14 = vrot.slane %v9806_v0, %v8679_v49  ;;  %v7962_v0 = vld [vmem:[%s11215_s1 + $0x714] ss:$8 sps:$4 sm:$0xff]  }
 0x189   :  { %5851 = vmatprep.subr.bf16.mxu0 %v7873_v15  ;;  %v10037_v15 = vrot.slane %v9809_v1, %v8679_v49  ;;  %v7965_v1 = vld [vmem:[%s11215_s1 + $0x1314] ss:$8 sps:$4 sm:$0xff]  }
 0x18b   :  { %5360 = vmatpush1.bf16.msra.mxu1 %v7868_v18  ;;  %v7953_v18 = vld [vmem:[%s11215_s1 + $0x700] ss:$8 sps:$4 sm:$0xff]  }
 0x18c   :  { %5852 = vmatpush1.bf16.msra.mxu0 %v7871_v19  ;;  %5361 = vmatprep.subr.bf16.mxu1 %v7876_v20  ;;  %v7957_v19 = vld [vmem:[%s11215_s1 + $0x1300] ss:$8 sps:$4 sm:$0xff]   ;;  %v929_v20 = vcombine.high %v9844_v59, %v9844_v59  ;;  %v7968_v59 = vld [vmem:[%s11215_s1 + $0x724] ss:$8 sps:$4 sm:$0xff]  }
 0x18d   :  { %5853 = vmatprep.subr.bf16.mxu0 %v7879_v21  ;;  %v1076_v21 = vcombine.high %v9847_v11, %v9847_v11  ;;  %v7971_v11 = vld [vmem:[%s11215_s1 + $0x1324] ss:$8 sps:$4 sm:$0xff]  }
 0x18f   :  { %5362 = vmatpush1.bf16.msra.mxu1 %v7874_v22  ;;  %v7960_v22 = vld [vmem:[%s11215_s1 + $0x710] ss:$8 sps:$4 sm:$0xff]  }
 0x190   :  { %5854 = vmatpush1.bf16.msra.mxu0 %v7877_v52  ;;  %5363 = vmatprep.subr.bf16.mxu1 %v7882_v24  ;;  %v7963_v52 = vld [vmem:[%s11215_s1 + $0x1310] ss:$8 sps:$4 sm:$0xff]   ;;  %v7966_v24 = vld [vmem:[%s11215_s1 + $0x720] ss:$8 sps:$4 sm:$0xff]  }
 0x191   :  { %5855 = vmatprep.subr.bf16.mxu0 %v7885_v25  ;;  %v7969_v25 = vld [vmem:[%s11215_s1 + $0x1320] ss:$8 sps:$4 sm:$0xff]  }
 0x193   :  { %5364 = vmatpush1.bf16.msra.mxu1 %v7880_v26  ;;  %v7974_v26 = vld [vmem:[%s11215_s1 + $0x734] ss:$8 sps:$4 sm:$0xff]  }
 0x194   :  { %5856 = vmatpush1.bf16.msra.mxu0 %v7883_v27  ;;  %5365 = vmatprep.subr.bf16.mxu1 %v7888_v28  ;;  %v7977_v27 = vld [vmem:[%s11215_s1 + $0x1334] ss:$8 sps:$4 sm:$0xff]   ;;  %v7972_v28 = vld [vmem:[%s11215_s1 + $0x730] ss:$8 sps:$4 sm:$0xff]  }
 0x195   :  { %5857 = vmatprep.subr.bf16.mxu0 %v7891_v29  ;;  %v7975_v29 = vld [vmem:[%s11215_s1 + $0x1330] ss:$8 sps:$4 sm:$0xff]  }
 0x197   :  { %5366 = vmatpush1.bf16.msra.mxu1 %v7886_v30  ;;  %v7980_v30 = vld [vmem:[%s11215_s1 + $0x744] ss:$8 sps:$4 sm:$0xff]  }
 0x198   :  { %5858 = vmatpush1.bf16.msra.mxu0 %v7889_v31  ;;  %5367 = vmatprep.subr.bf16.mxu1 %v7894_v32  ;;  %v7983_v31 = vld [vmem:[%s11215_s1 + $0x1344] ss:$8 sps:$4 sm:$0xff]   ;;  %v7978_v32 = vld [vmem:[%s11215_s1 + $0x740] ss:$8 sps:$4 sm:$0xff]  }
 0x199   :  { %5859 = vmatprep.subr.bf16.mxu0 %v7897_v33  ;;  %v7981_v33 = vld [vmem:[%s11215_s1 + $0x1340] ss:$8 sps:$4 sm:$0xff]  }
 0x19b   :  { %5368 = vmatpush1.bf16.msra.mxu1 %v7892_v34  ;;  %v7986_v34 = vld [vmem:[%s11215_s1 + $0x754] ss:$8 sps:$4 sm:$0xff]  }
 0x19c   :  { %5860 = vmatpush1.bf16.msra.mxu0 %v7895_v16  ;;  %5369 = vmatprep.subr.bf16.mxu1 %v7900_v36  ;;  %v7989_v16 = vld [vmem:[%s11215_s1 + $0x1354] ss:$8 sps:$4 sm:$0xff]   ;;  %v7984_v36 = vld [vmem:[%s11215_s1 + $0x750] ss:$8 sps:$4 sm:$0xff]  }
 0x19d   :  { %5861 = vmatprep.subr.bf16.mxu0 %v7903_v37  ;;  %v7987_v37 = vld [vmem:[%s11215_s1 + $0x1350] ss:$8 sps:$4 sm:$0xff]  }
 0x19f   :  { %5370 = vmatpush1.bf16.msra.mxu1 %v7898_v56  ;;  %v7992_v56 = vld [vmem:[%s11215_s1 + $0x764] ss:$8 sps:$4 sm:$0xff]  }
 0x1a0   :  { %5862 = vmatpush1.bf16.msra.mxu0 %v7901_v23  ;;  %5371 = vmatprep.subr.bf16.mxu1 %v7906_v43  ;;  %v7995_v23 = vld [vmem:[%s11215_s1 + $0x1364] ss:$8 sps:$4 sm:$0xff]   ;;  %v7990_v43 = vld [vmem:[%s11215_s1 + $0x760] ss:$8 sps:$4 sm:$0xff]  }
 0x1a1   :  { %5863 = vmatprep.subr.bf16.mxu0 %v7909_v44  ;;  %v7993_v44 = vld [vmem:[%s11215_s1 + $0x1360] ss:$8 sps:$4 sm:$0xff]  }
 0x1a3   :  { %5372 = vmatpush1.bf16.msra.mxu1 %v7904_v45  ;;  %v7998_v45 = vld [vmem:[%s11215_s1 + $0x774] ss:$8 sps:$4 sm:$0xff]  }
 0x1a4   :  { %5864 = vmatpush1.bf16.msra.mxu0 %v7907_v46  ;;  %5373 = vmatprep.subr.bf16.mxu1 %v7912_v17  ;;  %v8001_v46 = vld [vmem:[%s11215_s1 + $0x1374] ss:$8 sps:$4 sm:$0xff]  }
 0x1a5   :  { %5865 = vmatprep.subr.bf16.mxu0 %v7915_v35 }
 0x1a7   :  { %5374 = vmatpush1.bf16.msra.mxu1 %v7910_v47 }
 0x1a8   :  { %5866 = vmatpush1.bf16.msra.mxu0 %v7913_v48  ;;  %5375 = vmatprep.subr.bf16.mxu1 %v7918_v50 }
 0x1a9   :  { %5867 = vmatprep.subr.bf16.mxu0 %v7921_v51 }
 0x1ab   :  { %5376 = vmatpush1.bf16.msra.mxu1 %v7916_v53 }
 0x1ac   :  { %5868 = vmatpush1.bf16.msra.mxu0 %v7919_v54  ;;  %5377 = vmatprep.subr.bf16.mxu1 %v7924_v39 }
 0x1ad   :  { %5869 = vmatprep.subr.bf16.mxu0 %v7927_v57 }
 0x1af   :  { %5378 = vmatpush1.bf16.msra.mxu1 %v7922_v60 }
 0x1b0   :  { %5870 = vmatpush1.bf16.msra.mxu0 %v7925_v61  ;;  %5379 = vmatprep.subr.bf16.mxu1 %v7930_v40 }
 0x1b1   :  { %5871 = vmatprep.subr.bf16.mxu0 %v7933_v41 }
 0x1b3   :  { %5380 = vmatpush1.bf16.msra.mxu1 %v7928_v62 }
 0x1b4   :  { %5872 = vmatpush1.bf16.msra.mxu0 %v7931_v63  ;;  %5381 = vmatprep.subr.bf16.mxu1 %v7936_v55 }
 0x1b5   :  { %5873 = vmatprep.subr.bf16.mxu0 %v7939_v38 }
 0x1b7   :  { %5382 = vmatpush1.bf16.msra.mxu1 %v7934_v2 }
 0x1b8   :  { %5874 = vmatpush1.bf16.msra.mxu0 %v7937_v3  ;;  %5383 = vmatprep.subr.bf16.mxu1 %v7942_v4 }
 0x1b9   :  { %5875 = vmatprep.subr.bf16.mxu0 %v7945_v5 }
 0x1bb   :  { %5384 = vmatpush1.bf16.msra.mxu1 %v7940_v6 }
 0x1bc   :  { %5876 = vmatpush1.bf16.msra.mxu0 %v7943_v7  ;;  %5385 = vmatprep.subr.bf16.mxu1 %v7948_v8 }
 0x1bd   :  { %5877 = vmatprep.subr.bf16.mxu0 %v7951_v9 }
 0x1bf   :  { %5386 = vmatpush1.bf16.msra.mxu1 %v7946_v10 }
 0x1c0   :  { %5878 = vmatpush1.bf16.msra.mxu0 %v7949_v58  ;;  %5396 = vmatprep.subr.bf16.mxu1 %v7955_v12 }
 0x1c1   :  { %5888 = vmatprep.subr.bf16.mxu0 %v7959_v13 }
 0x1c2   :  { %5388 = vmatmul.mubr.bf16.vlgmr.msra.gmra.mrb[0].mxu1 %v10033_v14 }
 0x1c3   :  { %5880 = vmatmul.mubr.bf16.vlgmr.msra.gmra.mrb[0].mxu0 %v10037_v15  ;;  %5397 = vmatpush1.bf16.msra.mxu1 %v7953_v18 }
 0x1c4   :  { %5889 = vmatpush1.bf16.msra.mxu0 %v7957_v19  ;;  %5398 = vmatprep.subr.bf16.mxu1 %v7962_v0 }
 0x1c5   :  { %5890 = vmatprep.subr.bf16.mxu0 %v7965_v1  ;;  %5428 = vmatprep.mubr.bf16.mxu1 %v929_v20 }
 0x1c6   :  { %5920 = vmatprep.mubr.bf16.mxu0 %v1076_v21 }
 0x1c7   :  { %5399 = vmatpush1.bf16.msra.mxu1 %v7960_v22 }
 0x1c8   :  { %5891 = vmatpush1.bf16.msra.mxu0 %v7963_v52  ;;  %5400 = vmatprep.subr.bf16.mxu1 %v7968_v59 }
 0x1c9   :  { %5892 = vmatprep.subr.bf16.mxu0 %v7971_v11 }
 0x1cb   :  { %5401 = vmatpush1.bf16.msra.mxu1 %v7966_v24 }
 0x1cc   :  { %5893 = vmatpush1.bf16.msra.mxu0 %v7969_v25  ;;  %5402 = vmatprep.subr.bf16.mxu1 %v7974_v26 }
 0x1cd   :  { %5894 = vmatprep.subr.bf16.mxu0 %v7977_v27 }
 0x1cf   :  { %5403 = vmatpush1.bf16.msra.mxu1 %v7972_v28 }
 0x1d0   :  { %5895 = vmatpush1.bf16.msra.mxu0 %v7975_v29  ;;  %5404 = vmatprep.subr.bf16.mxu1 %v7980_v30 }
 0x1d1   :  { %5896 = vmatprep.subr.bf16.mxu0 %v7983_v31 }
 0x1d3   :  { %5405 = vmatpush1.bf16.msra.mxu1 %v7978_v32 }
 0x1d4   :  { %5897 = vmatpush1.bf16.msra.mxu0 %v7981_v33  ;;  %5406 = vmatprep.subr.bf16.mxu1 %v7986_v34 }
 0x1d5   :  { %5898 = vmatprep.subr.bf16.mxu0 %v7989_v16 }
 0x1d7   :  { %5407 = vmatpush1.bf16.msra.mxu1 %v7984_v36 }
 0x1d8   :  { %5899 = vmatpush1.bf16.msra.mxu0 %v7987_v37  ;;  %5408 = vmatprep.subr.bf16.mxu1 %v7992_v56 }
 0x1d9   :  { %5900 = vmatprep.subr.bf16.mxu0 %v7995_v23 }
 0x1da   :  { %10 = vsyncpa [#allocation3], 0  ;;  %v7996_v17 = vld [vmem:[%s11215_s1 + $0x770] ss:$8 sps:$4 sm:$0xff]   ;;  %v8004_v47 = vld [vmem:[%s11215_s1 + $0x784] ss:$8 sps:$4 sm:$0xff]   ;;  %v927_v26 = vcombine.high %v10033_v14, %v10033_v14  ;;  %v1074_v27 = vcombine.high %v10037_v15, %v10037_v15 }
 0x1db   :  { %5409 = vmatpush1.bf16.msra.mxu1 %v7990_v43  ;;  %v7999_v35 = vld [vmem:[%s11215_s1 + $0x1370] ss:$8 sps:$4 sm:$0xff]   ;;  %v8007_v48 = vld [vmem:[%s11215_s1 + $0x1384] ss:$8 sps:$4 sm:$0xff]   ;;  %v8002_v50 = vld [vmem:[%s11215_s1 + $0x780] ss:$8 sps:$4 sm:$0xff]  }
 0x1dc   :  { %5901 = vmatpush1.bf16.msra.mxu0 %v7993_v44  ;;  %5410 = vmatprep.subr.bf16.mxu1 %v7998_v45  ;;  %v8005_v51 = vld [vmem:[%s11215_s1 + $0x1380] ss:$8 sps:$4 sm:$0xff]   ;;  %v8010_v53 = vld [vmem:[%s11215_s1 + $0x794] ss:$8 sps:$4 sm:$0xff]   ;;  %v8008_v39 = vld [vmem:[%s11215_s1 + $0x790] ss:$8 sps:$4 sm:$0xff]  }
 0x1dd   :  { %5902 = vmatprep.subr.bf16.mxu0 %v8001_v46  ;;  %v8013_v54 = vld [vmem:[%s11215_s1 + $0x1394] ss:$8 sps:$4 sm:$0xff]   ;;  %v8011_v57 = vld [vmem:[%s11215_s1 + $0x1390] ss:$8 sps:$4 sm:$0xff]   ;;  %v8016_v60 = vld [vmem:[%s11215_s1 + $0x7a4] ss:$8 sps:$4 sm:$0xff]  }
 0x1de   :  { %v8019_v61 = vld [vmem:[%s11215_s1 + $0x13a4] ss:$8 sps:$4 sm:$0xff]   ;;  %v8014_v40 = vld [vmem:[%s11215_s1 + $0x7a0] ss:$8 sps:$4 sm:$0xff]   ;;  %v8022_v62 = vld [vmem:[%s11215_s1 + $0x7b4] ss:$8 sps:$4 sm:$0xff]  }
 0x1df   :  { %5411 = vmatpush1.bf16.msra.mxu1 %v7996_v17  ;;  %v8017_v41 = vld [vmem:[%s11215_s1 + $0x13a0] ss:$8 sps:$4 sm:$0xff]   ;;  %v8025_v63 = vld [vmem:[%s11215_s1 + $0x13b4] ss:$8 sps:$4 sm:$0xff]   ;;  %v8020_v55 = vld [vmem:[%s11215_s1 + $0x7b0] ss:$8 sps:$4 sm:$0xff]  }
 0x1e0   :  { %5903 = vmatpush1.bf16.msra.mxu0 %v7999_v35  ;;  %5412 = vmatprep.subr.bf16.mxu1 %v8004_v47  ;;  %v8023_v38 = vld [vmem:[%s11215_s1 + $0x13b0] ss:$8 sps:$4 sm:$0xff]   ;;  %v8028_v2 = vld [vmem:[%s11215_s1 + $0x7c4] ss:$8 sps:$4 sm:$0xff]   ;;  %v8026_v4 = vld [vmem:[%s11215_s1 + $0x7c0] ss:$8 sps:$4 sm:$0xff]  }
 0x1e1   :  { %5904 = vmatprep.subr.bf16.mxu0 %v8007_v48  ;;  %v8031_v3 = vld [vmem:[%s11215_s1 + $0x13c4] ss:$8 sps:$4 sm:$0xff]   ;;  %v8029_v5 = vld [vmem:[%s11215_s1 + $0x13c0] ss:$8 sps:$4 sm:$0xff]   ;;  %v8034_v6 = vld [vmem:[%s11215_s1 + $0x7d4] ss:$8 sps:$4 sm:$0xff]  }
 0x1e2   :  { %v8037_v7 = vld [vmem:[%s11215_s1 + $0x13d4] ss:$8 sps:$4 sm:$0xff]   ;;  %v8032_v8 = vld [vmem:[%s11215_s1 + $0x7d0] ss:$8 sps:$4 sm:$0xff]   ;;  %v8040_v10 = vld [vmem:[%s11215_s1 + $0x7e4] ss:$8 sps:$4 sm:$0xff]  }
 0x1e3   :  { %5413 = vmatpush1.bf16.msra.mxu1 %v8002_v50  ;;  %v8035_v9 = vld [vmem:[%s11215_s1 + $0x13d0] ss:$8 sps:$4 sm:$0xff]   ;;  %v8043_v58 = vld [vmem:[%s11215_s1 + $0x13e4] ss:$8 sps:$4 sm:$0xff]   ;;  %v8038_v18 = vld [vmem:[%s11215_s1 + $0x7e0] ss:$8 sps:$4 sm:$0xff]  }
 0x1e4   :  { %5905 = vmatpush1.bf16.msra.mxu0 %v8005_v51  ;;  %5414 = vmatprep.subr.bf16.mxu1 %v8010_v53  ;;  %v10216_v12 = vld [vmem:[%s11214_s0 + $0x10] sm:$0xff]  ;;  %v10221_v13 = vld [vmem:[%s11214_s0 + $0x28] sm:$0xff]  ;;  %vm6326_vm1 = vcmask 74752  }
 0x1e5   :  { %5906 = vmatprep.subr.bf16.mxu0 %v8013_v54  ;;  %v8041_v19 = vld [vmem:[%s11215_s1 + $0x13e0] ss:$8 sps:$4 sm:$0xff]   ;;  %v8046_v0 = vld [vmem:[%s11215_s1 + $0x7f4] ss:$8 sps:$4 sm:$0xff]   ;;  %v10237_v20 = vrot.slane %v10216_v12, %v8679_v49  ;;  %v10241_v21 = vrot.slane %v10221_v13, %v8679_v49  ;;  %v8044_v22 = vld [vmem:[%s11215_s1 + $0x7f0] ss:$8 sps:$4 sm:$0xff]  }
 0x1e6   :  { %v8049_v1 = vld [vmem:[%s11215_s1 + $0x13f4] ss:$8 sps:$4 sm:$0xff]   ;;  %v8047_v52 = vld [vmem:[%s11215_s1 + $0x13f0] ss:$8 sps:$4 sm:$0xff]   ;;  %v8052_v59 = vld [vmem:[%s11215_s1 + $0x804] ss:$8 sps:$4 sm:$0xff]  }
 0x1e7   :  { %5415 = vmatpush1.bf16.msra.mxu1 %v8008_v39  ;;  %v8055_v11 = vld [vmem:[%s11215_s1 + $0x1404] ss:$8 sps:$4 sm:$0xff]   ;;  %v945_v24 = vcombine.high %v10237_v20, %v10237_v20  ;;  %v1092_v25 = vcombine.high %v10241_v21, %v10241_v21  ;;  %v8050_v28 = vld [vmem:[%s11215_s1 + $0x800] ss:$8 sps:$4 sm:$0xff]   ;;  %v8058_v30 = vld [vmem:[%s11215_s1 + $0x814] ss:$8 sps:$4 sm:$0xff]  }
 0x1e8   :  { %5907 = vmatpush1.bf16.msra.mxu0 %v8011_v57  ;;  %5416 = vmatprep.subr.bf16.mxu1 %v8016_v60  ;;  %v8053_v29 = vld [vmem:[%s11215_s1 + $0x1400] ss:$8 sps:$4 sm:$0xff]   ;;  %v8061_v14 = vld [vmem:[%s11215_s1 + $0x1414] ss:$8 sps:$4 sm:$0xff]   ;;  %v8056_v32 = vld [vmem:[%s11215_s1 + $0x810] ss:$8 sps:$4 sm:$0xff]  }
 0x1e9   :  { %5908 = vmatprep.subr.bf16.mxu0 %v8019_v61  ;;  %v10276_v15 = vrot.slane %v945_v24, %v8679_v49  ;;  %v10279_v31 = vrot.slane %v1092_v25, %v8679_v49  ;;  %v8059_v33 = vld [vmem:[%s11215_s1 + $0x1410] ss:$8 sps:$4 sm:$0xff]   ;;  %v8064_v34 = vld [vmem:[%s11215_s1 + $0x824] ss:$8 sps:$4 sm:$0xff]   ;;  %v8062_v36 = vld [vmem:[%s11215_s1 + $0x820] ss:$8 sps:$4 sm:$0xff]  }
 0x1ea   :  { %v8067_v16 = vld [vmem:[%s11215_s1 + $0x1424] ss:$8 sps:$4 sm:$0xff]   ;;  %v8065_v37 = vld [vmem:[%s11215_s1 + $0x1420] ss:$8 sps:$4 sm:$0xff]   ;;  %v8070_v56 = vld [vmem:[%s11215_s1 + $0x834] ss:$8 sps:$4 sm:$0xff]  }
 0x1eb   :  { %5417 = vmatpush1.bf16.msra.mxu1 %v8014_v40  ;;  %v8073_v23 = vld [vmem:[%s11215_s1 + $0x1434] ss:$8 sps:$4 sm:$0xff]   ;;  %v8068_v43 = vld [vmem:[%s11215_s1 + $0x830] ss:$8 sps:$4 sm:$0xff]   ;;  %v8076_v45 = vld [vmem:[%s11215_s1 + $0x844] ss:$8 sps:$4 sm:$0xff]  }
 0x1ec   :  { %5909 = vmatpush1.bf16.msra.mxu0 %v8017_v41  ;;  %5418 = vmatprep.subr.bf16.mxu1 %v8022_v62  ;;  %v8071_v44 = vld [vmem:[%s11215_s1 + $0x1430] ss:$8 sps:$4 sm:$0xff]   ;;  %v8079_v46 = vld [vmem:[%s11215_s1 + $0x1444] ss:$8 sps:$4 sm:$0xff]   ;;  %v8074_v17 = vld [vmem:[%s11215_s1 + $0x840] ss:$8 sps:$4 sm:$0xff]  }
 0x1ed   :  { %5910 = vmatprep.subr.bf16.mxu0 %v8025_v63  ;;  %v8077_v35 = vld [vmem:[%s11215_s1 + $0x1440] ss:$8 sps:$4 sm:$0xff]   ;;  %v8082_v47 = vld [vmem:[%s11215_s1 + $0x854] ss:$8 sps:$4 sm:$0xff]   ;;  %v8080_v50 = vld [vmem:[%s11215_s1 + $0x850] ss:$8 sps:$4 sm:$0xff]  }
 0x1ee   :  { %v8085_v48 = vld [vmem:[%s11215_s1 + $0x1454] ss:$8 sps:$4 sm:$0xff]   ;;  %v8083_v51 = vld [vmem:[%s11215_s1 + $0x1450] ss:$8 sps:$4 sm:$0xff]   ;;  %v8088_v53 = vld [vmem:[%s11215_s1 + $0x864] ss:$8 sps:$4 sm:$0xff]  }
 0x1ef   :  { %5419 = vmatpush1.bf16.msra.mxu1 %v8020_v55  ;;  %v8091_v54 = vld [vmem:[%s11215_s1 + $0x1464] ss:$8 sps:$4 sm:$0xff]   ;;  %v8086_v39 = vld [vmem:[%s11215_s1 + $0x860] ss:$8 sps:$4 sm:$0xff]   ;;  %v8094_v60 = vld [vmem:[%s11215_s1 + $0x874] ss:$8 sps:$4 sm:$0xff]  }
 0x1f0   :  { %5911 = vmatpush1.bf16.msra.mxu0 %v8023_v38  ;;  %5420 = vmatprep.subr.bf16.mxu1 %v8028_v2  ;;  %v8089_v57 = vld [vmem:[%s11215_s1 + $0x1460] ss:$8 sps:$4 sm:$0xff]   ;;  %v8097_v61 = vld [vmem:[%s11215_s1 + $0x1474] ss:$8 sps:$4 sm:$0xff]   ;;  %v8092_v40 = vld [vmem:[%s11215_s1 + $0x870] ss:$8 sps:$4 sm:$0xff]  }
 0x1f1   :  { %5912 = vmatprep.subr.bf16.mxu0 %v8031_v3  ;;  %v8095_v41 = vld [vmem:[%s11215_s1 + $0x1470] ss:$8 sps:$4 sm:$0xff]   ;;  %v8100_v62 = vld [vmem:[%s11215_s1 + $0x884] ss:$8 sps:$4 sm:$0xff]   ;;  %v8098_v55 = vld [vmem:[%s11215_s1 + $0x880] ss:$8 sps:$4 sm:$0xff]  }
 0x1f2   :  { %v8103_v63 = vld [vmem:[%s11215_s1 + $0x1484] ss:$8 sps:$4 sm:$0xff]   ;;  %v8101_v38 = vld [vmem:[%s11215_s1 + $0x1480] ss:$8 sps:$4 sm:$0xff]   ;;  %v8106_v2 = vld [vmem:[%s11215_s1 + $0x894] ss:$8 sps:$4 sm:$0xff]  }
 0x1f3   :  { %5421 = vmatpush1.bf16.msra.mxu1 %v8026_v4  ;;  %v8109_v3 = vld [vmem:[%s11215_s1 + $0x1494] ss:$8 sps:$4 sm:$0xff]   ;;  %v8104_v4 = vld [vmem:[%s11215_s1 + $0x890] ss:$8 sps:$4 sm:$0xff]  }
 0x1f4   :  { %5913 = vmatpush1.bf16.msra.mxu0 %v8029_v5  ;;  %5422 = vmatprep.subr.bf16.mxu1 %v8034_v6  ;;  %v8107_v5 = vld [vmem:[%s11215_s1 + $0x1490] ss:$8 sps:$4 sm:$0xff]   ;;  %v8112_v6 = vld [vmem:[%s11215_s1 + $0x8a4] ss:$8 sps:$4 sm:$0xff]  }
 0x1f5   :  { %5914 = vmatprep.subr.bf16.mxu0 %v8037_v7  ;;  %v8115_v7 = vld [vmem:[%s11215_s1 + $0x14a4] ss:$8 sps:$4 sm:$0xff]   ;;  %v8128_v24 = vld [vmem:[%s11215_s1 + $0x8d0] ss:$8 sps:$4 sm:$0xff]  }
 0x1f6   :  { %v8131_v25 = vld [vmem:[%s11215_s1 + $0x14d0] ss:$8 sps:$4 sm:$0xff]  }
 0x1f7   :  { %5423 = vmatpush1.bf16.msra.mxu1 %v8032_v8  ;;  %v8110_v8 = vld [vmem:[%s11215_s1 + $0x8a0] ss:$8 sps:$4 sm:$0xff]  }
 0x1f8   :  { %5915 = vmatpush1.bf16.msra.mxu0 %v8035_v9  ;;  %5424 = vmatprep.subr.bf16.mxu1 %v8040_v10  ;;  %v8113_v9 = vld [vmem:[%s11215_s1 + $0x14a0] ss:$8 sps:$4 sm:$0xff]   ;;  %v8118_v10 = vld [vmem:[%s11215_s1 + $0x8b4] ss:$8 sps:$4 sm:$0xff]  }
 0x1f9   :  { %5916 = vmatprep.subr.bf16.mxu0 %v8043_v58  ;;  %v8121_v58 = vld [vmem:[%s11215_s1 + $0x14b4] ss:$8 sps:$4 sm:$0xff]  }
 0x1fb   :  { %5425 = vmatpush1.bf16.msra.mxu1 %v8038_v18  ;;  %v8116_v18 = vld [vmem:[%s11215_s1 + $0x8b0] ss:$8 sps:$4 sm:$0xff]  }
 0x1fc   :  { %5917 = vmatpush1.bf16.msra.mxu0 %v8041_v19  ;;  %5426 = vmatprep.subr.bf16.mxu1 %v8046_v0  ;;  %v8119_v19 = vld [vmem:[%s11215_s1 + $0x14b0] ss:$8 sps:$4 sm:$0xff]   ;;  %v8124_v0 = vld [vmem:[%s11215_s1 + $0x8c4] ss:$8 sps:$4 sm:$0xff]  }
 0x1fd   :  { %5918 = vmatprep.subr.bf16.mxu0 %v8049_v1  ;;  %v8127_v1 = vld [vmem:[%s11215_s1 + $0x14c4] ss:$8 sps:$4 sm:$0xff]  }
 0x1ff   :  { %5427 = vmatpush1.bf16.msra.mxu1 %v8044_v22  ;;  %v8122_v22 = vld [vmem:[%s11215_s1 + $0x8c0] ss:$8 sps:$4 sm:$0xff]  }
 0x200   :  { %5919 = vmatpush1.bf16.msra.mxu0 %v8047_v52  ;;  %5437 = vmatprep.subr.bf16.mxu1 %v8052_v59  ;;  %v8125_v52 = vld [vmem:[%s11215_s1 + $0x14c0] ss:$8 sps:$4 sm:$0xff]   ;;  %v8130_v59 = vld [vmem:[%s11215_s1 + $0x8d4] ss:$8 sps:$4 sm:$0xff]  }
 0x201   :  { %5929 = vmatprep.subr.bf16.mxu0 %v8055_v11  ;;  %v8133_v11 = vld [vmem:[%s11215_s1 + $0x14d4] ss:$8 sps:$4 sm:$0xff]  }
 0x202   :  { %5429 = vmatmul.mubr.bf16.vlgmr.msra.gmra.mrb[0].mxu1 %v927_v26  ;;  %v8136_v26 = vld [vmem:[%s11215_s1 + $0x8e4] ss:$8 sps:$4 sm:$0xff]  }
 0x203   :  { %5921 = vmatmul.mubr.bf16.vlgmr.msra.gmra.mrb[0].mxu0 %v1074_v27  ;;  %5438 = vmatpush1.bf16.msra.mxu1 %v8050_v28  ;;  %v8139_v27 = vld [vmem:[%s11215_s1 + $0x14e4] ss:$8 sps:$4 sm:$0xff]   ;;  %v8134_v28 = vld [vmem:[%s11215_s1 + $0x8e0] ss:$8 sps:$4 sm:$0xff]  }
 0x204   :  { %5930 = vmatpush1.bf16.msra.mxu0 %v8053_v29  ;;  %5439 = vmatprep.subr.bf16.mxu1 %v8058_v30  ;;  %v8137_v29 = vld [vmem:[%s11215_s1 + $0x14e0] ss:$8 sps:$4 sm:$0xff]   ;;  %v8142_v30 = vld [vmem:[%s11215_s1 + $0x8f4] ss:$8 sps:$4 sm:$0xff]  }
 0x205   :  { %5931 = vmatprep.subr.bf16.mxu0 %v8061_v14  ;;  %5469 = vmatprep.mubr.bf16.mxu1 %v10276_v15  ;;  %v8145_v14 = vld [vmem:[%s11215_s1 + $0x14f4] ss:$8 sps:$4 sm:$0xff]  }
 0x206   :  { %5961 = vmatprep.mubr.bf16.mxu0 %v10279_v31 }
 0x207   :  { %5440 = vmatpush1.bf16.msra.mxu1 %v8056_v32  ;;  %v8140_v32 = vld [vmem:[%s11215_s1 + $0x8f0] ss:$8 sps:$4 sm:$0xff]  }
 0x208   :  { %5932 = vmatpush1.bf16.msra.mxu0 %v8059_v33  ;;  %5441 = vmatprep.subr.bf16.mxu1 %v8064_v34  ;;  %v8143_v33 = vld [vmem:[%s11215_s1 + $0x14f0] ss:$8 sps:$4 sm:$0xff]   ;;  %v8148_v34 = vld [vmem:[%s11215_s1 + $0x904] ss:$8 sps:$4 sm:$0xff]  }
 0x209   :  { %5933 = vmatprep.subr.bf16.mxu0 %v8067_v16  ;;  %v8151_v16 = vld [vmem:[%s11215_s1 + $0x1504] ss:$8 sps:$4 sm:$0xff]  }
 0x20b   :  { %5442 = vmatpush1.bf16.msra.mxu1 %v8062_v36  ;;  %v10465_v36 = vrot.slane %v10237_v20, %v8679_v49  ;;  %v8154_v20 = vld [vmem:[%s11215_s1 + $0x914] ss:$8 sps:$4 sm:$0xff]  }
 0x20c   :  { %5934 = vmatpush1.bf16.msra.mxu0 %v8065_v37  ;;  %5443 = vmatprep.subr.bf16.mxu1 %v8070_v56  ;;  %v10469_v37 = vrot.slane %v10241_v21, %v8679_v49  ;;  %v8146_v56 = vld [vmem:[%s11215_s1 + $0x900] ss:$8 sps:$4 sm:$0xff]   ;;  %v8157_v21 = vld [vmem:[%s11215_s1 + $0x1514] ss:$8 sps:$4 sm:$0xff]  }
 0x20d   :  { %5935 = vmatprep.subr.bf16.mxu0 %v8073_v23  ;;  %v8149_v23 = vld [vmem:[%s11215_s1 + $0x1500] ss:$8 sps:$4 sm:$0xff]  }
 0x20f   :  { %5444 = vmatpush1.bf16.msra.mxu1 %v8068_v43  ;;  %v977_v43 = vcombine.high %v10276_v15, %v10276_v15  ;;  %v8160_v15 = vld [vmem:[%s11215_s1 + $0x924] ss:$8 sps:$4 sm:$0xff]  }
 0x210   :  { %5936 = vmatpush1.bf16.msra.mxu0 %v8071_v44  ;;  %5445 = vmatprep.subr.bf16.mxu1 %v8076_v45  ;;  %v1124_v44 = vcombine.high %v10279_v31, %v10279_v31  ;;  %v8152_v45 = vld [vmem:[%s11215_s1 + $0x910] ss:$8 sps:$4 sm:$0xff]   ;;  %v8163_v31 = vld [vmem:[%s11215_s1 + $0x1524] ss:$8 sps:$4 sm:$0xff]  }
 0x211   :  { %5937 = vmatprep.subr.bf16.mxu0 %v8079_v46  ;;  %v8155_v46 = vld [vmem:[%s11215_s1 + $0x1510] ss:$8 sps:$4 sm:$0xff]  }
 0x213   :  { %5446 = vmatpush1.bf16.msra.mxu1 %v8074_v17  ;;  %v8158_v17 = vld [vmem:[%s11215_s1 + $0x920] ss:$8 sps:$4 sm:$0xff]  }
 0x214   :  { %5938 = vmatpush1.bf16.msra.mxu0 %v8077_v35  ;;  %5447 = vmatprep.subr.bf16.mxu1 %v8082_v47  ;;  %v8161_v35 = vld [vmem:[%s11215_s1 + $0x1520] ss:$8 sps:$4 sm:$0xff]   ;;  %v8166_v47 = vld [vmem:[%s11215_s1 + $0x934] ss:$8 sps:$4 sm:$0xff]  }
 0x215   :  { %5939 = vmatprep.subr.bf16.mxu0 %v8085_v48  ;;  %v8169_v48 = vld [vmem:[%s11215_s1 + $0x1534] ss:$8 sps:$4 sm:$0xff]  }
 0x217   :  { %5448 = vmatpush1.bf16.msra.mxu1 %v8080_v50  ;;  %v8164_v50 = vld [vmem:[%s11215_s1 + $0x930] ss:$8 sps:$4 sm:$0xff]  }
 0x218   :  { %5940 = vmatpush1.bf16.msra.mxu0 %v8083_v51  ;;  %5449 = vmatprep.subr.bf16.mxu1 %v8088_v53  ;;  %v8167_v51 = vld [vmem:[%s11215_s1 + $0x1530] ss:$8 sps:$4 sm:$0xff]   ;;  %v8172_v53 = vld [vmem:[%s11215_s1 + $0x944] ss:$8 sps:$4 sm:$0xff]  }
 0x219   :  { %5941 = vmatprep.subr.bf16.mxu0 %v8091_v54  ;;  %v8175_v54 = vld [vmem:[%s11215_s1 + $0x1544] ss:$8 sps:$4 sm:$0xff]  }
 0x21b   :  { %5450 = vmatpush1.bf16.msra.mxu1 %v8086_v39  ;;  %v8170_v39 = vld [vmem:[%s11215_s1 + $0x940] ss:$8 sps:$4 sm:$0xff]  }
 0x21c   :  { %5942 = vmatpush1.bf16.msra.mxu0 %v8089_v57  ;;  %5451 = vmatprep.subr.bf16.mxu1 %v8094_v60  ;;  %v8173_v57 = vld [vmem:[%s11215_s1 + $0x1540] ss:$8 sps:$4 sm:$0xff]   ;;  %v8178_v60 = vld [vmem:[%s11215_s1 + $0x954] ss:$8 sps:$4 sm:$0xff]  }
 0x21d   :  { %5943 = vmatprep.subr.bf16.mxu0 %v8097_v61  ;;  %v8181_v61 = vld [vmem:[%s11215_s1 + $0x1554] ss:$8 sps:$4 sm:$0xff]  }
 0x21f   :  { %5452 = vmatpush1.bf16.msra.mxu1 %v8092_v40  ;;  %v8176_v40 = vld [vmem:[%s11215_s1 + $0x950] ss:$8 sps:$4 sm:$0xff]  }
 0x220   :  { %5944 = vmatpush1.bf16.msra.mxu0 %v8095_v41  ;;  %5453 = vmatprep.subr.bf16.mxu1 %v8100_v62  ;;  %v8179_v41 = vld [vmem:[%s11215_s1 + $0x1550] ss:$8 sps:$4 sm:$0xff]   ;;  %v8184_v62 = vld [vmem:[%s11215_s1 + $0x964] ss:$8 sps:$4 sm:$0xff]  }
 0x221   :  { %5945 = vmatprep.subr.bf16.mxu0 %v8103_v63  ;;  %v8187_v63 = vld [vmem:[%s11215_s1 + $0x1564] ss:$8 sps:$4 sm:$0xff]  }
 0x223   :  { %5454 = vmatpush1.bf16.msra.mxu1 %v8098_v55  ;;  %v8182_v55 = vld [vmem:[%s11215_s1 + $0x960] ss:$8 sps:$4 sm:$0xff]  }
 0x224   :  { %5946 = vmatpush1.bf16.msra.mxu0 %v8101_v38  ;;  %5455 = vmatprep.subr.bf16.mxu1 %v8106_v2  ;;  %v8185_v38 = vld [vmem:[%s11215_s1 + $0x1560] ss:$8 sps:$4 sm:$0xff]   ;;  %v8190_v2 = vld [vmem:[%s11215_s1 + $0x974] ss:$8 sps:$4 sm:$0xff]  }
 0x225   :  { %5947 = vmatprep.subr.bf16.mxu0 %v8109_v3  ;;  %v8193_v3 = vld [vmem:[%s11215_s1 + $0x1574] ss:$8 sps:$4 sm:$0xff]  }
 0x227   :  { %5456 = vmatpush1.bf16.msra.mxu1 %v8104_v4  ;;  %v8188_v4 = vld [vmem:[%s11215_s1 + $0x970] ss:$8 sps:$4 sm:$0xff]  }
 0x228   :  { %5948 = vmatpush1.bf16.msra.mxu0 %v8107_v5  ;;  %5457 = vmatprep.subr.bf16.mxu1 %v8112_v6  ;;  %v8191_v5 = vld [vmem:[%s11215_s1 + $0x1570] ss:$8 sps:$4 sm:$0xff]   ;;  %v8196_v6 = vld [vmem:[%s11215_s1 + $0x984] ss:$8 sps:$4 sm:$0xff]  }
 0x229   :  { %5949 = vmatprep.subr.bf16.mxu0 %v8115_v7  ;;  %v8199_v7 = vld [vmem:[%s11215_s1 + $0x1584] ss:$8 sps:$4 sm:$0xff]  }
 0x22b   :  { %5458 = vmatpush1.bf16.msra.mxu1 %v8110_v8  ;;  %v8194_v8 = vld [vmem:[%s11215_s1 + $0x980] ss:$8 sps:$4 sm:$0xff]  }
 0x22c   :  { %5950 = vmatpush1.bf16.msra.mxu0 %v8113_v9  ;;  %5459 = vmatprep.subr.bf16.mxu1 %v8118_v10  ;;  %v8197_v9 = vld [vmem:[%s11215_s1 + $0x1580] ss:$8 sps:$4 sm:$0xff]   ;;  %v8202_v10 = vld [vmem:[%s11215_s1 + $0x994] ss:$8 sps:$4 sm:$0xff]  }
 0x22d   :  { %5951 = vmatprep.subr.bf16.mxu0 %v8121_v58  ;;  %v8205_v58 = vld [vmem:[%s11215_s1 + $0x1594] ss:$8 sps:$4 sm:$0xff]  }
 0x22f   :  { %5460 = vmatpush1.bf16.msra.mxu1 %v8116_v18  ;;  %v8200_v18 = vld [vmem:[%s11215_s1 + $0x990] ss:$8 sps:$4 sm:$0xff]  }
 0x230   :  { %5952 = vmatpush1.bf16.msra.mxu0 %v8119_v19  ;;  %5461 = vmatprep.subr.bf16.mxu1 %v8124_v0  ;;  %v8203_v19 = vld [vmem:[%s11215_s1 + $0x1590] ss:$8 sps:$4 sm:$0xff]   ;;  %v8208_v0 = vld [vmem:[%s11215_s1 + $0x9a4] ss:$8 sps:$4 sm:$0xff]  }
 0x231   :  { %5953 = vmatprep.subr.bf16.mxu0 %v8127_v1  ;;  %v8211_v1 = vld [vmem:[%s11215_s1 + $0x15a4] ss:$8 sps:$4 sm:$0xff]  }
 0x233   :  { %5462 = vmatpush1.bf16.msra.mxu1 %v8122_v22  ;;  %v8206_v22 = vld [vmem:[%s11215_s1 + $0x9a0] ss:$8 sps:$4 sm:$0xff]  }
 0x234   :  { %5954 = vmatpush1.bf16.msra.mxu0 %v8125_v52  ;;  %5463 = vmatprep.subr.bf16.mxu1 %v8130_v59  ;;  %v8209_v52 = vld [vmem:[%s11215_s1 + $0x15a0] ss:$8 sps:$4 sm:$0xff]   ;;  %v8214_v59 = vld [vmem:[%s11215_s1 + $0x9b4] ss:$8 sps:$4 sm:$0xff]  }
 0x235   :  { %5955 = vmatprep.subr.bf16.mxu0 %v8133_v11  ;;  %v8217_v11 = vld [vmem:[%s11215_s1 + $0x15b4] ss:$8 sps:$4 sm:$0xff]  }
 0x237   :  { %5464 = vmatpush1.bf16.msra.mxu1 %v8128_v24  ;;  %v8212_v24 = vld [vmem:[%s11215_s1 + $0x9b0] ss:$8 sps:$4 sm:$0xff]  }
 0x238   :  { %5956 = vmatpush1.bf16.msra.mxu0 %v8131_v25  ;;  %5465 = vmatprep.subr.bf16.mxu1 %v8136_v26  ;;  %v8215_v25 = vld [vmem:[%s11215_s1 + $0x15b0] ss:$8 sps:$4 sm:$0xff]   ;;  %v8220_v26 = vld [vmem:[%s11215_s1 + $0x9c4] ss:$8 sps:$4 sm:$0xff]  }
 0x239   :  { %5957 = vmatprep.subr.bf16.mxu0 %v8139_v27  ;;  %v8223_v27 = vld [vmem:[%s11215_s1 + $0x15c4] ss:$8 sps:$4 sm:$0xff]  }
 0x23b   :  { %5466 = vmatpush1.bf16.msra.mxu1 %v8134_v28  ;;  %v8218_v28 = vld [vmem:[%s11215_s1 + $0x9c0] ss:$8 sps:$4 sm:$0xff]  }
 0x23c   :  { %5958 = vmatpush1.bf16.msra.mxu0 %v8137_v29  ;;  %5467 = vmatprep.subr.bf16.mxu1 %v8142_v30  ;;  %v8221_v29 = vld [vmem:[%s11215_s1 + $0x15c0] ss:$8 sps:$4 sm:$0xff]   ;;  %v8226_v30 = vld [vmem:[%s11215_s1 + $0x9d4] ss:$8 sps:$4 sm:$0xff]  }
 0x23d   :  { %5959 = vmatprep.subr.bf16.mxu0 %v8145_v14  ;;  %v8229_v14 = vld [vmem:[%s11215_s1 + $0x15d4] ss:$8 sps:$4 sm:$0xff]  }
 0x23f   :  { %5468 = vmatpush1.bf16.msra.mxu1 %v8140_v32  ;;  %v8224_v32 = vld [vmem:[%s11215_s1 + $0x9d0] ss:$8 sps:$4 sm:$0xff]  }
 0x240   :  { %5960 = vmatpush1.bf16.msra.mxu0 %v8143_v33  ;;  %5478 = vmatprep.subr.bf16.mxu1 %v8148_v34  ;;  %v8227_v33 = vld [vmem:[%s11215_s1 + $0x15d0] ss:$8 sps:$4 sm:$0xff]   ;;  %v8232_v34 = vld [vmem:[%s11215_s1 + $0x9e4] ss:$8 sps:$4 sm:$0xff]  }
 0x241   :  { %5970 = vmatprep.subr.bf16.mxu0 %v8151_v16  ;;  %v8235_v16 = vld [vmem:[%s11215_s1 + $0x15e4] ss:$8 sps:$4 sm:$0xff]  }
 0x242   :  { %5470 = vmatmul.mubr.bf16.vlgmr.msra.gmra.mrb[0].mxu1 %v10465_v36 }
 0x243   :  { %5962 = vmatmul.mubr.bf16.vlgmr.msra.gmra.mrb[0].mxu0 %v10469_v37  ;;  %5479 = vmatpush1.bf16.msra.mxu1 %v8146_v56  ;;  %v930_v56 = vcombine.high %v10216_v12, %v10216_v12  ;;  %v8241_v12 = vld [vmem:[%s11215_s1 + $0x15f4] ss:$8 sps:$4 sm:$0xff]  }
 0x244   :  { %5971 = vmatpush1.bf16.msra.mxu0 %v8149_v23  ;;  %5480 = vmatprep.subr.bf16.mxu1 %v8154_v20  ;;  %v1077_v23 = vcombine.high %v10221_v13, %v10221_v13  ;;  %v8230_v20 = vld [vmem:[%s11215_s1 + $0x9e0] ss:$8 sps:$4 sm:$0xff]  }
 0x245   :  { %5972 = vmatprep.subr.bf16.mxu0 %v8157_v21  ;;  %5510 = vmatprep.mubr.bf16.mxu1 %v977_v43  ;;  %v8233_v21 = vld [vmem:[%s11215_s1 + $0x15e0] ss:$8 sps:$4 sm:$0xff]   ;;  %v8238_v43 = vld [vmem:[%s11215_s1 + $0x9f4] ss:$8 sps:$4 sm:$0xff]   ;;  %v10662_v13 = vrot.slane %v930_v56, %v8679_v49  ;;  %v8308_v56 = vld [vmem:[%s11215_s1 + $0xab0] ss:$8 sps:$4 sm:$0xff]  }
 0x246   :  { %6002 = vmatprep.mubr.bf16.mxu0 %v1124_v44  ;;  %v10665_v44 = vrot.slane %v1077_v23, %v8679_v49  ;;  %v8311_v23 = vld [vmem:[%s11215_s1 + $0x16b0] ss:$8 sps:$4 sm:$0xff]  }
 0x247   :  { %5481 = vmatpush1.bf16.msra.mxu1 %v8152_v45  ;;  %v8236_v45 = vld [vmem:[%s11215_s1 + $0x9f0] ss:$8 sps:$4 sm:$0xff]  }
 0x248   :  { %5973 = vmatpush1.bf16.msra.mxu0 %v8155_v46  ;;  %5482 = vmatprep.subr.bf16.mxu1 %v8160_v15  ;;  %v8239_v46 = vld [vmem:[%s11215_s1 + $0x15f0] ss:$8 sps:$4 sm:$0xff]   ;;  %v8244_v15 = vld [vmem:[%s11215_s1 + $0xa04] ss:$8 sps:$4 sm:$0xff]  }
 0x249   :  { %5974 = vmatprep.subr.bf16.mxu0 %v8163_v31  ;;  %v8247_v31 = vld [vmem:[%s11215_s1 + $0x1604] ss:$8 sps:$4 sm:$0xff]  }
 0x24b   :  { %5483 = vmatpush1.bf16.msra.mxu1 %v8158_v17  ;;  %v946_v17 = vcombine.high %v10662_v13, %v10662_v13 }
 0x24c   :  { %5975 = vmatpush1.bf16.msra.mxu0 %v8161_v35  ;;  %5484 = vmatprep.subr.bf16.mxu1 %v8166_v47  ;;  %v1093_v35 = vcombine.high %v10665_v44, %v10665_v44  ;;  %v975_v47 = vcombine.high %v10465_v36, %v10465_v36  ;;  %v8253_v36 = vld [vmem:[%s11215_s1 + $0x1614] ss:$8 sps:$4 sm:$0xff]  }
 0x24d   :  { %5976 = vmatprep.subr.bf16.mxu0 %v8169_v48  ;;  %v1122_v48 = vcombine.high %v10469_v37, %v10469_v37  ;;  %v10700_v37 = vrot.slane %v946_v17, %v8679_v49  ;;  %v8328_v17 = vld [vmem:[%s11215_s1 + $0xae4] ss:$8 sps:$4 sm:$0xff]  }
 0x24f   :  { %5485 = vmatpush1.bf16.msra.mxu1 %v8164_v50  ;;  %v8242_v50 = vld [vmem:[%s11215_s1 + $0xa00] ss:$8 sps:$4 sm:$0xff]  }
 0x250   :  { %5977 = vmatpush1.bf16.msra.mxu0 %v8167_v51  ;;  %5486 = vmatprep.subr.bf16.mxu1 %v8172_v53  ;;  %v8245_v51 = vld [vmem:[%s11215_s1 + $0x1600] ss:$8 sps:$4 sm:$0xff]   ;;  %v8250_v53 = vld [vmem:[%s11215_s1 + $0xa14] ss:$8 sps:$4 sm:$0xff]  }
 0x251   :  { %5978 = vmatprep.subr.bf16.mxu0 %v8175_v54  ;;  %v10703_v54 = vrot.slane %v1093_v35, %v8679_v49  ;;  %v8331_v35 = vld [vmem:[%s11215_s1 + $0x16e4] ss:$8 sps:$4 sm:$0xff]  }
 0x253   :  { %5487 = vmatpush1.bf16.msra.mxu1 %v8170_v39  ;;  %v8248_v39 = vld [vmem:[%s11215_s1 + $0xa10] ss:$8 sps:$4 sm:$0xff]  }
 0x254   :  { %5979 = vmatpush1.bf16.msra.mxu0 %v8173_v57  ;;  %5488 = vmatprep.subr.bf16.mxu1 %v8178_v60  ;;  %v8251_v57 = vld [vmem:[%s11215_s1 + $0x1610] ss:$8 sps:$4 sm:$0xff]   ;;  %v8256_v60 = vld [vmem:[%s11215_s1 + $0xa24] ss:$8 sps:$4 sm:$0xff]  }
 0x255   :  { %5980 = vmatprep.subr.bf16.mxu0 %v8181_v61  ;;  %v8259_v61 = vld [vmem:[%s11215_s1 + $0x1624] ss:$8 sps:$4 sm:$0xff]  }
 0x257   :  { %5489 = vmatpush1.bf16.msra.mxu1 %v8176_v40  ;;  %v8254_v40 = vld [vmem:[%s11215_s1 + $0xa20] ss:$8 sps:$4 sm:$0xff]  }
 0x258   :  { %5981 = vmatpush1.bf16.msra.mxu0 %v8179_v41  ;;  %5490 = vmatprep.subr.bf16.mxu1 %v8184_v62  ;;  %v8257_v41 = vld [vmem:[%s11215_s1 + $0x1620] ss:$8 sps:$4 sm:$0xff]   ;;  %v8262_v62 = vld [vmem:[%s11215_s1 + $0xa34] ss:$8 sps:$4 sm:$0xff]  }
 0x259   :  { %5982 = vmatprep.subr.bf16.mxu0 %v8187_v63  ;;  %v8265_v63 = vld [vmem:[%s11215_s1 + $0x1634] ss:$8 sps:$4 sm:$0xff]  }
 0x25b   :  { %5491 = vmatpush1.bf16.msra.mxu1 %v8182_v55  ;;  %v8260_v55 = vld [vmem:[%s11215_s1 + $0xa30] ss:$8 sps:$4 sm:$0xff]  }
 0x25c   :  { %5983 = vmatpush1.bf16.msra.mxu0 %v8185_v38  ;;  %5492 = vmatprep.subr.bf16.mxu1 %v8190_v2  ;;  %v8263_v38 = vld [vmem:[%s11215_s1 + $0x1630] ss:$8 sps:$4 sm:$0xff]   ;;  %v8268_v2 = vld [vmem:[%s11215_s1 + $0xa44] ss:$8 sps:$4 sm:$0xff]  }
 0x25d   :  { %5984 = vmatprep.subr.bf16.mxu0 %v8193_v3  ;;  %v8271_v3 = vld [vmem:[%s11215_s1 + $0x1644] ss:$8 sps:$4 sm:$0xff]  }
 0x25f   :  { %5493 = vmatpush1.bf16.msra.mxu1 %v8188_v4  ;;  %v8266_v4 = vld [vmem:[%s11215_s1 + $0xa40] ss:$8 sps:$4 sm:$0xff]  }
 0x260   :  { %5985 = vmatpush1.bf16.msra.mxu0 %v8191_v5  ;;  %5494 = vmatprep.subr.bf16.mxu1 %v8196_v6  ;;  %v8269_v5 = vld [vmem:[%s11215_s1 + $0x1640] ss:$8 sps:$4 sm:$0xff]   ;;  %v8274_v6 = vld [vmem:[%s11215_s1 + $0xa54] ss:$8 sps:$4 sm:$0xff]  }
 0x261   :  { %5986 = vmatprep.subr.bf16.mxu0 %v8199_v7  ;;  %v8277_v7 = vld [vmem:[%s11215_s1 + $0x1654] ss:$8 sps:$4 sm:$0xff]  }
 0x263   :  { %5495 = vmatpush1.bf16.msra.mxu1 %v8194_v8  ;;  %v8272_v8 = vld [vmem:[%s11215_s1 + $0xa50] ss:$8 sps:$4 sm:$0xff]  }
 0x264   :  { %5987 = vmatpush1.bf16.msra.mxu0 %v8197_v9  ;;  %5496 = vmatprep.subr.bf16.mxu1 %v8202_v10  ;;  %v8275_v9 = vld [vmem:[%s11215_s1 + $0x1650] ss:$8 sps:$4 sm:$0xff]   ;;  %v8280_v10 = vld [vmem:[%s11215_s1 + $0xa64] ss:$8 sps:$4 sm:$0xff]  }
 0x265   :  { %5988 = vmatprep.subr.bf16.mxu0 %v8205_v58  ;;  %v8283_v58 = vld [vmem:[%s11215_s1 + $0x1664] ss:$8 sps:$4 sm:$0xff]  }
 0x267   :  { %5497 = vmatpush1.bf16.msra.mxu1 %v8200_v18  ;;  %v8278_v18 = vld [vmem:[%s11215_s1 + $0xa60] ss:$8 sps:$4 sm:$0xff]  }
 0x268   :  { %5989 = vmatpush1.bf16.msra.mxu0 %v8203_v19  ;;  %5498 = vmatprep.subr.bf16.mxu1 %v8208_v0  ;;  %v8281_v19 = vld [vmem:[%s11215_s1 + $0x1660] ss:$8 sps:$4 sm:$0xff]   ;;  %v8286_v0 = vld [vmem:[%s11215_s1 + $0xa74] ss:$8 sps:$4 sm:$0xff]  }
 0x269   :  { %5990 = vmatprep.subr.bf16.mxu0 %v8211_v1  ;;  %v8289_v1 = vld [vmem:[%s11215_s1 + $0x1674] ss:$8 sps:$4 sm:$0xff]  }
 0x26b   :  { %5499 = vmatpush1.bf16.msra.mxu1 %v8206_v22  ;;  %v8284_v22 = vld [vmem:[%s11215_s1 + $0xa70] ss:$8 sps:$4 sm:$0xff]  }
 0x26c   :  { %5991 = vmatpush1.bf16.msra.mxu0 %v8209_v52  ;;  %5500 = vmatprep.subr.bf16.mxu1 %v8214_v59  ;;  %v8287_v52 = vld [vmem:[%s11215_s1 + $0x1670] ss:$8 sps:$4 sm:$0xff]   ;;  %v8292_v59 = vld [vmem:[%s11215_s1 + $0xa84] ss:$8 sps:$4 sm:$0xff]  }
 0x26d   :  { %5992 = vmatprep.subr.bf16.mxu0 %v8217_v11  ;;  %v8295_v11 = vld [vmem:[%s11215_s1 + $0x1684] ss:$8 sps:$4 sm:$0xff]  }
 0x26f   :  { %5501 = vmatpush1.bf16.msra.mxu1 %v8212_v24  ;;  %v8290_v24 = vld [vmem:[%s11215_s1 + $0xa80] ss:$8 sps:$4 sm:$0xff]  }
 0x270   :  { %5993 = vmatpush1.bf16.msra.mxu0 %v8215_v25  ;;  %5502 = vmatprep.subr.bf16.mxu1 %v8220_v26  ;;  %v8293_v25 = vld [vmem:[%s11215_s1 + $0x1680] ss:$8 sps:$4 sm:$0xff]   ;;  %v8298_v26 = vld [vmem:[%s11215_s1 + $0xa94] ss:$8 sps:$4 sm:$0xff]  }
 0x271   :  { %5994 = vmatprep.subr.bf16.mxu0 %v8223_v27  ;;  %v8301_v27 = vld [vmem:[%s11215_s1 + $0x1694] ss:$8 sps:$4 sm:$0xff]  }
 0x273   :  { %5503 = vmatpush1.bf16.msra.mxu1 %v8218_v28  ;;  %v8296_v28 = vld [vmem:[%s11215_s1 + $0xa90] ss:$8 sps:$4 sm:$0xff]  }
 0x274   :  { %5995 = vmatpush1.bf16.msra.mxu0 %v8221_v29  ;;  %5504 = vmatprep.subr.bf16.mxu1 %v8226_v30  ;;  %v8299_v29 = vld [vmem:[%s11215_s1 + $0x1690] ss:$8 sps:$4 sm:$0xff]   ;;  %v8304_v30 = vld [vmem:[%s11215_s1 + $0xaa4] ss:$8 sps:$4 sm:$0xff]  }
 0x275   :  { %5996 = vmatprep.subr.bf16.mxu0 %v8229_v14  ;;  %v8307_v14 = vld [vmem:[%s11215_s1 + $0x16a4] ss:$8 sps:$4 sm:$0xff]  }
 0x277   :  { %5505 = vmatpush1.bf16.msra.mxu1 %v8224_v32  ;;  %v8302_v32 = vld [vmem:[%s11215_s1 + $0xaa0] ss:$8 sps:$4 sm:$0xff]  }
 0x278   :  { %5997 = vmatpush1.bf16.msra.mxu0 %v8227_v33  ;;  %5506 = vmatprep.subr.bf16.mxu1 %v8232_v34  ;;  %v8305_v33 = vld [vmem:[%s11215_s1 + $0x16a0] ss:$8 sps:$4 sm:$0xff]   ;;  %v8310_v34 = vld [vmem:[%s11215_s1 + $0xab4] ss:$8 sps:$4 sm:$0xff]  }
 0x279   :  { %5998 = vmatprep.subr.bf16.mxu0 %v8235_v16  ;;  %v8313_v16 = vld [vmem:[%s11215_s1 + $0x16b4] ss:$8 sps:$4 sm:$0xff]  }
 0x27b   :  { %5507 = vmatpush1.bf16.msra.mxu1 %v8230_v20  ;;  %v8316_v20 = vld [vmem:[%s11215_s1 + $0xac4] ss:$8 sps:$4 sm:$0xff]  }
 0x27c   :  { %5999 = vmatpush1.bf16.msra.mxu0 %v8233_v21  ;;  %5508 = vmatprep.subr.bf16.mxu1 %v8238_v43  ;;  %v8319_v21 = vld [vmem:[%s11215_s1 + $0x16c4] ss:$8 sps:$4 sm:$0xff]   ;;  %v8314_v43 = vld [vmem:[%s11215_s1 + $0xac0] ss:$8 sps:$4 sm:$0xff]  }
 0x27d   :  { %6000 = vmatprep.subr.bf16.mxu0 %v8241_v12  ;;  %v8317_v12 = vld [vmem:[%s11215_s1 + $0x16c0] ss:$8 sps:$4 sm:$0xff]  }
 0x27f   :  { %5509 = vmatpush1.bf16.msra.mxu1 %v8236_v45  ;;  %v8322_v45 = vld [vmem:[%s11215_s1 + $0xad4] ss:$8 sps:$4 sm:$0xff]  }
 0x280   :  { %6001 = vmatpush1.bf16.msra.mxu0 %v8239_v46  ;;  %5519 = vmatprep.subr.bf16.mxu1 %v8244_v15  ;;  %v8325_v46 = vld [vmem:[%s11215_s1 + $0x16d4] ss:$8 sps:$4 sm:$0xff]   ;;  %v8320_v15 = vld [vmem:[%s11215_s1 + $0xad0] ss:$8 sps:$4 sm:$0xff]  }
 0x281   :  { %6011 = vmatprep.subr.bf16.mxu0 %v8247_v31  ;;  %v8323_v31 = vld [vmem:[%s11215_s1 + $0x16d0] ss:$8 sps:$4 sm:$0xff]  }
 0x282   :  { %5511 = vmatmul.mubr.bf16.vlgmr.msra.gmra.mrb[0].mxu1 %v975_v47  ;;  %v8326_v47 = vld [vmem:[%s11215_s1 + $0xae0] ss:$8 sps:$4 sm:$0xff]  }
 0x283   :  { %6003 = vmatmul.mubr.bf16.vlgmr.msra.gmra.mrb[0].mxu0 %v1122_v48  ;;  %5520 = vmatpush1.bf16.msra.mxu1 %v8242_v50  ;;  %v8329_v48 = vld [vmem:[%s11215_s1 + $0x16e0] ss:$8 sps:$4 sm:$0xff]   ;;  %v8334_v50 = vld [vmem:[%s11215_s1 + $0xaf4] ss:$8 sps:$4 sm:$0xff]  }
 0x284   :  { %6012 = vmatpush1.bf16.msra.mxu0 %v8245_v51  ;;  %5521 = vmatprep.subr.bf16.mxu1 %v8250_v53  ;;  %v8337_v51 = vld [vmem:[%s11215_s1 + $0x16f4] ss:$8 sps:$4 sm:$0xff]   ;;  %v8332_v53 = vld [vmem:[%s11215_s1 + $0xaf0] ss:$8 sps:$4 sm:$0xff]  }
 0x285   :  { %6013 = vmatprep.subr.bf16.mxu0 %v8253_v36  ;;  %5551 = vmatprep.mubr.bf16.mxu1 %v10700_v37  ;;  %v8335_v36 = vld [vmem:[%s11215_s1 + $0x16f0] ss:$8 sps:$4 sm:$0xff]  }
 0x286   :  { %6043 = vmatprep.mubr.bf16.mxu0 %v10703_v54 }
 0x287   :  { %5522 = vmatpush1.bf16.msra.mxu1 %v8248_v39  ;;  %v8341_v39 = vld [vmem:[%s11215_s1 + $0xb04] ss:$8 sps:$4 sm:$0xff]  }
 0x288   :  { %6014 = vmatpush1.bf16.msra.mxu0 %v8251_v57  ;;  %5523 = vmatprep.subr.bf16.mxu1 %v8256_v60  ;;  %v8345_v57 = vld [vmem:[%s11215_s1 + $0x1704] ss:$8 sps:$4 sm:$0xff]   ;;  %v10889_v60 = vrot.slane %v10662_v13, %v8679_v49  ;;  %v8348_v13 = vld [vmem:[%s11215_s1 + $0xb14] ss:$8 sps:$4 sm:$0xff]  }
 0x289   :  { %6015 = vmatprep.subr.bf16.mxu0 %v8259_v61  ;;  %v10893_v61 = vrot.slane %v10665_v44, %v8679_v49  ;;  %v8351_v44 = vld [vmem:[%s11215_s1 + $0x1714] ss:$8 sps:$4 sm:$0xff]  }
 0x28b   :  { %5524 = vmatpush1.bf16.msra.mxu1 %v8254_v40  ;;  %v8339_v40 = vld [vmem:[%s11215_s1 + $0xb00] ss:$8 sps:$4 sm:$0xff]  }
 0x28c   :  { %6016 = vmatpush1.bf16.msra.mxu0 %v8257_v41  ;;  %5525 = vmatprep.subr.bf16.mxu1 %v8262_v62  ;;  %v8343_v41 = vld [vmem:[%s11215_s1 + $0x1700] ss:$8 sps:$4 sm:$0xff]   ;;  %v978_v62 = vcombine.high %v10700_v37, %v10700_v37  ;;  %v8354_v37 = vld [vmem:[%s11215_s1 + $0xb24] ss:$8 sps:$4 sm:$0xff]  }
 0x28d   :  { %6017 = vmatprep.subr.bf16.mxu0 %v8265_v63  ;;  %v1125_v63 = vcombine.high %v10703_v54, %v10703_v54  ;;  %v8357_v54 = vld [vmem:[%s11215_s1 + $0x1724] ss:$8 sps:$4 sm:$0xff]  }
 0x28f   :  { %5526 = vmatpush1.bf16.msra.mxu1 %v8260_v55  ;;  %v8346_v55 = vld [vmem:[%s11215_s1 + $0xb10] ss:$8 sps:$4 sm:$0xff]  }
 0x290   :  { %6018 = vmatpush1.bf16.msra.mxu0 %v8263_v38  ;;  %5527 = vmatprep.subr.bf16.mxu1 %v8268_v2  ;;  %v8349_v38 = vld [vmem:[%s11215_s1 + $0x1710] ss:$8 sps:$4 sm:$0xff]   ;;  %v8352_v2 = vld [vmem:[%s11215_s1 + $0xb20] ss:$8 sps:$4 sm:$0xff]  }
 0x291   :  { %6019 = vmatprep.subr.bf16.mxu0 %v8271_v3  ;;  %v8355_v3 = vld [vmem:[%s11215_s1 + $0x1720] ss:$8 sps:$4 sm:$0xff]  }
 0x293   :  { %5528 = vmatpush1.bf16.msra.mxu1 %v8266_v4  ;;  %v8360_v4 = vld [vmem:[%s11215_s1 + $0xb34] ss:$8 sps:$4 sm:$0xff]  }
 0x294   :  { %6020 = vmatpush1.bf16.msra.mxu0 %v8269_v5  ;;  %5529 = vmatprep.subr.bf16.mxu1 %v8274_v6  ;;  %v8363_v5 = vld [vmem:[%s11215_s1 + $0x1734] ss:$8 sps:$4 sm:$0xff]   ;;  %v8358_v6 = vld [vmem:[%s11215_s1 + $0xb30] ss:$8 sps:$4 sm:$0xff]  }
 0x295   :  { %6021 = vmatprep.subr.bf16.mxu0 %v8277_v7  ;;  %v8361_v7 = vld [vmem:[%s11215_s1 + $0x1730] ss:$8 sps:$4 sm:$0xff]  }
 0x297   :  { %5530 = vmatpush1.bf16.msra.mxu1 %v8272_v8  ;;  %v8366_v8 = vld [vmem:[%s11215_s1 + $0xb44] ss:$8 sps:$4 sm:$0xff]  }
 0x298   :  { %6022 = vmatpush1.bf16.msra.mxu0 %v8275_v9  ;;  %5531 = vmatprep.subr.bf16.mxu1 %v8280_v10  ;;  %v8369_v9 = vld [vmem:[%s11215_s1 + $0x1744] ss:$8 sps:$4 sm:$0xff]   ;;  %v8364_v10 = vld [vmem:[%s11215_s1 + $0xb40] ss:$8 sps:$4 sm:$0xff]  }
 0x299   :  { %6023 = vmatprep.subr.bf16.mxu0 %v8283_v58  ;;  %v8367_v58 = vld [vmem:[%s11215_s1 + $0x1740] ss:$8 sps:$4 sm:$0xff]  }
 0x29b   :  { %5532 = vmatpush1.bf16.msra.mxu1 %v8278_v18  ;;  %v8372_v18 = vld [vmem:[%s11215_s1 + $0xb54] ss:$8 sps:$4 sm:$0xff]  }
 0x29c   :  { %6024 = vmatpush1.bf16.msra.mxu0 %v8281_v19  ;;  %5533 = vmatprep.subr.bf16.mxu1 %v8286_v0  ;;  %v8375_v19 = vld [vmem:[%s11215_s1 + $0x1754] ss:$8 sps:$4 sm:$0xff]   ;;  %v8370_v0 = vld [vmem:[%s11215_s1 + $0xb50] ss:$8 sps:$4 sm:$0xff]  }
 0x29d   :  { %6025 = vmatprep.subr.bf16.mxu0 %v8289_v1  ;;  %v8373_v1 = vld [vmem:[%s11215_s1 + $0x1750] ss:$8 sps:$4 sm:$0xff]  }
 0x29f   :  { %5534 = vmatpush1.bf16.msra.mxu1 %v8284_v22  ;;  %v8378_v22 = vld [vmem:[%s11215_s1 + $0xb64] ss:$8 sps:$4 sm:$0xff]  }
 0x2a0   :  { %6026 = vmatpush1.bf16.msra.mxu0 %v8287_v52  ;;  %5535 = vmatprep.subr.bf16.mxu1 %v8292_v59  ;;  %v8381_v52 = vld [vmem:[%s11215_s1 + $0x1764] ss:$8 sps:$4 sm:$0xff]   ;;  %v8376_v59 = vld [vmem:[%s11215_s1 + $0xb60] ss:$8 sps:$4 sm:$0xff]  }
 0x2a1   :  { %6027 = vmatprep.subr.bf16.mxu0 %v8295_v11  ;;  %v8379_v11 = vld [vmem:[%s11215_s1 + $0x1760] ss:$8 sps:$4 sm:$0xff]  }
 0x2a3   :  { %5536 = vmatpush1.bf16.msra.mxu1 %v8290_v24  ;;  %v8384_v24 = vld [vmem:[%s11215_s1 + $0xb74] ss:$8 sps:$4 sm:$0xff]  }
 0x2a4   :  { %6028 = vmatpush1.bf16.msra.mxu0 %v8293_v25  ;;  %5537 = vmatprep.subr.bf16.mxu1 %v8298_v26  ;;  %v8387_v25 = vld [vmem:[%s11215_s1 + $0x1774] ss:$8 sps:$4 sm:$0xff]   ;;  %v8382_v26 = vld [vmem:[%s11215_s1 + $0xb70] ss:$8 sps:$4 sm:$0xff]  }
 0x2a5   :  { %6029 = vmatprep.subr.bf16.mxu0 %v8301_v27  ;;  %v8385_v27 = vld [vmem:[%s11215_s1 + $0x1770] ss:$8 sps:$4 sm:$0xff]  }
 0x2a7   :  { %5538 = vmatpush1.bf16.msra.mxu1 %v8296_v28  ;;  %v8390_v28 = vld [vmem:[%s11215_s1 + $0xb84] ss:$8 sps:$4 sm:$0xff]  }
 0x2a8   :  { %6030 = vmatpush1.bf16.msra.mxu0 %v8299_v29  ;;  %5539 = vmatprep.subr.bf16.mxu1 %v8304_v30  ;;  %v8393_v29 = vld [vmem:[%s11215_s1 + $0x1784] ss:$8 sps:$4 sm:$0xff]   ;;  %v8388_v30 = vld [vmem:[%s11215_s1 + $0xb80] ss:$8 sps:$4 sm:$0xff]  }
 0x2a9   :  { %6031 = vmatprep.subr.bf16.mxu0 %v8307_v14  ;;  %v8391_v14 = vld [vmem:[%s11215_s1 + $0x1780] ss:$8 sps:$4 sm:$0xff]  }
 0x2ab   :  { %5540 = vmatpush1.bf16.msra.mxu1 %v8302_v32  ;;  %v8396_v32 = vld [vmem:[%s11215_s1 + $0xb94] ss:$8 sps:$4 sm:$0xff]  }
 0x2ac   :  { %6032 = vmatpush1.bf16.msra.mxu0 %v8305_v33  ;;  %5541 = vmatprep.subr.bf16.mxu1 %v8310_v34  ;;  %v8399_v33 = vld [vmem:[%s11215_s1 + $0x1794] ss:$8 sps:$4 sm:$0xff]   ;;  %v8394_v34 = vld [vmem:[%s11215_s1 + $0xb90] ss:$8 sps:$4 sm:$0xff]  }
 0x2ad   :  { %6033 = vmatprep.subr.bf16.mxu0 %v8313_v16  ;;  %v8397_v16 = vld [vmem:[%s11215_s1 + $0x1790] ss:$8 sps:$4 sm:$0xff]  }
 0x2af   :  { %5542 = vmatpush1.bf16.msra.mxu1 %v8308_v56  ;;  %v8402_v56 = vld [vmem:[%s11215_s1 + $0xba4] ss:$8 sps:$4 sm:$0xff]  }
 0x2b0   :  { %6034 = vmatpush1.bf16.msra.mxu0 %v8311_v23  ;;  %5543 = vmatprep.subr.bf16.mxu1 %v8316_v20  ;;  %v8405_v23 = vld [vmem:[%s11215_s1 + $0x17a4] ss:$8 sps:$4 sm:$0xff]   ;;  %v8400_v20 = vld [vmem:[%s11215_s1 + $0xba0] ss:$8 sps:$4 sm:$0xff]  }
 0x2b1   :  { %6035 = vmatprep.subr.bf16.mxu0 %v8319_v21  ;;  %v8403_v21 = vld [vmem:[%s11215_s1 + $0x17a0] ss:$8 sps:$4 sm:$0xff]  }
 0x2b3   :  { %5544 = vmatpush1.bf16.msra.mxu1 %v8314_v43  ;;  %v8408_v43 = vld [vmem:[%s11215_s1 + $0xbb4] ss:$8 sps:$4 sm:$0xff]  }
 0x2b4   :  { %6036 = vmatpush1.bf16.msra.mxu0 %v8317_v12  ;;  %5545 = vmatprep.subr.bf16.mxu1 %v8322_v45  ;;  %v8411_v12 = vld [vmem:[%s11215_s1 + $0x17b4] ss:$8 sps:$4 sm:$0xff]   ;;  %v8406_v45 = vld [vmem:[%s11215_s1 + $0xbb0] ss:$8 sps:$4 sm:$0xff]  }
 0x2b5   :  { %6037 = vmatprep.subr.bf16.mxu0 %v8325_v46  ;;  %v8409_v46 = vld [vmem:[%s11215_s1 + $0x17b0] ss:$8 sps:$4 sm:$0xff]  }
 0x2b7   :  { %5546 = vmatpush1.bf16.msra.mxu1 %v8320_v15  ;;  %v8414_v15 = vld [vmem:[%s11215_s1 + $0xbc4] ss:$8 sps:$4 sm:$0xff]  }
 0x2b8   :  { %6038 = vmatpush1.bf16.msra.mxu0 %v8323_v31  ;;  %5547 = vmatprep.subr.bf16.mxu1 %v8328_v17  ;;  %v8417_v31 = vld [vmem:[%s11215_s1 + $0x17c4] ss:$8 sps:$4 sm:$0xff]   ;;  %v8412_v17 = vld [vmem:[%s11215_s1 + $0xbc0] ss:$8 sps:$4 sm:$0xff]  }
 0x2b9   :  { %6039 = vmatprep.subr.bf16.mxu0 %v8331_v35  ;;  %v8415_v35 = vld [vmem:[%s11215_s1 + $0x17c0] ss:$8 sps:$4 sm:$0xff]  }
 0x2bb   :  { %5548 = vmatpush1.bf16.msra.mxu1 %v8326_v47  ;;  %v8420_v47 = vld [vmem:[%s11215_s1 + $0xbd4] ss:$8 sps:$4 sm:$0xff]  }
 0x2bc   :  { %6040 = vmatpush1.bf16.msra.mxu0 %v8329_v48  ;;  %5549 = vmatprep.subr.bf16.mxu1 %v8334_v50  ;;  %v8423_v48 = vld [vmem:[%s11215_s1 + $0x17d4] ss:$8 sps:$4 sm:$0xff]   ;;  %v8418_v50 = vld [vmem:[%s11215_s1 + $0xbd0] ss:$8 sps:$4 sm:$0xff]  }
 0x2bd   :  { %6041 = vmatprep.subr.bf16.mxu0 %v8337_v51  ;;  %v8421_v51 = vld [vmem:[%s11215_s1 + $0x17d0] ss:$8 sps:$4 sm:$0xff]  }
 0x2bf   :  { %5550 = vmatpush1.bf16.msra.mxu1 %v8332_v53  ;;  %v8426_v53 = vld [vmem:[%s11215_s1 + $0xbe4] ss:$8 sps:$4 sm:$0xff]  }
 0x2c0   :  { %6042 = vmatpush1.bf16.msra.mxu0 %v8335_v36  ;;  %5560 = vmatprep.subr.bf16.mxu1 %v8341_v39  ;;  %v8429_v36 = vld [vmem:[%s11215_s1 + $0x17e4] ss:$8 sps:$4 sm:$0xff]   ;;  %v8424_v39 = vld [vmem:[%s11215_s1 + $0xbe0] ss:$8 sps:$4 sm:$0xff]  }
 0x2c1   :  { %6052 = vmatprep.subr.bf16.mxu0 %v8345_v57  ;;  %v8427_v57 = vld [vmem:[%s11215_s1 + $0x17e0] ss:$8 sps:$4 sm:$0xff]  }
 0x2c2   :  { %5552 = vmatmul.mubr.bf16.vlgmr.msra.gmra.mrb[0].mxu1 %v10889_v60 }
 0x2c3   :  { %6044 = vmatmul.mubr.bf16.vlgmr.msra.gmra.mrb[0].mxu0 %v10893_v61  ;;  %5561 = vmatpush1.bf16.msra.mxu1 %v8339_v40  ;;  %v8432_v40 = vld [vmem:[%s11215_s1 + $0xbf4] ss:$8 sps:$4 sm:$0xff]  }
 0x2c4   :  { %6053 = vmatpush1.bf16.msra.mxu0 %v8343_v41  ;;  %5562 = vmatprep.subr.bf16.mxu1 %v8348_v13  ;;  %v8435_v41 = vld [vmem:[%s11215_s1 + $0x17f4] ss:$8 sps:$4 sm:$0xff]   ;;  %v8430_v13 = vld [vmem:[%s11215_s1 + $0xbf0] ss:$8 sps:$4 sm:$0xff]  }
 0x2c5   :  { %6054 = vmatprep.subr.bf16.mxu0 %v8351_v44  ;;  %5592 = vmatprep.mubr.bf16.mxu1 %v978_v62  ;;  %v8433_v44 = vld [vmem:[%s11215_s1 + $0x17f0] ss:$8 sps:$4 sm:$0xff]   ;;  %v8438_v62 = vld [vmem:[%s11215_s1 + $0x1804] ss:$8 sps:$4 sm:$0xff]  }
 0x2c6   :  { %6084 = vmatprep.mubr.bf16.mxu0 %v1125_v63  ;;  %v976_v63 = vcombine.high %v10889_v60, %v10889_v60  ;;  %v8439_v60 = vld [vmem:[%s11215_s1 + $0x1810] ss:$8 sps:$4 sm:$0xff]  }
 0x2c7   :  { %5563 = vmatpush1.bf16.msra.mxu1 %v8346_v55  ;;  %v1123_v55 = vcombine.high %v10893_v61, %v10893_v61  ;;  %v8444_v61 = vld [vmem:[%s11215_s1 + $0x1824] ss:$8 sps:$4 sm:$0xff]  }
 0x2c8   :  { %6055 = vmatpush1.bf16.msra.mxu0 %v8349_v38  ;;  %5564 = vmatprep.subr.bf16.mxu1 %v8354_v37  ;;  %v8436_v38 = vld [vmem:[%s11215_s1 + $0x1800] ss:$8 sps:$4 sm:$0xff]   ;;  %v8441_v37 = vld [vmem:[%s11215_s1 + $0x1814] ss:$8 sps:$4 sm:$0xff]  }
 0x2c9   :  { %6056 = vmatprep.subr.bf16.mxu0 %v8357_v54  ;;  %v8511_v54 = vmov 0  }
 0x2cb   :  { %5565 = vmatpush1.bf16.msra.mxu1 %v8352_v2  ;;  %v8442_v2 = vld [vmem:[%s11215_s1 + $0x1820] ss:$8 sps:$4 sm:$0xff]  }
 0x2cc   :  { %6057 = vmatpush1.bf16.msra.mxu0 %v8355_v3  ;;  %5566 = vmatprep.subr.bf16.mxu1 %v8360_v4  ;;  %v8447_v3 = vld [vmem:[%s11215_s1 + $0x1834] ss:$8 sps:$4 sm:$0xff]   ;;  %v8445_v4 = vld [vmem:[%s11215_s1 + $0x1830] ss:$8 sps:$4 sm:$0xff]  }
 0x2cd   :  { %6058 = vmatprep.subr.bf16.mxu0 %v8363_v5  ;;  %v8450_v5 = vld [vmem:[%s11215_s1 + $0x1844] ss:$8 sps:$4 sm:$0xff]  }
 0x2cf   :  { %5567 = vmatpush1.bf16.msra.mxu1 %v8358_v6  ;;  %v8448_v6 = vld [vmem:[%s11215_s1 + $0x1840] ss:$8 sps:$4 sm:$0xff]  }
 0x2d0   :  { %6059 = vmatpush1.bf16.msra.mxu0 %v8361_v7  ;;  %5568 = vmatprep.subr.bf16.mxu1 %v8366_v8  ;;  %v8453_v7 = vld [vmem:[%s11215_s1 + $0x1854] ss:$8 sps:$4 sm:$0xff]   ;;  %v8451_v8 = vld [vmem:[%s11215_s1 + $0x1850] ss:$8 sps:$4 sm:$0xff]  }
 0x2d1   :  { %6060 = vmatprep.subr.bf16.mxu0 %v8369_v9  ;;  %v8456_v9 = vld [vmem:[%s11215_s1 + $0x1864] ss:$8 sps:$4 sm:$0xff]  }
 0x2d3   :  { %5569 = vmatpush1.bf16.msra.mxu1 %v8364_v10  ;;  %v8454_v10 = vld [vmem:[%s11215_s1 + $0x1860] ss:$8 sps:$4 sm:$0xff]  }
 0x2d4   :  { %6061 = vmatpush1.bf16.msra.mxu0 %v8367_v58  ;;  %5570 = vmatprep.subr.bf16.mxu1 %v8372_v18  ;;  %v8459_v58 = vld [vmem:[%s11215_s1 + $0x1874] ss:$8 sps:$4 sm:$0xff]   ;;  %v8457_v18 = vld [vmem:[%s11215_s1 + $0x1870] ss:$8 sps:$4 sm:$0xff]   ;;  %s8512_s1 = smov 118  }
 0x2d5   :  { %6062 = vmatprep.subr.bf16.mxu0 %v8375_v19  ;;  %v6354_v19 = vld.sshfl [vmem:[%s11214_s0 + $0x30] sm:$0x1 pattern:$0x75316420] }
 0x2d7   :  { %5571 = vmatpush1.bf16.msra.mxu1 %v8370_v0  ;;  %v1139_v0 = vrot.slane %v6354_v19, %v8679_v49  ;;  %v8463_v49 = vld [vmem:[%s11217_s3 + $0x8] sm:$0xff]  }
 0x2d8   :  { %6063 = vmatpush1.bf16.msra.mxu0 %v8373_v1  ;;  %5572 = vmatprep.subr.bf16.mxu1 %v8378_v22  ;;  %v8460_v1 = vld [vmem:[%s11217_s3 + $0x40] sm:$0xff]  }
 0x2d9   :  { %6064 = vmatprep.subr.bf16.mxu0 %v8381_v52  ;;  %v8461_v22 = vld [vmem:[%s11217_s3] sm:$0xff]   ;;  %v8462_v52 = vld [vmem:[%s11217_s3 + $0x48] sm:$0xff]  }
 0x2db   :  { %5573 = vmatpush1.bf16.msra.mxu1 %v8376_v59  ;;  %v8464_v59 = vld [vmem:[%s11217_s3 + $0x50] sm:$0xff]  }
 0x2dc   :  { %6065 = vmatpush1.bf16.msra.mxu0 %v8379_v11  ;;  %5574 = vmatprep.subr.bf16.mxu1 %v8384_v24  ;;  %v8465_v11 = vld [vmem:[%s11217_s3 + $0x10] sm:$0xff]   ;;  %v8466_v24 = vld [vmem:[%s11217_s3 + $0x58] sm:$0xff]  }
 0x2dd   :  { %6066 = vmatprep.subr.bf16.mxu0 %v8387_v25  ;;  %v8467_v25 = vld [vmem:[%s11217_s3 + $0x18] sm:$0xff]  }
 0x2df   :  { %5575 = vmatpush1.bf16.msra.mxu1 %v8382_v26  ;;  %v8468_v26 = vld [vmem:[%s11217_s3 + $0x60] sm:$0xff]  }
 0x2e0   :  { %6067 = vmatpush1.bf16.msra.mxu0 %v8385_v27  ;;  %5576 = vmatprep.subr.bf16.mxu1 %v8390_v28  ;;  %v8469_v27 = vld [vmem:[%s11217_s3 + $0x20] sm:$0xff]   ;;  %v8470_v28 = vld [vmem:[%s11217_s3 + $0x68] sm:$0xff]  }
 0x2e1   :  { %6068 = vmatprep.subr.bf16.mxu0 %v8393_v29  ;;  %v8471_v29 = vld [vmem:[%s11217_s3 + $0x28] sm:$0xff]  }
 0x2e3   :  { %5577 = vmatpush1.bf16.msra.mxu1 %v8388_v30  ;;  %v8472_v30 = vld [vmem:[%s11217_s3 + $0x70] sm:$0xff]  }
 0x2e4   :  { %6069 = vmatpush1.bf16.msra.mxu0 %v8391_v14  ;;  %5578 = vmatprep.subr.bf16.mxu1 %v8396_v32  ;;  %v8473_v14 = vld [vmem:[%s11217_s3 + $0x30] sm:$0xff]   ;;  %v8474_v32 = vld [vmem:[%s11217_s3 + $0x78] sm:$0xff]  }
 0x2e5   :  { %6070 = vmatprep.subr.bf16.mxu0 %v8399_v33  ;;  %v8475_v33 = vld [vmem:[%s11217_s3 + $0x38] sm:$0xff]  }
 0x2e7   :  { %5579 = vmatpush1.bf16.msra.mxu1 %v8394_v34 }
 0x2e8   :  { %6071 = vmatpush1.bf16.msra.mxu0 %v8397_v16  ;;  %5580 = vmatprep.subr.bf16.mxu1 %v8402_v56 }
 0x2e9   :  { %6072 = vmatprep.subr.bf16.mxu0 %v8405_v23 }
 0x2eb   :  { %5581 = vmatpush1.bf16.msra.mxu1 %v8400_v20  ;;  %v817_v20 = vsub.s32 0, %v8661_v42 }
 0x2ec   :  { %6073 = vmatpush1.bf16.msra.mxu0 %v8403_v21  ;;  %5582 = vmatprep.subr.bf16.mxu1 %v8408_v43  ;;  %v813_v21 = vld [vmem:[%s11216_s2] sm:$0x3]  ;;  %v821_v43 = vsub.s32 1, %v8661_v42 }
 0x2ed   :  { %6074 = vmatprep.subr.bf16.mxu0 %v8411_v12  ;;  %v818_v12 = vrot.slane %v813_v21, %v817_v20  ;;  %v7139_v42 = vld [vmem:[%s11218_s4] ss:$0 sm:$0xff]  ;;  %s8513_s4 = smov [#allocation2]  }
 0x2ee   :  { %s6346_s10 = sshll.u32 %s8513_s4, 4  ;;  %s6347_s10 = int_to_ptr.vmem [resolvable:$true] %s6346_s10 }
 0x2ef   :  { %5583 = vmatpush1.bf16.msra.mxu1 %v8406_v45  ;;  %v822_v45 = vrot.slane %v813_v21, %v821_v43  ;;  %s8486_s11 = scalar_lea.vmem %s6347_s10, 32  ;;  %p8491_p1 = scmp.lt.s32.totalorder %s6347_s10, %s6347_s10 }
 0x2f0   :  { %6075 = vmatpush1.bf16.msra.mxu0 %v8409_v46  ;;  %5584 = vmatprep.subr.bf16.mxu1 %v8414_v15  ;;  %p8487_p0 = scmp.ne.s32.totalorder %s6347_s10, %s8486_s11  ;;  %p8492_p2 = scmp.lt.s32.totalorder %s8486_s11, %s8486_s11 }
 0x2f1   :  { %6076 = vmatprep.subr.bf16.mxu0 %v8417_v31 }
 0x2f2   :  { %p8493_p3 = por %p8492_p2, %p8491_p1 }
 0x2f3   :  { %5585 = vmatpush1.bf16.msra.mxu1 %v8412_v17 }
 0x2f4   :  { %6077 = vmatpush1.bf16.msra.mxu0 %v8415_v35  ;;  %5586 = vmatprep.subr.bf16.mxu1 %v8420_v47  ;;  %p8494_p4 = pnand %p8493_p3, %p8487_p0 }
 0x2f5   :  { %6078 = vmatprep.subr.bf16.mxu0 %v8423_v48 }
 0x2f7   :  { %5587 = vmatpush1.bf16.msra.mxu1 %v8418_v50 }
 0x2f8   :  { %6079 = vmatpush1.bf16.msra.mxu0 %v8421_v51  ;;  %5588 = vmatprep.subr.bf16.mxu1 %v8426_v53 }
 0x2f9   :  { %6080 = vmatprep.subr.bf16.mxu0 %v8429_v36 }
 0x2fb   :  { %5589 = vmatpush1.bf16.msra.mxu1 %v8424_v39 }
 0x2fc   :  { %6081 = vmatpush1.bf16.msra.mxu0 %v8427_v57  ;;  %5590 = vmatprep.subr.bf16.mxu1 %v8432_v40 }
 0x2fd   :  { %6082 = vmatprep.subr.bf16.mxu0 %v8435_v41 }
 0x2ff   :  { %5591 = vmatpush1.bf16.msra.mxu1 %v8430_v13 }
 0x300   :  { %6083 = vmatpush1.bf16.msra.mxu0 %v8433_v44  ;;  %7156 = vmatprep.subr.bf16.mxu1 %v8460_v1 }
 0x301   :  { %6093 = vmatprep.subr.bf16.mxu0 %v8438_v62 }
 0x302   :  { %5593 = vmatmul.mubr.bf16.vlgmr.msra.gmra.mrb[0].mxu1 %v976_v63 }
 0x303   :  { %6085 = vmatmul.mubr.bf16.vlgmr.msra.gmra.mrb[0].mxu0 %v1123_v55  ;;  %7157 = vmatpush3.bf16.msra.mxu1 %v8461_v22 }
 0x304   :  { %6094 = vmatpush1.bf16.msra.mxu0 %v8436_v38  ;;  %6125 = vmatprep.mubr.bf16.mxu0 %v8511_v54 }
 0x305   :  { %6095 = vmatprep.subr.bf16.mxu0 %v8441_v37  ;;  %7158 = vmatprep.subr.bf16.mxu1 %v8462_v52 }
 0x307   :  { %7159 = vmatpush3.bf16.msra.mxu1 %v8463_v49 }
 0x308   :  { %6096 = vmatpush1.bf16.msra.mxu0 %v8439_v60  ;;  %7160 = vmatprep.subr.bf16.mxu1 %v8464_v59 }
 0x309   :  { %6097 = vmatprep.subr.bf16.mxu0 %v8444_v61 }
 0x30b   :  { %7161 = vmatpush3.bf16.msra.mxu1 %v8465_v11 }
 0x30c   :  { %6098 = vmatpush1.bf16.msra.mxu0 %v8442_v2  ;;  %7162 = vmatprep.subr.bf16.mxu1 %v8466_v24 }
 0x30d   :  { %6099 = vmatprep.subr.bf16.mxu0 %v8447_v3 }
 0x30f   :  { %7163 = vmatpush3.bf16.msra.mxu1 %v8467_v25 }
 0x310   :  { %6100 = vmatpush1.bf16.msra.mxu0 %v8445_v4  ;;  %7164 = vmatprep.subr.bf16.mxu1 %v8468_v26 }
 0x311   :  { %6101 = vmatprep.subr.bf16.mxu0 %v8450_v5 }
 0x313   :  { %7165 = vmatpush3.bf16.msra.mxu1 %v8469_v27 }
 0x314   :  { %6102 = vmatpush1.bf16.msra.mxu0 %v8448_v6  ;;  %7166 = vmatprep.subr.bf16.mxu1 %v8470_v28 }
 0x315   :  { %6103 = vmatprep.subr.bf16.mxu0 %v8453_v7 }
 0x317   :  { %7167 = vmatpush3.bf16.msra.mxu1 %v8471_v29 }
 0x318   :  { %6104 = vmatpush1.bf16.msra.mxu0 %v8451_v8  ;;  %7168 = vmatprep.subr.bf16.mxu1 %v8472_v30 }
 0x319   :  { %6105 = vmatprep.subr.bf16.mxu0 %v8456_v9 }
 0x31b   :  { %7169 = vmatpush3.bf16.msra.mxu1 %v8473_v14 }
 0x31c   :  { %6106 = vmatpush1.bf16.msra.mxu0 %v8454_v10  ;;  %7170 = vmatprep.subr.bf16.mxu1 %v8474_v32 }
 0x31d   :  { %6107 = vmatprep.subr.bf16.mxu0 %v8459_v58 }
 0x31f   :  { %7171 = vmatpush3.bf16.msra.mxu1 %v8475_v33 }
 0x320   :  { %6108 = vmatpush1.bf16.msra.mxu0 %v8457_v18 }
 0x323   :  { %6126 = vmatmul.mubr.bf16.vlgmr.msra.gmra.mrb[0].mxu0 %v1139_v0 }
 0x3d5   :  { %v5594_v34 = vpop.f32.mrb[0].mxu1 }
 0x3d6   :  { %v5596_v16 = vpop.f32.mrb[1].mxu1  ;;  %v7178_v46 = vadd.f32 %v5594_v34, %v818_v12 }
 0x3d7   :  { %v5598_v56 = vpop.f32.mrb[2].mxu1  ;;  %v7180_v15 = vadd.f32 %v5596_v16, %v822_v45 }
 0x3d8   :  { %v5599_v23 = vpop.f32.mrb[3].mxu1 }
 0x3f6   :  { %v6127_v31 = vpop.f32.mrb[0].mxu0 }
 0x3f7   :  { %v7179_v17 = vadd.f32 %v7178_v46, %v6127_v31  ;;  %v6129_v35 = vpop.f32.mrb[1].mxu0 }
 0x3f8   :  { %v7181_v47 = vadd.f32 %v7180_v15, %v6129_v35  ;;  %v6131_v48 = vpop.f32.mrb[2].mxu0 }
 0x3f9   :  { %v6134_v50 = vmax.f32 %v7179_v17, 0.0  ;;  %v6132_v51 = vpop.f32.mrb[3].mxu0 }
 0x3fa   :  { %v6135_v53 = vmax.f32 %v7181_v47, 0.0 }
 0x3fb   :  { %v6136_v39 = vpack.c.bf16 %v6134_v50, %v6134_v50 }
 0x3fc   :  { %v6137_v36 = vpack.c.bf16 %v6135_v53, %v6135_v53 }
 0x3fe   :  { %6305 = vmatprep.mubr.bf16.mxu1 %v6137_v36 }
 0x3ff   :  { %6306 = vmatmul.mubr.bf16.vlgmr.msra.gmra.mrb[4].mxu1 %v6136_v39 }
 0x4d2   :  { %v7172_v57 = vpop.f32.mrb[4].mxu1 }
 0x4d3   :  { %v7173_v40 = vpop.f32.mrb[5].mxu1 }
 0x4d4   :  { %v7174_v41 = vadd.f32 %v7173_v40, %v7172_v57  ;;  %v7175_v13 = vpop.f32.mrb[6].mxu1 }
 0x4d5   :  { %v7176_v44 = vpop.f32.mrb[7].mxu1 }
 0x4d6   :  { %v6308_v62 = vadd.f32 %v7174_v41, %v7139_v42 }
 0x4d8   :  { %v6313_v63 = vmul.f32 %v6308_v62, %v6308_v62 }
 0x4da   :  { %6315 = vrot.lane.b32.xlu0 %v6313_v63, %s8512_s1 }
 0x54c   :  { %v6316_v55 = vpop.permute.xlu0 %6315 }
 0x54d   :  { %v6318_v38 = vadd.f32 %v6316_v55, %v6313_v63 }
 0x54f   :  { %8476 = vrsqrt.f32 %v6318_v38  ;;  %vm6321_vm0 = vcmp.eq.f32.partialorder %v6318_v38, inf  ;;  %v6324_v54 = vand.u32 2147483648, %v6318_v38  ;;  %vm6323_vm2 = vcmp.eq.f32.partialorder %v6318_v38, 0.0 }
 0x559   :  { %v8477_v37 = vpop.eup %8476 }
 0x55a   :  { %v6320_v60 = vmul.f32 %v8477_v37, %v6318_v38 }
 0x55c   :  { %v6322_v61 = vsel %vm6321_vm0, %v6318_v38, %v6320_v60 }
 0x55d   :  { %v6325_v2 = vsel %vm6323_vm2, %v6324_v54, %v6322_v61 }
 0x55e   :  { %v6327_v3 = vsel %vm6326_vm1, %v6325_v2, -inf }
 0x55f   :  { %6328 = vmax.xlane.f32.xlu0 %v6327_v3 }
 0x5ec   :  { %v6329_v4 = vpop.xlane.xlu0 %6328 }
 0x5ed   :  { %v6330_v5 = vsub.f32 %v6325_v2, %v6329_v4 }
 0x5ef   :  { %v6331_v6 = vmul.f32 1.442695, %v6330_v5 }
 0x5f1   :  { %8478 = vpow2.f32 %v6331_v6 }
 0x5fb   :  { %v8479_v7 = vpop.eup %8478 }
 0x5fc   :  { %v6333_v8 = vsel %vm6326_vm1, %v8479_v7, 0.0 }
 0x5fd   :  { %6334 = vadd.xlane.f32.xlu1 %v6333_v8 }
 0x68a   :  { %v6335_v9 = vpop.xlane.xlu1 %6334 }
 0x68b   :  { %8480 = vlog2.f32 %v6335_v9 }
 0x695   :  { %v8481_v10 = vpop.eup %8480 }
 0x696   :  { %v6337_v58 = vmul.f32 0.6931472, %v8481_v10 }
 0x698   :  { %v6338_v18 = vsub.f32 %v6330_v5, %v6337_v58 }
 0x69a   :  { %6339 = vst.msk [vmem:[#allocation2] sm:$0x3] %vm6326_vm1, %v6338_v18 }
 0x69b   :  { %8497 = shalt.err (!%p8494_p4)
}
 0x69c   :  { %s8498_s14 = scalar_lea.hbm %s11219_s5, 32 }
 0x69d   :  { %p8499_p5 = scmp.ne.s32.totalorder %s11219_s5, %s8498_s14  ;;  %p8502_p6 = scmp.lt.u32.totalorder %s8498_s14, %s11219_s5 }
 0x69f   :  { %p8504_p7 = pnand %p8502_p6, %p8499_p5 }
 0x6a1   :  { %8507 = shalt.err (!%p8504_p7)
}
 0x6a2   :  { %6349 = dma.vmem_to_hbm [thread:$0]  %s6347_s10, 32, %s11219_s5, [#allocation3]  }
 0x6a3   :  { %8508 = dma.done.wait [#allocation3], 32  }
 0x6a4   :  { %8509 = vsyncadd [#allocation3], 4294967264 }
 0x6a5   :  { %6353 = vsyncpa [#allocation3], 1 }

</bundles_post_ra>
